<compile_context>
chip_gen: v7x
topology: tpu7x:2x2x1
jax: 0.10.0
libtpu: 0.0.40
codegen_flags: <defaults>
</compile_context>

<pallas_src>
import functools

import jax
import jax.numpy as jnp
from jax import lax
from jax.experimental import pallas as pl
from jax.experimental.pallas import tpu as pltpu

EPS = 1e-5


@functools.lru_cache(maxsize=None)
def _vmem_limit():
    """Generation-aware scoped-VMEM budget, leaving headroom for the
    double-buffered BlockSpec streams: ~48 MiB on v7x (64 MiB physical),
    ~96 MiB on v5e/v6e (128 MiB physical)."""
    try:
        cap = pltpu.get_tpu_info().vmem_capacity_bytes
    except Exception:  # conservative fallback if the query is unavailable
        cap = 64 * 1024 * 1024
    return int(min(cap * 3 // 4, 100 * 1024 * 1024))


# ----------------------------------------------------------------------------
# Kernel A/B: fused [optional bn+relu] -> 3x3 conv (stride 1, pad 1, no bias)
#             -> per-block BN partials (mean, centered sum of squares).
# One (Cout tile, batch chunk of nb images) per grid step. The im2col patch is
# built from a bf16 zero-halo VMEM scratch and contracted with ONE MXU matmul
# of depth K = 9*Cin (bf16 x bf16 -> f32 accumulate).
# ----------------------------------------------------------------------------
def _conv3x3_fused_kernel(x_ref, sc_ref, bi_ref, w_ref,
                          y_ref, mean_ref, m2_ref, xp_ref, *, act, nb):
    # x_ref  : (nb, H, W, Cin)     bf16 input tile (nb batch images)
    # sc/bi  : (1, 1, Cin)         f32 folded BN scale/bias for the input
    # w_ref  : (9*Cin, Ct)         bf16 weights, HWIO flattened (kh,kw,cin)-major
    # y_ref  : (nb, H, W, Ct)      bf16 conv output tile
    # mean   : (1, Ct)             f32 per-block mean of the f32 accumulator
    # m2     : (1, Ct)             f32 per-block centered sum of squares
    # xp_ref : (nb, H+2, W+9, Cin) bf16 zero-halo scratch; interior at rows
    #          1..H, cols 8..W+7 (sublane-aligned interior store); cols 0..6
    #          are never read (alignment padding only).
    _, H, W, Ct = y_ref.shape
    Cin = x_ref.shape[-1]
    M = nb * H * W

    v = x_ref[...].astype(jnp.float32)
    if act:
        # Fused bn1 + ReLU. The conv halo must stay exactly 0 (padding applies
        # to the *activated* map), which the zeroed strips below provide.
        v = jnp.maximum(v * sc_ref[...] + bi_ref[...], 0.0)
    v = v.astype(jnp.bfloat16)

    # Zero ONLY the halo strips: the interior is fully overwritten every step
    # and the dead alignment columns 0..6 are never read. This replaces the
    # previous full-tile f32 zero store.
    zr = jnp.zeros((nb, 1, W + 9, Cin), jnp.bfloat16)
    zc = jnp.zeros((nb, H + 2, 1, Cin), jnp.bfloat16)
    xp_ref[:, 0:1, :, :] = zr
    xp_ref[:, H + 1:H + 2, :, :] = zr
    xp_ref[:, :, 7:8, :] = zc
    xp_ref[:, :, W + 8:W + 9, :] = zc
    xp_ref[:, 1:H + 1, 8:W + 8, :] = v

    # im2col in bf16: nine shifted views per image, concatenated along the
    # contraction axis, then ONE matmul with K = 9*Cin (good MXU K-occupancy).
    # TODO(synk): a 9-tap accumulate variant would exploit v7x's MRB in-place
    # accumulation and skip the lane-axis concatenate entirely.
    per_img = []
    for i in range(nb):
        taps = [xp_ref[i, kh:kh + H, kw + 7:kw + 7 + W, :].reshape(H * W, Cin)
                for kh in range(3) for kw in range(3)]
        per_img.append(jnp.concatenate(taps, axis=-1))          # (H*W, 9*Cin)
    patch = per_img[0] if nb == 1 else jnp.concatenate(per_img, axis=0)

    acc = jnp.dot(patch, w_ref[...],
                  preferred_element_type=jnp.float32)           # (M, Ct) f32

    y_ref[...] = acc.reshape(nb, H, W, Ct).astype(y_ref.dtype)

    # BN partials from the f32 accumulator: per-block mean + centered M2
    # (numerically robust vs. raw sum / sum-of-squares).
    mean = jnp.sum(acc, axis=0, keepdims=True) * (1.0 / M)
    d = acc - mean
    mean_ref[...] = mean
    m2_ref[...] = jnp.sum(d * d, axis=0, keepdims=True)


def conv3x3_bn_stats(x_nhwc, w_hwio, scale=None, bias=None, *, act=False):
    """3x3 SAME conv (no bias, bf16 MXU operands, f32 accumulate) + per-block
    BN partials. If act=True, relu(x*scale + bias) is applied to the input
    tile inside the kernel before the convolution.

    Returns (conv bf16 (N,H,W,Cout), mean (NB,1,Cout), m2 (NB,1,Cout),
    per-block element count)."""
    N, H, W, Cin = x_nhwc.shape
    Cout = w_hwio.shape[-1]

    # Weight residency: standard ResNet widths (Cout <= 512) keep the whole
    # bf16 weight VMEM-resident (<= 4.5 MiB) and it is fetched once (constant
    # block index). Wider layers tile Cout on the OUTER grid axis so a weight
    # tile stays resident across the whole batch sweep.
    cout_tile = Cout
    if Cout > 512:
        for cand in (512, 256, 128):
            if Cout % cand == 0:
                cout_tile = cand
                break
    nj = Cout // cout_tile

    # Pack images per grid step so the matmul M-dim >= 256 at small spatial
    # sizes (7x7 / 14x14 stages); nb must divide N.
    nb = 1
    if H * W < 256:
        nb = min(N, -(-256 // (H * W)))
        while N % nb:
            nb -= 1
    NB = N // nb

    w2d = w_hwio.reshape(9 * Cin, Cout).astype(jnp.bfloat16)
    if scale is None:
        scale = jnp.ones((1, 1, Cin), jnp.float32)
        bias = jnp.zeros((1, 1, Cin), jnp.float32)

    x_nhwc = x_nhwc.astype(jnp.bfloat16)   # no-op for already-bf16 activations

    cost = pl.CostEstimate(
        flops=int(2 * N * H * W * 9 * Cin * Cout),
        transcendentals=0,
        bytes_accessed=int(x_nhwc.size * 2 + w2d.size * 2
                           + N * H * W * Cout * 2 + 2 * NB * Cout * 4))

    kernel = functools.partial(_conv3x3_fused_kernel, act=act, nb=nb)
    conv, mean_b, m2_b = pl.pallas_call(
        kernel,
        out_shape=(jax.ShapeDtypeStruct((N, H, W, Cout), jnp.bfloat16),
                   jax.ShapeDtypeStruct((NB, 1, Cout), jnp.float32),
                   jax.ShapeDtypeStruct((NB, 1, Cout), jnp.float32)),
        grid=(nj, NB),   # Cout-tile axis OUTER -> weight tile resident over batch
        in_specs=[
            pl.BlockSpec((nb, H, W, Cin), lambda j, n: (n, 0, 0, 0)),
            pl.BlockSpec((1, 1, Cin), lambda j, n: (0, 0, 0)),
            pl.BlockSpec((1, 1, Cin), lambda j, n: (0, 0, 0)),
            pl.BlockSpec((9 * Cin, cout_tile), lambda j, n: (0, j)),
        ],
        out_specs=(
            pl.BlockSpec((nb, H, W, cout_tile), lambda j, n: (n, 0, 0, j)),
            pl.BlockSpec((None, 1, cout_tile), lambda j, n: (n, 0, j)),
            pl.BlockSpec((None, 1, cout_tile), lambda j, n: (n, 0, j)),
        ),
        scratch_shapes=[pltpu.VMEM((nb, H + 2, W + 9, Cin), jnp.bfloat16)],
        compiler_params=pltpu.CompilerParams(
            dimension_semantics=("parallel", "parallel"),
            vmem_limit_bytes=_vmem_limit()),
        cost_estimate=cost,
    )(x_nhwc, scale, bias, w2d)
    return conv, mean_b, m2_b, float(nb * H * W)


# ----------------------------------------------------------------------------
# Kernel C: bn2 + residual add + ReLU on a lane-dense (rows, W*C) slab.
# ----------------------------------------------------------------------------
def _bn_add_relu_kernel(x_ref, sc_ref, bi_ref, res_ref, o_ref):
    y = (x_ref[...].astype(jnp.float32) * sc_ref[...] + bi_ref[...]
         + res_ref[...].astype(jnp.float32))
    o_ref[...] = jnp.maximum(y, 0.0).astype(o_ref.dtype)


def bn_add_relu(c2_nhwc, scale, bias, residual_nhwc, out_dtype):
    N, H, W, C = c2_nhwc.shape
    R, L = N * H, W * C
    # NHWC is contiguous, so these reshapes are free views; the slab keeps the
    # last dim a multiple of 128 (W*C) for unmasked, lane-dense loads/stores.
    x2 = c2_nhwc.reshape(R, L)
    r2 = residual_nhwc.reshape(R, L)
    sc = jnp.tile(scale.reshape(1, C), (1, W))   # per-channel, tiled across W
    bi = jnp.tile(bias.reshape(1, C), (1, W))

    tr = R if R <= 512 else 512                  # ~512-row tiles -> pipelined,
    if tr != R:                                  # enough steps for 2 TCs (v7x)
        tr = max(8, (tr // 8) * 8)
    out = pl.pallas_call(
        _bn_add_relu_kernel,
        out_shape=jax.ShapeDtypeStruct((R, L), out_dtype),
        grid=(pl.cdiv(R, tr),),
        in_specs=[
            pl.BlockSpec((tr, L), lambda r: (r, 0)),
            pl.BlockSpec((1, L), lambda r: (0, 0)),
            pl.BlockSpec((1, L), lambda r: (0, 0)),
            pl.BlockSpec((tr, L), lambda r: (r, 0)),
        ],
        out_specs=pl.BlockSpec((tr, L), lambda r: (r, 0)),
        compiler_params=pltpu.CompilerParams(
            dimension_semantics=("parallel",),
            vmem_limit_bytes=_vmem_limit()),
    )(x2, sc, bi, r2)
    return out.reshape(N, H, W, C)


# ----------------------------------------------------------------------------
# BasicBlock forward (stride=1, downsample=None, groups=1)
# ----------------------------------------------------------------------------
def _fold_bn(gamma, beta, mean_b, m2_b, count_b):
    """Merge per-block (mean, centered M2) partials (Chan-style merge with
    equal block counts) into biased batch statistics, then fold gamma/beta
    into per-channel scale/bias."""
    nb_blocks = mean_b.shape[0]
    total = count_b * nb_blocks
    mean = jnp.mean(mean_b, axis=0)                                 # (1, C)
    m2 = jnp.sum(m2_b, axis=0) + count_b * jnp.sum(
        jnp.square(mean_b - mean), axis=0)                          # (1, C)
    var = m2 / total                                # biased, as in BN training
    scale = gamma.reshape(1, 1, -1) * lax.rsqrt(var.reshape(1, 1, -1) + EPS)
    bias = beta.reshape(1, 1, -1) - mean.reshape(1, 1, -1) * scale
    return scale, bias


def basic_block_forward_nhwc(x_nhwc, params, out_dtype=None):
    if out_dtype is None:
        out_dtype = x_nhwc.dtype
    # bf16 activations at every kernel boundary (the MXU consumes bf16 anyway;
    # halves the x / residual / c1 / c2 HBM traffic). BN statistics are still
    # taken from the f32 accumulators inside the conv kernels.
    xb = x_nhwc.astype(jnp.bfloat16)

    # conv1 + BN1 partials (one pass over x; c1 written once, as bf16).
    c1, m1, q1, cnt1 = conv3x3_bn_stats(xb, params["w1"], act=False)
    scale1, bias1 = _fold_bn(params["g1"], params["b1"], m1, q1, cnt1)

    # bn1 + relu fused into conv2 + BN2 partials (h1 never hits HBM).
    c2, m2_, q2, cnt2 = conv3x3_bn_stats(c1, params["w2"], scale1, bias1,
                                         act=True)
    scale2, bias2 = _fold_bn(params["g2"], params["b2"], m2_, q2, cnt2)

    # bn2 + residual add + relu, lane-dense.
    return bn_add_relu(c2, scale2, bias2, xb, out_dtype)


def basic_block_forward(x_nchw, params):
    # NCHW <-> NHWC only at the module boundary; the bf16 cast fuses into the
    # transpose pass. A full network would stay NHWC/bf16 end-to-end.
    x = jnp.transpose(x_nchw, (0, 2, 3, 1))
    out = basic_block_forward_nhwc(x, params, out_dtype=x_nchw.dtype)
    return jnp.transpose(out, (0, 3, 1, 2))


# ----------------------------------------------------------------------------
# Pure-JAX reference (same bf16 MXU-operand / f32-accumulate policy, but f32
# intermediates and f32 residual).
# ----------------------------------------------------------------------------
def basic_block_ref(x_nchw, params):
    x = jnp.transpose(x_nchw, (0, 2, 3, 1))

    def conv(h, w):
        return lax.conv_general_dilated(
            h.astype(jnp.bfloat16), w.astype(jnp.bfloat16),
            window_strides=(1, 1), padding="SAME",
            dimension_numbers=("NHWC", "HWIO", "NHWC"),
            preferred_element_type=jnp.float32)

    def bn(h, gamma, beta):
        mean = jnp.mean(h, axis=(0, 1, 2))
        var = jnp.var(h, axis=(0, 1, 2))
        return gamma.reshape(-1) * (h - mean) / jnp.sqrt(var + EPS) \
            + beta.reshape(-1)

    out = jnp.maximum(bn(conv(x, params["w1"]), params["g1"], params["b1"]), 0.)
    out = bn(conv(out, params["w2"]), params["g2"], params["b2"]) + x
    return jnp.transpose(jnp.maximum(out, 0.), (0, 3, 1, 2))


if __name__ == "__main__":
    # N=2, inplanes=planes=8, H=W=16 (stride=1, no downsample => inplanes==planes).
    N, C, H, W = 2, 8, 16, 16
    key = jax.random.PRNGKey(0)
    kx, kw1, kw2, kg1, kb1, kg2, kb2 = jax.random.split(key, 7)

    x = jax.random.normal(kx, (N, C, H, W), jnp.float32)

    # Conv weights in HWIO layout (PyTorch stores OIHW; values are synthetic).
    params = {
        "w1": jax.random.normal(kw1, (3, 3, C, C), jnp.float32) * 0.1,
        "w2": jax.random.normal(kw2, (3, 3, C, C), jnp.float32) * 0.1,
        "g1": 1.0 + 0.1 * jax.random.normal(kg1, (1, 1, C), jnp.float32),
        "b1": 0.1 * jax.random.normal(kb1, (1, 1, C), jnp.float32),
        "g2": 1.0 + 0.1 * jax.random.normal(kg2, (1, 1, C), jnp.float32),
        "b2": 0.1 * jax.random.normal(kb2, (1, 1, C), jnp.float32),
    }

    out = jax.block_until_ready(jax.jit(basic_block_forward)(x, params))
    ref = jax.block_until_ready(basic_block_ref(x, params))

    assert out.shape == (N, C, H, W)
    err = float(jnp.max(jnp.abs(out - ref)))
    # Tolerance reflects the shared bf16 MXU-operand policy plus ~1 bf16 ulp
    # per stage from storing the inter-kernel activations (c1, c2) and the
    # residual stream in bf16 (deliberate HBM-traffic optimization).
    assert jnp.allclose(out, ref, atol=3e-2, rtol=2e-2), err

    print("KERNEL_OK")
</pallas_src>

<mosaic_0001>
module attributes {stable_mosaic.version = 11 : i64} {
  func.func @_conv3x3_fused_kernel(%arg0: i32, %arg1: i32, %arg2: memref<1x16x16x8xbf16, #tpu.memory_space<vmem>>, %arg3: memref<1x1x8xf32, #tpu.memory_space<vmem>>, %arg4: memref<1x1x8xf32, #tpu.memory_space<vmem>>, %arg5: memref<72x8xbf16, #tpu.memory_space<vmem>>, %arg6: memref<1x16x16x8xbf16, #tpu.memory_space<vmem>>, %arg7: memref<1x1x8xf32, #tpu.memory_space<vmem>>, %arg8: memref<1x1x8xf32, #tpu.memory_space<vmem>>, %arg9: memref<1x18x25x8xbf16, #tpu.memory_space<vmem>>) attributes {dimension_semantics = [#tpu.dimension_semantics<parallel>, #tpu.dimension_semantics<parallel>], iteration_bounds = array<i64: 1, 2>, scalar_prefetch = 0 : i64, scratch_operands = 1 : i64, tpu.core_type = #tpu.core_type<tc>, window_params = [{transform_indices = @transform_0, window_bounds = array<i64: 1, 16, 16, 8>}, {pipeline_mode = #tpu.pipeline_mode<synchronous>, transform_indices = @transform_1, window_bounds = array<i64: 1, 1, 8>}, {pipeline_mode = #tpu.pipeline_mode<synchronous>, transform_indices = @transform_2, window_bounds = array<i64: 1, 1, 8>}, {transform_indices = @transform_3, window_bounds = array<i64: 72, 8>}, {transform_indices = @transform_4, window_bounds = array<i64: 1, 16, 16, 8>}, {transform_indices = @transform_5, window_bounds = array<i64: 1, 1, 8>}, {transform_indices = @transform_6, window_bounds = array<i64: 1, 1, 8>}]} {
    %c0 = arith.constant 0 : index
    %c0_0 = arith.constant 0 : index
    %c0_1 = arith.constant 0 : index
    %c0_2 = arith.constant 0 : index
    %0 = vector.load %arg2[%c0, %c0_0, %c0_1, %c0_2] : memref<1x16x16x8xbf16, #tpu.memory_space<vmem>>, vector<1x16x16x8xbf16>
    %1 = arith.extf %0 : vector<1x16x16x8xbf16> to vector<1x16x16x8xf32>
    %2 = arith.truncf %1 : vector<1x16x16x8xf32> to vector<1x16x16x8xbf16>
    %cst = arith.constant 0.000000e+00 : bf16
    %3 = vector.broadcast %cst : bf16 to vector<1x1x25x8xbf16>
    %cst_3 = arith.constant 0.000000e+00 : bf16
    %4 = vector.broadcast %cst_3 : bf16 to vector<1x18x1x8xbf16>
    %c0_4 = arith.constant 0 : index
    %c0_5 = arith.constant 0 : index
    %c0_6 = arith.constant 0 : index
    %c0_7 = arith.constant 0 : index
    %5 = vector.load %arg9[%c0_4, %c0_5, %c0_6, %c0_7] : memref<1x18x25x8xbf16, #tpu.memory_space<vmem>>, vector<1x1x25x8xbf16>
    tpu.vector_store %arg9[%c0_4, %c0_5, %c0_6, %c0_7], %3 {strides = array<i32>} : memref<1x18x25x8xbf16, #tpu.memory_space<vmem>>, vector<1x1x25x8xbf16>,
    %c0_8 = arith.constant 0 : index
    %c17 = arith.constant 17 : index
    %c0_9 = arith.constant 0 : index
    %c0_10 = arith.constant 0 : index
    %6 = vector.load %arg9[%c0_8, %c17, %c0_9, %c0_10] : memref<1x18x25x8xbf16, #tpu.memory_space<vmem>>, vector<1x1x25x8xbf16>
    tpu.vector_store %arg9[%c0_8, %c17, %c0_9, %c0_10], %3 {strides = array<i32>} : memref<1x18x25x8xbf16, #tpu.memory_space<vmem>>, vector<1x1x25x8xbf16>,
    %c0_11 = arith.constant 0 : index
    %c0_12 = arith.constant 0 : index
    %c7 = arith.constant 7 : index
    %c0_13 = arith.constant 0 : index
    %7 = vector.load %arg9[%c0_11, %c0_12, %c7, %c0_13] : memref<1x18x25x8xbf16, #tpu.memory_space<vmem>>, vector<1x18x1x8xbf16>
    tpu.vector_store %arg9[%c0_11, %c0_12, %c7, %c0_13], %4 {strides = array<i32>} : memref<1x18x25x8xbf16, #tpu.memory_space<vmem>>, vector<1x18x1x8xbf16>,
    %c0_14 = arith.constant 0 : index
    %c0_15 = arith.constant 0 : index
    %c24 = arith.constant 24 : index
    %c0_16 = arith.constant 0 : index
    %8 = vector.load %arg9[%c0_14, %c0_15, %c24, %c0_16] : memref<1x18x25x8xbf16, #tpu.memory_space<vmem>>, vector<1x18x1x8xbf16>
    tpu.vector_store %arg9[%c0_14, %c0_15, %c24, %c0_16], %4 {strides = array<i32>} : memref<1x18x25x8xbf16, #tpu.memory_space<vmem>>, vector<1x18x1x8xbf16>,
    %c0_17 = arith.constant 0 : index
    %c1 = arith.constant 1 : index
    %c8 = arith.constant 8 : index
    %c0_18 = arith.constant 0 : index
    %9 = vector.load %arg9[%c0_17, %c1, %c8, %c0_18] : memref<1x18x25x8xbf16, #tpu.memory_space<vmem>>, vector<1x16x16x8xbf16>
    tpu.vector_store %arg9[%c0_17, %c1, %c8, %c0_18], %2 {strides = array<i32>} : memref<1x18x25x8xbf16, #tpu.memory_space<vmem>>, vector<1x16x16x8xbf16>,
    %c0_19 = arith.constant 0 : index
    %c0_20 = arith.constant 0 : index
    %c7_21 = arith.constant 7 : index
    %c0_22 = arith.constant 0 : index
    %10 = vector.load %arg9[%c0_19, %c0_20, %c7_21, %c0_22] : memref<1x18x25x8xbf16, #tpu.memory_space<vmem>>, vector<1x16x16x8xbf16>
    %11 = vector.shape_cast %10 : vector<1x16x16x8xbf16> to vector<16x16x8xbf16>
    %12 = vector.shape_cast %11 : vector<16x16x8xbf16> to vector<256x8xbf16>
    %c0_23 = arith.constant 0 : index
    %c0_24 = arith.constant 0 : index
    %c8_25 = arith.constant 8 : index
    %c0_26 = arith.constant 0 : index
    %13 = vector.load %arg9[%c0_23, %c0_24, %c8_25, %c0_26] : memref<1x18x25x8xbf16, #tpu.memory_space<vmem>>, vector<1x16x16x8xbf16>
    %14 = vector.shape_cast %13 : vector<1x16x16x8xbf16> to vector<16x16x8xbf16>
    %15 = vector.shape_cast %14 : vector<16x16x8xbf16> to vector<256x8xbf16>
    %c0_27 = arith.constant 0 : index
    %c0_28 = arith.constant 0 : index
    %c9 = arith.constant 9 : index
    %c0_29 = arith.constant 0 : index
    %16 = vector.load %arg9[%c0_27, %c0_28, %c9, %c0_29] : memref<1x18x25x8xbf16, #tpu.memory_space<vmem>>, vector<1x16x16x8xbf16>
    %17 = vector.shape_cast %16 : vector<1x16x16x8xbf16> to vector<16x16x8xbf16>
    %18 = vector.shape_cast %17 : vector<16x16x8xbf16> to vector<256x8xbf16>
    %c0_30 = arith.constant 0 : index
    %c1_31 = arith.constant 1 : index
    %c7_32 = arith.constant 7 : index
    %c0_33 = arith.constant 0 : index
    %19 = vector.load %arg9[%c0_30, %c1_31, %c7_32, %c0_33] : memref<1x18x25x8xbf16, #tpu.memory_space<vmem>>, vector<1x16x16x8xbf16>
    %20 = vector.shape_cast %19 : vector<1x16x16x8xbf16> to vector<16x16x8xbf16>
    %21 = vector.shape_cast %20 : vector<16x16x8xbf16> to vector<256x8xbf16>
    %c0_34 = arith.constant 0 : index
    %c1_35 = arith.constant 1 : index
    %c8_36 = arith.constant 8 : index
    %c0_37 = arith.constant 0 : index
    %22 = vector.load %arg9[%c0_34, %c1_35, %c8_36, %c0_37] : memref<1x18x25x8xbf16, #tpu.memory_space<vmem>>, vector<1x16x16x8xbf16>
    %23 = vector.shape_cast %22 : vector<1x16x16x8xbf16> to vector<16x16x8xbf16>
    %24 = vector.shape_cast %23 : vector<16x16x8xbf16> to vector<256x8xbf16>
    %c0_38 = arith.constant 0 : index
    %c1_39 = arith.constant 1 : index
    %c9_40 = arith.constant 9 : index
    %c0_41 = arith.constant 0 : index
    %25 = vector.load %arg9[%c0_38, %c1_39, %c9_40, %c0_41] : memref<1x18x25x8xbf16, #tpu.memory_space<vmem>>, vector<1x16x16x8xbf16>
    %26 = vector.shape_cast %25 : vector<1x16x16x8xbf16> to vector<16x16x8xbf16>
    %27 = vector.shape_cast %26 : vector<16x16x8xbf16> to vector<256x8xbf16>
    %c0_42 = arith.constant 0 : index
    %c2 = arith.constant 2 : index
    %c7_43 = arith.constant 7 : index
    %c0_44 = arith.constant 0 : index
    %28 = vector.load %arg9[%c0_42, %c2, %c7_43, %c0_44] : memref<1x18x25x8xbf16, #tpu.memory_space<vmem>>, vector<1x16x16x8xbf16>
    %29 = vector.shape_cast %28 : vector<1x16x16x8xbf16> to vector<16x16x8xbf16>
    %30 = vector.shape_cast %29 : vector<16x16x8xbf16> to vector<256x8xbf16>
    %c0_45 = arith.constant 0 : index
    %c2_46 = arith.constant 2 : index
    %c8_47 = arith.constant 8 : index
    %c0_48 = arith.constant 0 : index
    %31 = vector.load %arg9[%c0_45, %c2_46, %c8_47, %c0_48] : memref<1x18x25x8xbf16, #tpu.memory_space<vmem>>, vector<1x16x16x8xbf16>
    %32 = vector.shape_cast %31 : vector<1x16x16x8xbf16> to vector<16x16x8xbf16>
    %33 = vector.shape_cast %32 : vector<16x16x8xbf16> to vector<256x8xbf16>
    %c0_49 = arith.constant 0 : index
    %c2_50 = arith.constant 2 : index
    %c9_51 = arith.constant 9 : index
    %c0_52 = arith.constant 0 : index
    %34 = vector.load %arg9[%c0_49, %c2_50, %c9_51, %c0_52] : memref<1x18x25x8xbf16, #tpu.memory_space<vmem>>, vector<1x16x16x8xbf16>
    %35 = vector.shape_cast %34 : vector<1x16x16x8xbf16> to vector<16x16x8xbf16>
    %36 = vector.shape_cast %35 : vector<16x16x8xbf16> to vector<256x8xbf16>
    %37 = tpu.concatenate %12, %15, %18, %21, %24, %27, %30, %33, %36 in 1 : vector<256x8xbf16>, vector<256x8xbf16>, vector<256x8xbf16>, vector<256x8xbf16>, vector<256x8xbf16>, vector<256x8xbf16>, vector<256x8xbf16>, vector<256x8xbf16>, vector<256x8xbf16> -> vector<256x72xbf16>
    %c0_53 = arith.constant 0 : index
    %c0_54 = arith.constant 0 : index
    %38 = vector.load %arg5[%c0_53, %c0_54] : memref<72x8xbf16, #tpu.memory_space<vmem>>, vector<72x8xbf16>
    %cst_55 = arith.constant dense<0.000000e+00> : vector<256x8xf32>
    %39 = tpu.matmul %37, %38, %cst_55 {dimension_numbers = #tpu.dot_dimension_numbers<[1], [0], [0], [1], [0, 0, 1, 1], [], []>} : vector<256x72xbf16>, vector<72x8xbf16>, vector<256x8xf32> -> vector<256x8xf32>
    %40 = vector.shape_cast %39 : vector<256x8xf32> to vector<1x16x16x8xf32>
    %41 = arith.truncf %40 : vector<1x16x16x8xf32> to vector<1x16x16x8xbf16>
    %c0_56 = arith.constant 0 : index
    %c0_57 = arith.constant 0 : index
    %c0_58 = arith.constant 0 : index
    %c0_59 = arith.constant 0 : index
    %42 = vector.load %arg6[%c0_56, %c0_57, %c0_58, %c0_59] : memref<1x16x16x8xbf16, #tpu.memory_space<vmem>>, vector<1x16x16x8xbf16>
    tpu.vector_store %arg6[%c0_56, %c0_57, %c0_58, %c0_59], %41 {strides = array<i32>} : memref<1x16x16x8xbf16, #tpu.memory_space<vmem>>, vector<1x16x16x8xbf16>,
    %cst_60 = arith.constant dense<0.000000e+00> : vector<8xf32>
    %43 = vector.multi_reduction <add>, %39, %cst_60 [0] : vector<256x8xf32> to vector<8xf32>
    %44 = vector.shape_cast %43 : vector<8xf32> to vector<1x8xf32>
    %cst_61 = arith.constant 3.906250e-03 : f32
    %45 = vector.broadcast %cst_61 : f32 to vector<1x8xf32>
    %46 = arith.mulf %44, %45 : vector<1x8xf32>
    %47 = vector.broadcast %46 : vector<1x8xf32> to vector<256x8xf32>
    %48 = arith.subf %39, %47 : vector<256x8xf32>
    %c0_62 = arith.constant 0 : index
    %c0_63 = arith.constant 0 : index
    %c0_64 = arith.constant 0 : index
    %49 = vector.load %arg7[%c0_62, %c0_63, %c0_64] : memref<1x1x8xf32, #tpu.memory_space<vmem>>, vector<1x1x8xf32>
    %50 = vector.shape_cast %49 : vector<1x1x8xf32> to vector<1x8xf32>
    %51 = vector.shape_cast %46 : vector<1x8xf32> to vector<1x1x8xf32>
    tpu.vector_store %arg7[%c0_62, %c0_63, %c0_64], %51 {strides = array<i32>} : memref<1x1x8xf32, #tpu.memory_space<vmem>>, vector<1x1x8xf32>,
    %52 = arith.mulf %48, %48 : vector<256x8xf32>
    %cst_65 = arith.constant dense<0.000000e+00> : vector<8xf32>
    %53 = vector.multi_reduction <add>, %52, %cst_65 [0] : vector<256x8xf32> to vector<8xf32>
    %54 = vector.shape_cast %53 : vector<8xf32> to vector<1x8xf32>
    %c0_66 = arith.constant 0 : index
    %c0_67 = arith.constant 0 : index
    %c0_68 = arith.constant 0 : index
    %55 = vector.load %arg8[%c0_66, %c0_67, %c0_68] : memref<1x1x8xf32, #tpu.memory_space<vmem>>, vector<1x1x8xf32>
    %56 = vector.shape_cast %55 : vector<1x1x8xf32> to vector<1x8xf32>
    %57 = vector.shape_cast %54 : vector<1x8xf32> to vector<1x1x8xf32>
    tpu.vector_store %arg8[%c0_66, %c0_67, %c0_68], %57 {strides = array<i32>} : memref<1x1x8xf32, #tpu.memory_space<vmem>>, vector<1x1x8xf32>,
    return
  }
  func.func @transform_0(%arg0: i32, %arg1: i32) -> (i32, i32, i32, i32) {
    %c0_i32 = arith.constant 0 : i32
    %c0_i32_0 = arith.constant 0 : i32
    %c0_i32_1 = arith.constant 0 : i32
    %c0_i32_2 = arith.constant 0 : i32
    return %arg1, %c0_i32, %c0_i32_0, %c0_i32_1 : i32, i32, i32, i32
  }
  func.func @transform_1(%arg0: i32, %arg1: i32) -> (i32, i32, i32) {
    %c0_i32 = arith.constant 0 : i32
    %c0_i32_0 = arith.constant 0 : i32
    %c0_i32_1 = arith.constant 0 : i32
    %c0_i32_2 = arith.constant 0 : i32
    return %c0_i32, %c0_i32_0, %c0_i32_1 : i32, i32, i32
  }
  func.func @transform_2(%arg0: i32, %arg1: i32) -> (i32, i32, i32) {
    %c0_i32 = arith.constant 0 : i32
    %c0_i32_0 = arith.constant 0 : i32
    %c0_i32_1 = arith.constant 0 : i32
    %c0_i32_2 = arith.constant 0 : i32
    return %c0_i32, %c0_i32_0, %c0_i32_1 : i32, i32, i32
  }
  func.func @transform_3(%arg0: i32, %arg1: i32) -> (i32, i32) {
    %c0_i32 = arith.constant 0 : i32
    %c0_i32_0 = arith.constant 0 : i32
    return %c0_i32, %arg0 : i32, i32
  }
  func.func @transform_4(%arg0: i32, %arg1: i32) -> (i32, i32, i32, i32) {
    %c0_i32 = arith.constant 0 : i32
    %c0_i32_0 = arith.constant 0 : i32
    %c0_i32_1 = arith.constant 0 : i32
    return %arg1, %c0_i32, %c0_i32_0, %arg0 : i32, i32, i32, i32
  }
  func.func @transform_5(%arg0: i32, %arg1: i32) -> (i32, i32, i32) {
    %c0_i32 = arith.constant 0 : i32
    %c0_i32_0 = arith.constant 0 : i32
    return %arg1, %c0_i32, %arg0 : i32, i32, i32
  }
  func.func @transform_6(%arg0: i32, %arg1: i32) -> (i32, i32, i32) {
    %c0_i32 = arith.constant 0 : i32
    %c0_i32_0 = arith.constant 0 : i32
    return %arg1, %c0_i32, %arg0 : i32, i32, i32
  }
}

module attributes {stable_mosaic.version = 11 : i64} {
  func.func @_conv3x3_fused_kernel(%arg0: i32, %arg1: i32, %arg2: memref<1x16x16x8xbf16, #tpu.memory_space<vmem>>, %arg3: memref<1x1x8xf32, #tpu.memory_space<vmem>>, %arg4: memref<1x1x8xf32, #tpu.memory_space<vmem>>, %arg5: memref<72x8xbf16, #tpu.memory_space<vmem>>, %arg6: memref<1x16x16x8xbf16, #tpu.memory_space<vmem>>, %arg7: memref<1x1x8xf32, #tpu.memory_space<vmem>>, %arg8: memref<1x1x8xf32, #tpu.memory_space<vmem>>, %arg9: memref<1x18x25x8xbf16, #tpu.memory_space<vmem>>) attributes {dimension_semantics = [#tpu.dimension_semantics<parallel>, #tpu.dimension_semantics<parallel>], iteration_bounds = array<i64: 1, 2>, scalar_prefetch = 0 : i64, scratch_operands = 1 : i64, tpu.core_type = #tpu.core_type<tc>, window_params = [{transform_indices = @transform_0, window_bounds = array<i64: 1, 16, 16, 8>}, {pipeline_mode = #tpu.pipeline_mode<synchronous>, transform_indices = @transform_1, window_bounds = array<i64: 1, 1, 8>}, {pipeline_mode = #tpu.pipeline_mode<synchronous>, transform_indices = @transform_2, window_bounds = array<i64: 1, 1, 8>}, {transform_indices = @transform_3, window_bounds = array<i64: 72, 8>}, {transform_indices = @transform_4, window_bounds = array<i64: 1, 16, 16, 8>}, {transform_indices = @transform_5, window_bounds = array<i64: 1, 1, 8>}, {transform_indices = @transform_6, window_bounds = array<i64: 1, 1, 8>}]} {
    %c0 = arith.constant 0 : index
    %c0_0 = arith.constant 0 : index
    %c0_1 = arith.constant 0 : index
    %c0_2 = arith.constant 0 : index
    %0 = vector.load %arg2[%c0, %c0_0, %c0_1, %c0_2] : memref<1x16x16x8xbf16, #tpu.memory_space<vmem>>, vector<1x16x16x8xbf16>
    %1 = arith.extf %0 : vector<1x16x16x8xbf16> to vector<1x16x16x8xf32>
    %c0_3 = arith.constant 0 : index
    %c0_4 = arith.constant 0 : index
    %c0_5 = arith.constant 0 : index
    %2 = vector.load %arg3[%c0_3, %c0_4, %c0_5] : memref<1x1x8xf32, #tpu.memory_space<vmem>>, vector<1x1x8xf32>
    %3 = vector.shape_cast %2 : vector<1x1x8xf32> to vector<1x1x1x8xf32>
    %4 = vector.broadcast %3 : vector<1x1x1x8xf32> to vector<1x16x16x8xf32>
    %5 = arith.mulf %1, %4 : vector<1x16x16x8xf32>
    %c0_6 = arith.constant 0 : index
    %c0_7 = arith.constant 0 : index
    %c0_8 = arith.constant 0 : index
    %6 = vector.load %arg4[%c0_6, %c0_7, %c0_8] : memref<1x1x8xf32, #tpu.memory_space<vmem>>, vector<1x1x8xf32>
    %7 = vector.shape_cast %6 : vector<1x1x8xf32> to vector<1x1x1x8xf32>
    %8 = vector.broadcast %7 : vector<1x1x1x8xf32> to vector<1x16x16x8xf32>
    %9 = arith.addf %5, %8 : vector<1x16x16x8xf32>
    %cst = arith.constant 0.000000e+00 : f32
    %10 = vector.broadcast %cst : f32 to vector<1x16x16x8xf32>
    %11 = arith.maximumf %9, %10 : vector<1x16x16x8xf32>
    %12 = arith.truncf %11 : vector<1x16x16x8xf32> to vector<1x16x16x8xbf16>
    %cst_9 = arith.constant 0.000000e+00 : bf16
    %13 = vector.broadcast %cst_9 : bf16 to vector<1x1x25x8xbf16>
    %cst_10 = arith.constant 0.000000e+00 : bf16
    %14 = vector.broadcast %cst_10 : bf16 to vector<1x18x1x8xbf16>
    %c0_11 = arith.constant 0 : index
    %c0_12 = arith.constant 0 : index
    %c0_13 = arith.constant 0 : index
    %c0_14 = arith.constant 0 : index
    %15 = vector.load %arg9[%c0_11, %c0_12, %c0_13, %c0_14] : memref<1x18x25x8xbf16, #tpu.memory_space<vmem>>, vector<1x1x25x8xbf16>
    tpu.vector_store %arg9[%c0_11, %c0_12, %c0_13, %c0_14], %13 {strides = array<i32>} : memref<1x18x25x8xbf16, #tpu.memory_space<vmem>>, vector<1x1x25x8xbf16>,
    %c0_15 = arith.constant 0 : index
    %c17 = arith.constant 17 : index
    %c0_16 = arith.constant 0 : index
    %c0_17 = arith.constant 0 : index
    %16 = vector.load %arg9[%c0_15, %c17, %c0_16, %c0_17] : memref<1x18x25x8xbf16, #tpu.memory_space<vmem>>, vector<1x1x25x8xbf16>
    tpu.vector_store %arg9[%c0_15, %c17, %c0_16, %c0_17], %13 {strides = array<i32>} : memref<1x18x25x8xbf16, #tpu.memory_space<vmem>>, vector<1x1x25x8xbf16>,
    %c0_18 = arith.constant 0 : index
    %c0_19 = arith.constant 0 : index
    %c7 = arith.constant 7 : index
    %c0_20 = arith.constant 0 : index
    %17 = vector.load %arg9[%c0_18, %c0_19, %c7, %c0_20] : memref<1x18x25x8xbf16, #tpu.memory_space<vmem>>, vector<1x18x1x8xbf16>
    tpu.vector_store %arg9[%c0_18, %c0_19, %c7, %c0_20], %14 {strides = array<i32>} : memref<1x18x25x8xbf16, #tpu.memory_space<vmem>>, vector<1x18x1x8xbf16>,
    %c0_21 = arith.constant 0 : index
    %c0_22 = arith.constant 0 : index
    %c24 = arith.constant 24 : index
    %c0_23 = arith.constant 0 : index
    %18 = vector.load %arg9[%c0_21, %c0_22, %c24, %c0_23] : memref<1x18x25x8xbf16, #tpu.memory_space<vmem>>, vector<1x18x1x8xbf16>
    tpu.vector_store %arg9[%c0_21, %c0_22, %c24, %c0_23], %14 {strides = array<i32>} : memref<1x18x25x8xbf16, #tpu.memory_space<vmem>>, vector<1x18x1x8xbf16>,
    %c0_24 = arith.constant 0 : index
    %c1 = arith.constant 1 : index
    %c8 = arith.constant 8 : index
    %c0_25 = arith.constant 0 : index
    %19 = vector.load %arg9[%c0_24, %c1, %c8, %c0_25] : memref<1x18x25x8xbf16, #tpu.memory_space<vmem>>, vector<1x16x16x8xbf16>
    tpu.vector_store %arg9[%c0_24, %c1, %c8, %c0_25], %12 {strides = array<i32>} : memref<1x18x25x8xbf16, #tpu.memory_space<vmem>>, vector<1x16x16x8xbf16>,
    %c0_26 = arith.constant 0 : index
    %c0_27 = arith.constant 0 : index
    %c7_28 = arith.constant 7 : index
    %c0_29 = arith.constant 0 : index
    %20 = vector.load %arg9[%c0_26, %c0_27, %c7_28, %c0_29] : memref<1x18x25x8xbf16, #tpu.memory_space<vmem>>, vector<1x16x16x8xbf16>
    %21 = vector.shape_cast %20 : vector<1x16x16x8xbf16> to vector<16x16x8xbf16>
    %22 = vector.shape_cast %21 : vector<16x16x8xbf16> to vector<256x8xbf16>
    %c0_30 = arith.constant 0 : index
    %c0_31 = arith.constant 0 : index
    %c8_32 = arith.constant 8 : index
    %c0_33 = arith.constant 0 : index
    %23 = vector.load %arg9[%c0_30, %c0_31, %c8_32, %c0_33] : memref<1x18x25x8xbf16, #tpu.memory_space<vmem>>, vector<1x16x16x8xbf16>
    %24 = vector.shape_cast %23 : vector<1x16x16x8xbf16> to vector<16x16x8xbf16>
    %25 = vector.shape_cast %24 : vector<16x16x8xbf16> to vector<256x8xbf16>
    %c0_34 = arith.constant 0 : index
    %c0_35 = arith.constant 0 : index
    %c9 = arith.constant 9 : index
    %c0_36 = arith.constant 0 : index
    %26 = vector.load %arg9[%c0_34, %c0_35, %c9, %c0_36] : memref<1x18x25x8xbf16, #tpu.memory_space<vmem>>, vector<1x16x16x8xbf16>
    %27 = vector.shape_cast %26 : vector<1x16x16x8xbf16> to vector<16x16x8xbf16>
    %28 = vector.shape_cast %27 : vector<16x16x8xbf16> to vector<256x8xbf16>
    %c0_37 = arith.constant 0 : index
    %c1_38 = arith.constant 1 : index
    %c7_39 = arith.constant 7 : index
    %c0_40 = arith.constant 0 : index
    %29 = vector.load %arg9[%c0_37, %c1_38, %c7_39, %c0_40] : memref<1x18x25x8xbf16, #tpu.memory_space<vmem>>, vector<1x16x16x8xbf16>
    %30 = vector.shape_cast %29 : vector<1x16x16x8xbf16> to vector<16x16x8xbf16>
    %31 = vector.shape_cast %30 : vector<16x16x8xbf16> to vector<256x8xbf16>
    %c0_41 = arith.constant 0 : index
    %c1_42 = arith.constant 1 : index
    %c8_43 = arith.constant 8 : index
    %c0_44 = arith.constant 0 : index
    %32 = vector.load %arg9[%c0_41, %c1_42, %c8_43, %c0_44] : memref<1x18x25x8xbf16, #tpu.memory_space<vmem>>, vector<1x16x16x8xbf16>
    %33 = vector.shape_cast %32 : vector<1x16x16x8xbf16> to vector<16x16x8xbf16>
    %34 = vector.shape_cast %33 : vector<16x16x8xbf16> to vector<256x8xbf16>
    %c0_45 = arith.constant 0 : index
    %c1_46 = arith.constant 1 : index
    %c9_47 = arith.constant 9 : index
    %c0_48 = arith.constant 0 : index
    %35 = vector.load %arg9[%c0_45, %c1_46, %c9_47, %c0_48] : memref<1x18x25x8xbf16, #tpu.memory_space<vmem>>, vector<1x16x16x8xbf16>
    %36 = vector.shape_cast %35 : vector<1x16x16x8xbf16> to vector<16x16x8xbf16>
    %37 = vector.shape_cast %36 : vector<16x16x8xbf16> to vector<256x8xbf16>
    %c0_49 = arith.constant 0 : index
    %c2 = arith.constant 2 : index
    %c7_50 = arith.constant 7 : index
    %c0_51 = arith.constant 0 : index
    %38 = vector.load %arg9[%c0_49, %c2, %c7_50, %c0_51] : memref<1x18x25x8xbf16, #tpu.memory_space<vmem>>, vector<1x16x16x8xbf16>
    %39 = vector.shape_cast %38 : vector<1x16x16x8xbf16> to vector<16x16x8xbf16>
    %40 = vector.shape_cast %39 : vector<16x16x8xbf16> to vector<256x8xbf16>
    %c0_52 = arith.constant 0 : index
    %c2_53 = arith.constant 2 : index
    %c8_54 = arith.constant 8 : index
    %c0_55 = arith.constant 0 : index
    %41 = vector.load %arg9[%c0_52, %c2_53, %c8_54, %c0_55] : memref<1x18x25x8xbf16, #tpu.memory_space<vmem>>, vector<1x16x16x8xbf16>
    %42 = vector.shape_cast %41 : vector<1x16x16x8xbf16> to vector<16x16x8xbf16>
    %43 = vector.shape_cast %42 : vector<16x16x8xbf16> to vector<256x8xbf16>
    %c0_56 = arith.constant 0 : index
    %c2_57 = arith.constant 2 : index
    %c9_58 = arith.constant 9 : index
    %c0_59 = arith.constant 0 : index
    %44 = vector.load %arg9[%c0_56, %c2_57, %c9_58, %c0_59] : memref<1x18x25x8xbf16, #tpu.memory_space<vmem>>, vector<1x16x16x8xbf16>
    %45 = vector.shape_cast %44 : vector<1x16x16x8xbf16> to vector<16x16x8xbf16>
    %46 = vector.shape_cast %45 : vector<16x16x8xbf16> to vector<256x8xbf16>
    %47 = tpu.concatenate %22, %25, %28, %31, %34, %37, %40, %43, %46 in 1 : vector<256x8xbf16>, vector<256x8xbf16>, vector<256x8xbf16>, vector<256x8xbf16>, vector<256x8xbf16>, vector<256x8xbf16>, vector<256x8xbf16>, vector<256x8xbf16>, vector<256x8xbf16> -> vector<256x72xbf16>
    %c0_60 = arith.constant 0 : index
    %c0_61 = arith.constant 0 : index
    %48 = vector.load %arg5[%c0_60, %c0_61] : memref<72x8xbf16, #tpu.memory_space<vmem>>, vector<72x8xbf16>
    %cst_62 = arith.constant dense<0.000000e+00> : vector<256x8xf32>
    %49 = tpu.matmul %47, %48, %cst_62 {dimension_numbers = #tpu.dot_dimension_numbers<[1], [0], [0], [1], [0, 0, 1, 1], [], []>} : vector<256x72xbf16>, vector<72x8xbf16>, vector<256x8xf32> -> vector<256x8xf32>
    %50 = vector.shape_cast %49 : vector<256x8xf32> to vector<1x16x16x8xf32>
    %51 = arith.truncf %50 : vector<1x16x16x8xf32> to vector<1x16x16x8xbf16>
    %c0_63 = arith.constant 0 : index
    %c0_64 = arith.constant 0 : index
    %c0_65 = arith.constant 0 : index
    %c0_66 = arith.constant 0 : index
    %52 = vector.load %arg6[%c0_63, %c0_64, %c0_65, %c0_66] : memref<1x16x16x8xbf16, #tpu.memory_space<vmem>>, vector<1x16x16x8xbf16>
    tpu.vector_store %arg6[%c0_63, %c0_64, %c0_65, %c0_66], %51 {strides = array<i32>} : memref<1x16x16x8xbf16, #tpu.memory_space<vmem>>, vector<1x16x16x8xbf16>,
    %cst_67 = arith.constant dense<0.000000e+00> : vector<8xf32>
    %53 = vector.multi_reduction <add>, %49, %cst_67 [0] : vector<256x8xf32> to vector<8xf32>
    %54 = vector.shape_cast %53 : vector<8xf32> to vector<1x8xf32>
    %cst_68 = arith.constant 3.906250e-03 : f32
    %55 = vector.broadcast %cst_68 : f32 to vector<1x8xf32>
    %56 = arith.mulf %54, %55 : vector<1x8xf32>
    %57 = vector.broadcast %56 : vector<1x8xf32> to vector<256x8xf32>
    %58 = arith.subf %49, %57 : vector<256x8xf32>
    %c0_69 = arith.constant 0 : index
    %c0_70 = arith.constant 0 : index
    %c0_71 = arith.constant 0 : index
    %59 = vector.load %arg7[%c0_69, %c0_70, %c0_71] : memref<1x1x8xf32, #tpu.memory_space<vmem>>, vector<1x1x8xf32>
    %60 = vector.shape_cast %59 : vector<1x1x8xf32> to vector<1x8xf32>
    %61 = vector.shape_cast %56 : vector<1x8xf32> to vector<1x1x8xf32>
    tpu.vector_store %arg7[%c0_69, %c0_70, %c0_71], %61 {strides = array<i32>} : memref<1x1x8xf32, #tpu.memory_space<vmem>>, vector<1x1x8xf32>,
    %62 = arith.mulf %58, %58 : vector<256x8xf32>
    %cst_72 = arith.constant dense<0.000000e+00> : vector<8xf32>
    %63 = vector.multi_reduction <add>, %62, %cst_72 [0] : vector<256x8xf32> to vector<8xf32>
    %64 = vector.shape_cast %63 : vector<8xf32> to vector<1x8xf32>
    %c0_73 = arith.constant 0 : index
    %c0_74 = arith.constant 0 : index
    %c0_75 = arith.constant 0 : index
    %65 = vector.load %arg8[%c0_73, %c0_74, %c0_75] : memref<1x1x8xf32, #tpu.memory_space<vmem>>, vector<1x1x8xf32>
    %66 = vector.shape_cast %65 : vector<1x1x8xf32> to vector<1x8xf32>
    %67 = vector.shape_cast %64 : vector<1x8xf32> to vector<1x1x8xf32>
    tpu.vector_store %arg8[%c0_73, %c0_74, %c0_75], %67 {strides = array<i32>} : memref<1x1x8xf32, #tpu.memory_space<vmem>>, vector<1x1x8xf32>,
    return
  }
  func.func @transform_0(%arg0: i32, %arg1: i32) -> (i32, i32, i32, i32) {
    %c0_i32 = arith.constant 0 : i32
    %c0_i32_0 = arith.constant 0 : i32
    %c0_i32_1 = arith.constant 0 : i32
    %c0_i32_2 = arith.constant 0 : i32
    return %arg1, %c0_i32, %c0_i32_0, %c0_i32_1 : i32, i32, i32, i32
  }
  func.func @transform_1(%arg0: i32, %arg1: i32) -> (i32, i32, i32) {
    %c0_i32 = arith.constant 0 : i32
    %c0_i32_0 = arith.constant 0 : i32
    %c0_i32_1 = arith.constant 0 : i32
    %c0_i32_2 = arith.constant 0 : i32
    return %c0_i32, %c0_i32_0, %c0_i32_1 : i32, i32, i32
  }
  func.func @transform_2(%arg0: i32, %arg1: i32) -> (i32, i32, i32) {
    %c0_i32 = arith.constant 0 : i32
    %c0_i32_0 = arith.constant 0 : i32
    %c0_i32_1 = arith.constant 0 : i32
    %c0_i32_2 = arith.constant 0 : i32
    return %c0_i32, %c0_i32_0, %c0_i32_1 : i32, i32, i32
  }
  func.func @transform_3(%arg0: i32, %arg1: i32) -> (i32, i32) {
    %c0_i32 = arith.constant 0 : i32
    %c0_i32_0 = arith.constant 0 : i32
    return %c0_i32, %arg0 : i32, i32
  }
  func.func @transform_4(%arg0: i32, %arg1: i32) -> (i32, i32, i32, i32) {
    %c0_i32 = arith.constant 0 : i32
    %c0_i32_0 = arith.constant 0 : i32
    %c0_i32_1 = arith.constant 0 : i32
    return %arg1, %c0_i32, %c0_i32_0, %arg0 : i32, i32, i32, i32
  }
  func.func @transform_5(%arg0: i32, %arg1: i32) -> (i32, i32, i32) {
    %c0_i32 = arith.constant 0 : i32
    %c0_i32_0 = arith.constant 0 : i32
    return %arg1, %c0_i32, %arg0 : i32, i32, i32
  }
  func.func @transform_6(%arg0: i32, %arg1: i32) -> (i32, i32, i32) {
    %c0_i32 = arith.constant 0 : i32
    %c0_i32_0 = arith.constant 0 : i32
    return %arg1, %c0_i32, %arg0 : i32, i32, i32
  }
}

module attributes {stable_mosaic.version = 11 : i64} {
  func.func @_bn_add_relu_kernel(%arg0: i32, %arg1: memref<32x128xbf16, #tpu.memory_space<vmem>>, %arg2: memref<1x128xf32, #tpu.memory_space<vmem>>, %arg3: memref<1x128xf32, #tpu.memory_space<vmem>>, %arg4: memref<32x128xbf16, #tpu.memory_space<vmem>>, %arg5: memref<32x128xf32, #tpu.memory_space<vmem>>) attributes {dimension_semantics = [#tpu.dimension_semantics<parallel>], iteration_bounds = array<i64: 1>, scalar_prefetch = 0 : i64, scratch_operands = 0 : i64, tpu.core_type = #tpu.core_type<tc>, window_params = [{transform_indices = @transform_0, window_bounds = array<i64: 32, 128>}, {pipeline_mode = #tpu.pipeline_mode<synchronous>, transform_indices = @transform_1, window_bounds = array<i64: 1, 128>}, {pipeline_mode = #tpu.pipeline_mode<synchronous>, transform_indices = @transform_2, window_bounds = array<i64: 1, 128>}, {transform_indices = @transform_3, window_bounds = array<i64: 32, 128>}, {transform_indices = @transform_4, window_bounds = array<i64: 32, 128>}]} {
    %c0 = arith.constant 0 : index
    %c0_0 = arith.constant 0 : index
    %0 = vector.load %arg1[%c0, %c0_0] : memref<32x128xbf16, #tpu.memory_space<vmem>>, vector<32x128xbf16>
    %1 = arith.extf %0 : vector<32x128xbf16> to vector<32x128xf32>
    %c0_1 = arith.constant 0 : index
    %c0_2 = arith.constant 0 : index
    %2 = vector.load %arg2[%c0_1, %c0_2] : memref<1x128xf32, #tpu.memory_space<vmem>>, vector<1x128xf32>
    %3 = vector.broadcast %2 : vector<1x128xf32> to vector<32x128xf32>
    %4 = arith.mulf %1, %3 : vector<32x128xf32>
    %c0_3 = arith.constant 0 : index
    %c0_4 = arith.constant 0 : index
    %5 = vector.load %arg3[%c0_3, %c0_4] : memref<1x128xf32, #tpu.memory_space<vmem>>, vector<1x128xf32>
    %6 = vector.broadcast %5 : vector<1x128xf32> to vector<32x128xf32>
    %7 = arith.addf %4, %6 : vector<32x128xf32>
    %c0_5 = arith.constant 0 : index
    %c0_6 = arith.constant 0 : index
    %8 = vector.load %arg4[%c0_5, %c0_6] : memref<32x128xbf16, #tpu.memory_space<vmem>>, vector<32x128xbf16>
    %9 = arith.extf %8 : vector<32x128xbf16> to vector<32x128xf32>
    %10 = arith.addf %7, %9 : vector<32x128xf32>
    %cst = arith.constant 0.000000e+00 : f32
    %11 = vector.broadcast %cst : f32 to vector<32x128xf32>
    %12 = arith.maximumf %10, %11 : vector<32x128xf32>
    %c0_7 = arith.constant 0 : index
    %c0_8 = arith.constant 0 : index
    %13 = vector.load %arg5[%c0_7, %c0_8] : memref<32x128xf32, #tpu.memory_space<vmem>>, vector<32x128xf32>
    tpu.vector_store %arg5[%c0_7, %c0_8], %12 {strides = array<i32>} : memref<32x128xf32, #tpu.memory_space<vmem>>, vector<32x128xf32>,
    return
  }
  func.func @transform_0(%arg0: i32) -> (i32, i32) {
    %c0_i32 = arith.constant 0 : i32
    %c0_i32_0 = arith.constant 0 : i32
    return %arg0, %c0_i32 : i32, i32
  }
  func.func @transform_1(%arg0: i32) -> (i32, i32) {
    %c0_i32 = arith.constant 0 : i32
    %c0_i32_0 = arith.constant 0 : i32
    %c0_i32_1 = arith.constant 0 : i32
    return %c0_i32, %c0_i32_0 : i32, i32
  }
  func.func @transform_2(%arg0: i32) -> (i32, i32) {
    %c0_i32 = arith.constant 0 : i32
    %c0_i32_0 = arith.constant 0 : i32
    %c0_i32_1 = arith.constant 0 : i32
    return %c0_i32, %c0_i32_0 : i32, i32
  }
  func.func @transform_3(%arg0: i32) -> (i32, i32) {
    %c0_i32 = arith.constant 0 : i32
    %c0_i32_0 = arith.constant 0 : i32
    return %arg0, %c0_i32 : i32, i32
  }
  func.func @transform_4(%arg0: i32) -> (i32, i32) {
    %c0_i32 = arith.constant 0 : i32
    %c0_i32_0 = arith.constant 0 : i32
    return %arg0, %c0_i32 : i32, i32
  }
}

</mosaic_0001>

<bundles_post_ra>
// kernel: basic_block_forward.5
= control target key start
LH: loop header
LB: loop body
LE: loop exit
PB: predicated region body
PF: predicated region fallthrough
CT: control target
= control target key end

     0   :  { %s146_s0 = inlined_call_operand.vmem [shape: bf16[32,128], index: 0, kind: input, shape index: {}]   ;;  %s147_s1 = inlined_call_operand.vmem [shape: f32[1,128], index: 1, kind: input, shape index: {}]   ;;  %s148_s2 = inlined_call_operand.vmem [shape: f32[1,128], index: 2, kind: input, shape index: {}]   ;;  %s149_s3 = inlined_call_operand.vmem [shape: bf16[32,128], index: 3, kind: input, shape index: {}]   ;;  %s150_s4 = inlined_call_operand.vmem [shape: f32[32,128], index: 4, kind: output, shape index: {}]  }
   0x1   :  { %v74_v0 = vld [vmem:[%s146_s0] sm:$0xff]   ;;  %v89_v5 = vld [vmem:[%s146_s0 + $0x8] sm:$0xff]  }
   0x2   :  { %v71_v1 = vld [vmem:[%s147_s1] ss:$0 sm:$0xff]  ;;  %v75_v2 = vunpack.c.l.bf16 %v74_v0  ;;  %v76_v4 = vunpack.c.h.bf16 %v74_v0  ;;  %v90_v6 = vld [vmem:[%s149_s3 + $0x8] sm:$0xff]   ;;  %v79_v9 = vunpack.c.l.bf16 %v89_v5  ;;  %v80_v13 = vunpack.c.h.bf16 %v89_v5 }
   0x3   :  { %v82_v3 = vld [vmem:[%s149_s3] sm:$0xff]   ;;  %v87_v15 = vunpack.c.l.bf16 %v90_v6  ;;  %v88_v19 = vunpack.c.h.bf16 %v90_v6 }
   0x4   :  { %v72_v7 = vld [vmem:[%s148_s2] ss:$0 sm:$0xff]  ;;  %v83_v8 = vunpack.c.l.bf16 %v82_v3  ;;  %v32_v10 = vmul.f32 %v75_v2, %v71_v1  ;;  %v33_v11 = vmul.f32 %v76_v4, %v71_v1  ;;  %v84_v12 = vunpack.c.h.bf16 %v82_v3 }
   0x5   :  { %v34_v14 = vmul.f32 %v79_v9, %v71_v1  ;;  %v35_v18 = vmul.f32 %v80_v13, %v71_v1 }
   0x6   :  { %v43_v16 = vadd.f32 %v72_v7, %v32_v10  ;;  %v44_v17 = vadd.f32 %v72_v7, %v33_v11 }
   0x7   :  { %v45_v20 = vadd.f32 %v72_v7, %v34_v14  ;;  %v46_v23 = vadd.f32 %v72_v7, %v35_v18 }
   0x8   :  { %v55_v21 = vadd.f32 %v83_v8, %v43_v16  ;;  %v56_v22 = vadd.f32 %v84_v12, %v44_v17 }
   0x9   :  { %v57_v24 = vadd.f32 %v87_v15, %v45_v20  ;;  %v58_v27 = vadd.f32 %v88_v19, %v46_v23 }
   0xa   :  { %v59_v25 = vmax.f32 %v55_v21, 0.0  ;;  %v60_v26 = vmax.f32 %v56_v22, 0.0 }
   0xb   :  { %v61_v28 = vmax.f32 %v57_v24, 0.0  ;;  %v62_v29 = vmax.f32 %v58_v27, 0.0 }
   0xc   :  { %63 = vst [vmem:[%s150_s4] sm:$0xff] %v59_v25  ;;  %64 = vst [vmem:[%s150_s4 + $0x8] sm:$0xff] %v60_v26 }
   0xd   :  { %65 = vst [vmem:[%s150_s4 + $0x10] sm:$0xff] %v61_v28  ;;  %66 = vst [vmem:[%s150_s4 + $0x18] sm:$0xff] %v62_v29 }

// kernel: basic_block_forward.3
= control target key start
LH: loop header
LB: loop body
LE: loop exit
PB: predicated region body
PF: predicated region fallthrough
CT: control target
= control target key end

     0   :  { %s4782_s21 = smov 0   ;;  %s4784_s22 = smov 0   ;;  %s7252_s0 = inlined_call_operand.vmem [shape: bf16[2,16,16,8], index: 0, kind: input, shape index: {}]   ;;  %s7253_s1 = inlined_call_operand.vmem [shape: f32[1,1,8], index: 1, kind: input, shape index: {}]   ;;  %s7254_s2 = inlined_call_operand.vmem [shape: f32[1,1,8], index: 2, kind: input, shape index: {}]   ;;  %s7255_s3 = inlined_call_operand.vmem [shape: bf16[72,8], index: 3, kind: input, shape index: {}]   ;;  %s7256_s4 = inlined_call_operand.vmem [shape: bf16[2,16,16,8], index: 4, kind: output, shape index: {0}]   ;;  %s7257_s5 = inlined_call_operand.vmem [shape: f32[2,1,8], index: 5, kind: output, shape index: {1}]   ;;  %s7258_s6 = inlined_call_operand.vmem [shape: f32[2,1,8], index: 6, kind: output, shape index: {2}]  }
   0x1   :  { %s4786_s1 = smov 0  }
   0x2 LB: > { %s26_s2 = sadd.s32 1, %s4732_s22  ;;  %p4274_p0 = scmp.ge.s32.totalorder %s4736_s1, 1  ;;  %s4736_s1 = sphi %s4786_s1, %s17_s1   ;;  %s4732_s22 = sphi %s4784_s22, %s7348_s22   ;;  %s4728_s21 = sphi %s4782_s21, %s7347_s21  }
   0x3   : > { %p27_p1 = scmp.ge.s32.totalorder %s26_s2, 2  ;;  %p244_p2 = scmp.lt.s32.totalorder %s4736_s1, 3 }
   0x5   : > { %s7350_s2 = smov (%p27_p1, %s26_s2), 0  ;;  %p245_p3 = pnand %p4274_p0, %p244_p2 }
   0x7   : > { %248 = sbr.rel (%p245_p3) target bundleno = 841 (0x349), region = 36 }
   0xe   : > { %vm355_vm0 = vcmask 60416   ;;  %p293_p4 = scmp.lt.s32.totalorder %s4728_s21, 1  ;;  %v4738_v0 = vmov 0   ;;  %vm360_vm1 = vsmask.f32 256  ;;  %vm372_vm2 = vcmask 60419  }
   0xf   : > { %357 = vst.msk [vmem:[#allocation2 + $0x4] sm:$0xf] %vm355_vm0, %v4738_v0  ;;  %358 = vst.msk [vmem:[#allocation2 + $0x8] sm:$0xf] %vm355_vm0, %v4738_v0  ;;  %vm373_vm3 = vsmask.f32 7950 }
  0x10   : > { %356 = vst.msk [vmem:[#allocation2] sm:$0xf] %vm355_vm0, %v4738_v0  ;;  %366 = vst.msk [vmem:[#allocation2 + $0x110] sm:$0xf] %vm355_vm0, %v4738_v0  ;;  %vm359_vm4 = vcmask 57344   ;;  %s7352_s21 = smov (!%p293_p4, %s4728_s21), 1 }
  0x11   : > { %367 = vst.msk [vmem:[#allocation2 + $0x114] sm:$0xf] %vm355_vm0, %v4738_v0  ;;  %368 = vst.msk [vmem:[#allocation2 + $0x118] sm:$0xf] %vm355_vm0, %v4738_v0  ;;  %v381_v2 = vld [vmem:[#allocation2 + $0x20] sm:$0x8] }
  0x12   : > { %vm4808_vm5 = vmand %vm372_vm2, %vm373_vm3  ;;  %v384_v4 = vld [vmem:[#allocation2 + $0x30] sm:$0x8]  ;;  %s4526_s23 = sshll.u32 %s7352_s21, 7  ;;  %v432_v8 = vld [vmem:[#allocation2 + $0x1c] sm:$0x1]  ;;  %s4739_s27 = smov 8  }
  0x13   : > { %v382_v3 = vsel %vm4808_vm5, 0, %v381_v2  ;;  %v385_v5 = vsel %vm4808_vm5, 0, %v384_v4  ;;  %v378_v6 = vld [vmem:[#allocation2 + $0x10] sm:$0x8]  ;;  %vm4819_vm6 = vmand %vm359_vm4, %vm360_vm1  ;;  %s4828_s26 = scalar_lea.vmem %s7252_s0, %s4526_s23  ;;  %v435_v23 = vld [vmem:[#allocation2 + $0x2c] sm:$0x1] }
  0x14   : > { %383 = vst [vmem:[#allocation2 + $0x20] sm:$0x8] %v382_v3  ;;  %386 = vst [vmem:[#allocation2 + $0x30] sm:$0x8] %v385_v5  ;;  %v379_v9 = vsel %vm4808_vm5, 0, %v378_v6  ;;  %v433_v10 = vsel %vm4819_vm6, 0, %v432_v8 }
  0x15   : > { %v325_v11 = vld [vmem:[%s4828_s26 + $0x8] sm:$0xf]  ;;  %v326_v12 = vld [vmem:[%s4828_s26 + $0xc] sm:$0xf]  ;;  %v323_v13 = vld [vmem:[%s4828_s26] sm:$0xf] }
  0x16   : > { %380 = vst [vmem:[#allocation2 + $0x10] sm:$0x8] %v379_v9  ;;  %434 = vst [vmem:[#allocation2 + $0x1c] sm:$0x1] %v433_v10  ;;  %v324_v14 = vld [vmem:[%s4828_s26 + $0x4] sm:$0xf] }
  0x17   : > { %486 = vst.msk [vmem:[#allocation2 + $0x24] sm:$0xf] %vm355_vm0, %v325_v11  ;;  %487 = vst.msk [vmem:[#allocation2 + $0x28] sm:$0xf] %vm355_vm0, %v326_v12  ;;  %v327_v15 = vld [vmem:[%s4828_s26 + $0x10] sm:$0xf] }
  0x18   : > { %484 = vst.msk [vmem:[#allocation2 + $0x14] sm:$0xf] %vm355_vm0, %v323_v13  ;;  %v328_v16 = vld [vmem:[%s4828_s26 + $0x14] sm:$0xf]  ;;  %v517_v17 = vld [vmem:[#allocation2 + $0x4] sm:$0xf] }
  0x19   : > { %v518_v18 = vld [vmem:[#allocation2 + $0x8] sm:$0xf]  ;;  %485 = vst.msk [vmem:[#allocation2 + $0x18] sm:$0xf] %vm355_vm0, %v324_v14  ;;  %488 = vst.msk [vmem:[#allocation2 + $0x34] sm:$0xf] %vm355_vm0, %v327_v15 }
  0x1a   : > { %489 = vst.msk [vmem:[#allocation2 + $0x38] sm:$0xf] %vm355_vm0, %v328_v16  ;;  %v581_v19 = vshrl.u32 %v518_v18, 16  ;;  %v584_v20 = vshll.u32 %v518_v18, 16  ;;  %v4343_v21 = vcombine.low %v517_v17, %v518_v18  ;;  %v572_v22 = vshrl.u32 %v517_v17, 16  ;;  %s4740_s28 = smov 32  }
  0x1b   : > { %v575_v24 = vshll.u32 %v517_v17, 16  ;;  %v436_v25 = vsel %vm4819_vm6, 0, %v435_v23  ;;  %v362_v26 = vld [vmem:[#allocation2 + $0xc] sm:$0x1]  ;;  %v4855_v31 = vld [vmem:[#allocation2 + $0x20] sm:$0x8] }
  0x1c   : > { %v583_v27 = vrot.slane %v581_v19, 7  ;;  %v4848_v28 = vrot.slane %v584_v20, 5  ;;  %v4850_v29 = vrot.slane %v581_v19, 4  ;;  %2570 = vrot.lane.b32.xlu0 %v4343_v21, %s4739_s27  ;;  %v4853_v30 = vrot.slane %v572_v22, 7  ;;  %437 = vst [vmem:[#allocation2 + $0x2c] sm:$0x1] %v436_v25 }
  0x1d   : > { %v4857_v32 = vrot.slane %v572_v22, 4  ;;  %v4859_v33 = vrot.slane %v575_v24, 5  ;;  %v1232_v34 = vshrl.u32 %v4855_v31, 16  ;;  %v4862_v35 = vld [vmem:[#allocation2 + $0x30] sm:$0x8]  ;;  %v363_v36 = vsel %vm4819_vm6, 0, %v362_v26 }
  0x1e   : > { %v4866_v37 = vor.u32 %v584_v20, %v583_v27  ;;  %v4869_v38 = vor.u32 %v575_v24, %v4853_v30  ;;  %vm564_vm7 = vsmask.f32 4368  ;;  %v1873_v40 = vshrl.u32 %v4862_v35, 16  ;;  %364 = vst [vmem:[#allocation2 + $0xc] sm:$0x1] %v363_v36  ;;  %s4741_s29 = smov 56  }
  0x1f   : > { %v1165_v41 = vld [vmem:[#allocation2 + $0x24] sm:$0xf]  ;;  %v1166_v42 = vld [vmem:[#allocation2 + $0x28] sm:$0xf]  ;;  %v520_v43 = vld [vmem:[#allocation2 + $0x14] sm:$0xf]  ;;  %v939_v44 = vor.u32 %v4859_v33, %v4857_v32  ;;  %v944_v54 = vor.u32 %v4850_v29, %v4848_v28 }
  0x20   : > { %v1246_v45 = vshrl.u32 %v1166_v42, 16  ;;  %v1249_v46 = vshll.u32 %v1166_v42, 16  ;;  %v4392_v47 = vcombine.low %v1165_v41, %v1166_v42  ;;  %v1237_v48 = vshrl.u32 %v1165_v41, 16  ;;  %v4875_v49 = vld [vmem:[#allocation2 + $0x18] sm:$0xf]  ;;  %vm4930_vm8 = vmor %vm360_vm1, %vm564_vm7  ;;  %s4742_s30 = smov 24  }
  0x21   : > { %v1240_v50 = vshll.u32 %v1165_v41, 16  ;;  %v603_v51 = vshrl.u32 %v4875_v49, 16  ;;  %v4344_v52 = vcombine.low %v520_v43, %v4875_v49  ;;  %v4879_v53 = vld [vmem:[#allocation2 + $0x34] sm:$0xf]  ;;  %v606_v58 = vshll.u32 %v4875_v49, 16  ;;  %s4743_s7 = smov 48  }
  0x22   : > { %v1248_v55 = vrot.slane %v1246_v45, 7  ;;  %v4883_v56 = vrot.slane %v1249_v46, 5  ;;  %2844 = vrot.lane.b32.xlu1 %v4392_v47, %s4740_s28  ;;  %v1239_v57 = vrot.slane %v1237_v48, 7  ;;  %v4887_v59 = vld [vmem:[#allocation2 + $0x38] sm:$0xf]  ;;  %v4889_v60 = vrot.slane %v1246_v45, 4 }
  0x23   : > { %v4891_v61 = vrot.slane %v1237_v48, 4  ;;  %v4893_v62 = vrot.slane %v1240_v50, 5  ;;  %v605_v63 = vrot.slane %v603_v51, 7  ;;  %2572 = vrot.lane.b32.xlu0 %v4344_v52, %s4739_s27  ;;  %v4896_v2 = vrot.slane %v603_v51, 4  ;;  %v1162_v10 = vld [vmem:[#allocation2 + $0x14] sm:$0xf] }
  0x24   : > { %v1251_v0 = vor.u32 %v1249_v46, %v1248_v55  ;;  %v594_v3 = vshrl.u32 %v520_v43, 16  ;;  %v597_v4 = vshll.u32 %v520_v43, 16  ;;  %v1242_v5 = vor.u32 %v1240_v50, %v1239_v57  ;;  %v4911_v15 = vld [vmem:[#allocation2 + $0x18] sm:$0xf]  ;;  %v1803_v24 = vld [vmem:[#allocation2 + $0x24] sm:$0xf] }
  0x25   : > { %v4900_v6 = vor.u32 %v606_v58, %v605_v63  ;;  %v1878_v8 = vshrl.u32 %v4879_v53, 16  ;;  %v1887_v9 = vshrl.u32 %v4887_v59, 16  ;;  %v1881_v14 = vshll.u32 %v4879_v53, 16  ;;  %v4934_v42 = vld [vmem:[#allocation2 + $0x28] sm:$0xf]  ;;  %s4744_s8 = smov 16  }
  0x26   : > { %v4904_v11 = vrot.slane %v594_v3, 7  ;;  %v4906_v12 = vrot.slane %v594_v3, 4  ;;  %v4908_v13 = vrot.slane %v597_v4, 5  ;;  %v1890_v18 = vshll.u32 %v4887_v59, 16  ;;  %v332_v39 = vld [vmem:[%s4828_s26 + $0x24] sm:$0xf] }
  0x27   : > { %v1880_v16 = vrot.slane %v1878_v8, 7  ;;  %v1889_v17 = vrot.slane %v1887_v9, 7  ;;  %v4916_v19 = vrot.slane %v1878_v8, 4  ;;  %v4921_v21 = vrot.slane %v1881_v14, 5  ;;  %v1161_v8 = vld [vmem:[#allocation2 + $0x10] sm:$0x8] }
  0x28   : > { %v4919_v20 = vor.u32 %v597_v4, %v4904_v11  ;;  %v4440_v22 = vcombine.low %v4879_v53, %v4887_v59  ;;  %v1215_v23 = vshrl.u32 %v1162_v10, 16  ;;  %v1218_v25 = vshll.u32 %v1162_v10, 16  ;;  %493 = vst.msk [vmem:[#allocation2 + $0x58] sm:$0xf] %vm355_vm0, %v332_v39  ;;  %s4745_s9 = smov 40   ;;  %s4746_s10 = smov 64  }
  0x29   : > { %v1224_v26 = vshrl.u32 %v4911_v15, 16  ;;  %v1227_v27 = vshll.u32 %v4911_v15, 16  ;;  %v4391_v36 = vcombine.low %v1162_v10, %v4911_v15  ;;  %vm934_vm9 = vsmask.f32 3328 }
  0x2a   : > { %vm935_vm10 = vsmask.f32 7440  ;;  %3116 = vrot.lane.b32.xlu1 %v4440_v22, %s4741_s29  ;;  %v1217_v43 = vrot.slane %v1215_v23, 7  ;;  %v4937_v45 = vrot.slane %v1215_v23, 4  ;;  %v4296_v46 = vrot.slane %v1232_v34, 11 }
  0x2b   : > { %v1244_v47 = vrot.slane %v1239_v57, 4  ;;  %v1226_v48 = vrot.slane %v1224_v26, 7  ;;  %v4941_v50 = vrot.slane %v1218_v25, 5  ;;  %v4943_v51 = vrot.slane %v1224_v26, 4  ;;  %2842 = vrot.lane.b32.xlu0 %v4391_v36, %s4740_s28  ;;  %vm4992_vm11 = vmor %vm934_vm9, %vm935_vm10 }
  0x2c   : > { %v1856_v52 = vshrl.u32 %v1803_v24, 16  ;;  %v1243_v53 = vsel %vm4930_vm8, %v4296_v46, %v1242_v5  ;;  %v1859_v63 = vshll.u32 %v1803_v24, 16  ;;  %v1865_v3 = vshrl.u32 %v4934_v42, 16 }
  0x2d   : > { %v1252_v55 = vsel %vm4930_vm8, %v1244_v47, %v1251_v0  ;;  %v1868_v57 = vshll.u32 %v4934_v42, 16  ;;  %v4439_v5 = vcombine.low %v1803_v24, %v4934_v42  ;;  %v1802_v0 = vld [vmem:[#allocation2 + $0x20] sm:$0x8]  ;;  %v4312_v26 = vrot.slane %v1873_v40, 11 }
  0x2e   : > { %v4376_v31 = vcombine.low %v1243_v53, %v1252_v55  ;;  %v1858_v34 = vrot.slane %v1856_v52, 7  ;;  %v4952_v4 = vrot.slane %v1856_v52, 4  ;;  %v1867_v10 = vrot.slane %v1865_v3, 7 }
  0x2f   : > { %v4954_v22 = vrot.slane %v1859_v63, 5  ;;  %v4956_v23 = vrot.slane %v1865_v3, 4  ;;  %v1883_v36 = vor.u32 %v1881_v14, %v1880_v16  ;;  %v1885_v46 = vrot.slane %v1880_v16, 4  ;;  %3114 = vrot.lane.b32.xlu0 %v4439_v5, %s4741_s29  ;;  %v329_v3 = vld [vmem:[%s4828_s26 + $0x18] sm:$0xf] }
  0x30   : > { %2732 = vrot.lane.b32.xlu1 %v4376_v31, %s4742_s30  ;;  %v1892_v47 = vor.u32 %v1890_v18, %v1889_v17  ;;  %v1210_v52 = vshrl.u32 %v1161_v8, 16  ;;  %v1220_v53 = vor.u32 %v1218_v25, %v1217_v43  ;;  %v1222_v55 = vrot.slane %v1217_v43, 4  ;;  %v330_v31 = vld [vmem:[%s4828_s26 + $0x1c] sm:$0xf]  ;;  %490 = vst.msk [vmem:[#allocation2 + $0x44] sm:$0xf] %vm355_vm0, %v329_v3 }
  0x31   : > { %v1229_v24 = vor.u32 %v1227_v27, %v1226_v48  ;;  %v1884_v35 = vsel %vm4930_vm8, %v4312_v26, %v1883_v36  ;;  %v1851_v14 = vshrl.u32 %v1802_v0, 16  ;;  %v1861_v16 = vor.u32 %v1859_v63, %v1858_v34  ;;  %v919_v17 = vld [vmem:[#allocation2 + $0x1c] sm:$0x1]  ;;  %491 = vst.msk [vmem:[#allocation2 + $0x48] sm:$0xf] %vm355_vm0, %v330_v31 }
  0x32   : > { %v1893_v40 = vsel %vm4930_vm8, %v1885_v46, %v1892_v47  ;;  %v4295_v43 = vrot.slane %v1210_v52, 11  ;;  %v1863_v8 = vrot.slane %v1858_v34, 4  ;;  %v331_v5 = vld [vmem:[%s4828_s26 + $0x20] sm:$0xf]  ;;  %v1870_v0 = vor.u32 %v1868_v57, %v1867_v10  ;;  %v1561_v46 = vld [vmem:[#allocation2 + $0x1c] sm:$0x1] }
  0x33   : > { %v4424_v25 = vcombine.low %v1884_v35, %v1893_v40  ;;  %v1230_v48 = vsel %vm4930_vm8, %v1222_v55, %v1229_v24  ;;  %v4311_v26 = vrot.slane %v1851_v14, 11  ;;  %v953_v63 = vor.u32 %v4908_v13, %v4906_v12  ;;  %492 = vst.msk [vmem:[#allocation2 + $0x54] sm:$0xf] %vm355_vm0, %v331_v5  ;;  %v334_v13 = vld [vmem:[%s4828_s26 + $0x2c] sm:$0xf] }
  0x34   : > { %v955_v36 = vrot.slane %v606_v58, 5  ;;  %v1221_v34 = vsel %vm4930_vm8, %v4295_v43, %v1220_v53  ;;  %v961_v12 = vshll.u32 %v919_v17, 16  ;;  %v1579_v49 = vor.u32 %v4941_v50, %v4937_v45  ;;  %v333_v58 = vld [vmem:[%s4828_s26 + $0x28] sm:$0xf]  ;;  %v1562_v24 = vld [vmem:[#allocation2 + $0x2c] sm:$0x1] }
  0x35   : > { %3004 = vrot.lane.b32.xlu1 %v4424_v25, %s4743_s7  ;;  %v1581_v39 = vrot.slane %v1227_v27, 5  ;;  %v4375_v47 = vcombine.low %v1221_v34, %v1230_v48  ;;  %v1862_v52 = vsel %vm4930_vm8, %v4311_v26, %v1861_v16  ;;  %v1871_v53 = vsel %vm4930_vm8, %v1863_v8, %v1870_v0  ;;  %494 = vst.msk [vmem:[#allocation2 + $0x64] sm:$0xf] %vm355_vm0, %v333_v58  ;;  %v335_v3 = vld [vmem:[%s4828_s26 + $0x30] sm:$0xf] }
  0x36   : > { %v954_v55 = vrot.slane %v953_v63, 4  ;;  %495 = vst.msk [vmem:[#allocation2 + $0x68] sm:$0xf] %vm355_vm0, %v334_v13  ;;  %v4423_v45 = vcombine.low %v1862_v52, %v1871_v53  ;;  %v958_v15 = vor.u32 %v4896_v2, %v955_v36  ;;  %v963_v50 = vrot.slane %v961_v12, 5  ;;  %v336_v31 = vld [vmem:[%s4828_s26 + $0x34] sm:$0xf] }
  0x37   : > { %v1580_v27 = vrot.slane %v1579_v49, 4  ;;  %2730 = vrot.lane.b32.xlu0 %v4375_v47, %s4742_s30  ;;  %v1584_v40 = vor.u32 %v4943_v51, %v1581_v39  ;;  %v1587_v14 = vshll.u32 %v1561_v46, 16  ;;  %v1593_v16 = vor.u32 %v4893_v62, %v4891_v61  ;;  %496 = vst.msk [vmem:[#allocation2 + $0x74] sm:$0xf] %vm355_vm0, %v335_v3  ;;  %497 = vst.msk [vmem:[#allocation2 + $0x78] sm:$0xf] %vm355_vm0, %v336_v31 }
  0x38   : > { %v956_v35 = vsel %vm4992_vm11, %v954_v55, %v955_v36  ;;  %v959_v2 = vrot.slane %v958_v15, 4  ;;  %v1598_v25 = vor.u32 %v4889_v60, %v4883_v56  ;;  %v1601_v43 = vshll.u32 %v1562_v24, 16  ;;  %v2202_v51 = vld [vmem:[#allocation2 + $0x2c] sm:$0x1]  ;;  %v5047_v52 = vld [vmem:[#allocation2 + $0x28] sm:$0xf] }
  0x39   : > { %v1582_v17 = vsel %vm4992_vm11, %v1580_v27, %v1581_v39  ;;  %v1585_v48 = vrot.slane %v1584_v40, 4  ;;  %v1589_v8 = vrot.slane %v1587_v14, 5  ;;  %v1594_v5 = vrot.slane %v1593_v16, 4  ;;  %v429_v36 = vld [vmem:[#allocation2 + $0xc] sm:$0x1] }
  0x3a   : > { %v2220_v26 = vor.u32 %v4954_v22, %v4952_v4  ;;  %v964_v61 = vsel %vm4992_vm11, %v959_v2, %v963_v50  ;;  %v1599_v62 = vrot.slane %v1598_v25, 4  ;;  %v1603_v0 = vrot.slane %v1601_v43, 5  ;;  %v438_v22 = vld [vmem:[#allocation2 + $0x3c] sm:$0x1]  ;;  %v5038_v39 = vld [vmem:[#allocation2 + $0x24] sm:$0xf] }
  0x3b   : > { %v2222_v63 = vrot.slane %v1868_v57, 5  ;;  %3002 = vrot.lane.b32.xlu0 %v4423_v45, %s4743_s7  ;;  %v4360_v60 = vcombine.low %v956_v35, %v964_v61  ;;  %v1590_v46 = vsel %vm4992_vm11, %v1585_v48, %v1589_v8  ;;  %v1596_v34 = vsel %vm4992_vm11, %v1594_v5, %v4883_v56  ;;  %v5082_v14 = vld [vmem:[#allocation2 + $0x38] sm:$0xf] }
  0x3c   : > { %v2221_v4 = vrot.slane %v2220_v26, 4  ;;  %v4407_v12 = vcombine.low %v1582_v17, %v1590_v46  ;;  %v1604_v49 = vsel %vm4992_vm11, %v1599_v62, %v1603_v0  ;;  %v2228_v57 = vshll.u32 %v2202_v51, 16 }
  0x3d   : > { %v2225_v42 = vor.u32 %v4956_v23, %v2222_v63  ;;  %v2238_v58 = vrot.slane %v1887_v9, 4  ;;  %2652 = vrot.lane.b32.xlu1 %v4360_v60, %s4744_s8  ;;  %v4408_v13 = vcombine.low %v1596_v34, %v1604_v49  ;;  %v430_v47 = vsel %vm4819_vm6, 0, %v429_v36  ;;  %v1167_v49 = vld [vmem:[#allocation2 + $0x30] sm:$0x8] }
  0x3e   : > { %v2223_v56 = vsel %vm4992_vm11, %v2221_v4, %v2222_v63  ;;  %v2230_v23 = vrot.slane %v2228_v57, 5  ;;  %431 = vst [vmem:[#allocation2 + $0xc] sm:$0x1] %v430_v47  ;;  %v5052_v55 = vrot.slane %v939_v44, 4  ;;  %v439_v9 = vsel %vm4819_vm6, 0, %v438_v22  ;;  %v4690_v47 = vld [vmem:[%s7255_s3] sm:$0xff]  }
  0x3f   : > { %v2226_v53 = vrot.slane %v2225_v42, 4  ;;  %2922 = vrot.lane.b32.xlu0 %v4407_v12, %s4745_s9  ;;  %v5060_v24 = vrot.slane %v944_v54, 4  ;;  %440 = vst [vmem:[#allocation2 + $0x3c] sm:$0x1] %v439_v9  ;;  %v2234_v45 = vor.u32 %v4921_v21, %v4916_v19  ;;  %v5066_v32 = vrot.slane %v1890_v18, 5  ;;  %4581 = vmatprep.subr.bf16.mxu0 %v4690_v47 }
  0x40   : > { %v616_v33 = vshrl.u32 %v5038_v39, 16  ;;  %v619_v15 = vshll.u32 %v5038_v39, 16  ;;  %v625_v50 = vshrl.u32 %v5047_v52, 16  ;;  %v628_v29 = vshll.u32 %v5047_v52, 16  ;;  %v920_v19 = vld [vmem:[#allocation2 + $0x2c] sm:$0x1]  ;;  %4623 = vmatprep.subr.bf16.mxu1 %v4690_v47  ;;  %4582 = vmatpush3.bf16.msra.mxu0 %v4690_v47 }
  0x41   : > { %v2231_v44 = vsel %vm4992_vm11, %v2226_v53, %v2230_v23  ;;  %2924 = vrot.lane.b32.xlu1 %v4408_v13, %s4745_s9  ;;  %v5075_v27 = vrot.slane %v2234_v45, 4  ;;  %v2239_v59 = vor.u32 %v2238_v58, %v5066_v32  ;;  %v5080_v21 = vld [vmem:[#allocation2 + $0x34] sm:$0xf]  ;;  %v942_v16 = vsel %vm4992_vm11, %v5052_v55, %v4848_v28  ;;  %v5118_v45 = vld [vmem:[#allocation2 + $0x38] sm:$0xf]  ;;  %4628 = vmatpush3.bf16.msra.mxu1 %v4690_v47 }
  0x42   : > { %v4455_v54 = vcombine.low %v2223_v56, %v2231_v44  ;;  %v5078_v18 = vrot.slane %v616_v33, 7  ;;  %v627_v3 = vrot.slane %v625_v50, 7  ;;  %v965_v31 = vrot.slane %v616_v33, 4  ;;  %v5108_v56 = vld [vmem:[#allocation2 + $0x34] sm:$0xf] }
  0x43   : > { %v966_v35 = vrot.slane %v619_v15, 5  ;;  %v971_v40 = vrot.slane %v625_v50, 4  ;;  %v2237_v2 = vsel %vm4992_vm11, %v5075_v27, %v5066_v32  ;;  %v2240_v17 = vrot.slane %v2239_v59, 4  ;;  %v387_v50 = vld [vmem:[#allocation2 + $0x40] sm:$0x8] }
  0x44   : > { %3194 = vrot.lane.b32.xlu0 %v4455_v54, %s4746_s10  ;;  %v5094_v25 = vor.u32 %v619_v15, %v5078_v18  ;;  %v5096_v43 = vor.u32 %v628_v29, %v627_v3  ;;  %v969_v8 = vrot.slane %v628_v29, 5  ;;  %v975_v5 = vshll.u32 %v920_v19, 16  ;;  %v337_v29 = vld [vmem:[%s4828_s26 + $0x38] sm:$0xf] }
  0x45   : > { %v967_v48 = vor.u32 %v966_v35, %v965_v31  ;;  %v918_v51 = vld [vmem:[#allocation2 + $0xc] sm:$0x1]  ;;  %v4345_v26 = vcombine.low %v5038_v39, %v5047_v52  ;;  %v638_v28 = vshrl.u32 %v5080_v21, 16  ;;  %v641_v61 = vshll.u32 %v5080_v21, 16  ;;  %498 = vst.msk [vmem:[#allocation2 + $0x84] sm:$0xf] %vm355_vm0, %v337_v29 }
  0x46   : > { %v647_v62 = vshrl.u32 %v5082_v14, 16  ;;  %v947_v0 = vshll.u32 %v918_v51, 16  ;;  %v2203_v63 = vld [vmem:[#allocation2 + $0x3c] sm:$0x1]  ;;  %v972_v60 = vor.u32 %v971_v40, %v969_v8  ;;  %v977_v46 = vrot.slane %v975_v5, 5 }
  0x47   : > { %v968_v36 = vrot.slane %v967_v48, 4  ;;  %v2242_v34 = vshll.u32 %v2203_v63, 16  ;;  %v5103_v4 = vrot.slane %v638_v28, 7  ;;  %v650_v12 = vshll.u32 %v5082_v14, 16  ;;  %v921_v3 = vld [vmem:[#allocation2 + $0x3c] sm:$0x1] }
  0x48   : > { %v649_v22 = vrot.slane %v647_v62, 7  ;;  %v949_v42 = vrot.slane %v947_v0, 5  ;;  %v973_v58 = vrot.slane %v972_v60, 4  ;;  %v979_v13 = vrot.slane %v638_v28, 4  ;;  %v1563_v52 = vld [vmem:[#allocation2 + $0x3c] sm:$0x1] }
  0x49   : > { %v970_v57 = vsel %vm4992_vm11, %v968_v36, %v969_v8  ;;  %v2244_v53 = vrot.slane %v2242_v34, 5  ;;  %v5114_v23 = vor.u32 %v641_v61, %v5103_v4  ;;  %v980_v9 = vrot.slane %v641_v61, 5  ;;  %v5141_v8 = vld [vmem:[#allocation2 + $0x44] sm:$0xf] }
  0x4a   : > { %v5116_v55 = vor.u32 %v650_v12, %v649_v22  ;;  %v950_v32 = vsel %vm4992_vm11, %v5060_v24, %v949_v42  ;;  %v978_v33 = vsel %vm4992_vm11, %v973_v58, %v977_v46  ;;  %v985_v44 = vrot.slane %v647_v62, 4  ;;  %v338_v24 = vld [vmem:[%s4828_s26 + $0x3c] sm:$0xf]  ;;  %v5146_v62 = vld [vmem:[#allocation2 + $0x48] sm:$0xf] }
  0x4b   : > { %v1254_v15 = vshrl.u32 %v1167_v49, 16  ;;  %v4359_v54 = vcombine.low %v942_v16, %v950_v32  ;;  %v2245_v27 = vsel %vm4992_vm11, %v2240_v17, %v2244_v53  ;;  %v4346_v59 = vcombine.low %v5080_v21, %v5082_v14  ;;  %499 = vst.msk [vmem:[#allocation2 + $0x88] sm:$0xf] %vm355_vm0, %v338_v24  ;;  %v4692_v21 = vld [vmem:[%s7255_s3 + $0x8] sm:$0xff]   ;;  %v339_v46 = vld [vmem:[%s4828_s26 + $0x40] sm:$0xf] }
  0x4c   : > { %v1259_v19 = vshrl.u32 %v5108_v56, 16  ;;  %v4456_v31 = vcombine.low %v2237_v2, %v2245_v27  ;;  %v1262_v40 = vshll.u32 %v5108_v56, 16  ;;  %v1268_v16 = vshrl.u32 %v5118_v45, 16  ;;  %4583 = vmatprep.subr.bf16.mxu0 %v4692_v21  ;;  %v340_v34 = vld [vmem:[%s4828_s26 + $0x44] sm:$0xf]  ;;  %4624 = vmatprep.subr.bf16.mxu1 %v4692_v21 }
  0x4d   : > { %v4297_v35 = vrot.slane %v1254_v15, 11  ;;  %2650 = vrot.lane.b32.xlu1 %v4359_v54, %s4744_s8  ;;  %v1271_v17 = vshll.u32 %v5118_v45, 16  ;;  %v981_v48 = vor.u32 %v980_v9, %v979_v13  ;;  %v983_v2 = vrot.slane %v650_v12, 5  ;;  %4584 = vmatpush3.bf16.msra.mxu0 %v4692_v21  ;;  %500 = vst.msk [vmem:[#allocation2 + $0x94] sm:$0xf] %vm355_vm0, %v339_v46 }
  0x4e   : > { %v1261_v14 = vrot.slane %v1259_v19, 7  ;;  %3196 = vrot.lane.b32.xlu0 %v4456_v31, %s4746_s10  ;;  %v4361_v5 = vcombine.low %v970_v57, %v978_v33  ;;  %v1270_v51 = vrot.slane %v1268_v16, 7  ;;  %v989_v28 = vshll.u32 %v921_v3, 16  ;;  %501 = vst.msk [vmem:[#allocation2 + $0x98] sm:$0xf] %vm355_vm0, %v340_v34  ;;  %4629 = vmatpush3.bf16.msra.mxu1 %v4692_v21 }
  0x4f   : > { %v388_v61 = vsel %vm4808_vm5, 0, %v387_v50  ;;  %v982_v36 = vrot.slane %v981_v48, 4  ;;  %v986_v60 = vor.u32 %v985_v44, %v983_v2  ;;  %v1281_v49 = vshrl.u32 %v5141_v8, 16  ;;  %v5173_v50 = vld [vmem:[#allocation2 + $0x44] sm:$0xf] }
  0x50   : > { %v1264_v0 = vor.u32 %v1262_v40, %v1261_v14  ;;  %v1266_v63 = vrot.slane %v1261_v14, 4  ;;  %389 = vst [vmem:[#allocation2 + $0x40] sm:$0x8] %v388_v61  ;;  %v1273_v22 = vor.u32 %v1271_v17, %v1270_v51  ;;  %v991_v12 = vrot.slane %v989_v28, 5  ;;  %v5178_v21 = vld [vmem:[#allocation2 + $0x48] sm:$0xf] }
  0x51   : > { %v1284_v42 = vshll.u32 %v5141_v8, 16  ;;  %2574 = vrot.lane.b32.xlu1 %v4345_v26, %s4739_s27  ;;  %v984_v58 = vsel %vm4992_vm11, %v982_v36, %v983_v2  ;;  %v987_v13 = vrot.slane %v986_v60, 4  ;;  %v1290_v47 = vshrl.u32 %v5146_v62, 16  ;;  %v441_v51 = vld [vmem:[#allocation2 + $0x4c] sm:$0x1] }
  0x52   : > { %v1265_v57 = vsel %vm4930_vm8, %v4297_v35, %v1264_v0  ;;  %2654 = vrot.lane.b32.xlu0 %v4361_v5, %s4744_s8  ;;  %v1274_v53 = vsel %vm4930_vm8, %v1266_v63, %v1273_v22  ;;  %v1283_v9 = vrot.slane %v1281_v49, 7  ;;  %v1293_v39 = vshll.u32 %v5146_v62, 16  ;;  %v390_v36 = vld [vmem:[#allocation2 + $0x50] sm:$0x8] }
  0x53   : > { %v1605_v26 = vrot.slane %v1259_v19, 4  ;;  %v4377_v32 = vcombine.low %v1265_v57, %v1274_v53  ;;  %v992_v33 = vsel %vm4992_vm11, %v987_v13, %v991_v12  ;;  %v1292_v44 = vrot.slane %v1290_v47, 7  ;;  %v5194_v12 = vld [vmem:[#allocation2 + $0x54] sm:$0xf] }
  0x54   : > { %v1606_v15 = vrot.slane %v1262_v40, 5  ;;  %v4362_v29 = vcombine.low %v984_v58, %v992_v33  ;;  %v4393_v54 = vcombine.low %v5108_v56, %v5118_v45  ;;  %v1288_v27 = vrot.slane %v1283_v9, 4  ;;  %v4693_v57 = vld [vmem:[%s7255_s3 + $0x10] sm:$0xff]  }
  0x55   : > { %v1609_v3 = vrot.slane %v1271_v17, 5  ;;  %2576 = vrot.lane.b32.xlu1 %v4346_v59, %s4739_s27  ;;  %v1295_v24 = vor.u32 %v1293_v39, %v1292_v44  ;;  %v1611_v31 = vrot.slane %v1268_v16, 4  ;;  %v1615_v35 = vshll.u32 %v1563_v52, 16  ;;  %v5208_v44 = vld [vmem:[#allocation2 + $0x58] sm:$0xf]  ;;  %4585 = vmatprep.subr.bf16.mxu0 %v4693_v57 }
  0x56   : > { %v1607_v19 = vor.u32 %v1606_v15, %v1605_v26  ;;  %2734 = vrot.lane.b32.xlu0 %v4377_v32, %s4742_s30  ;;  %v1286_v40 = vor.u32 %v1284_v42, %v1283_v9  ;;  %v4394_v48 = vcombine.low %v5141_v8, %v5146_v62  ;;  %v1900_v45 = vshrl.u32 %v5173_v50, 16  ;;  %4625 = vmatprep.subr.bf16.mxu1 %v4693_v57 }
  0x57   : > { %v1170_v14 = vld [vmem:[#allocation2 + $0x40] sm:$0x8]  ;;  %v1903_v59 = vshll.u32 %v5173_v50, 16  ;;  %v1296_v16 = vsel %vm4930_vm8, %v1288_v27, %v1295_v24  ;;  %v1612_v5 = vor.u32 %v1611_v31, %v1609_v3  ;;  %v1617_v28 = vrot.slane %v1615_v35, 5  ;;  %4586 = vmatpush3.bf16.msra.mxu0 %v4693_v57  ;;  %v341_v31 = vld [vmem:[%s4828_s26 + $0x48] sm:$0xf]  ;;  %4630 = vmatpush3.bf16.msra.mxu1 %v4693_v57 }
  0x58   : > { %v1808_v56 = vld [vmem:[#allocation2 + $0x40] sm:$0x8]  ;;  %v1276_v17 = vshrl.u32 %v1170_v14, 16  ;;  %v1608_v2 = vrot.slane %v1607_v19, 4  ;;  %v1902_v0 = vrot.slane %v1900_v45, 7  ;;  %v1909_v63 = vshrl.u32 %v5178_v21, 16 }
  0x59   : > { %v1895_v61 = vshrl.u32 %v1808_v56, 16  ;;  %2656 = vrot.lane.b32.xlu1 %v4362_v29, %s4744_s8  ;;  %v1613_v34 = vrot.slane %v1612_v5, 4  ;;  %v1912_v22 = vshll.u32 %v5178_v21, 16  ;;  %v442_v32 = vsel %vm4819_vm6, 0, %v441_v51  ;;  %502 = vst.msk [vmem:[#allocation2 + $0xa4] sm:$0xf] %vm355_vm0, %v341_v31 }
  0x5a   : > { %v4298_v60 = vrot.slane %v1276_v17, 11  ;;  %v1610_v46 = vsel %vm4992_vm11, %v1608_v2, %v1609_v3  ;;  %2846 = vrot.lane.b32.xlu0 %v4393_v54, %s4740_s28  ;;  %v1905_v13 = vor.u32 %v1903_v59, %v1902_v0  ;;  %v1907_v53 = vrot.slane %v1902_v0, 4  ;;  %443 = vst [vmem:[#allocation2 + $0x4c] sm:$0x1] %v442_v32  ;;  %v444_v2 = vld [vmem:[#allocation2 + $0x5c] sm:$0x1] }
  0x5b   : > { %v4313_v58 = vrot.slane %v1895_v61, 11  ;;  %v1911_v9 = vrot.slane %v1909_v63, 7  ;;  %v1618_v26 = vsel %vm4992_vm11, %v1613_v34, %v1617_v28  ;;  %v1619_v33 = vrot.slane %v1281_v49, 4  ;;  %v4695_v5 = vld [vmem:[%s7255_s3 + $0x18] sm:$0xff]  }
  0x5c   : > { %v1287_v52 = vsel %vm4930_vm8, %v4298_v60, %v1286_v40  ;;  %v4409_v29 = vcombine.low %v1610_v46, %v1618_v26  ;;  %v1620_v3 = vrot.slane %v1284_v42, 5  ;;  %v5214_v24 = vrot.slane %v1293_v39, 5  ;;  %4587 = vmatprep.subr.bf16.mxu0 %v4695_v5  ;;  %4626 = vmatprep.subr.bf16.mxu1 %v4695_v5  ;;  %v5252_v26 = vld [vmem:[#allocation2 + $0x48] sm:$0xf] }
  0x5d   : > { %v4378_v15 = vcombine.low %v1287_v52, %v1296_v16  ;;  %v1906_v54 = vsel %vm4930_vm8, %v4313_v58, %v1905_v13  ;;  %v1914_v27 = vor.u32 %v1912_v22, %v1911_v9  ;;  %v1625_v49 = vrot.slane %v1290_v47, 4  ;;  %v342_v47 = vld [vmem:[%s4828_s26 + $0x4c] sm:$0xf]  ;;  %4588 = vmatpush3.bf16.msra.mxu0 %v4695_v5  ;;  %4631 = vmatpush3.bf16.msra.mxu1 %v4695_v5 }
  0x5e   : > { %v391_v19 = vsel %vm4808_vm5, 0, %v390_v36  ;;  %2926 = vrot.lane.b32.xlu0 %v4409_v29, %s4745_s9  ;;  %v1922_v42 = vshrl.u32 %v5194_v12, 16  ;;  %v1925_v39 = vshll.u32 %v5194_v12, 16  ;;  %v1931_v14 = vshrl.u32 %v5208_v44, 16  ;;  %503 = vst.msk [vmem:[#allocation2 + $0xa8] sm:$0xf] %vm355_vm0, %v342_v47 }
  0x5f   : > { %2736 = vrot.lane.b32.xlu1 %v4378_v15, %s4742_s30  ;;  %v1915_v35 = vsel %vm4930_vm8, %v1907_v53, %v1914_v27  ;;  %392 = vst [vmem:[#allocation2 + $0x50] sm:$0x8] %v391_v19  ;;  %v1621_v56 = vor.u32 %v1620_v3, %v1619_v33  ;;  %v1626_v17 = vor.u32 %v1625_v49, %v5214_v24  ;;  %v1934_v16 = vshll.u32 %v5208_v44, 16 }
  0x60   : > { %v4425_v40 = vcombine.low %v1906_v54, %v1915_v35  ;;  %v1924_v51 = vrot.slane %v1922_v42, 7  ;;  %v1933_v28 = vrot.slane %v1931_v14, 7  ;;  %v2246_v61 = vrot.slane %v1900_v45, 4 }
  0x61   : > { %v2247_v0 = vrot.slane %v1903_v59, 5  ;;  %v1622_v36 = vrot.slane %v1621_v56, 4  ;;  %v4441_v60 = vcombine.low %v5173_v50, %v5178_v21  ;;  %v2250_v46 = vrot.slane %v1912_v22, 5  ;;  %v5243_v59 = vld [vmem:[#allocation2 + $0x44] sm:$0xf] }
  0x62   : > { %v2252_v34 = vrot.slane %v1909_v63, 4  ;;  %3006 = vrot.lane.b32.xlu0 %v4425_v40, %s4743_s7  ;;  %v1627_v57 = vrot.slane %v1626_v17, 4  ;;  %v1929_v58 = vrot.slane %v1924_v51, 4  ;;  %v1936_v13 = vor.u32 %v1934_v16, %v1933_v28  ;;  %v1564_v53 = vld [vmem:[#allocation2 + $0x4c] sm:$0x1] }
  0x63   : > { %2848 = vrot.lane.b32.xlu1 %v4394_v48, %s4740_s28  ;;  %v2248_v45 = vor.u32 %v2247_v0, %v2246_v61  ;;  %v1624_v50 = vsel %vm4992_vm11, %v1622_v36, %v5214_v24  ;;  %v1927_v21 = vor.u32 %v1925_v39, %v1924_v51  ;;  %v2204_v63 = vld [vmem:[#allocation2 + $0x4c] sm:$0x1]  ;;  %v445_v8 = vsel %vm4819_vm6, 0, %v444_v2 }
  0x64   : > { %v2253_v22 = vor.u32 %v2252_v34, %v2250_v46  ;;  %v1629_v62 = vshll.u32 %v1564_v53, 16  ;;  %v1937_v48 = vsel %vm4930_vm8, %v1929_v58, %v1936_v13  ;;  %v2256_v52 = vshll.u32 %v2204_v63, 16  ;;  %446 = vst [vmem:[#allocation2 + $0x5c] sm:$0x1] %v445_v8  ;;  %v922_v0 = vld [vmem:[#allocation2 + $0x4c] sm:$0x1] }
  0x65   : > { %v2249_v9 = vrot.slane %v2248_v45, 4  ;;  %v2260_v15 = vrot.slane %v1922_v42, 4  ;;  %v2261_v29 = vrot.slane %v1925_v39, 5  ;;  %v2264_v54 = vrot.slane %v1934_v16, 5  ;;  %v5273_v58 = vld [vmem:[#allocation2 + $0x54] sm:$0xf] }
  0x66   : > { %v1811_v32 = vld [vmem:[#allocation2 + $0x50] sm:$0x8]  ;;  %v2254_v33 = vrot.slane %v2253_v22, 4  ;;  %v1631_v27 = vrot.slane %v1629_v62, 5  ;;  %3118 = vrot.lane.b32.xlu0 %v4441_v60, %s4741_s29  ;;  %v2258_v49 = vrot.slane %v2256_v52, 5  ;;  %v2266_v31 = vrot.slane %v1931_v14, 4 }
  0x67   : > { %v1917_v3 = vshrl.u32 %v1811_v32, 16  ;;  %v2251_v24 = vsel %vm4992_vm11, %v2249_v9, %v2250_v46  ;;  %v2262_v19 = vor.u32 %v2261_v29, %v2260_v15  ;;  %v660_v35 = vshrl.u32 %v5243_v59, 16  ;;  %v343_v63 = vld [vmem:[%s4828_s26 + $0x50] sm:$0xf]  ;;  %v344_v62 = vld [vmem:[%s4828_s26 + $0x54] sm:$0xf] }
  0x68   : > { %v663_v47 = vshll.u32 %v5243_v59, 16  ;;  %v1632_v40 = vsel %vm4992_vm11, %v1627_v57, %v1631_v27  ;;  %v2259_v39 = vsel %vm4992_vm11, %v2254_v33, %v2258_v49  ;;  %v669_v56 = vshrl.u32 %v5252_v26, 16  ;;  %504 = vst.msk [vmem:[#allocation2 + $0xb4] sm:$0xf] %vm355_vm0, %v343_v63  ;;  %505 = vst.msk [vmem:[#allocation2 + $0xb8] sm:$0xf] %vm355_vm0, %v344_v62 }
  0x69   : > { %v4314_v42 = vrot.slane %v1917_v3, 11  ;;  %v4410_v17 = vcombine.low %v1624_v50, %v1632_v40  ;;  %v4457_v16 = vcombine.low %v2251_v24, %v2259_v39  ;;  %v2263_v2 = vrot.slane %v2262_v19, 4  ;;  %v5293_v27 = vld [vmem:[#allocation2 + $0x54] sm:$0xf]  ;;  %v5299_v39 = vld [vmem:[#allocation2 + $0x58] sm:$0xf] }
  0x6a   : > { %v2267_v5 = vor.u32 %v2266_v31, %v2264_v54  ;;  %v5266_v51 = vrot.slane %v660_v35, 7  ;;  %v671_v28 = vrot.slane %v669_v56, 7  ;;  %v672_v61 = vshll.u32 %v5252_v26, 16  ;;  %v1173_v31 = vld [vmem:[#allocation2 + $0x50] sm:$0x8] }
  0x6b   : > { %v1928_v14 = vsel %vm4930_vm8, %v4314_v42, %v1927_v21  ;;  %2928 = vrot.lane.b32.xlu1 %v4410_v17, %s4745_s9  ;;  %3198 = vrot.lane.b32.xlu0 %v4457_v16, %s4746_s10  ;;  %v4442_v60 = vcombine.low %v5194_v12, %v5208_v44  ;;  %v2205_v46 = vld [vmem:[#allocation2 + $0x5c] sm:$0x1]  ;;  %v993_v57 = vrot.slane %v660_v35, 4  ;;  %v994_v50 = vrot.slane %v663_v47, 5  ;;  %v5280_v21 = vld [vmem:[#allocation2 + $0x58] sm:$0xf] }
  0x6c   : > { %v4426_v36 = vcombine.low %v1928_v14, %v1937_v48  ;;  %v2268_v34 = vrot.slane %v2267_v5, 4  ;;  %v2270_v13 = vshll.u32 %v2205_v46, 16  ;;  %v5276_v45 = vor.u32 %v663_v47, %v5266_v51  ;;  %v5318_v63 = vld [vmem:[#allocation2 + $0x64] sm:$0xf]  ;;  %v5324_v62 = vld [vmem:[#allocation2 + $0x68] sm:$0xf] }
  0x6d   : > { %v5278_v53 = vor.u32 %v672_v61, %v671_v28  ;;  %v2265_v22 = vsel %vm4992_vm11, %v2263_v2, %v2264_v54  ;;  %v999_v8 = vrot.slane %v669_v56, 4  ;;  %v997_v12 = vrot.slane %v672_v61, 5 }
  0x6e   : > { %v1003_v44 = vshll.u32 %v922_v0, 16  ;;  %v2272_v48 = vrot.slane %v2270_v13, 5  ;;  %v995_v9 = vor.u32 %v994_v50, %v993_v57  ;;  %v682_v52 = vshrl.u32 %v5273_v58, 16 }
  0x6f   : > { %v685_v32 = vshll.u32 %v5273_v58, 16  ;;  %3008 = vrot.lane.b32.xlu1 %v4426_v36, %s4743_s7  ;;  %v1000_v33 = vor.u32 %v999_v8, %v997_v12  ;;  %v691_v29 = vshrl.u32 %v5280_v21, 16  ;;  %v694_v54 = vshll.u32 %v5280_v21, 16 }
  0x70   : > { %v1005_v15 = vrot.slane %v1003_v44, 5  ;;  %v2273_v3 = vsel %vm4992_vm11, %v2268_v34, %v2272_v48  ;;  %v996_v24 = vrot.slane %v995_v9, 4  ;;  %v5297_v49 = vrot.slane %v682_v52, 7 }
  0x71   : > { %v1007_v19 = vrot.slane %v682_v52, 4  ;;  %v4458_v35 = vcombine.low %v2265_v22, %v2273_v3  ;;  %v1001_v47 = vrot.slane %v1000_v33, 4  ;;  %v693_v40 = vrot.slane %v691_v29, 7  ;;  %v345_v33 = vld [vmem:[%s4828_s26 + $0x58] sm:$0xf] }
  0x72   : > { %v1008_v42 = vrot.slane %v685_v32, 5  ;;  %v4347_v56 = vcombine.low %v5243_v59, %v5252_v26  ;;  %v998_v17 = vsel %vm4992_vm11, %v996_v24, %v997_v12  ;;  %v5306_v16 = vor.u32 %v685_v32, %v5297_v49  ;;  %v923_v59 = vld [vmem:[#allocation2 + $0x5c] sm:$0x1]  ;;  %v393_v26 = vld [vmem:[#allocation2 + $0x60] sm:$0x8] }
  0x73   : > { %v1013_v2 = vrot.slane %v691_v29, 4  ;;  %3120 = vrot.lane.b32.xlu1 %v4442_v60, %s4741_s29  ;;  %3200 = vrot.lane.b32.xlu0 %v4458_v35, %s4746_s10  ;;  %v1006_v5 = vsel %vm4992_vm11, %v1001_v47, %v1005_v15  ;;  %v5312_v14 = vor.u32 %v694_v54, %v693_v40  ;;  %v1298_v28 = vshrl.u32 %v1173_v31, 16  ;;  %506 = vst.msk [vmem:[#allocation2 + $0xc4] sm:$0xf] %vm355_vm0, %v345_v33  ;;  %v346_v31 = vld [vmem:[%s4828_s26 + $0x5c] sm:$0xf] }
  0x74   : > { %v1303_v61 = vshrl.u32 %v5293_v27, 16  ;;  %v4363_v0 = vcombine.low %v998_v17, %v1006_v5  ;;  %v1306_v36 = vshll.u32 %v5293_v27, 16  ;;  %v1312_v46 = vshrl.u32 %v5299_v39, 16  ;;  %507 = vst.msk [vmem:[#allocation2 + $0xc8] sm:$0xf] %vm355_vm0, %v346_v31 }
  0x75   : > { %v1315_v34 = vshll.u32 %v5299_v39, 16  ;;  %v4299_v60 = vrot.slane %v1298_v28, 11  ;;  %v1009_v13 = vor.u32 %v1008_v42, %v1007_v19  ;;  %v1011_v50 = vrot.slane %v694_v54, 5  ;;  %v1565_v42 = vld [vmem:[#allocation2 + $0x5c] sm:$0x1] }
  0x76   : > { %v1305_v57 = vrot.slane %v1303_v61, 7  ;;  %v4348_v22 = vcombine.low %v5273_v58, %v5280_v21  ;;  %v1314_v8 = vrot.slane %v1312_v46, 7  ;;  %v1017_v12 = vshll.u32 %v923_v59, 16  ;;  %v5345_v59 = vld [vmem:[#allocation2 + $0x64] sm:$0xf] }
  0x77   : > { %v394_v44 = vsel %vm4808_vm5, 0, %v393_v26  ;;  %2578 = vrot.lane.b32.xlu1 %v4347_v56, %s4739_s27  ;;  %2658 = vrot.lane.b32.xlu0 %v4363_v0, %s4744_s8  ;;  %v1010_v52 = vrot.slane %v1009_v13, 4  ;;  %v1014_v32 = vor.u32 %v1013_v2, %v1011_v50  ;;  %v1325_v21 = vshrl.u32 %v5318_v63, 16 }
  0x78   : > { %v1308_v48 = vor.u32 %v1306_v36, %v1305_v57  ;;  %v1310_v9 = vrot.slane %v1305_v57, 4  ;;  %395 = vst [vmem:[#allocation2 + $0x60] sm:$0x8] %v394_v44  ;;  %v1317_v15 = vor.u32 %v1315_v34, %v1314_v8  ;;  %v1019_v58 = vrot.slane %v1017_v12, 5  ;;  %v5350_v8 = vld [vmem:[#allocation2 + $0x68] sm:$0xf] }
  0x79   : > { %v1328_v29 = vshll.u32 %v5318_v63, 16  ;;  %v1012_v3 = vsel %vm4992_vm11, %v1010_v52, %v1011_v50  ;;  %v1015_v24 = vrot.slane %v1014_v32, 4  ;;  %v1334_v19 = vshrl.u32 %v5324_v62, 16 }
  0x7a   : > { %v1309_v54 = vsel %vm4930_vm8, %v4299_v60, %v1308_v48  ;;  %v1318_v35 = vsel %vm4930_vm8, %v1310_v9, %v1317_v15  ;;  %v1327_v47 = vrot.slane %v1325_v21, 7  ;;  %v1337_v40 = vshll.u32 %v5324_v62, 16 }
  0x7b   : > { %v1633_v56 = vrot.slane %v1303_v61, 4  ;;  %2580 = vrot.lane.b32.xlu1 %v4348_v22, %s4739_s27  ;;  %v4379_v17 = vcombine.low %v1309_v54, %v1318_v35  ;;  %v1020_v2 = vsel %vm4992_vm11, %v1015_v24, %v1019_v58  ;;  %v1336_v5 = vrot.slane %v1334_v19, 7  ;;  %v447_v54 = vld [vmem:[#allocation2 + $0x6c] sm:$0x1] }
  0x7c   : > { %v1634_v28 = vrot.slane %v1306_v36, 5  ;;  %v4364_v26 = vcombine.low %v1012_v3, %v1020_v2  ;;  %v4395_v0 = vcombine.low %v5293_v27, %v5299_v39  ;;  %v1332_v60 = vrot.slane %v1327_v47, 4 }
  0x7d   : > { %v1637_v57 = vrot.slane %v1315_v34, 5  ;;  %2738 = vrot.lane.b32.xlu0 %v4379_v17, %s4742_s30  ;;  %v1339_v61 = vor.u32 %v1337_v40, %v1336_v5  ;;  %v1639_v50 = vrot.slane %v1312_v46, 4  ;;  %v1643_v22 = vshll.u32 %v1565_v42, 16  ;;  %v396_v17 = vld [vmem:[#allocation2 + $0x70] sm:$0x8] }
  0x7e   : > { %v1635_v13 = vor.u32 %v1634_v28, %v1633_v56  ;;  %v1330_v36 = vor.u32 %v1328_v29, %v1327_v47  ;;  %v4396_v44 = vcombine.low %v5318_v63, %v5324_v62  ;;  %v1944_v27 = vshrl.u32 %v5345_v59, 16 }
  0x7f   : > { %v1176_v12 = vld [vmem:[#allocation2 + $0x60] sm:$0x8]  ;;  %v1947_v39 = vshll.u32 %v5345_v59, 16  ;;  %2660 = vrot.lane.b32.xlu1 %v4364_v26, %s4744_s8  ;;  %v1340_v46 = vsel %vm4930_vm8, %v1332_v60, %v1339_v61  ;;  %v1640_v52 = vor.u32 %v1639_v50, %v1637_v57  ;;  %v1645_v32 = vrot.slane %v1643_v22, 5  ;;  %v5374_v60 = vld [vmem:[#allocation2 + $0x78] sm:$0xf] }
  0x80   : > { %v1814_v48 = vld [vmem:[#allocation2 + $0x60] sm:$0x8]  ;;  %v1320_v34 = vshrl.u32 %v1176_v12, 16  ;;  %v1636_v9 = vrot.slane %v1635_v13, 4  ;;  %v1946_v15 = vrot.slane %v1944_v27, 7  ;;  %v1953_v58 = vshrl.u32 %v5350_v8, 16 }
  0x81   : > { %v1939_v33 = vshrl.u32 %v1814_v48, 16  ;;  %2850 = vrot.lane.b32.xlu0 %v4395_v0, %s4740_s28  ;;  %v1641_v24 = vrot.slane %v1640_v52, 4  ;;  %v1956_v31 = vshll.u32 %v5350_v8, 16  ;;  %v448_v28 = vsel %vm4819_vm6, 0, %v447_v54  ;;  %v5372_v0 = vld [vmem:[#allocation2 + $0x74] sm:$0xf] }
  0x82   : > { %v4300_v62 = vrot.slane %v1320_v34, 11  ;;  %v1638_v3 = vsel %vm4992_vm11, %v1636_v9, %v1637_v57  ;;  %v1949_v47 = vor.u32 %v1947_v39, %v1946_v15  ;;  %v1951_v42 = vrot.slane %v1946_v15, 4  ;;  %449 = vst [vmem:[#allocation2 + $0x6c] sm:$0x1] %v448_v28  ;;  %v450_v54 = vld [vmem:[#allocation2 + $0x7c] sm:$0x1] }
  0x83   : > { %v4315_v35 = vrot.slane %v1939_v33, 11  ;;  %v1955_v56 = vrot.slane %v1953_v58, 7  ;;  %v1646_v5 = vsel %vm4992_vm11, %v1641_v24, %v1645_v32  ;;  %v1647_v26 = vrot.slane %v1325_v21, 4 }
  0x84   : > { %v1331_v2 = vsel %vm4930_vm8, %v4300_v62, %v1330_v36  ;;  %v4411_v61 = vcombine.low %v1638_v3, %v1646_v5  ;;  %v1648_v22 = vrot.slane %v1328_v29, 5  ;;  %v1651_v12 = vrot.slane %v1337_v40, 5 }
  0x85   : > { %v4380_v57 = vcombine.low %v1331_v2, %v1340_v46  ;;  %v1950_v13 = vsel %vm4930_vm8, %v4315_v35, %v1949_v47  ;;  %v1958_v50 = vor.u32 %v1956_v31, %v1955_v56  ;;  %v1653_v36 = vrot.slane %v1334_v19, 4  ;;  %v5394_v2 = vld [vmem:[#allocation2 + $0x64] sm:$0xf] }
  0x86   : > { %v397_v48 = vsel %vm4808_vm5, 0, %v396_v17  ;;  %2930 = vrot.lane.b32.xlu0 %v4411_v61, %s4745_s9  ;;  %v1966_v34 = vshrl.u32 %v5372_v0, 16  ;;  %v1969_v46 = vshll.u32 %v5372_v0, 16  ;;  %v1975_v63 = vshrl.u32 %v5374_v60, 16 }
  0x87   : > { %2740 = vrot.lane.b32.xlu1 %v4380_v57, %s4742_s30  ;;  %v1959_v21 = vsel %vm4930_vm8, %v1951_v42, %v1958_v50  ;;  %398 = vst [vmem:[#allocation2 + $0x70] sm:$0x8] %v397_v48  ;;  %v1649_v40 = vor.u32 %v1648_v22, %v1647_v26  ;;  %v1654_v19 = vor.u32 %v1653_v36, %v1651_v12  ;;  %v1978_v9 = vshll.u32 %v5374_v60, 16  ;;  %v5402_v57 = vld [vmem:[#allocation2 + $0x68] sm:$0xf] }
  0x88   : > { %v4427_v29 = vcombine.low %v1950_v13, %v1959_v21  ;;  %v1968_v52 = vrot.slane %v1966_v34, 7  ;;  %v1977_v32 = vrot.slane %v1975_v63, 7  ;;  %v2274_v33 = vrot.slane %v1944_v27, 4 }
  0x89   : > { %v2275_v15 = vrot.slane %v1947_v39, 5  ;;  %v1650_v62 = vrot.slane %v1649_v40, 4  ;;  %v4443_v3 = vcombine.low %v5345_v59, %v5350_v8  ;;  %v2278_v24 = vrot.slane %v1956_v31, 5  ;;  %v1566_v5 = vld [vmem:[#allocation2 + $0x6c] sm:$0x1] }
  0x8a   : > { %v2280_v35 = vrot.slane %v1953_v58, 4  ;;  %3010 = vrot.lane.b32.xlu0 %v4427_v29, %s4743_s7  ;;  %v1655_v47 = vrot.slane %v1654_v19, 4  ;;  %v1973_v42 = vrot.slane %v1968_v52, 4  ;;  %v1980_v56 = vor.u32 %v1978_v9, %v1977_v32  ;;  %v2206_v28 = vld [vmem:[#allocation2 + $0x6c] sm:$0x1] }
  0x8b   : > { %2852 = vrot.lane.b32.xlu1 %v4396_v44, %s4740_s28  ;;  %v2276_v17 = vor.u32 %v2275_v15, %v2274_v33  ;;  %v1652_v27 = vsel %vm4992_vm11, %v1650_v62, %v1651_v12  ;;  %v1971_v39 = vor.u32 %v1969_v46, %v1968_v52  ;;  %v451_v59 = vsel %vm4819_vm6, 0, %v450_v54 }
  0x8c   : > { %v2281_v26 = vor.u32 %v2280_v35, %v2278_v24  ;;  %v1657_v8 = vshll.u32 %v1566_v5, 16  ;;  %v1981_v44 = vsel %vm4930_vm8, %v1973_v42, %v1980_v56  ;;  %v2284_v31 = vshll.u32 %v2206_v28, 16  ;;  %452 = vst [vmem:[#allocation2 + $0x7c] sm:$0x1] %v451_v59  ;;  %v348_v35 = vld [vmem:[%s4828_s26 + $0x64] sm:$0xf] }
  0x8d   : > { %v2277_v58 = vrot.slane %v2276_v17, 4  ;;  %v2288_v50 = vrot.slane %v1966_v34, 4  ;;  %v2289_v22 = vrot.slane %v1969_v46, 5  ;;  %v2292_v12 = vrot.slane %v1978_v9, 5  ;;  %v924_v5 = vld [vmem:[#allocation2 + $0x6c] sm:$0x1] }
  0x8e   : > { %v1817_v61 = vld [vmem:[#allocation2 + $0x70] sm:$0x8]  ;;  %v2282_v13 = vrot.slane %v2281_v26, 4  ;;  %v1659_v36 = vrot.slane %v1657_v8, 5  ;;  %3122 = vrot.lane.b32.xlu0 %v4443_v3, %s4741_s29  ;;  %v2286_v29 = vrot.slane %v2284_v31, 5  ;;  %v2294_v19 = vrot.slane %v1975_v63, 4 }
  0x8f   : > { %v1961_v48 = vshrl.u32 %v1817_v61, 16  ;;  %v2279_v21 = vsel %vm4992_vm11, %v2277_v58, %v2278_v24  ;;  %v2290_v40 = vor.u32 %v2289_v22, %v2288_v50  ;;  %v704_v52 = vshrl.u32 %v5394_v2, 16  ;;  %v5414_v24 = vpop.permute.xlu0 %2570  ;;  %v347_v63 = vld [vmem:[%s4828_s26 + $0x60] sm:$0xf]  ;;  %509 = vst.msk [vmem:[#allocation2 + $0xd8] sm:$0xf] %vm355_vm0, %v348_v35 }
  0x90   : > { %v707_v32 = vshll.u32 %v5394_v2, 16  ;;  %v1660_v34 = vsel %vm4992_vm11, %v1655_v47, %v1659_v36  ;;  %v2287_v9 = vsel %vm4992_vm11, %v2282_v13, %v2286_v29  ;;  %v713_v33 = vshrl.u32 %v5402_v57, 16  ;;  %508 = vst.msk [vmem:[#allocation2 + $0xd4] sm:$0xf] %vm355_vm0, %v347_v63  ;;  %v5429_v8 = vld [vmem:[#allocation2 + $0x74] sm:$0xf] }
  0x91   : > { %v4316_v46 = vrot.slane %v1961_v48, 11  ;;  %v4412_v15 = vcombine.low %v1652_v27, %v1660_v34  ;;  %v4459_v54 = vcombine.low %v2279_v21, %v2287_v9  ;;  %v2291_v62 = vrot.slane %v2290_v40, 4  ;;  %v5436_v50 = vld [vmem:[#allocation2 + $0x78] sm:$0xf]  ;;  %v5445_v34 = vld [vmem:[#allocation2 + $0x74] sm:$0xf] }
  0x92   : > { %v2295_v3 = vor.u32 %v2294_v19, %v2292_v12  ;;  %v5420_v56 = vrot.slane %v704_v52, 7  ;;  %v715_v47 = vrot.slane %v713_v33, 7  ;;  %v716_v17 = vshll.u32 %v5402_v57, 16 }
  0x93   : > { %v1972_v42 = vsel %vm4930_vm8, %v4316_v46, %v1971_v39  ;;  %2932 = vrot.lane.b32.xlu1 %v4412_v15, %s4745_s9  ;;  %3202 = vrot.lane.b32.xlu0 %v4459_v54, %s4746_s10  ;;  %v4444_v28 = vcombine.low %v5372_v0, %v5374_v60  ;;  %v2207_v26 = vld [vmem:[#allocation2 + $0x7c] sm:$0x1]  ;;  %v1021_v59 = vrot.slane %v704_v52, 4  ;;  %v1022_v13 = vrot.slane %v707_v32, 5  ;;  %v1179_v54 = vld [vmem:[#allocation2 + $0x70] sm:$0x8] }
  0x94   : > { %v4428_v27 = vcombine.low %v1972_v42, %v1981_v44  ;;  %v2296_v39 = vrot.slane %v2295_v3, 4  ;;  %v2298_v58 = vshll.u32 %v2207_v26, 16  ;;  %v5432_v31 = vor.u32 %v707_v32, %v5420_v56  ;;  %v5453_v42 = vld [vmem:[#allocation2 + $0x78] sm:$0xf] }
  0x95   : > { %v5434_v61 = vor.u32 %v716_v17, %v715_v47  ;;  %v2293_v44 = vsel %vm4992_vm11, %v2291_v62, %v2292_v12  ;;  %v1027_v22 = vrot.slane %v713_v33, 4  ;;  %v1025_v36 = vrot.slane %v716_v17, 5  ;;  %v5447_v12 = vpop.permute.xlu0 %2572 }
  0x96   : > { %7293 = vst [vmem:[#allocation3_spill] sm:$0xff] %v5432_v31  ;;  %v1031_v0 = vshll.u32 %v924_v5, 16  ;;  %v2300_v60 = vrot.slane %v2298_v58, 5  ;;  %v1023_v48 = vor.u32 %v1022_v13, %v1021_v59  ;;  %v726_v21 = vshrl.u32 %v5429_v8, 16  ;;  %v5469_v13 = vpop.permute.xlu1 %2844 }
  0x97   : > { %v729_v29 = vshll.u32 %v5429_v8, 16  ;;  %3012 = vrot.lane.b32.xlu1 %v4428_v27, %s4743_s7  ;;  %v1028_v40 = vor.u32 %v1027_v22, %v1025_v36  ;;  %v735_v52 = vshrl.u32 %v5436_v50, 16  ;;  %v738_v32 = vshll.u32 %v5436_v50, 16 }
  0x98   : > { %v1033_v19 = vrot.slane %v1031_v0, 5  ;;  %v2301_v46 = vsel %vm4992_vm11, %v2296_v39, %v2300_v60  ;;  %v1024_v9 = vrot.slane %v1023_v48, 4  ;;  %v5451_v33 = vrot.slane %v726_v21, 7 }
  0x99   : > { %v1035_v15 = vrot.slane %v726_v21, 4  ;;  %v4460_v62 = vcombine.low %v2293_v44, %v2301_v46  ;;  %v1029_v3 = vrot.slane %v1028_v40, 4  ;;  %v737_v63 = vrot.slane %v735_v52, 7 }
  0x9a   : > { %7294 = vst [vmem:[#allocation4_spill] sm:$0xff] %v5451_v33  ;;  %v1036_v35 = vrot.slane %v729_v29, 5  ;;  %v4349_v47 = vcombine.low %v5394_v2, %v5402_v57  ;;  %v1026_v17 = vsel %vm4992_vm11, %v1024_v9, %v1025_v36  ;;  %v5460_v5 = vor.u32 %v729_v29, %v5451_v33  ;;  %v925_v2 = vld [vmem:[#allocation2 + $0x7c] sm:$0x1]  ;;  %v399_v57 = vld [vmem:[#allocation2 + $0x80] sm:$0x8] }
  0x9b   : > { %v1041_v27 = vrot.slane %v735_v52, 4  ;;  %3124 = vrot.lane.b32.xlu1 %v4444_v28, %s4741_s29  ;;  %3204 = vrot.lane.b32.xlu0 %v4460_v62, %s4746_s10  ;;  %v1034_v26 = vsel %vm4992_vm11, %v1029_v3, %v1033_v19  ;;  %v5466_v39 = vor.u32 %v738_v32, %v737_v63  ;;  %v1342_v59 = vshrl.u32 %v1179_v54, 16  ;;  %v5474_v29 = vld [vmem:[#allocation2 + $0x84] sm:$0xf]  ;;  %v5482_v54 = vld [vmem:[#allocation2 + $0x88] sm:$0xf] }
  0x9c   : > { %7295 = vst [vmem:[#allocation5_spill] sm:$0xff] %v5460_v5  ;;  %v1347_v58 = vshrl.u32 %v5445_v34, 16  ;;  %v4365_v44 = vcombine.low %v1026_v17, %v1034_v26  ;;  %v1350_v22 = vshll.u32 %v5445_v34, 16  ;;  %v1356_v36 = vshrl.u32 %v5453_v42, 16  ;;  %v352_v33 = vld [vmem:[%s4828_s26 + $0x74] sm:$0xf] }
  0x9d   : > { %7296 = vst [vmem:[#allocation6_spill] sm:$0xff] %v5466_v39  ;;  %v1359_v28 = vshll.u32 %v5453_v42, 16  ;;  %v4301_v0 = vrot.slane %v1342_v59, 11  ;;  %v1037_v48 = vor.u32 %v1036_v35, %v1035_v15  ;;  %v1039_v21 = vrot.slane %v738_v32, 5  ;;  %v5476_v40 = vpop.permute.xlu0 %2842  ;;  %513 = vst.msk [vmem:[#allocation2 + $0xf8] sm:$0xf] %vm355_vm0, %v352_v33 }
  0x9e   : > { %v1349_v60 = vrot.slane %v1347_v58, 7  ;;  %v4350_v19 = vcombine.low %v5429_v8, %v5436_v50  ;;  %v1358_v52 = vrot.slane %v1356_v36, 7  ;;  %v1045_v46 = vshll.u32 %v925_v2, 16  ;;  %v5493_v2 = vpop.permute.xlu1 %3116 }
  0x9f   : > { %v400_v9 = vsel %vm4808_vm5, 0, %v399_v57  ;;  %2582 = vrot.lane.b32.xlu1 %v4349_v47, %s4739_s27  ;;  %2662 = vrot.lane.b32.xlu0 %v4365_v44, %s4744_s8  ;;  %v1038_v62 = vrot.slane %v1037_v48, 4  ;;  %v1042_v3 = vor.u32 %v1041_v27, %v1039_v21  ;;  %v1369_v8 = vshrl.u32 %v5474_v29, 16 }
  0xa0   : > { %v1352_v15 = vor.u32 %v1350_v22, %v1349_v60  ;;  %v1354_v32 = vrot.slane %v1349_v60, 4  ;;  %401 = vst [vmem:[#allocation2 + $0x80] sm:$0x8] %v400_v9  ;;  %v1361_v63 = vor.u32 %v1359_v28, %v1358_v52  ;;  %v1047_v35 = vrot.slane %v1045_v46, 5  ;;  %v1567_v60 = vld [vmem:[#allocation2 + $0x7c] sm:$0x1] }
  0xa1   : > { %v1372_v50 = vshll.u32 %v5474_v29, 16  ;;  %v1040_v26 = vsel %vm4992_vm11, %v1038_v62, %v1039_v21  ;;  %v1043_v47 = vrot.slane %v1042_v3, 4  ;;  %v7260_v59 = vshrl.u32 %v5482_v54, 16  ;;  %v375_v9 = vld [vmem:[#allocation2] sm:$0x8] }
  0xa2   : > { %v1353_v17 = vsel %vm4930_vm8, %v4301_v0, %v1352_v15  ;;  %v1362_v27 = vsel %vm4930_vm8, %v1354_v32, %v1361_v63  ;;  %v1371_v57 = vrot.slane %v1369_v8, 7  ;;  %v7261_v44 = vshll.u32 %v5482_v54, 16  ;;  %v5505_v15 = vpop.permute.xlu0 %3114 }
  0xa3   : > { %v1661_v48 = vrot.slane %v1347_v58, 4  ;;  %2584 = vrot.lane.b32.xlu1 %v4350_v19, %s4739_s27  ;;  %v4381_v0 = vcombine.low %v1353_v17, %v1362_v27  ;;  %v1048_v21 = vsel %vm4992_vm11, %v1043_v47, %v1047_v35  ;;  %v1380_v52 = vrot.slane %v7260_v59, 7  ;;  %v5512_v47 = vld [vmem:[#allocation2 + $0x84] sm:$0xf] }
  0xa4   : > { %v1662_v46 = vrot.slane %v1350_v22, 5  ;;  %v4366_v32 = vcombine.low %v1040_v26, %v1048_v21  ;;  %v4397_v62 = vcombine.low %v5445_v34, %v5453_v42  ;;  %v1376_v3 = vrot.slane %v1371_v57, 4  ;;  %v5514_v22 = vld [vmem:[#allocation2 + $0x88] sm:$0xf] }
  0xa5   : > { %v1665_v63 = vrot.slane %v1359_v28, 5  ;;  %2742 = vrot.lane.b32.xlu0 %v4381_v0, %s4742_s30  ;;  %v1383_v58 = vor.u32 %v7261_v44, %v1380_v52  ;;  %v1667_v35 = vrot.slane %v1356_v36, 4  ;;  %v1671_v17 = vshll.u32 %v1567_v60, 16  ;;  %v453_v52 = vld [vmem:[#allocation2 + $0x8c] sm:$0x1] }
  0xa6   : > { %v1663_v19 = vor.u32 %v1662_v46, %v1661_v48  ;;  %v1374_v26 = vor.u32 %v1372_v50, %v1371_v57  ;;  %v376_v42 = vsel %vm4808_vm5, 0, %v375_v9  ;;  %v7297_v28 = vrot.slane %v4853_v30, 4  ;;  %v5532_v46 = vpop.permute.xlu1 %2732  ;;  %v402_v44 = vld [vmem:[#allocation2 + $0x90] sm:$0x8] }
  0xa7   : > { %v1182_v27 = vld [vmem:[#allocation2 + $0x80] sm:$0x8]  ;;  %2664 = vrot.lane.b32.xlu1 %v4366_v32, %s4744_s8  ;;  %v1384_v57 = vsel %vm4930_vm8, %v1376_v3, %v1383_v58  ;;  %v1668_v21 = vor.u32 %v1667_v35, %v1665_v63  ;;  %377 = vst [vmem:[#allocation2] sm:$0x8] %v376_v42  ;;  %v1673_v9 = vrot.slane %v1671_v17, 5  ;;  %v7259_v30 = vshrl.u32 %v5512_v47, 16 }
  0xa8   : > { %v5527_v36 = vsel %vm4930_vm8, %v7297_v28, %v4866_v37  ;;  %v1820_v60 = vld [vmem:[#allocation2 + $0x80] sm:$0x8]  ;;  %v1364_v48 = vshrl.u32 %v1182_v27, 16  ;;  %v1664_v0 = vrot.slane %v1663_v19, 4  ;;  %v7264_v37 = vshll.u32 %v5512_v47, 16 }
  0xa9   : > { %v1983_v34 = vshrl.u32 %v1820_v60, 16  ;;  %v349_v28 = vld [vmem:[%s4828_s26 + $0x68] sm:$0xf]  ;;  %2854 = vrot.lane.b32.xlu0 %v4397_v62, %s4740_s28  ;;  %v1669_v58 = vrot.slane %v1668_v21, 4  ;;  %v7262_v19 = vshrl.u32 %v5514_v22, 16  ;;  %v5541_v35 = vpop.permute.xlu0 %2730  ;;  %v1990_v27 = vrot.slane %v7259_v30, 7 }
  0xaa   : > { %v4302_v32 = vrot.slane %v1364_v48, 11  ;;  %v1666_v3 = vsel %vm4992_vm11, %v1664_v0, %v1665_v63  ;;  %510 = vst.msk [vmem:[#allocation2 + $0xe4] sm:$0xf] %vm355_vm0, %v349_v28  ;;  %v7263_v42 = vshll.u32 %v5514_v22, 16  ;;  %v454_v62 = vsel %vm4819_vm6, 0, %v453_v52 }
  0xab   : > { %v4317_v17 = vrot.slane %v1983_v34, 11  ;;  %v1674_v63 = vsel %vm4992_vm11, %v1669_v58, %v1673_v9  ;;  %v1999_v48 = vrot.slane %v7262_v19, 7  ;;  %455 = vst [vmem:[#allocation2 + $0x8c] sm:$0x1] %v454_v62  ;;  %v1675_v34 = vrot.slane %v1369_v8, 4  ;;  %v5571_v62 = vpop.permute.xlu1 %3004 }
  0xac   : > { %v1375_v60 = vsel %vm4930_vm8, %v4302_v32, %v1374_v26  ;;  %v519_v0 = vld [vmem:[#allocation2 + $0x10] sm:$0x8]  ;;  %v350_v21 = vld [vmem:[%s4828_s26 + $0x6c] sm:$0xf]  ;;  %v4413_v30 = vcombine.low %v1666_v3, %v1674_v63  ;;  %v1993_v52 = vor.u32 %v7264_v37, %v1990_v27  ;;  %v1995_v59 = vrot.slane %v1990_v27, 4 }
  0xad   : > { %v4382_v28 = vcombine.low %v1375_v60, %v1384_v57  ;;  %511 = vst.msk [vmem:[#allocation2 + $0xe8] sm:$0xf] %vm355_vm0, %v350_v21  ;;  %v2002_v26 = vor.u32 %v7263_v42, %v1999_v48  ;;  %v1676_v9 = vrot.slane %v1372_v50, 5  ;;  %v7298_v32 = vshll.u32 %v5482_v54, 16  ;;  %v5569_v3 = vld [vmem:[#allocation2 + $0x94] sm:$0xf]  ;;  %v5578_v48 = vpop.permute.xlu0 %3002 }
  0xae   : > { %v7299_v58 = vshrl.u32 %v5482_v54, 16  ;;  %2934 = vrot.lane.b32.xlu0 %v4413_v30, %s4745_s9  ;;  %vm3226_vm12 = vcmask 64512   ;;  %v516_v27 = vld [vmem:[#allocation2] sm:$0x8]  ;;  %v1994_v60 = vsel %vm4930_vm8, %v4317_v17, %v1993_v52  ;;  %v589_v50 = vshrl.u32 %v519_v0, 16 }
  0xaf   : > { %v1679_v8 = vrot.slane %v7298_v32, 5  ;;  %2744 = vrot.lane.b32.xlu1 %v4382_v28, %s4742_s30  ;;  %v601_v63 = vrot.slane %v4904_v11, 4  ;;  %v567_v21 = vshrl.u32 %v516_v27, 16  ;;  %v2003_v32 = vsel %vm4930_vm8, %v1995_v59, %v2002_v26  ;;  %v5582_v42 = vld [vmem:[#allocation2 + $0x98] sm:$0xf] }
  0xb0   : > { %v1681_v57 = vrot.slane %v7299_v58, 4  ;;  %v1677_v58 = vor.u32 %v1676_v9, %v1675_v34  ;;  %v4429_v28 = vcombine.low %v1994_v60, %v2003_v32  ;;  %v4280_v30 = vrot.slane %v589_v50, 11  ;;  %v5606_v50 = vpop.permute.xlu1 %2652 }
  0xb1   : > { %v609_v37 = vsel %vm4930_vm8, %v601_v63, %v4900_v6  ;;  %v403_v17 = vsel %vm4808_vm5, 0, %v402_v44  ;;  %v4279_v11 = vrot.slane %v567_v21, 11  ;;  %v4445_v52 = vcombine.low %v5512_v47, %v5514_v22 }
  0xb2   : > { %v1682_v19 = vor.u32 %v1681_v57, %v1679_v8  ;;  %v1678_v0 = vrot.slane %v1677_v58, 4  ;;  %404 = vst [vmem:[#allocation2 + $0x90] sm:$0x8] %v403_v17  ;;  %v2010_v59 = vshrl.u32 %v5569_v3, 16  ;;  %v7300_v34 = vcombine.low %v5474_v29, %v5482_v54  ;;  %3014 = vrot.lane.b32.xlu0 %v4429_v28, %s4743_s7  ;;  %v1568_v26 = vld [vmem:[#allocation2 + $0x8c] sm:$0x1] }
  0xb3   : > { %v600_v6 = vsel %vm4930_vm8, %v4280_v30, %v4919_v20  ;;  %v2013_v44 = vshll.u32 %v5569_v3, 16  ;;  %v2019_v9 = vshrl.u32 %v5582_v42, 16  ;;  %v2022_v57 = vshll.u32 %v5582_v42, 16  ;;  %v2208_v32 = vld [vmem:[#allocation2 + $0x8c] sm:$0x1]  ;;  %v5613_v30 = vpop.permute.xlu0 %2922 }
  0xb4   : > { %2856 = vrot.lane.b32.xlu1 %v7300_v34, %s4740_s28  ;;  %v578_v27 = vsel %vm4930_vm8, %v4279_v11, %v4869_v38  ;;  %v1683_v60 = vrot.slane %v1682_v19, 4  ;;  %v1685_v29 = vshll.u32 %v1568_v26, 16  ;;  %v4328_v54 = vcombine.low %v600_v6, %v609_v37 }
  0xb5   : > { %v5609_v63 = vcombine.low %v578_v27, %v5527_v36  ;;  %v2012_v21 = vrot.slane %v2010_v59, 7  ;;  %v2021_v20 = vrot.slane %v2019_v9, 7  ;;  %v7301_v58 = vshrl.u32 %v5512_v47, 16  ;;  %v456_v36 = vld [vmem:[#allocation2 + $0x9c] sm:$0x1] }
  0xb6   : > { %v1680_v17 = vsel %vm4992_vm11, %v1678_v0, %v1679_v8  ;;  %v1687_v38 = vrot.slane %v1685_v29, 5  ;;  %v7302_v19 = vshll.u32 %v5512_v47, 16  ;;  %v7303_v11 = vshll.u32 %v5514_v22, 16  ;;  %3126 = vrot.lane.b32.xlu0 %v4445_v52, %s4741_s29 }
  0xb7   : > { %v2302_v28 = vrot.slane %v7301_v58, 4  ;;  %v5623_v26 = vsel %vm3226_vm12, %v4328_v54, %v5447_v12  ;;  %v2015_v6 = vor.u32 %v2013_v44, %v2012_v21  ;;  %v2017_v27 = vrot.slane %v2012_v21, 4  ;;  %v5636_v54 = vld [vmem:[#allocation2 + $0x84] sm:$0xf] }
  0xb8   : > { %v2303_v37 = vrot.slane %v7302_v19, 5  ;;  %v2306_v34 = vrot.slane %v7303_v11, 5  ;;  %v2024_v58 = vor.u32 %v2022_v57, %v2021_v20  ;;  %v1688_v8 = vsel %vm4992_vm11, %v1683_v60, %v1687_v38 }
  0xb9   : > { %v7304_v47 = vshrl.u32 %v5514_v22, 16  ;;  %v2312_v19 = vshll.u32 %v2208_v32, 16  ;;  %v4414_v5 = vcombine.low %v1680_v17, %v1688_v8  ;;  %v1823_v11 = vld [vmem:[#allocation2 + $0x90] sm:$0x8]  ;;  %v457_v52 = vsel %vm4819_vm6, 0, %v456_v36  ;;  %v5640_v32 = vpop.permute.xlu1 %2924 }
  0xba   : > { %v2304_v0 = vor.u32 %v2303_v37, %v2302_v28  ;;  %v2025_v39 = vsel %vm4930_vm8, %v2017_v27, %v2024_v58  ;;  %v2005_v21 = vshrl.u32 %v1823_v11, 16  ;;  %458 = vst [vmem:[#allocation2 + $0x9c] sm:$0x1] %v457_v52  ;;  %v5638_v22 = vld [vmem:[#allocation2 + $0x88] sm:$0xf]  ;;  %v2316_v17 = vrot.slane %v2010_v59, 4  ;;  %v5645_v58 = vpop.permute.xlu0 %3194 }
  0xbb   : > { %v2308_v29 = vrot.slane %v7304_v47, 4  ;;  %v2314_v28 = vrot.slane %v2312_v19, 5  ;;  %2936 = vrot.lane.b32.xlu1 %v4414_v5, %s4745_s9  ;;  %v2317_v38 = vrot.slane %v2013_v44, 5  ;;  %v5643_v37 = vrot.slane %v2022_v57, 5  ;;  %v5660_v11 = vld [vmem:[#allocation2 + $0x94] sm:$0xf] }
  0xbc   : > { %v2305_v60 = vrot.slane %v2304_v0, 4  ;;  %v2322_v27 = vrot.slane %v2019_v9, 4  ;;  %v4318_v36 = vrot.slane %v2005_v21, 11  ;;  %v748_v47 = vshrl.u32 %v5636_v54, 16  ;;  %v5662_v52 = vld [vmem:[#allocation2 + $0x98] sm:$0xf] }
  0xbd   : > { %v2309_v20 = vor.u32 %v2308_v29, %v2306_v34  ;;  %v2318_v29 = vor.u32 %v2317_v38, %v2316_v17  ;;  %v751_v5 = vshll.u32 %v5636_v54, 16  ;;  %v757_v59 = vshrl.u32 %v5638_v22, 16  ;;  %v926_v38 = vld [vmem:[#allocation2 + $0x8c] sm:$0x1] }
  0xbe   : > { %v2307_v8 = vsel %vm4992_vm11, %v2305_v60, %v2306_v34  ;;  %v2323_v19 = vor.u32 %v2322_v27, %v5643_v37  ;;  %v2016_v44 = vsel %vm4930_vm8, %v4318_v36, %v2015_v6  ;;  %v5657_v57 = vrot.slane %v748_v47, 7  ;;  %v351_v27 = vld [vmem:[%s4828_s26 + $0x70] sm:$0xf] }
  0xbf   : > { %v2310_v0 = vrot.slane %v2309_v20, 4  ;;  %v760_v34 = vshll.u32 %v5638_v22, 16  ;;  %v4430_v21 = vcombine.low %v2016_v44, %v2025_v39  ;;  %v2319_v20 = vrot.slane %v2318_v29, 4  ;;  %v5668_v12 = vpop.permute.xlu1 %2650  ;;  %512 = vst.msk [vmem:[#allocation2 + $0xf4] sm:$0xf] %vm355_vm0, %v351_v27 }
  0xc0   : > { %7305 = vst [vmem:[#allocation7_spill] sm:$0xff] %v5657_v57  ;;  %v2324_v17 = vrot.slane %v2323_v19, 4  ;;  %v5666_v6 = vor.u32 %v751_v5, %v5657_v57  ;;  %v759_v36 = vrot.slane %v757_v59, 7  ;;  %v1055_v29 = vrot.slane %v757_v59, 4 }
  0xc1   : > { %v2315_v9 = vsel %vm4992_vm11, %v2310_v0, %v2314_v28  ;;  %v1049_v28 = vrot.slane %v748_v47, 4  ;;  %v1050_v0 = vrot.slane %v751_v5, 5  ;;  %3016 = vrot.lane.b32.xlu1 %v4430_v21, %s4743_s7  ;;  %v2209_v39 = vld [vmem:[#allocation2 + $0x9c] sm:$0x1]  ;;  %v4351_v19 = vcombine.low %v5636_v54, %v5638_v22  ;;  %v5679_v5 = vpop.permute.xlu0 %3196 }
  0xc2   : > { %v4461_v60 = vcombine.low %v2307_v8, %v2315_v9  ;;  %7306 = vst [vmem:[#allocation8_spill] sm:$0xff] %v5666_v6  ;;  %v2321_v8 = vsel %vm4992_vm11, %v2319_v20, %v5643_v37  ;;  %v1053_v47 = vrot.slane %v760_v34, 5  ;;  %v2326_v44 = vshll.u32 %v2209_v39, 16 }
  0xc3   : > { %v5682_v9 = vor.u32 %v760_v34, %v759_v36  ;;  %v1051_v21 = vor.u32 %v1050_v0, %v1049_v28  ;;  %v1059_v27 = vshll.u32 %v926_v38, 16  ;;  %v770_v6 = vshrl.u32 %v5660_v11, 16  ;;  %v5688_v31 = vpop.permute.xlu1 %2574 }
  0xc4   : > { %3206 = vrot.lane.b32.xlu0 %v4461_v60, %s4746_s10  ;;  %v1056_v60 = vor.u32 %v1055_v29, %v1053_v47  ;;  %v773_v57 = vshll.u32 %v5660_v11, 16  ;;  %v779_v37 = vshrl.u32 %v5662_v52, 16  ;;  %v2328_v59 = vrot.slane %v2326_v44, 5 }
  0xc5   : > { %7307 = vst [vmem:[#allocation9_spill] sm:$0xff] %v5682_v9  ;;  %v1052_v20 = vrot.slane %v1051_v21, 4  ;;  %v1061_v54 = vrot.slane %v1059_v27, 5  ;;  %v782_v22 = vshll.u32 %v5662_v52, 16  ;;  %v7308_v33 = vcombine.low %v5569_v3, %v5582_v42  ;;  %v5696_v0 = vpop.permute.xlu0 %2654  ;;  %v1185_v27 = vld [vmem:[#allocation2 + $0x90] sm:$0x8] }
  0xc6   : > { %v1057_v34 = vrot.slane %v1056_v60, 4  ;;  %v5694_v38 = vrot.slane %v770_v6, 7  ;;  %v781_v36 = vrot.slane %v779_v37, 7  ;;  %v1063_v28 = vrot.slane %v770_v6, 4  ;;  %v5702_v9 = vld [vmem:[#allocation2 + $0x94] sm:$0xf] }
  0xc7   : > { %3128 = vrot.lane.b32.xlu1 %v7308_v33, %s4741_s29  ;;  %v2329_v39 = vsel %vm4992_vm11, %v2324_v17, %v2328_v59  ;;  %v1054_v29 = vsel %vm4992_vm11, %v1052_v20, %v1053_v47  ;;  %v1064_v44 = vrot.slane %v773_v57, 5  ;;  %v1069_v21 = vrot.slane %v779_v37, 4  ;;  %v5711_v33 = vld [vmem:[#allocation2 + $0x98] sm:$0xf]  ;;  %v927_v37 = vld [vmem:[#allocation2 + $0x9c] sm:$0x1]  ;;  %v5715_v59 = vpop.permute.xlu1 %2576 }
  0xc8   : > { %7309 = vst [vmem:[#allocation10_spill] sm:$0xff] %v5694_v38  ;;  %v4462_v42 = vcombine.low %v2321_v8, %v2329_v39  ;;  %v1062_v3 = vsel %vm4992_vm11, %v1057_v34, %v1061_v54  ;;  %v5707_v60 = vor.u32 %v773_v57, %v5694_v38  ;;  %v5709_v6 = vor.u32 %v782_v22, %v781_v36  ;;  %v405_v38 = vld [vmem:[#allocation2 + $0xa0] sm:$0x8] }
  0xc9   : > { %v4367_v17 = vcombine.low %v1054_v29, %v1062_v3  ;;  %v4352_v47 = vcombine.low %v5660_v11, %v5662_v52  ;;  %vm3275_vm13 = vcmask 130048   ;;  %vm3308_vm14 = vcmask 195584   ;;  %v5724_v34 = vpop.permute.xlu0 %2734 }
  0xca   : > { %7310 = vst [vmem:[#allocation11_spill] sm:$0xff] %v5707_v60  ;;  %7311 = vst [vmem:[#allocation12_spill] sm:$0xff] %v5709_v6  ;;  %3208 = vrot.lane.b32.xlu0 %v4462_v42, %s4746_s10  ;;  %v3279_v57 = vsel %vm3275_vm13, %v5623_v26, %v5606_v50  ;;  %v1386_v8 = vshrl.u32 %v1185_v27, 16  ;;  %v1391_v20 = vshrl.u32 %v5702_v9, 16  ;;  %v1394_v54 = vshll.u32 %v5702_v9, 16 }
  0xcb   : > { %2586 = vrot.lane.b32.xlu1 %v4351_v19, %s4739_s27  ;;  %v3312_v11 = vsel %vm3308_vm14, %v3279_v57, %v5532_v46  ;;  %v1400_v52 = vshrl.u32 %v5711_v33, 16  ;;  %v1403_v36 = vshll.u32 %v5711_v33, 16  ;;  %v1065_v39 = vor.u32 %v1064_v44, %v1063_v28  ;;  %v5730_v27 = vpop.permute.xlu1 %2656  ;;  %v5734_v28 = vld [vmem:[#allocation2 + $0xa4] sm:$0xf] }
  0xcc   : > { %v4303_v19 = vrot.slane %v1386_v8, 11  ;;  %v1393_v29 = vrot.slane %v1391_v20, 7  ;;  %v1067_v42 = vrot.slane %v782_v22, 5  ;;  %v1073_v3 = vshll.u32 %v927_v37, 16 }
  0xcd   : > { %v1402_v50 = vrot.slane %v1400_v52, 7  ;;  %v1066_v26 = vrot.slane %v1065_v39, 4  ;;  %vm3341_vm15 = vcmask 261120   ;;  %vm3374_vm1 = vcmask 326656   ;;  %v5736_v44 = vpop.permute.xlu0 %2846 }
  0xce   : > { %2666 = vrot.lane.b32.xlu0 %v4367_v17, %s4744_s8  ;;  %v1396_v46 = vor.u32 %v1394_v54, %v1393_v29  ;;  %v1398_v57 = vrot.slane %v1393_v29, 4  ;;  %v1070_v60 = vor.u32 %v1069_v21, %v1067_v42  ;;  %v1075_v6 = vrot.slane %v1073_v3, 5 }
  0xcf   : > { %2588 = vrot.lane.b32.xlu1 %v4352_v47, %s4739_s27  ;;  %v3229_v22 = vsel %vm3226_vm12, %v5609_v63, %v5414_v24  ;;  %v1405_v37 = vor.u32 %v1403_v36, %v1402_v50  ;;  %v1068_v8 = vsel %vm4992_vm11, %v1066_v26, %v1067_v42  ;;  %v3345_v17 = vsel %vm3341_vm15, %v3312_v11, %v5469_v13  ;;  %v5745_v47 = vld [vmem:[#allocation2 + $0xa8] sm:$0xf]  ;;  %v1569_v26 = vld [vmem:[#allocation2 + $0x9c] sm:$0x1] }
  0xd0   : > { %v1397_v21 = vsel %vm4930_vm8, %v4303_v19, %v1396_v46  ;;  %v1071_v39 = vrot.slane %v1070_v60, 4  ;;  %vm3407_vm2 = vcmask 392192   ;;  %v3378_v29 = vsel %vm3374_vm1, %v3345_v17, %v5640_v32  ;;  %v522_v17 = vld [vmem:[#allocation2 + $0x20] sm:$0x8] }
  0xd1   : > { %v1406_v24 = vsel %vm4930_vm8, %v1398_v57, %v1405_v37  ;;  %v4399_v63 = vcombine.low %v5702_v9, %v5711_v33  ;;  %v406_v42 = vsel %vm4808_vm5, 0, %v405_v38  ;;  %v1413_v13 = vshrl.u32 %v5734_v28, 16  ;;  %v5762_v3 = vpop.permute.xlu0 %2926  ;;  %v5769_v46 = vpop.permute.xlu1 %2736 }
  0xd2   : > { %v4383_v11 = vcombine.low %v1397_v21, %v1406_v24  ;;  %v1076_v19 = vsel %vm4992_vm11, %v1071_v39, %v1075_v6  ;;  %407 = vst [vmem:[#allocation2 + $0xa0] sm:$0x8] %v406_v42  ;;  %v1416_v60 = vshll.u32 %v5734_v28, 16  ;;  %v1422_v32 = vshrl.u32 %v5745_v47, 16  ;;  %v4697_v24 = vld [vmem:[%s7255_s3 + $0x20] ss:$0 sps:$4 sm:$0xff]  }
  0xd3   : > { %v4368_v50 = vcombine.low %v1068_v8, %v1076_v19  ;;  %v1415_v9 = vrot.slane %v1413_v13, 7  ;;  %v1425_v33 = vshll.u32 %v5745_v47, 16  ;;  %v3277_v38 = vsel %vm3275_vm13, %v3229_v22, %v5668_v12  ;;  %v353_v19 = vld [vmem:[%s4828_s26 + $0x78] sm:$0xf] }
  0xd4   : > { %2746 = vrot.lane.b32.xlu0 %v4383_v11, %s4742_s30  ;;  %v1424_v6 = vrot.slane %v1422_v32, 7  ;;  %v3310_v57 = vsel %vm3308_vm14, %v3277_v38, %v5541_v35  ;;  %v1689_v37 = vrot.slane %v1391_v20, 4  ;;  %v1690_v8 = vrot.slane %v1394_v54, 5  ;;  %514 = vst.msk [vmem:[#allocation2 + $0x104] sm:$0xf] %vm355_vm0, %v353_v19 }
  0xd5   : > { %2668 = vrot.lane.b32.xlu1 %v4368_v50, %s4744_s8  ;;  %v3411_v12 = vsel %vm3407_vm2, %v3378_v29, %v5571_v62  ;;  %v1418_v22 = vor.u32 %v1416_v60, %v1415_v9  ;;  %v1420_v21 = vrot.slane %v1415_v9, 4  ;;  %v1693_v39 = vrot.slane %v1403_v36, 5  ;;  %v5786_v11 = vpop.permute.xlu0 %3006  ;;  %v354_v50 = vld [vmem:[%s4828_s26 + $0x7c] sm:$0xf]  ;;  %v5810_v19 = vld [vmem:[#allocation2 + $0xa8] sm:$0xf]  ;;  %s6839_s26 = scalar_lea.vmem %s7256_s4, %s4526_s23 }
  0xd6   : > { %v1427_v35 = vor.u32 %v1425_v33, %v1424_v6  ;;  %v1691_v20 = vor.u32 %v1690_v8, %v1689_v37  ;;  %v1695_v54 = vrot.slane %v1400_v52, 4  ;;  %v1699_v42 = vshll.u32 %v1569_v26, 16  ;;  %515 = vst.msk [vmem:[#allocation2 + $0x108] sm:$0xf] %vm355_vm0, %v354_v50  ;;  %v5799_v26 = vld [vmem:[#allocation2 + $0xa4] sm:$0xf]  ;;  %v5804_v8 = vpop.permute.xlu1 %2848 }
  0xd7   : > { %v5792_v62 = vsel %vm3341_vm15, %v3310_v57, %v5476_v40  ;;  %v4400_v36 = vcombine.low %v5734_v28, %v5745_v47  ;;  %vm3440_vm3 = vcmask 457728   ;;  %v611_v29 = vshrl.u32 %v522_v17, 16 }
  0xd8   : > { %2858 = vrot.lane.b32.xlu0 %v4399_v63, %s4740_s28  ;;  %v1692_v52 = vrot.slane %v1691_v20, 4  ;;  %v1696_v9 = vor.u32 %v1695_v54, %v1693_v39  ;;  %v1701_v38 = vrot.slane %v1699_v42, 5  ;;  %vm3473_vm7 = vcmask 523264  }
  0xd9   : > { %v1188_v6 = vld [vmem:[#allocation2 + $0xa0] sm:$0x8]  ;;  %v1428_v40 = vsel %vm4930_vm8, %v1420_v21, %v1427_v35  ;;  %v4281_v57 = vrot.slane %v611_v29, 11  ;;  %v623_v37 = vrot.slane %v5078_v18, 4  ;;  %vm3575_vm9 = vcmask 1043456  }
  0xda   : > { %v1408_v17 = vshrl.u32 %v1188_v6, 16  ;;  %v1694_v63 = vsel %vm4992_vm11, %v1692_v52, %v1693_v39  ;;  %v1697_v20 = vrot.slane %v1696_v9, 4  ;;  %v3444_v54 = vsel %vm3440_vm3, %v3411_v12, %v5493_v2  ;;  %4633 = vmatprep.subr.msk.bf16.mxu0 %vm3575_vm9, %v4697_v24  ;;  %v1826_v42 = vld [vmem:[#allocation2 + $0xa0] sm:$0x8]  ;;  %4634 = vmatprep.subr.msk.bf16.mxu1 %vm3575_vm9, %v4697_v24  ;;  %v5818_v39 = vpop.permute.xlu0 %3118  ;;  %v459_v9 = vld [vmem:[#allocation2 + $0xac] sm:$0x1] }
  0xdb   : > { %v622_v18 = vsel %vm4930_vm8, %v4281_v57, %v5094_v25  ;;  %v631_v21 = vsel %vm4930_vm8, %v623_v37, %v5096_v43  ;;  %v3577_v35 = vsel %vm3575_vm9, %v4697_v24, 0  ;;  %v2027_v50 = vshrl.u32 %v1826_v42, 16 }
  0xdc   : > { %v4304_v29 = vrot.slane %v1408_v17, 11  ;;  %v1702_v2 = vsel %vm4992_vm11, %v1697_v20, %v1701_v38  ;;  %v4329_v12 = vcombine.low %v622_v18, %v631_v21  ;;  %4590 = vmatpush3.bf16.msra.mxu0 %v3577_v35  ;;  %v2032_v52 = vshrl.u32 %v5799_v26, 16  ;;  %4632 = vmatpush3.bf16.msra.mxu1 %v3577_v35  ;;  %v525_v35 = vld [vmem:[#allocation2 + $0x30] sm:$0x8] }
  0xdd   : > { %v4415_v6 = vcombine.low %v1694_v63, %v1702_v2  ;;  %v3477_v25 = vsel %vm3473_vm7, %v3444_v54, %v5679_v5  ;;  %v2035_v43 = vshll.u32 %v5799_v26, 16  ;;  %v2041_v24 = vshrl.u32 %v5810_v19, 16  ;;  %v5839_v42 = vpop.permute.xlu1 %2928 }
  0xde   : > { %v1419_v57 = vsel %vm4930_vm8, %v4304_v29, %v1418_v22  ;;  %v4319_v37 = vrot.slane %v2027_v50, 11  ;;  %v2034_v38 = vrot.slane %v2032_v52, 7  ;;  %v2044_v17 = vshll.u32 %v5810_v19, 16 }
  0xdf   : > { %v4384_v20 = vcombine.low %v1419_v57, %v1428_v40  ;;  %2938 = vrot.lane.b32.xlu0 %v4415_v6, %s4745_s9  ;;  %v2043_v63 = vrot.slane %v2041_v24, 7  ;;  %v460_v5 = vsel %vm4819_vm6, 0, %v459_v9  ;;  %v1703_v54 = vrot.slane %v1413_v13, 4  ;;  %v5857_v9 = vpop.permute.xlu0 %3198  ;;  %v408_v57 = vld [vmem:[#allocation2 + $0xb0] sm:$0x8] }
  0xe0   : > { %v2037_v22 = vor.u32 %v2035_v43, %v2034_v38  ;;  %v2039_v18 = vrot.slane %v2034_v38, 4  ;;  %461 = vst [vmem:[#allocation2 + $0xac] sm:$0x1] %v460_v5  ;;  %v1704_v40 = vrot.slane %v1416_v60, 5  ;;  %v5847_v21 = vrot.slane %v1425_v33, 5 }
  0xe1   : > { %2748 = vrot.lane.b32.xlu1 %v4384_v20, %s4742_s30  ;;  %v3235_v13 = vsel %vm3226_vm12, %v4329_v12, %v5688_v31  ;;  %v2046_v50 = vor.u32 %v2044_v17, %v2043_v63  ;;  %v1709_v29 = vrot.slane %v1422_v32, 4  ;;  %v3376_v2 = vsel %vm3374_vm1, %v5792_v62, %v5613_v30  ;;  %v5868_v62 = vld [vmem:[#allocation2 + $0xb4] sm:$0xf]  ;;  %v5870_v38 = vpop.permute.xlu1 %3008  ;;  %v5875_v5 = vld [vmem:[#allocation2 + $0xb8] sm:$0xf] }
  0xe2   : > { %v2038_v60 = vsel %vm4930_vm8, %v4319_v37, %v2037_v22  ;;  %v1705_v33 = vor.u32 %v1704_v40, %v1703_v54  ;;  %v3409_v6 = vsel %vm3407_vm2, %v3376_v2, %v5578_v48  ;;  %vm3542_vm10 = vcmask 588800  }
  0xe3   : > { %v2047_v31 = vsel %vm4930_vm8, %v2039_v18, %v2046_v50  ;;  %v1710_v32 = vor.u32 %v1709_v29, %v5847_v21  ;;  %v3442_v12 = vsel %vm3440_vm3, %v3409_v6, %v5505_v15  ;;  %v633_v30 = vshrl.u32 %v525_v35, 16 }
  0xe4   : > { %v4431_v37 = vcombine.low %v2038_v60, %v2047_v31  ;;  %v1706_v20 = vrot.slane %v1705_v33, 4  ;;  %v3475_v48 = vsel %vm3473_vm7, %v3442_v12, %v5645_v58  ;;  %v645_v63 = vrot.slane %v5103_v4, 4 }
  0xe5   : > { %2860 = vrot.lane.b32.xlu1 %v4400_v36, %s4740_s28  ;;  %v1711_v15 = vrot.slane %v1710_v32, 4  ;;  %v3281_v54 = vsel %vm3275_vm13, %v3235_v13, %v5696_v0  ;;  %4591 = vmatprep.mubr.msk.bf16.mxu0 %vm3542_vm10, %v3475_v48  ;;  %v4282_v22 = vrot.slane %v633_v30, 11  ;;  %v409_v18 = vsel %vm4808_vm5, 0, %v408_v57 }
  0xe6   : > { %3018 = vrot.lane.b32.xlu0 %v4431_v37, %s4743_s7  ;;  %v1708_v4 = vsel %vm4992_vm11, %v1706_v20, %v5847_v21  ;;  %v653_v58 = vsel %vm4930_vm8, %v645_v63, %v5116_v55  ;;  %4592 = vmatmul.mubr.msk.bf16.vlgmr.msra.gmra.mrb[0].mxu0 %vm3542_vm10, %v3477_v25  ;;  %v4447_v0 = vcombine.low %v5799_v26, %v5810_v19  ;;  %v2054_v28 = vshrl.u32 %v5868_v62, 16  ;;  %v5903_v55 = vpop.permute.xlu1 %3120  ;;  %v5905_v25 = vpop.permute.xlu0 %3200  ;;  %v462_v26 = vld [vmem:[#allocation2 + $0xbc] sm:$0x1] }
  0xe7   : > { %410 = vst [vmem:[#allocation2 + $0xb0] sm:$0x8] %v409_v18  ;;  %v1570_v47 = vld [vmem:[#allocation2 + $0xac] sm:$0x1]  ;;  %v644_v36 = vsel %vm4930_vm8, %v4282_v22, %v5114_v23  ;;  %v2057_v40 = vshll.u32 %v5868_v62, 16  ;;  %v2063_v21 = vshrl.u32 %v5875_v5, 16  ;;  %v3314_v30 = vsel %vm3308_vm14, %v3281_v54, %v5724_v34 }
  0xe8   : > { %v2066_v35 = vshll.u32 %v5875_v5, 16  ;;  %v1713_v13 = vshll.u32 %v1570_v47, 16  ;;  %v4330_v50 = vcombine.low %v644_v36, %v653_v58  ;;  %v2056_v29 = vrot.slane %v2054_v28, 7  ;;  %v2210_v33 = vld [vmem:[#allocation2 + $0xac] sm:$0x1] }
  0xe9   : > { %v2330_v2 = vrot.slane %v2032_v52, 4  ;;  %v2065_v60 = vrot.slane %v2063_v21, 7  ;;  %v2331_v23 = vrot.slane %v2035_v43, 5  ;;  %v2334_v6 = vrot.slane %v2044_v17, 5 }
  0xea   : > { %v2336_v57 = vrot.slane %v2041_v24, 4  ;;  %v1715_v31 = vrot.slane %v1713_v13, 5  ;;  %v3238_v32 = vsel %vm3226_vm12, %v4330_v50, %v5715_v59  ;;  %3130 = vrot.lane.b32.xlu0 %v4447_v0, %s4741_s29  ;;  %v2061_v12 = vrot.slane %v2056_v29, 4  ;;  %v5918_v43 = vpop.permute.xlu1 %2578  ;;  %v5920_v17 = vpop.permute.xlu0 %2658  ;;  %v5930_v0 = vld [vmem:[#allocation2 + $0xa4] sm:$0xf] }
  0xeb   : > { %v2059_v52 = vor.u32 %v2057_v40, %v2056_v29  ;;  %v2068_v37 = vor.u32 %v2066_v35, %v2065_v60  ;;  %v2332_v20 = vor.u32 %v2331_v23, %v2330_v2  ;;  %v3283_v59 = vsel %vm3275_vm13, %v3238_v32, %v5730_v27  ;;  %v5936_v13 = vld [vmem:[#allocation2 + $0xa8] sm:$0xf] }
  0xec   : > { %v2337_v48 = vor.u32 %v2336_v57, %v2334_v6  ;;  %v1716_v19 = vsel %vm4992_vm11, %v1711_v15, %v1715_v31  ;;  %v2340_v24 = vshll.u32 %v2210_v33, 16  ;;  %v4448_v63 = vcombine.low %v5868_v62, %v5875_v5 }
  0xed   : > { %v4416_v34 = vcombine.low %v1708_v4, %v1716_v19  ;;  %v2333_v22 = vrot.slane %v2332_v20, 4  ;;  %v3347_v58 = vsel %vm3341_vm15, %v3314_v30, %v5736_v44  ;;  %v2069_v15 = vsel %vm4930_vm8, %v2061_v12, %v2068_v37  ;;  %v928_v19 = vld [vmem:[#allocation2 + $0xac] sm:$0x1] }
  0xee   : > { %v1829_v54 = vld [vmem:[#allocation2 + $0xb0] sm:$0x8]  ;;  %v2338_v18 = vrot.slane %v2337_v48, 4  ;;  %v2342_v36 = vrot.slane %v2340_v24, 5  ;;  %v463_v27 = vsel %vm4819_vm6, 0, %v462_v26  ;;  %v2344_v50 = vrot.slane %v2054_v28, 4  ;;  %v5943_v2 = vpop.permute.xlu1 %2580 }
  0xef   : > { %v2049_v47 = vshrl.u32 %v1829_v54, 16  ;;  %2940 = vrot.lane.b32.xlu1 %v4416_v34, %s4745_s9  ;;  %v2335_v4 = vsel %vm4992_vm11, %v2333_v22, %v2334_v6  ;;  %464 = vst [vmem:[#allocation2 + $0xbc] sm:$0x1] %v463_v27  ;;  %v2345_v44 = vrot.slane %v2057_v40, 5  ;;  %v5941_v29 = vrot.slane %v2066_v35, 5  ;;  %v5950_v30 = vpop.permute.xlu0 %2738 }
  0xf0   : > { %v2343_v33 = vsel %vm4992_vm11, %v2338_v18, %v2342_v36  ;;  %v2350_v23 = vrot.slane %v2063_v21, 4  ;;  %v792_v57 = vshrl.u32 %v5930_v0, 16  ;;  %v795_v12 = vshll.u32 %v5930_v0, 16  ;;  %v5964_v22 = vld [vmem:[#allocation2 + $0xb4] sm:$0xf] }
  0xf1   : > { %v4320_v60 = vrot.slane %v2049_v47, 11  ;;  %v4463_v31 = vcombine.low %v2335_v4, %v2343_v33  ;;  %v2346_v32 = vor.u32 %v2345_v44, %v2344_v50  ;;  %v801_v6 = vshrl.u32 %v5936_v13, 16  ;;  %v5966_v18 = vld [vmem:[#allocation2 + $0xb8] sm:$0xf] }
  0xf2   : > { %v2351_v40 = vor.u32 %v2350_v23, %v5941_v29  ;;  %v5955_v35 = vrot.slane %v792_v57, 7  ;;  %v804_v37 = vshll.u32 %v5936_v13, 16  ;;  %v1077_v26 = vrot.slane %v792_v57, 4 }
  0xf3   : > { %v2060_v28 = vsel %vm4930_vm8, %v4320_v60, %v2059_v52  ;;  %3210 = vrot.lane.b32.xlu0 %v4463_v31, %s4746_s10  ;;  %v2347_v20 = vrot.slane %v2346_v32, 4  ;;  %v803_v48 = vrot.slane %v801_v6, 7  ;;  %v3316_v24 = vsel %vm3308_vm14, %v3283_v59, %v5769_v46  ;;  %v5976_v59 = vpop.permute.xlu1 %2660  ;;  %v5978_v27 = vpop.permute.xlu0 %2850 }
  0xf4   : > { %v4432_v21 = vcombine.low %v2060_v28, %v2069_v15  ;;  %v5962_v34 = vor.u32 %v795_v12, %v5955_v35  ;;  %v1078_v52 = vrot.slane %v795_v12, 5  ;;  %v1083_v54 = vrot.slane %v801_v6, 4 }
  0xf5   : > { %v2349_v47 = vsel %vm4992_vm11, %v2347_v20, %v5941_v29  ;;  %v2352_v15 = vrot.slane %v2351_v40, 4  ;;  %v5972_v36 = vor.u32 %v804_v37, %v803_v48  ;;  %v4353_v46 = vcombine.low %v5930_v0, %v5936_v13  ;;  %v5994_v40 = vld [vmem:[#allocation2 + $0xb4] sm:$0xf]  ;;  %v1191_v48 = vld [vmem:[#allocation2 + $0xb0] sm:$0x8] }
  0xf6   : > { %3020 = vrot.lane.b32.xlu1 %v4432_v21, %s4743_s7  ;;  %v2211_v4 = vld [vmem:[#allocation2 + $0xbc] sm:$0x1]  ;;  %v3380_v50 = vsel %vm3374_vm1, %v3347_v58, %v5762_v3  ;;  %v1079_v44 = vor.u32 %v1078_v52, %v1077_v26  ;;  %v1081_v60 = vrot.slane %v804_v37, 5  ;;  %v1087_v33 = vshll.u32 %v928_v19, 16 }
  0xf7   : > { %v2354_v23 = vshll.u32 %v2211_v4, 16  ;;  %v814_v29 = vshrl.u32 %v5964_v22, 16  ;;  %v817_v57 = vshll.u32 %v5964_v22, 16  ;;  %v823_v31 = vshrl.u32 %v5966_v18, 16 }
  0xf8   : > { %v3349_v0 = vsel %vm3341_vm15, %v3316_v24, %v5804_v8  ;;  %v1080_v13 = vrot.slane %v1079_v44, 4  ;;  %v1084_v32 = vor.u32 %v1083_v54, %v1081_v60  ;;  %v1089_v12 = vrot.slane %v1087_v33, 5  ;;  %v5998_v26 = vpop.permute.xlu0 %2930  ;;  %v6007_v24 = vld [vmem:[#allocation2 + $0xb8] sm:$0xf] }
  0xf9   : > { %v2356_v3 = vrot.slane %v2354_v23, 5  ;;  %v5991_v58 = vrot.slane %v814_v29, 7  ;;  %v825_v6 = vrot.slane %v823_v31, 7  ;;  %v826_v28 = vshll.u32 %v5966_v18, 16  ;;  %v6009_v52 = vpop.permute.xlu1 %2740 }
  0xfa   : > { %3132 = vrot.lane.b32.xlu1 %v4448_v63, %s4741_s29  ;;  %v1082_v37 = vsel %vm4992_vm11, %v1080_v13, %v1081_v60  ;;  %v1085_v8 = vrot.slane %v1084_v32, 4  ;;  %v1091_v21 = vrot.slane %v814_v29, 4  ;;  %v1092_v20 = vrot.slane %v817_v57, 5  ;;  %v929_v60 = vld [vmem:[#allocation2 + $0xbc] sm:$0x1] }
  0xfb   : > { %v2357_v62 = vsel %vm4992_vm11, %v2352_v15, %v2356_v3  ;;  %v6003_v5 = vor.u32 %v817_v57, %v5991_v58  ;;  %v6005_v63 = vor.u32 %v826_v28, %v825_v6  ;;  %v1097_v19 = vrot.slane %v823_v31, 4 }
  0xfc   : > { %v4464_v54 = vcombine.low %v2349_v47, %v2357_v62  ;;  %v1090_v4 = vsel %vm4992_vm11, %v1085_v8, %v1089_v12  ;;  %v4354_v44 = vcombine.low %v5964_v22, %v5966_v18  ;;  %v3413_v15 = vsel %vm3407_vm2, %v3380_v50, %v5786_v11  ;;  %v6023_v18 = vpop.permute.xlu0 %3010  ;;  %v411_v12 = vld [vmem:[#allocation2 + $0xc0] sm:$0x8]  ;;  %v6031_v62 = vld [vmem:[#allocation2 + $0xc8] sm:$0xf] }
  0xfd   : > { %v4369_v33 = vcombine.low %v1082_v37, %v1090_v4  ;;  %v1430_v23 = vshrl.u32 %v1191_v48, 16  ;;  %v1435_v29 = vshrl.u32 %v5994_v40, 16  ;;  %v1438_v57 = vshll.u32 %v5994_v40, 16  ;;  %v6029_v48 = vld [vmem:[#allocation2 + $0xc4] sm:$0xf] }
  0xfe   : > { %2590 = vrot.lane.b32.xlu1 %v4353_v46, %s4739_s27  ;;  %3212 = vrot.lane.b32.xlu0 %v4464_v54, %s4746_s10  ;;  %v1444_v47 = vshrl.u32 %v6007_v24, 16  ;;  %v1447_v31 = vshll.u32 %v6007_v24, 16  ;;  %v1093_v13 = vor.u32 %v1092_v20, %v1091_v21  ;;  %v1095_v22 = vrot.slane %v826_v28, 5 }
  0xff   : > { %v3382_v11 = vsel %vm3374_vm1, %v3349_v0, %v5839_v42  ;;  %v4305_v46 = vrot.slane %v1430_v23, 11  ;;  %v1437_v50 = vrot.slane %v1435_v29, 7  ;;  %v1101_v32 = vshll.u32 %v929_v60, 16  ;;  %v6036_v0 = vpop.permute.xlu1 %2852 }
 0x100   : > { %v1446_v3 = vrot.slane %v1444_v47, 7  ;;  %v1094_v6 = vrot.slane %v1093_v13, 4  ;;  %v1098_v37 = vor.u32 %v1097_v19, %v1095_v22  ;;  %v3446_v8 = vsel %vm3440_vm3, %v3413_v15, %v5818_v39 }
 0x101   : > { %v1440_v28 = vor.u32 %v1438_v57, %v1437_v50  ;;  %v1442_v21 = vrot.slane %v1437_v50, 4  ;;  %v1103_v20 = vrot.slane %v1101_v32, 5  ;;  %v3415_v42 = vsel %vm3407_vm2, %v3382_v11, %v5870_v38  ;;  %v6055_v11 = vpop.permute.xlu0 %3122 }
 0x102   : > { %2592 = vrot.lane.b32.xlu1 %v4354_v44, %s4739_s27  ;;  %2670 = vrot.lane.b32.xlu0 %v4369_v33, %s4744_s8  ;;  %v1449_v19 = vor.u32 %v1447_v31, %v1446_v3  ;;  %v1096_v39 = vsel %vm4992_vm11, %v1094_v6, %v1095_v22  ;;  %v1099_v54 = vrot.slane %v1098_v37, 4  ;;  %v412_v4 = vsel %vm4808_vm5, 0, %v411_v12  ;;  %v1571_v3 = vld [vmem:[#allocation2 + $0xbc] sm:$0x1] }
 0x103   : > { %v1441_v44 = vsel %vm4930_vm8, %v4305_v46, %v1440_v28  ;;  %413 = vst [vmem:[#allocation2 + $0xc0] sm:$0x8] %v412_v4  ;;  %v1457_v15 = vshrl.u32 %v6029_v48, 16  ;;  %v1460_v38 = vshll.u32 %v6029_v48, 16  ;;  %v1466_v60 = vshrl.u32 %v6031_v62, 16 }
 0x104   : > { %v1450_v33 = vsel %vm4930_vm8, %v1442_v21, %v1449_v19  ;;  %v1104_v23 = vsel %vm4992_vm11, %v1099_v54, %v1103_v20  ;;  %v1469_v13 = vshll.u32 %v6031_v62, 16  ;;  %v3479_v22 = vsel %vm3473_vm7, %v3446_v8, %v5857_v9  ;;  %v528_v9 = vld [vmem:[#allocation2 + $0x40] sm:$0x8] }
 0x105   : > { %v4385_v46 = vcombine.low %v1441_v44, %v1450_v33  ;;  %v4370_v50 = vcombine.low %v1096_v39, %v1104_v23  ;;  %v1459_v32 = vrot.slane %v1457_v15, 7  ;;  %v1468_v12 = vrot.slane %v1466_v60, 7  ;;  %4595 = vmatprep.mubr.msk.bf16.mxu0 %vm3542_vm10, %v3479_v22  ;;  %v6070_v54 = vpop.permute.xlu1 %2932  ;;  %v6079_v23 = vld [vmem:[#allocation2 + $0xc4] sm:$0xf] }
 0x106   : > { %v4401_v6 = vcombine.low %v5994_v40, %v6007_v24  ;;  %v1717_v37 = vrot.slane %v1435_v29, 4  ;;  %v1718_v28 = vrot.slane %v1438_v57, 5  ;;  %v1721_v21 = vrot.slane %v1447_v31, 5 }
 0x107   : > { %2750 = vrot.lane.b32.xlu0 %v4385_v46, %s4742_s30  ;;  %2672 = vrot.lane.b32.xlu1 %v4370_v50, %s4744_s8  ;;  %v1464_v8 = vrot.slane %v1459_v32, 4  ;;  %v1471_v20 = vor.u32 %v1469_v13, %v1468_v12  ;;  %v3448_v19 = vsel %vm3440_vm3, %v3415_v42, %v5903_v55  ;;  %v1723_v39 = vrot.slane %v1444_v47, 4  ;;  %v6081_v55 = vld [vmem:[#allocation2 + $0xc8] sm:$0xf] }
 0x108   : > { %v1462_v40 = vor.u32 %v1460_v38, %v1459_v32  ;;  %v1719_v24 = vor.u32 %v1718_v28, %v1717_v37  ;;  %v1727_v29 = vshll.u32 %v1571_v3, 16  ;;  %v3481_v57 = vsel %vm3473_vm7, %v3448_v19, %v5905_v25  ;;  %v6088_v32 = vpop.permute.xlu0 %3202 }
 0x109   : > { %v1724_v31 = vor.u32 %v1723_v39, %v1721_v21  ;;  %v4402_v4 = vcombine.low %v6029_v48, %v6031_v62  ;;  %v655_v44 = vshrl.u32 %v528_v9, 16  ;;  %v667_v33 = vrot.slane %v5266_v51, 4  ;;  %4596 = vmatmul.mubr.msk.bf16.gmra.mrb[4].mxu0 %vm3542_vm10, %v3481_v57  ;;  %v6094_v28 = vpop.permute.xlu1 %3012  ;;  %v465_v39 = vld [vmem:[#allocation2 + $0xcc] sm:$0x1] }
 0x10a   : > { %v1194_v47 = vld [vmem:[#allocation2 + $0xc0] sm:$0x8]  ;;  %v1472_v42 = vsel %vm4930_vm8, %v1464_v8, %v1471_v20  ;;  %v1720_v22 = vrot.slane %v1719_v24, 4  ;;  %v1729_v46 = vrot.slane %v1727_v29, 5  ;;  %v4449_v50 = vcombine.low %v6079_v23, %v6081_v55 }
 0x10b   : > { %v1832_v25 = vld [vmem:[#allocation2 + $0xc0] sm:$0x8]  ;;  %2862 = vrot.lane.b32.xlu0 %v4401_v6, %s4740_s28  ;;  %v1452_v51 = vshrl.u32 %v1194_v47, 16  ;;  %v1725_v12 = vrot.slane %v1724_v31, 4  ;;  %v4283_v3 = vrot.slane %v655_v44, 11  ;;  %v675_v37 = vsel %vm4930_vm8, %v667_v33, %v5278_v53 }
 0x10c   : > { %v1722_v9 = vsel %vm4992_vm11, %v1720_v22, %v1721_v21  ;;  %v2071_v8 = vshrl.u32 %v1832_v25, 16  ;;  %v2076_v20 = vshrl.u32 %v6079_v23, 16  ;;  %v2079_v19 = vshll.u32 %v6079_v23, 16  ;;  %v531_v33 = vld [vmem:[#allocation2 + $0x50] sm:$0x8] }
 0x10d   : > { %v4306_v24 = vrot.slane %v1452_v51, 11  ;;  %v1730_v6 = vsel %vm4992_vm11, %v1725_v12, %v1729_v46  ;;  %v666_v29 = vsel %vm4930_vm8, %v4283_v3, %v5276_v45  ;;  %v2085_v53 = vshrl.u32 %v6081_v55, 16  ;;  %v6108_v47 = vld [vmem:[#allocation2 + $0xd4] sm:$0xf]  ;;  %v6117_v51 = vld [vmem:[#allocation2 + $0xd8] sm:$0xf]  ;;  %v6119_v12 = vpop.permute.xlu1 %3124 }
 0x10e   : > { %v4417_v57 = vcombine.low %v1722_v9, %v1730_v6  ;;  %v4331_v31 = vcombine.low %v666_v29, %v675_v37  ;;  %v4321_v44 = vrot.slane %v2071_v8, 11  ;;  %v2078_v21 = vrot.slane %v2076_v20, 7 }
 0x10f   : > { %v1463_v22 = vsel %vm4930_vm8, %v4306_v24, %v1462_v40  ;;  %v2087_v46 = vrot.slane %v2085_v53, 7  ;;  %v2088_v25 = vshll.u32 %v6081_v55, 16  ;;  %v466_v45 = vsel %vm4819_vm6, 0, %v465_v39  ;;  %v414_v40 = vld [vmem:[#allocation2 + $0xd0] sm:$0x8]  ;;  %v6126_v24 = vpop.permute.xlu0 %3204 }
 0x110   : > { %v4386_v3 = vcombine.low %v1463_v22, %v1472_v42  ;;  %2942 = vrot.lane.b32.xlu0 %v4417_v57, %s4745_s9  ;;  %v2081_v37 = vor.u32 %v2079_v19, %v2078_v21  ;;  %v2083_v9 = vrot.slane %v2078_v21, 4  ;;  %467 = vst [vmem:[#allocation2 + $0xcc] sm:$0x1] %v466_v45  ;;  %v1731_v39 = vrot.slane %v1457_v15, 4 }
 0x111   : > { %v2090_v6 = vor.u32 %v2088_v25, %v2087_v46  ;;  %v1732_v42 = vrot.slane %v1460_v38, 5  ;;  %v1735_v29 = vrot.slane %v1469_v13, 5  ;;  %v3241_v57 = vsel %vm3226_vm12, %v4331_v31, %v5918_v43 }
 0x112   : > { %2752 = vrot.lane.b32.xlu1 %v4386_v3, %s4742_s30  ;;  %v2082_v21 = vsel %vm4930_vm8, %v4321_v44, %v2081_v37  ;;  %v1737_v22 = vrot.slane %v1466_v60, 4  ;;  %v677_v46 = vshrl.u32 %v531_v33, 16  ;;  %v689_v38 = vrot.slane %v5297_v49, 4  ;;  %v6146_v3 = vpop.permute.xlu1 %2582 }
 0x113   : > { %v2091_v15 = vsel %vm4930_vm8, %v2083_v9, %v2090_v6  ;;  %v1733_v45 = vor.u32 %v1732_v42, %v1731_v39  ;;  %v415_v13 = vsel %vm4808_vm5, 0, %v414_v40  ;;  %v2098_v44 = vshrl.u32 %v6108_v47, 16  ;;  %v6165_v39 = vpop.permute.xlu0 %2662 }
 0x114   : > { %v4433_v8 = vcombine.low %v2082_v21, %v2091_v15  ;;  %v1738_v43 = vor.u32 %v1737_v22, %v1735_v29  ;;  %v4284_v31 = vrot.slane %v677_v46, 11  ;;  %416 = vst [vmem:[#allocation2 + $0xd0] sm:$0x8] %v415_v13  ;;  %v697_v60 = vsel %vm4930_vm8, %v689_v38, %v5312_v14 }
 0x115   : > { %v1734_v37 = vrot.slane %v1733_v45, 4  ;;  %v2101_v33 = vshll.u32 %v6108_v47, 16  ;;  %v2107_v49 = vshrl.u32 %v6117_v51, 16  ;;  %v3285_v9 = vsel %vm3275_vm13, %v3241_v57, %v5920_v17 }
 0x116   : > { %2864 = vrot.lane.b32.xlu1 %v4402_v4, %s4740_s28  ;;  %3022 = vrot.lane.b32.xlu0 %v4433_v8, %s4743_s7  ;;  %v688_v40 = vsel %vm4930_vm8, %v4284_v31, %v5306_v16  ;;  %v2100_v6 = vrot.slane %v2098_v44, 7  ;;  %v2110_v14 = vshll.u32 %v6117_v51, 16  ;;  %v1739_v48 = vrot.slane %v1738_v43, 4  ;;  %v6175_v13 = vpop.permute.xlu1 %2584  ;;  %v468_v31 = vld [vmem:[#allocation2 + $0xdc] sm:$0x1] }
 0x117   : > { %v1572_v42 = vld [vmem:[#allocation2 + $0xcc] sm:$0x1]  ;;  %v1736_v21 = vsel %vm4992_vm11, %v1734_v37, %v1735_v29  ;;  %v4332_v62 = vcombine.low %v688_v40, %v697_v60  ;;  %v2109_v4 = vrot.slane %v2107_v49, 7  ;;  %v3318_v17 = vsel %vm3308_vm14, %v3285_v9, %v5950_v30  ;;  %v6195_v40 = vpop.permute.xlu0 %2742 }
 0x118   : > { %v2212_v8 = vld [vmem:[#allocation2 + $0xcc] sm:$0x1]  ;;  %v1741_v22 = vshll.u32 %v1572_v42, 16  ;;  %v2105_v46 = vrot.slane %v2100_v6, 4  ;;  %v2358_v16 = vrot.slane %v2076_v20, 4  ;;  %v2103_v57 = vor.u32 %v2101_v33, %v2100_v6 }
 0x119   : > { %v2112_v15 = vor.u32 %v2110_v14, %v2109_v4  ;;  %v2359_v45 = vrot.slane %v2079_v19, 5  ;;  %v2362_v38 = vrot.slane %v2088_v25, 5  ;;  %v3244_v43 = vsel %vm3226_vm12, %v4332_v62, %v5943_v2  ;;  %v6199_v4 = vld [vmem:[#allocation2 + $0xc8] sm:$0xf] }
 0x11a   : > { %v1743_v29 = vrot.slane %v1741_v22, 5  ;;  %3134 = vrot.lane.b32.xlu0 %v4449_v50, %s4741_s29  ;;  %v2364_v30 = vrot.slane %v2085_v53, 4  ;;  %v2368_v20 = vshll.u32 %v2212_v8, 16  ;;  %v3287_v25 = vsel %vm3275_vm13, %v3244_v43, %v5976_v59  ;;  %v6193_v53 = vld [vmem:[#allocation2 + $0xc4] sm:$0xf] }
 0x11b   : > { %v1835_v37 = vld [vmem:[#allocation2 + $0xd0] sm:$0x8]  ;;  %v2113_v19 = vsel %vm4930_vm8, %v2105_v46, %v2112_v15  ;;  %v2360_v60 = vor.u32 %v2359_v45, %v2358_v16  ;;  %v3351_v2 = vsel %vm3341_vm15, %v3318_v17, %v5978_v27  ;;  %v469_v62 = vsel %vm4819_vm6, 0, %v468_v31  ;;  %v6208_v15 = vpop.permute.xlu1 %2664 }
 0x11c   : > { %v1744_v23 = vsel %vm4992_vm11, %v1739_v48, %v1743_v29  ;;  %v2093_v50 = vshrl.u32 %v1835_v37, 16  ;;  %v2365_v9 = vor.u32 %v2364_v30, %v2362_v38  ;;  %v2370_v55 = vrot.slane %v2368_v20, 5  ;;  %470 = vst [vmem:[#allocation2 + $0xdc] sm:$0x1] %v469_v62 }
 0x11d   : > { %v4418_v6 = vcombine.low %v1736_v21, %v1744_v23  ;;  %v2361_v42 = vrot.slane %v2360_v60, 4  ;;  %v2372_v59 = vrot.slane %v2098_v44, 4  ;;  %v2373_v22 = vrot.slane %v2101_v33, 5  ;;  %v930_v60 = vld [vmem:[#allocation2 + $0xcc] sm:$0x1]  ;;  %v6219_v23 = vpop.permute.xlu0 %2854 }
 0x11e   : > { %v4322_v8 = vrot.slane %v2093_v50, 11  ;;  %v2366_v27 = vrot.slane %v2365_v9, 4  ;;  %v6201_v48 = vrot.slane %v2110_v14, 5  ;;  %v2378_v17 = vrot.slane %v2107_v49, 4 }
 0x11f   : > { %2944 = vrot.lane.b32.xlu1 %v4418_v6, %s4745_s9  ;;  %v2363_v46 = vsel %vm4992_vm11, %v2361_v42, %v2362_v38  ;;  %v836_v21 = vshrl.u32 %v6193_v53, 16  ;;  %v839_v16 = vshll.u32 %v6193_v53, 16  ;;  %v2374_v14 = vor.u32 %v2373_v22, %v2372_v59 }
 0x120   : > { %v2104_v44 = vsel %vm4930_vm8, %v4322_v8, %v2103_v57  ;;  %v2371_v33 = vsel %vm4992_vm11, %v2366_v27, %v2370_v55  ;;  %v845_v45 = vshrl.u32 %v6199_v4, 16  ;;  %v2379_v38 = vor.u32 %v2378_v17, %v6201_v48  ;;  %v556_v55 = vld [vmem:[#allocation2 + $0xd4] sm:$0xf]  ;;  %v557_v8 = vld [vmem:[#allocation2 + $0xd8] sm:$0xf] }
 0x121   : > { %v4434_v29 = vcombine.low %v2104_v44, %v2113_v19  ;;  %v4465_v43 = vcombine.low %v2363_v46, %v2371_v33  ;;  %v6216_v49 = vrot.slane %v836_v21, 7  ;;  %v2375_v30 = vrot.slane %v2374_v14, 4  ;;  %v6237_v17 = vpop.permute.xlu1 %2744 }
 0x122   : > { %v847_v20 = vrot.slane %v845_v45, 7  ;;  %v848_v31 = vshll.u32 %v6199_v4, 16  ;;  %v1105_v37 = vrot.slane %v836_v21, 4  ;;  %v3320_v57 = vsel %vm3308_vm14, %v3287_v25, %v6009_v52 }
 0x123   : > { %3024 = vrot.lane.b32.xlu1 %v4434_v29, %s4743_s7  ;;  %3214 = vrot.lane.b32.xlu0 %v4465_v43, %s4746_s10  ;;  %v6226_v19 = vor.u32 %v839_v16, %v6216_v49  ;;  %v1106_v50 = vrot.slane %v839_v16, 5  ;;  %v1111_v9 = vrot.slane %v845_v45, 4  ;;  %v2377_v6 = vsel %vm4992_vm11, %v2375_v30, %v6201_v48  ;;  %v2213_v27 = vld [vmem:[#allocation2 + $0xdc] sm:$0x1] }
 0x124   : > { %v2380_v42 = vrot.slane %v2379_v38, 4  ;;  %v6231_v62 = vor.u32 %v848_v31, %v847_v20  ;;  %v1109_v59 = vrot.slane %v848_v31, 5  ;;  %v4355_v52 = vcombine.low %v6193_v53, %v6199_v4 }
 0x125   : > { %v1107_v22 = vor.u32 %v1106_v50, %v1105_v37  ;;  %v3384_v25 = vsel %vm3374_vm1, %v3351_v2, %v5998_v26  ;;  %v1115_v46 = vshll.u32 %v930_v60, 16  ;;  %v2382_v21 = vshll.u32 %v2213_v27, 16  ;;  %v6245_v2 = vpop.permute.xlu0 %2934  ;;  %v6249_v60 = vld [vmem:[#allocation2 + $0xd4] sm:$0xf]  ;;  %v1197_v27 = vld [vmem:[#allocation2 + $0xd0] sm:$0x8] }
 0x126   : > { %v1112_v16 = vor.u32 %v1111_v9, %v1109_v59  ;;  %v858_v44 = vshrl.u32 %v556_v55, 16  ;;  %v861_v48 = vshll.u32 %v556_v55, 16  ;;  %v7312_v33 = vcombine.low %v6108_v47, %v6117_v51 }
 0x127   : > { %v1108_v14 = vrot.slane %v1107_v22, 4  ;;  %v1117_v45 = vrot.slane %v1115_v46, 5  ;;  %v867_v29 = vshrl.u32 %v557_v8, 16  ;;  %v870_v43 = vshll.u32 %v557_v8, 16  ;;  %v6258_v22 = vld [vmem:[#allocation2 + $0xd8] sm:$0xf] }
 0x128   : > { %3136 = vrot.lane.b32.xlu1 %v7312_v33, %s4741_s29  ;;  %v2384_v53 = vrot.slane %v2382_v21, 5  ;;  %v1113_v4 = vrot.slane %v1112_v16, 4  ;;  %v6243_v38 = vrot.slane %v858_v44, 7  ;;  %v1119_v26 = vrot.slane %v858_v44, 4  ;;  %v6265_v44 = vpop.permute.xlu1 %2856 }
 0x129   : > { %v1110_v30 = vsel %vm4992_vm11, %v1108_v14, %v1109_v59  ;;  %v869_v20 = vrot.slane %v867_v29, 7  ;;  %v1120_v31 = vrot.slane %v861_v48, 5  ;;  %v1123_v37 = vrot.slane %v870_v43, 5 }
 0x12a   : > { %v2385_v47 = vsel %vm4992_vm11, %v2380_v42, %v2384_v53  ;;  %v1118_v51 = vsel %vm4992_vm11, %v1113_v4, %v1117_v45  ;;  %v6256_v50 = vor.u32 %v861_v48, %v6243_v38  ;;  %v1125_v9 = vrot.slane %v867_v29, 4  ;;  %v931_v42 = vld [vmem:[#allocation2 + $0xdc] sm:$0x1] }
 0x12b   : > { %v4466_v46 = vcombine.low %v2377_v6, %v2385_v47  ;;  %v3353_v59 = vsel %vm3341_vm15, %v3320_v57, %v6036_v0  ;;  %v6263_v21 = vor.u32 %v870_v43, %v869_v20  ;;  %v1121_v16 = vor.u32 %v1120_v31, %v1119_v26  ;;  %v417_v57 = vld [vmem:[#allocation2 + $0xe0] sm:$0x8]  ;;  %v6281_v31 = vld [vmem:[#allocation2 + $0xe8] sm:$0xf] }
 0x12c   : > { %7313 = vst [vmem:[#allocation13_spill] sm:$0xff] %v6256_v50  ;;  %2594 = vrot.lane.b32.xlu1 %v4355_v52, %s4739_s27  ;;  %v4371_v33 = vcombine.low %v1110_v30, %v1118_v51  ;;  %v1126_v14 = vor.u32 %v1125_v9, %v1123_v37  ;;  %v4356_v48 = vcombine.low %v556_v55, %v557_v8  ;;  %v1474_v6 = vshrl.u32 %v1197_v27, 16  ;;  %v6274_v30 = vld [vmem:[#allocation2 + $0xe4] sm:$0xf]  ;;  %v6276_v55 = vpop.permute.xlu0 %3014 }
 0x12d   : > { %v3417_v45 = vsel %vm3407_vm2, %v3384_v25, %v6023_v18  ;;  %3216 = vrot.lane.b32.xlu0 %v4466_v46, %s4746_s10  ;;  %v1479_v52 = vshrl.u32 %v6249_v60, 16  ;;  %v1482_v29 = vshll.u32 %v6249_v60, 16  ;;  %v1488_v0 = vshrl.u32 %v6258_v22, 16 }
 0x12e   : > { %v1491_v43 = vshll.u32 %v6258_v22, 16  ;;  %v1122_v53 = vrot.slane %v1121_v16, 4  ;;  %v1127_v4 = vrot.slane %v1126_v14, 4  ;;  %v1129_v26 = vshll.u32 %v931_v42, 16  ;;  %v6292_v42 = vpop.permute.xlu1 %2936 }
 0x12f   : > { %v3386_v18 = vsel %vm3374_vm1, %v3353_v59, %v6070_v54  ;;  %v4307_v8 = vrot.slane %v1474_v6, 11  ;;  %v1481_v25 = vrot.slane %v1479_v52, 7  ;;  %v1490_v20 = vrot.slane %v1488_v0, 7 }
 0x130   : > { %2596 = vrot.lane.b32.xlu1 %v4356_v48, %s4739_s27  ;;  %v1124_v47 = vsel %vm4992_vm11, %v1122_v53, %v1123_v37  ;;  %v1131_v51 = vrot.slane %v1129_v26, 5  ;;  %v3450_v9 = vsel %vm3440_vm3, %v3417_v45, %v6055_v11  ;;  %v3419_v27 = vsel %vm3407_vm2, %v3386_v18, %v6094_v28  ;;  %v1573_v18 = vld [vmem:[#allocation2 + $0xdc] sm:$0x1] }
 0x131   : > { %2674 = vrot.lane.b32.xlu0 %v4371_v33, %s4744_s8  ;;  %v1484_v46 = vor.u32 %v1482_v29, %v1481_v25  ;;  %v1486_v16 = vrot.slane %v1481_v25, 4  ;;  %v1493_v54 = vor.u32 %v1491_v43, %v1490_v20  ;;  %v418_v59 = vsel %vm4808_vm5, 0, %v417_v57  ;;  %v6310_v25 = vpop.permute.xlu0 %3126 }
 0x132   : > { %v1132_v37 = vsel %vm4992_vm11, %v1127_v4, %v1131_v51  ;;  %419 = vst [vmem:[#allocation2 + $0xe0] sm:$0x8] %v418_v59  ;;  %v1501_v14 = vshrl.u32 %v6274_v30, 16  ;;  %v1504_v11 = vshll.u32 %v6274_v30, 16  ;;  %v1510_v28 = vshrl.u32 %v6281_v31, 16 }
 0x133   : > { %v1485_v33 = vsel %vm4930_vm8, %v4307_v8, %v1484_v46  ;;  %v1494_v48 = vsel %vm4930_vm8, %v1486_v16, %v1493_v54  ;;  %v4372_v45 = vcombine.low %v1124_v47, %v1132_v37  ;;  %v1513_v6 = vshll.u32 %v6281_v31, 16  ;;  %v534_v46 = vld [vmem:[#allocation2 + $0x60] sm:$0x8] }
 0x134   : > { %v4387_v57 = vcombine.low %v1485_v33, %v1494_v48  ;;  %v1503_v53 = vrot.slane %v1501_v14, 7  ;;  %v1512_v4 = vrot.slane %v1510_v28, 7  ;;  %v3483_v26 = vsel %vm3473_vm7, %v3450_v9, %v6088_v32  ;;  %v6328_v48 = vld [vmem:[#allocation2 + $0xe4] sm:$0xf] }
 0x135   : > { %2676 = vrot.lane.b32.xlu1 %v4372_v45, %s4744_s8  ;;  %v4403_v8 = vcombine.low %v6249_v60, %v6258_v22  ;;  %v1745_v20 = vrot.slane %v1479_v52, 4  ;;  %v1746_v47 = vrot.slane %v1482_v29, 5  ;;  %v1749_v51 = vrot.slane %v1491_v43, 5  ;;  %4599 = vmatprep.mubr.msk.bf16.mxu0 %vm3542_vm10, %v3483_v26  ;;  %v6323_v22 = vpop.permute.xlu1 %3016  ;;  %v6330_v45 = vld [vmem:[#allocation2 + $0xe8] sm:$0xf] }
 0x136   : > { %2754 = vrot.lane.b32.xlu0 %v4387_v57, %s4742_s30  ;;  %v1508_v16 = vrot.slane %v1503_v53, 4  ;;  %v1515_v32 = vor.u32 %v1513_v6, %v1512_v4  ;;  %v3452_v9 = vsel %vm3440_vm3, %v3419_v27, %v6119_v12  ;;  %v1751_v54 = vrot.slane %v1488_v0, 4 }
 0x137   : > { %v1747_v59 = vor.u32 %v1746_v47, %v1745_v20  ;;  %v1755_v37 = vshll.u32 %v1573_v18, 16  ;;  %v3485_v60 = vsel %vm3473_vm7, %v3452_v9, %v6126_v24  ;;  %v1506_v52 = vor.u32 %v1504_v11, %v1503_v53  ;;  %v6341_v20 = vpop.permute.xlu0 %3206  ;;  %v471_v9 = vld [vmem:[#allocation2 + $0xec] sm:$0x1] }
 0x138   : > { %v1752_v29 = vor.u32 %v1751_v54, %v1749_v51  ;;  %v699_v43 = vshrl.u32 %v534_v46, 16  ;;  %v711_v33 = vrot.slane %v5420_v56, 4  ;;  %4600 = vmatmul.mubr.msk.bf16.gmra.mrb[8].mxu0 %vm3542_vm10, %v3485_v60  ;;  %v1516_v0 = vsel %vm4930_vm8, %v1508_v16, %v1515_v32 }
 0x139   : > { %v1200_v12 = vld [vmem:[#allocation2 + $0xe0] sm:$0x8]  ;;  %v1748_v24 = vrot.slane %v1747_v59, 4  ;;  %v1757_v27 = vrot.slane %v1755_v37, 5  ;;  %v4404_v57 = vcombine.low %v6274_v30, %v6281_v31  ;;  %v2120_v16 = vshrl.u32 %v6328_v48, 16 }
 0x13a   : > { %v1838_v53 = vld [vmem:[#allocation2 + $0xe0] sm:$0x8]  ;;  %2866 = vrot.lane.b32.xlu0 %v4403_v8, %s4740_s28  ;;  %v1496_v4 = vshrl.u32 %v1200_v12, 16  ;;  %v1753_v56 = vrot.slane %v1752_v29, 4  ;;  %v4285_v26 = vrot.slane %v699_v43, 11  ;;  %v719_v18 = vsel %vm4930_vm8, %v711_v33, %v5434_v61  ;;  %v6355_v33 = vpop.permute.xlu1 %3128 }
 0x13b   : > { %v1750_v47 = vsel %vm4992_vm11, %v1748_v24, %v1749_v51  ;;  %v2115_v46 = vshrl.u32 %v1838_v53, 16  ;;  %v7269_v32 = vshll.u32 %v6328_v48, 16  ;;  %v7314_v59 = vld [vmem:[#allocation3_spill] sm:$0xff]  ;;  %v7268_v61 = vshrl.u32 %v6330_v45, 16  ;;  %v474_v30 = vld [vmem:[#allocation2 + $0xfc] sm:$0x1] }
 0x13c   : > { %v4308_v54 = vrot.slane %v1496_v4, 11  ;;  %v1758_v8 = vsel %vm4992_vm11, %v1753_v56, %v1757_v27  ;;  %v710_v37 = vsel %vm4930_vm8, %v4285_v26, %v7314_v59  ;;  %v2122_v51 = vrot.slane %v2120_v16, 7  ;;  %v537_v4 = vld [vmem:[#allocation2 + $0x70] sm:$0x8]  ;;  %v6377_v59 = vld [vmem:[#allocation2 + $0xf8] sm:$0xf] }
 0x13d   : > { %v4419_v60 = vcombine.low %v1750_v47, %v1758_v8  ;;  %v4333_v29 = vcombine.low %v710_v37, %v719_v18  ;;  %v4323_v43 = vrot.slane %v2115_v46, 11  ;;  %v2131_v24 = vrot.slane %v7268_v61, 7  ;;  %v420_v47 = vld [vmem:[#allocation2 + $0xf0] sm:$0x8]  ;;  %v6369_v46 = vld [vmem:[#allocation2 + $0xf4] sm:$0xf]  ;;  %v6379_v37 = vpop.permute.xlu0 %3208 }
 0x13e   : > { %v1507_v12 = vsel %vm4930_vm8, %v4308_v54, %v1506_v52  ;;  %v2132_v27 = vshll.u32 %v6330_v45, 16  ;;  %v472_v53 = vsel %vm4819_vm6, 0, %v471_v9  ;;  %v2125_v26 = vor.u32 %v7269_v32, %v2122_v51 }
 0x13f   : > { %v4388_v56 = vcombine.low %v1507_v12, %v1516_v0  ;;  %2946 = vrot.lane.b32.xlu0 %v4419_v60, %s4745_s9  ;;  %v2127_v18 = vrot.slane %v2122_v51, 4  ;;  %473 = vst [vmem:[#allocation2 + $0xec] sm:$0x1] %v472_v53  ;;  %v4451_v52 = vcombine.low %v6328_v48, %v6330_v45  ;;  %v1759_v8 = vrot.slane %v1501_v14, 4 }
 0x140   : > { %v2134_v54 = vor.u32 %v2132_v27, %v2131_v24  ;;  %v1760_v0 = vrot.slane %v1504_v11, 5  ;;  %v1763_v9 = vrot.slane %v1513_v6, 5  ;;  %v2126_v60 = vsel %vm4930_vm8, %v4323_v43, %v2125_v26  ;;  %v7315_v6 = vld [vmem:[#allocation4_spill] sm:$0xff]  ;;  %v7316_v26 = vld [vmem:[#allocation6_spill] sm:$0xff] }
 0x141   : > { %2756 = vrot.lane.b32.xlu1 %v4388_v56, %s4742_s30  ;;  %v1765_v51 = vrot.slane %v1510_v28, 4  ;;  %v721_v12 = vshrl.u32 %v537_v4, 16  ;;  %v733_v24 = vrot.slane %v7315_v6, 4  ;;  %v421_v53 = vsel %vm4808_vm5, 0, %v420_v47  ;;  %v6394_v28 = vpop.permute.xlu1 %2586  ;;  %v7317_v47 = vld [vmem:[#allocation5_spill] sm:$0xff] }
 0x142   : > { %v2135_v14 = vsel %vm4930_vm8, %v2127_v18, %v2134_v54  ;;  %v1761_v11 = vor.u32 %v1760_v0, %v1759_v8  ;;  %422 = vst [vmem:[#allocation2 + $0xf0] sm:$0x8] %v421_v53  ;;  %v2142_v31 = vshrl.u32 %v6369_v46, 16  ;;  %v3247_v43 = vsel %vm3226_vm12, %v4333_v29, %v6146_v3 }
 0x143   : > { %v4435_v56 = vcombine.low %v2126_v60, %v2135_v14  ;;  %v1766_v61 = vor.u32 %v1765_v51, %v1763_v9  ;;  %v4286_v32 = vrot.slane %v721_v12, 11  ;;  %v741_v18 = vsel %vm4930_vm8, %v733_v24, %v7316_v26 }
 0x144   : > { %v1762_v4 = vrot.slane %v1761_v11, 4  ;;  %v2151_v54 = vshrl.u32 %v6377_v59, 16  ;;  %v2144_v0 = vrot.slane %v2142_v31, 7  ;;  %v2145_v60 = vshll.u32 %v6369_v46, 16 }
 0x145   : > { %2868 = vrot.lane.b32.xlu1 %v4404_v57, %s4740_s28  ;;  %3026 = vrot.lane.b32.xlu0 %v4435_v56, %s4743_s7  ;;  %v732_v8 = vsel %vm4930_vm8, %v4286_v32, %v7317_v47  ;;  %v2154_v3 = vshll.u32 %v6377_v59, 16  ;;  %v1767_v51 = vrot.slane %v1766_v61, 4  ;;  %v3289_v12 = vsel %vm3275_vm13, %v3247_v43, %v6165_v39  ;;  %v6411_v57 = vpop.permute.xlu0 %2666 }
 0x146   : > { %v1574_v29 = vld [vmem:[#allocation2 + $0xec] sm:$0x1]  ;;  %v4334_v14 = vcombine.low %v732_v8, %v741_v18  ;;  %v2153_v11 = vrot.slane %v2151_v54, 7  ;;  %v1764_v24 = vsel %vm4992_vm11, %v1762_v4, %v1763_v9  ;;  %v2149_v32 = vrot.slane %v2144_v0, 4 }
 0x147   : > { %v2214_v6 = vld [vmem:[#allocation2 + $0xec] sm:$0x1]  ;;  %v1769_v53 = vshll.u32 %v1574_v29, 16  ;;  %v2386_v56 = vrot.slane %v2120_v16, 4  ;;  %v3322_v61 = vsel %vm3308_vm14, %v3289_v12, %v6195_v40  ;;  %v7318_v47 = vshll.u32 %v6328_v48, 16  ;;  %v6426_v16 = vpop.permute.xlu1 %2588 }
 0x148   : > { %v2156_v26 = vor.u32 %v2154_v3, %v2153_v11  ;;  %v2390_v43 = vrot.slane %v2132_v27, 5  ;;  %v3250_v8 = vsel %vm3226_vm12, %v4334_v14, %v6175_v13  ;;  %v7319_v9 = vshrl.u32 %v6330_v45, 16  ;;  %v6434_v14 = vld [vmem:[#allocation2 + $0xe4] sm:$0xf] }
 0x149   : > { %v2387_v39 = vrot.slane %v7318_v47, 5  ;;  %v1771_v18 = vrot.slane %v1769_v53, 5  ;;  %3138 = vrot.lane.b32.xlu0 %v4451_v52, %s4741_s29  ;;  %v2396_v29 = vshll.u32 %v2214_v6, 16  ;;  %v1841_v11 = vld [vmem:[#allocation2 + $0xf0] sm:$0x8]  ;;  %v2147_v50 = vor.u32 %v2145_v60, %v2144_v0 }
 0x14a   : > { %v2392_v4 = vrot.slane %v7319_v9, 4  ;;  %v2157_v40 = vsel %vm4930_vm8, %v2149_v32, %v2156_v26  ;;  %v3291_v48 = vsel %vm3275_vm13, %v3250_v8, %v6208_v15  ;;  %v2137_v52 = vshrl.u32 %v1841_v11, 16  ;;  %v6438_v9 = vld [vmem:[#allocation2 + $0xe8] sm:$0xf]  ;;  %v6440_v32 = vpop.permute.xlu0 %2746 }
 0x14b   : > { %v2388_v27 = vor.u32 %v2387_v39, %v2386_v56  ;;  %v1772_v13 = vsel %vm4992_vm11, %v1767_v51, %v1771_v18  ;;  %v2398_v45 = vrot.slane %v2396_v29, 5  ;;  %v475_v0 = vsel %vm4819_vm6, 0, %v474_v30  ;;  %7320 = vst [vmem:[#allocation3_spill] sm:$0xff] %v6438_v9 }
 0x14c   : > { %v2393_v12 = vor.u32 %v2392_v4, %v2390_v43  ;;  %v4420_v6 = vcombine.low %v1764_v24, %v1772_v13  ;;  %v2400_v47 = vrot.slane %v2142_v31, 4  ;;  %v4324_v15 = vrot.slane %v2137_v52, 11  ;;  %476 = vst [vmem:[#allocation2 + $0xfc] sm:$0x1] %v475_v0  ;;  %v6458_v13 = vld [vmem:[#allocation2 + $0xf4] sm:$0xf] }
 0x14d   : > { %v2389_v53 = vrot.slane %v2388_v27, 4  ;;  %v2401_v26 = vrot.slane %v2145_v60, 5  ;;  %v6442_v51 = vrot.slane %v2154_v3, 5  ;;  %v2406_v39 = vrot.slane %v2151_v54, 4  ;;  %v6454_v3 = vpop.permute.xlu1 %2668  ;;  %v932_v27 = vld [vmem:[#allocation2 + $0xec] sm:$0x1] }
 0x14e   : > { %v2394_v56 = vrot.slane %v2393_v12, 4  ;;  %2948 = vrot.lane.b32.xlu1 %v4420_v6, %s4745_s9  ;;  %v7276_v18 = vshrl.u32 %v6434_v14, 16  ;;  %v7274_v30 = vshll.u32 %v6434_v14, 16  ;;  %v2148_v31 = vsel %vm4930_vm8, %v4324_v15, %v2147_v50  ;;  %7321 = vst [vmem:[#allocation4_spill] sm:$0xff] %v6458_v13  ;;  %v6476_v0 = vpop.permute.xlu0 %2858 }
 0x14f   : > { %v2391_v24 = vsel %vm4992_vm11, %v2389_v53, %v2390_v43  ;;  %v2402_v4 = vor.u32 %v2401_v26, %v2400_v47  ;;  %v7275_v60 = vshrl.u32 %v6438_v9, 16  ;;  %v4436_v29 = vcombine.low %v2148_v31, %v2157_v40 }
 0x150   : > { %v2399_v8 = vsel %vm4992_vm11, %v2394_v56, %v2398_v45  ;;  %v2407_v43 = vor.u32 %v2406_v39, %v6442_v51  ;;  %v7273_v54 = vshll.u32 %v6438_v9, 16  ;;  %v3355_v50 = vsel %vm3341_vm15, %v3322_v61, %v6219_v23  ;;  %v6468_v45 = vld [vmem:[#allocation2 + $0xf8] sm:$0xf] }
 0x151   : > { %v4467_v11 = vcombine.low %v2391_v24, %v2399_v8  ;;  %v1133_v52 = vrot.slane %v7276_v18, 4  ;;  %v1134_v12 = vrot.slane %v7274_v30, 5  ;;  %v1139_v40 = vrot.slane %v7275_v60, 4  ;;  %v6482_v24 = vld [vmem:[#allocation2 + $0xf4] sm:$0xf] }
 0x152   : > { %3028 = vrot.lane.b32.xlu1 %v4436_v29, %s4743_s7  ;;  %v3324_v6 = vsel %vm3308_vm14, %v3291_v48, %v6237_v17  ;;  %v2403_v53 = vrot.slane %v2402_v4, 4  ;;  %v2408_v23 = vrot.slane %v2407_v43, 4  ;;  %v4357_v61 = vcombine.low %v6434_v14, %v6438_v9  ;;  %v1203_v43 = vld [vmem:[#allocation2 + $0xf0] sm:$0x8]  ;;  %v423_v60 = vld [vmem:[#allocation2 + $0x100] sm:$0x8] }
 0x153   : > { %3218 = vrot.lane.b32.xlu0 %v4467_v11, %s4746_s10  ;;  %v3388_v47 = vsel %vm3374_vm1, %v3355_v50, %v6245_v2  ;;  %v1135_v15 = vor.u32 %v1134_v12, %v1133_v52  ;;  %v1137_v56 = vrot.slane %v7273_v54, 5  ;;  %v1143_v26 = vshll.u32 %v932_v27, 16  ;;  %v2215_v39 = vld [vmem:[#allocation2 + $0xfc] sm:$0x1]  ;;  %v6489_v50 = vpop.permute.xlu1 %2748 }
 0x154   : > { %v3357_v17 = vsel %vm3341_vm15, %v3324_v6, %v6265_v44  ;;  %v7270_v48 = vshrl.u32 %v6458_v13, 16  ;;  %v7271_v31 = vshll.u32 %v6458_v13, 16  ;;  %v7272_v8 = vshrl.u32 %v6468_v45, 16  ;;  %v6503_v6 = vld [vmem:[#allocation2 + $0xf8] sm:$0xf] }
 0x155   : > { %v2410_v4 = vshll.u32 %v2215_v39, 16  ;;  %v1136_v29 = vrot.slane %v1135_v15, 4  ;;  %v1140_v2 = vor.u32 %v1139_v40, %v1137_v56  ;;  %v1145_v11 = vrot.slane %v1143_v26, 5 }
 0x156   : > { %v7322_v27 = vcombine.low %v6369_v46, %v6377_v59  ;;  %v2405_v44 = vsel %vm4992_vm11, %v2403_v53, %v6442_v51  ;;  %v1147_v12 = vrot.slane %v7270_v48, 4  ;;  %v1148_v40 = vrot.slane %v7271_v31, 5  ;;  %v933_v48 = vld [vmem:[#allocation2 + $0xfc] sm:$0x1]  ;;  %v6513_v31 = vpop.permute.xlu0 %2938 }
 0x157   : > { %v2412_v15 = vrot.slane %v2410_v4, 5  ;;  %v1141_v26 = vrot.slane %v1140_v2, 4  ;;  %v1153_v46 = vrot.slane %v7272_v8, 4  ;;  %v4358_v59 = vcombine.low %v6458_v13, %v6468_v45 }
 0x158   : > { %3140 = vrot.lane.b32.xlu1 %v7322_v27, %s4741_s29  ;;  %v1138_v51 = vsel %vm4992_vm11, %v1136_v29, %v1137_v56  ;;  %v1518_v53 = vshrl.u32 %v1203_v43, 16  ;;  %v1523_v39 = vshrl.u32 %v6482_v24, 16  ;;  %v1526_v27 = vshll.u32 %v6482_v24, 16 }
 0x159   : > { %v2413_v4 = vsel %vm4992_vm11, %v2408_v23, %v2412_v15  ;;  %v1146_v2 = vsel %vm4992_vm11, %v1141_v26, %v1145_v11  ;;  %v1532_v8 = vshrl.u32 %v6503_v6, 16  ;;  %v1535_v54 = vshll.u32 %v6503_v6, 16  ;;  %v6526_v11 = vld [vmem:[#allocation2 + $0x104] sm:$0xf]  ;;  %v6528_v26 = vpop.permute.xlu1 %2860 }
 0x15a   : > { %v4468_v30 = vcombine.low %v2405_v44, %v2413_v4  ;;  %v3421_v56 = vsel %vm3407_vm2, %v3388_v47, %v6276_v55  ;;  %v4309_v29 = vrot.slane %v1518_v53, 11  ;;  %v1525_v43 = vrot.slane %v1523_v39, 7 }
 0x15b   : > { %v1534_v18 = vrot.slane %v1532_v8, 7  ;;  %v1149_v52 = vor.u32 %v1148_v40, %v1147_v12  ;;  %v7323_v23 = vshll.u32 %v6468_v45, 16  ;;  %v1157_v13 = vshll.u32 %v933_v48, 16  ;;  %v6533_v40 = vld [vmem:[#allocation2 + $0x108] sm:$0xf] }
 0x15c   : > { %2598 = vrot.lane.b32.xlu1 %v4357_v61, %s4739_s27  ;;  %3220 = vrot.lane.b32.xlu0 %v4468_v30, %s4746_s10  ;;  %v4373_v44 = vcombine.low %v1138_v51, %v1146_v2  ;;  %v3390_v61 = vsel %vm3374_vm1, %v3357_v17, %v6292_v42  ;;  %v1528_v55 = vor.u32 %v1526_v27, %v1525_v43  ;;  %v1530_v47 = vrot.slane %v1525_v43, 4  ;;  %v6543_v17 = vpop.permute.xlu0 %3018 }
 0x15d   : > { %v1151_v15 = vrot.slane %v7323_v23, 5  ;;  %v1537_v53 = vor.u32 %v1535_v54, %v1534_v18  ;;  %v1150_v4 = vrot.slane %v1149_v52, 4  ;;  %v1159_v12 = vrot.slane %v1157_v13, 5  ;;  %v540_v23 = vld [vmem:[#allocation2 + $0x80] sm:$0x8] }
 0x15e   : > { %v1529_v48 = vsel %vm4930_vm8, %v4309_v29, %v1528_v55  ;;  %v3454_v30 = vsel %vm3440_vm3, %v3421_v56, %v6310_v25  ;;  %v424_v51 = vsel %vm4808_vm5, 0, %v423_v60  ;;  %v1545_v42 = vshrl.u32 %v6526_v11, 16  ;;  %v1575_v56 = vld [vmem:[#allocation2 + $0xfc] sm:$0x1] }
 0x15f   : > { %v1154_v9 = vor.u32 %v1153_v46, %v1151_v15  ;;  %v1538_v18 = vsel %vm4930_vm8, %v1530_v47, %v1537_v53  ;;  %v1152_v13 = vsel %vm4992_vm11, %v1150_v4, %v1151_v15  ;;  %v3423_v46 = vsel %vm3407_vm2, %v3390_v61, %v6323_v22  ;;  %425 = vst [vmem:[#allocation2 + $0x100] sm:$0x8] %v424_v51  ;;  %v6568_v51 = vld [vmem:[#allocation2 + $0x104] sm:$0xf] }
 0x160   : > { %2600 = vrot.lane.b32.xlu1 %v4358_v59, %s4739_s27  ;;  %2678 = vrot.lane.b32.xlu0 %v4373_v44, %s4744_s8  ;;  %v4389_v25 = vcombine.low %v1529_v48, %v1538_v18  ;;  %v1547_v60 = vrot.slane %v1545_v42, 7  ;;  %v1554_v59 = vshrl.u32 %v6533_v40, 16  ;;  %v1557_v2 = vshll.u32 %v6533_v40, 16 }
 0x161   : > { %v1155_v52 = vrot.slane %v1154_v9, 4  ;;  %v1548_v9 = vshll.u32 %v6526_v11, 16  ;;  %v3487_v22 = vsel %vm3473_vm7, %v3454_v30, %v6341_v20  ;;  %v1773_v43 = vrot.slane %v1523_v39, 4  ;;  %v6561_v15 = vpop.permute.xlu1 %2940 }
 0x162   : > { %v1552_v61 = vrot.slane %v1547_v60, 4  ;;  %v1556_v55 = vrot.slane %v1554_v59, 7  ;;  %v3456_v47 = vsel %vm3440_vm3, %v3423_v46, %v6355_v33  ;;  %4603 = vmatprep.mubr.msk.bf16.mxu0 %vm3542_vm10, %v3487_v22  ;;  %v1774_v53 = vrot.slane %v1526_v27, 5  ;;  %v6578_v27 = vpop.permute.xlu0 %3130 }
 0x163   : > { %v1160_v29 = vsel %vm4992_vm11, %v1155_v52, %v1159_v12  ;;  %v1777_v4 = vrot.slane %v1535_v54, 5  ;;  %v1779_v12 = vrot.slane %v1532_v8, 4  ;;  %v1783_v48 = vshll.u32 %v1575_v56, 16 }
 0x164   : > { %v4374_v44 = vcombine.low %v1152_v13, %v1160_v29  ;;  %2758 = vrot.lane.b32.xlu0 %v4389_v25, %s4742_s30  ;;  %v4405_v20 = vcombine.low %v6482_v24, %v6503_v6  ;;  %v1559_v39 = vor.u32 %v1557_v2, %v1556_v55  ;;  %v3489_v33 = vsel %vm3473_vm7, %v3456_v47, %v6379_v37  ;;  %v7324_v13 = vld [vmem:[#allocation7_spill] sm:$0xff]  ;;  %v7326_v47 = vld [vmem:[#allocation8_spill] sm:$0xff] }
 0x165   : > { %v743_v30 = vshrl.u32 %v540_v23, 16  ;;  %v1775_v54 = vor.u32 %v1774_v53, %v1773_v43  ;;  %v1780_v8 = vor.u32 %v1779_v12, %v1777_v4  ;;  %v1785_v18 = vrot.slane %v1783_v48, 5  ;;  %4604 = vmatmul.mubr.msk.bf16.gmra.mrb[12].mxu0 %vm3542_vm10, %v3489_v33  ;;  %v7325_v23 = vld [vmem:[#allocation9_spill] sm:$0xff] }
 0x166   : > { %2680 = vrot.lane.b32.xlu1 %v4374_v44, %s4744_s8  ;;  %v755_v52 = vrot.slane %v7324_v13, 4  ;;  %v1206_v46 = vld [vmem:[#allocation2 + $0x100] sm:$0x8]  ;;  %v1550_v24 = vor.u32 %v1548_v9, %v1547_v60  ;;  %v1560_v6 = vsel %vm4930_vm8, %v1552_v61, %v1559_v39  ;;  %v7281_v37 = vshrl.u32 %v6568_v51, 16  ;;  %v6596_v61 = vld [vmem:[#allocation2 + $0x108] sm:$0xf] }
 0x167   : > { %v4287_v25 = vrot.slane %v743_v30, 11  ;;  %v1844_v56 = vld [vmem:[#allocation2 + $0x100] sm:$0x8]  ;;  %v1540_v29 = vshrl.u32 %v1206_v46, 16  ;;  %v1776_v22 = vrot.slane %v1775_v54, 4  ;;  %v1781_v43 = vrot.slane %v1780_v8, 4 }
 0x168   : > { %v763_v44 = vsel %vm4930_vm8, %v755_v52, %v7325_v23  ;;  %v6590_v55 = vpop.permute.xlu1 %3020  ;;  %2870 = vrot.lane.b32.xlu0 %v4405_v20, %s4740_s28  ;;  %v2159_v53 = vshrl.u32 %v1844_v56, 16  ;;  %v2166_v12 = vrot.slane %v7281_v37, 7  ;;  %v2167_v48 = vshll.u32 %v6568_v51, 16  ;;  %v477_v54 = vld [vmem:[#allocation2 + $0x10c] sm:$0x1]  ;;  %v6605_v52 = vpop.permute.xlu0 %3210 }
 0x169   : > { %v754_v60 = vsel %vm4930_vm8, %v4287_v25, %v7326_v47  ;;  %v4310_v39 = vrot.slane %v1540_v29, 11  ;;  %v1778_v33 = vsel %vm4992_vm11, %v1776_v22, %v1777_v4  ;;  %v1786_v30 = vsel %vm4992_vm11, %v1781_v43, %v1785_v18  ;;  %v543_v23 = vld [vmem:[#allocation2 + $0x90] sm:$0x8]  ;;  %v7328_v37 = vld [vmem:[#allocation12_spill] sm:$0xff] }
 0x16a   : > { %v4335_v20 = vcombine.low %v754_v60, %v763_v44  ;;  %v4421_v8 = vcombine.low %v1778_v33, %v1786_v30  ;;  %v4325_v13 = vrot.slane %v2159_v53, 11  ;;  %v2169_v25 = vor.u32 %v2167_v48, %v2166_v12  ;;  %v426_v47 = vld [vmem:[#allocation2 + $0x110] sm:$0x8]  ;;  %v6616_v44 = vld [vmem:[#allocation2 + $0x114] sm:$0xf]  ;;  %v7327_v30 = vld [vmem:[#allocation10_spill] sm:$0xff] }
 0x16b   : > { %v1551_v46 = vsel %vm4930_vm8, %v4310_v39, %v1550_v24  ;;  %v2173_v56 = vshrl.u32 %v6596_v61, 16  ;;  %v2176_v29 = vshll.u32 %v6596_v61, 16  ;;  %v2171_v18 = vrot.slane %v2166_v12, 4  ;;  %v6626_v12 = vld [vmem:[#allocation2 + $0x118] sm:$0xf] }
 0x16c   : > { %v4390_v4 = vcombine.low %v1551_v46, %v1560_v6  ;;  %2950 = vrot.lane.b32.xlu0 %v4421_v8, %s4745_s9  ;;  %v478_v22 = vsel %vm4819_vm6, 0, %v477_v54  ;;  %v1787_v43 = vrot.slane %v1545_v42, 4  ;;  %v1788_v60 = vrot.slane %v1548_v9, 5  ;;  %v6628_v39 = vpop.permute.xlu1 %3132 }
 0x16d   : > { %v2175_v24 = vrot.slane %v2173_v56, 7  ;;  %479 = vst [vmem:[#allocation2 + $0x10c] sm:$0x1] %v478_v22  ;;  %v6622_v53 = vrot.slane %v1557_v2, 5  ;;  %v1793_v6 = vrot.slane %v1554_v59, 4  ;;  %v4406_v42 = vcombine.low %v6526_v11, %v6533_v40 }
 0x16e   : > { %2760 = vrot.lane.b32.xlu1 %v4390_v4, %s4742_s30  ;;  %v765_v33 = vshrl.u32 %v543_v23, 16  ;;  %v777_v54 = vrot.slane %v7327_v30, 4  ;;  %v427_v9 = vsel %vm4808_vm5, 0, %v426_v47  ;;  %v2170_v2 = vsel %vm4930_vm8, %v4325_v13, %v2169_v25 }
 0x16f   : > { %v2178_v8 = vor.u32 %v2176_v29, %v2175_v24  ;;  %v1789_v59 = vor.u32 %v1788_v60, %v1787_v43  ;;  %428 = vst [vmem:[#allocation2 + $0x110] sm:$0x8] %v427_v9  ;;  %v7284_v46 = vshrl.u32 %v6616_v44, 16  ;;  %v7282_v11 = vshrl.u32 %v6626_v12, 16  ;;  %v7329_v43 = vld [vmem:[#allocation11_spill] sm:$0xff] }
 0x170   : > { %v4288_v22 = vrot.slane %v765_v33, 11  ;;  %v785_v4 = vsel %vm4930_vm8, %v777_v54, %v7328_v37  ;;  %v6643_v40 = vpop.permute.xlu0 %3212  ;;  %v1794_v13 = vor.u32 %v1793_v6, %v6622_v53  ;;  %v7283_v60 = vshll.u32 %v6626_v12, 16  ;;  %v6660_v54 = vpop.permute.xlu1 %2590 }
 0x171   : > { %v2179_v1 = vsel %vm4930_vm8, %v2171_v18, %v2178_v8  ;;  %v1790_v23 = vrot.slane %v1789_v59, 4  ;;  %v2188_v25 = vrot.slane %v7284_v46, 7  ;;  %v2197_v24 = vrot.slane %v7282_v11, 7  ;;  %7330 = vst [vmem:[#allocation6_spill] sm:$0xff] %v6660_v54  ;;  %v369_v46 = vld [vmem:[#allocation2 + $0x11c] sm:$0x1] }
 0x172   : > { %2872 = vrot.lane.b32.xlu1 %v4406_v42, %s4740_s28  ;;  %v4437_v47 = vcombine.low %v2170_v2, %v2179_v1  ;;  %v776_v37 = vsel %vm4930_vm8, %v4288_v22, %v7329_v43  ;;  %v4453_v18 = vcombine.low %v6568_v51, %v6596_v61  ;;  %v2189_v6 = vshll.u32 %v6616_v44, 16  ;;  %s315_s28 = scalar_lea.vmem %s7257_s5, %s7352_s21 }
 0x173   : > { %v4336_v33 = vcombine.low %v776_v37, %v785_v4  ;;  %v2193_v30 = vrot.slane %v2188_v25, 4  ;;  %v3253_v42 = vsel %vm3226_vm12, %v4335_v20, %v6394_v28  ;;  %v2200_v2 = vor.u32 %v7283_v60, %v2197_v24 }
 0x174   : > { %3030 = vrot.lane.b32.xlu0 %v4437_v47, %s4743_s7  ;;  %v1576_v9 = vld [vmem:[#allocation2 + $0x10c] sm:$0x1]  ;;  %v7331_v59 = vshrl.u32 %v6568_v51, 16  ;;  %v2415_v4 = vrot.slane %v2167_v48, 5  ;;  %v6669_v61 = vpop.permute.xlu0 %2670  ;;  %v1795_v1 = vrot.slane %v1794_v13, 4  ;;  %v2418_v37 = vrot.slane %v2176_v29, 5 }
 0x175   : > { %v2216_v8 = vld [vmem:[#allocation2 + $0x10c] sm:$0x1]  ;;  %v1797_v43 = vshll.u32 %v1576_v9, 16  ;;  %v2420_v11 = vrot.slane %v2173_v56, 4  ;;  %v1792_v28 = vsel %vm4992_vm11, %v1790_v23, %v6622_v53  ;;  %v3293_v20 = vsel %vm3275_vm13, %v3253_v42, %v6411_v57 }
 0x176   : > { %v2414_v22 = vrot.slane %v7331_v59, 4  ;;  %v1847_v47 = vld [vmem:[#allocation2 + $0x110] sm:$0x8]  ;;  %v2424_v60 = vshll.u32 %v2216_v8, 16  ;;  %v2191_v48 = vor.u32 %v2189_v6, %v2188_v25  ;;  %v3256_v13 = vsel %vm3226_vm12, %v4336_v33, %v6426_v16  ;;  %v6685_v25 = vpop.permute.xlu1 %2592 }
 0x177   : > { %v1799_v51 = vrot.slane %v1797_v43, 5  ;;  %v2181_v59 = vshrl.u32 %v1847_v47, 16  ;;  %v2421_v54 = vor.u32 %v2420_v11, %v2418_v37  ;;  %v2201_v56 = vsel %vm4930_vm8, %v2193_v30, %v2200_v2  ;;  %v546_v30 = vld [vmem:[#allocation2 + $0xa0] sm:$0x8] }
 0x178   : > { %v2416_v24 = vor.u32 %v2415_v4, %v2414_v22  ;;  %3142 = vrot.lane.b32.xlu0 %v4453_v18, %s4741_s29  ;;  %v2426_v53 = vrot.slane %v2424_v60, 5  ;;  %v370_v9 = vsel %vm4819_vm6, 0, %v369_v46  ;;  %v3326_v33 = vsel %vm3308_vm14, %v3293_v20, %v6440_v32  ;;  %v549_v20 = vld [vmem:[#allocation2 + $0xb0] sm:$0x8] }
 0x179   : > { %v1800_v57 = vsel %vm4992_vm11, %v1795_v1, %v1799_v51  ;;  %v4326_v23 = vrot.slane %v2181_v59, 11  ;;  %v2422_v42 = vrot.slane %v2421_v54, 4  ;;  %v6687_v11 = vpop.permute.xlu0 %2750  ;;  %v3295_v18 = vsel %vm3275_vm13, %v3256_v13, %v6454_v3  ;;  %371 = vst [vmem:[#allocation2 + $0x11c] sm:$0x1] %v370_v9  ;;  %v552_v51 = vld [vmem:[#allocation2 + $0xc0] sm:$0x8] }
 0x17a   : > { %v2417_v29 = vrot.slane %v2416_v24, 4  ;;  %v4422_v16 = vcombine.low %v1792_v28, %v1800_v57  ;;  %v4454_v2 = vcombine.low %v6616_v44, %v6626_v12  ;;  %v3359_v32 = vsel %vm3341_vm15, %v3326_v33, %v6476_v0  ;;  %v6730_v13 = vpop.permute.xlu1 %2672 }
 0x17b   : > { %v2192_v54 = vsel %vm4930_vm8, %v4326_v23, %v2191_v48  ;;  %v2427_v46 = vsel %vm4992_vm11, %v2422_v42, %v2426_v53  ;;  %v3328_v22 = vsel %vm3308_vm14, %v3295_v18, %v6489_v50  ;;  %v3392_v4 = vsel %vm3374_vm1, %v3359_v32, %v6513_v31 }
 0x17c   : > { %v2419_v60 = vsel %vm4992_vm11, %v2417_v29, %v2418_v37  ;;  %2952 = vrot.lane.b32.xlu1 %v4422_v16, %s4745_s9  ;;  %v4438_v3 = vcombine.low %v2192_v54, %v2201_v56  ;;  %v7332_v1 = vshrl.u32 %v6616_v44, 16  ;;  %v3361_v37 = vsel %vm3341_vm15, %v3328_v22, %v6528_v26  ;;  %v555_v29 = vld [vmem:[#allocation2 + $0xd0] sm:$0x8] }
 0x17d   : > { %v4469_v8 = vcombine.low %v2419_v60, %v2427_v46  ;;  %v3425_v28 = vsel %vm3407_vm2, %v3392_v4, %v6543_v17  ;;  %v787_v0 = vshrl.u32 %v546_v30, 16  ;;  %v6714_v47 = vpop.permute.xlu0 %2862  ;;  %v2429_v24 = vrot.slane %v2189_v6, 5 }
 0x17e   : > { %v2428_v43 = vrot.slane %v7332_v1, 4  ;;  %v3394_v50 = vsel %vm3374_vm1, %v3361_v37, %v6561_v15  ;;  %v3458_v31 = vsel %vm3440_vm3, %v3425_v28, %v6578_v27  ;;  %v799_v44 = vrot.slane %v5955_v35, 4  ;;  %v561_v1 = vld [vmem:[#allocation2 + $0xf0] sm:$0x8] }
 0x17f   : > { %3222 = vrot.lane.b32.xlu0 %v4469_v8, %s4746_s10  ;;  %v7333_v26 = vshll.u32 %v6626_v12, 16  ;;  %v3427_v17 = vsel %vm3407_vm2, %v3394_v50, %v6590_v55  ;;  %v3491_v48 = vsel %vm3473_vm7, %v3458_v31, %v6605_v52  ;;  %v4289_v6 = vrot.slane %v787_v0, 11 }
 0x180   : > { %3032 = vrot.lane.b32.xlu1 %v4438_v3, %s4743_s7  ;;  %v7334_v15 = vshrl.u32 %v6626_v12, 16  ;;  %v3460_v35 = vsel %vm3440_vm3, %v3427_v17, %v6628_v39  ;;  %4607 = vmatprep.mubr.msk.bf16.mxu1 %vm3542_vm10, %v3491_v48  ;;  %v807_v55 = vsel %vm4930_vm8, %v799_v44, %v5972_v36  ;;  %v809_v56 = vshrl.u32 %v549_v20, 16  ;;  %v480_v52 = vld [vmem:[#allocation2 + $0x11c] sm:$0x1]  ;;  %v558_v39 = vld [vmem:[#allocation2 + $0xe0] sm:$0x8]  ;;  %s321_s7 = scalar_lea.vmem %s7258_s6, %s7352_s21 }
 0x181   : > { %v6724_v59 = vrot.slane %v7333_v26, 5  ;;  %v3493_v53 = vsel %vm3473_vm7, %v3460_v35, %v6643_v40  ;;  %v798_v12 = vsel %vm4930_vm8, %v4289_v6, %v5962_v34  ;;  %v821_v57 = vrot.slane %v5991_v58, 4  ;;  %v7335_v3 = vld [vmem:[#allocation13_spill] sm:$0xff]  ;;  %v7341_v17 = vld [vmem:[#allocation4_spill] sm:$0xff] }
 0x182   : > { %v2434_v27 = vrot.slane %v7334_v15, 4  ;;  %v831_v23 = vshrl.u32 %v552_v51, 16  ;;  %v481_v42 = vsel %vm4819_vm6, 0, %v480_v52  ;;  %v4337_v9 = vcombine.low %v798_v12, %v807_v55  ;;  %4608 = vmatmul.mubr.msk.bf16.vlgmr.msra.gmra.mrb[0].mxu1 %vm3542_vm10, %v3493_v53  ;;  %v2943_v33 = vpop.permute.xlu0 %2942 }
 0x183   : > { %v4290_v36 = vrot.slane %v809_v56, 11  ;;  %v843_v16 = vrot.slane %v6216_v49, 4  ;;  %482 = vst [vmem:[#allocation2 + $0x11c] sm:$0x1] %v481_v42  ;;  %v829_v40 = vsel %vm4930_vm8, %v821_v57, %v6005_v63  ;;  %v853_v18 = vshrl.u32 %v555_v29, 16 }
 0x184   : > { %v4291_v34 = vrot.slane %v831_v23, 11  ;;  %v865_v58 = vrot.slane %v6243_v38, 4  ;;  %3144 = vrot.lane.b32.xlu1 %v4454_v2, %s4741_s29  ;;  %v875_v60 = vshrl.u32 %v558_v39, 16  ;;  %v2430_v30 = vor.u32 %v2429_v24, %v2428_v43  ;;  %v2753_v46 = vpop.permute.xlu1 %2752 }
 0x185   : > { %v820_v7 = vsel %vm4930_vm8, %v4290_v36, %v6003_v5  ;;  %v851_v49 = vsel %vm4930_vm8, %v843_v16, %v6231_v62  ;;  %v4292_v32 = vrot.slane %v853_v18, 11  ;;  %v2435_v5 = vor.u32 %v2434_v27, %v6724_v59  ;;  %v7346_v18 = vld [vmem:[#allocation6_spill] sm:$0xff] }
 0x186   : > { %v4338_v54 = vcombine.low %v820_v7, %v829_v40  ;;  %v842_v63 = vsel %vm4930_vm8, %v4291_v34, %v6226_v19  ;;  %v873_v2 = vsel %vm4930_vm8, %v865_v58, %v6263_v21  ;;  %v4293_v8 = vrot.slane %v875_v60, 11  ;;  %v7337_v19 = vld [vmem:[#allocation3_spill] sm:$0xff] }
 0x187   : > { %v6765_v38 = vcombine.low %v842_v63, %v851_v49  ;;  %v864_v62 = vsel %vm4930_vm8, %v4292_v32, %v7335_v3  ;;  %v7336_v22 = vshrl.u32 %v6434_v14, 16  ;;  %v7338_v37 = vshrl.u32 %v7337_v19, 16 }
 0x188   : > { %v6776_v43 = vcombine.low %v864_v62, %v873_v2  ;;  %v2431_v0 = vrot.slane %v2430_v30, 4  ;;  %v3023_v20 = vpop.permute.xlu0 %3022  ;;  %v7339_v21 = vshll.u32 %v6434_v14, 16  ;;  %v7340_v44 = vshll.u32 %v7337_v19, 16  ;;  %v2865_v35 = vpop.permute.xlu1 %2864 }
 0x189   : > { %v882_v4 = vrot.slane %v7336_v22, 7  ;;  %v891_v28 = vrot.slane %v7338_v37, 7  ;;  %v897_v26 = vshrl.u32 %v561_v1, 16  ;;  %v7342_v48 = vshrl.u32 %v7341_v17, 16 }
 0x18a   : > { %v2217_v31 = vld [vmem:[#allocation2 + $0x11c] sm:$0x1]  ;;  %v2436_v15 = vrot.slane %v2435_v5, 4  ;;  %v7343_v56 = vshrl.u32 %v6468_v45, 16  ;;  %v7344_v53 = vshll.u32 %v7341_v17, 16  ;;  %v2433_v23 = vsel %vm4992_vm11, %v2431_v0, %v6724_v59 }
 0x18b   : > { %v885_v24 = vor.u32 %v7339_v21, %v882_v4  ;;  %v887_v50 = vrot.slane %v882_v4, 4  ;;  %v894_v51 = vor.u32 %v7340_v44, %v891_v28  ;;  %v904_v6 = vrot.slane %v7342_v48, 7 }
 0x18c   : > { %v2438_v27 = vshll.u32 %v2217_v31, 16  ;;  %v913_v29 = vrot.slane %v7343_v56, 7  ;;  %v4294_v52 = vrot.slane %v897_v26, 11  ;;  %v7345_v36 = vshll.u32 %v6468_v45, 16  ;;  %v3135_v7 = vpop.permute.xlu0 %3134 }
 0x18d   : > { %v886_v55 = vsel %vm4930_vm8, %v4293_v8, %v885_v24  ;;  %v895_v14 = vsel %vm4930_vm8, %v887_v50, %v894_v51  ;;  %v907_v12 = vor.u32 %v7344_v53, %v904_v6  ;;  %v909_v57 = vrot.slane %v904_v6, 4 }
 0x18e   : > { %v2440_v39 = vrot.slane %v2438_v27, 5  ;;  %v6797_v42 = vcombine.low %v886_v55, %v895_v14  ;;  %v916_v16 = vor.u32 %v7345_v36, %v913_v29  ;;  %v3259_v58 = vsel %vm3226_vm12, %v4337_v9, %v7346_v18 }
 0x18f   : > { %v908_v40 = vsel %vm4930_vm8, %v4294_v52, %v907_v12  ;;  %v3297_v60 = vsel %vm3275_vm13, %v3259_v58, %v6669_v61 }
 0x190   : > { %v2441_v34 = vsel %vm4992_vm11, %v2436_v15, %v2440_v39  ;;  %v917_v49 = vsel %vm4930_vm8, %v909_v57, %v916_v16  ;;  %v3330_v45 = vsel %vm3308_vm14, %v3297_v60, %v6687_v11  ;;  %v3262_v11 = vsel %vm3226_vm12, %v4338_v54, %v6685_v25 }
 0x191   : > { %v4470_v59 = vcombine.low %v2433_v23, %v2441_v34  ;;  %v6811_v30 = vcombine.low %v908_v40, %v917_v49  ;;  %v2945_v63 = vpop.permute.xlu1 %2944  ;;  %v3363_v10 = vsel %vm3341_vm15, %v3330_v45, %v6714_v47  ;;  %v3299_v3 = vsel %vm3275_vm13, %v3262_v11, %v6730_v13 }
 0x192   : > { %v3396_v9 = vsel %vm3374_vm1, %v3363_v10, %v2943_v33  ;;  %v3332_v47 = vsel %vm3308_vm14, %v3299_v3, %v2753_v46 }
 0x193   : > { %3224 = vrot.lane.b32.xlu1 %v4470_v59, %s4746_s10  ;;  %v3429_v41 = vsel %vm3407_vm2, %v3396_v9, %v3023_v20  ;;  %v3365_v33 = vsel %vm3341_vm15, %v3332_v47, %v2865_v35 }
 0x194   : > { %v3462_v32 = vsel %vm3440_vm3, %v3429_v41, %v3135_v7  ;;  %v3398_v8 = vsel %vm3374_vm1, %v3365_v33, %v2945_v63 }
 0x195   : > { %v3215_v2 = vpop.permute.xlu0 %3214  ;;  %v3025_v5 = vpop.permute.xlu1 %3024 }
 0x196   : > { %v3495_v61 = vsel %vm3473_vm7, %v3462_v32, %v3215_v2  ;;  %v3431_v22 = vsel %vm3407_vm2, %v3398_v8, %v3025_v5 }
 0x197   : > { %4611 = vmatprep.mubr.msk.bf16.mxu1 %vm3542_vm10, %v3495_v61 }
 0x19a   : > { %v3137_v62 = vpop.permute.xlu1 %3136 }
 0x19b   : > { %v3464_v4 = vsel %vm3440_vm3, %v3431_v22, %v3137_v62 }
 0x19e   : > { %v2595_v25 = vpop.permute.xlu1 %2594 }
 0x19f   : > { %v3217_v1 = vpop.permute.xlu0 %3216  ;;  %v3265_v35 = vsel %vm3226_vm12, %v6765_v38, %v2595_v25 }
 0x1a0   : > { %v3497_v19 = vsel %vm3473_vm7, %v3464_v4, %v3217_v1 }
 0x1a1   : > { %4612 = vmatmul.mubr.msk.bf16.gmra.mrb[4].mxu1 %vm3542_vm10, %v3497_v19 }
 0x1a2   : > { %v2597_v13 = vpop.permute.xlu1 %2596 }
 0x1a3   : > { %v2675_v54 = vpop.permute.xlu0 %2674  ;;  %v3268_v58 = vsel %vm3226_vm12, %v6776_v43, %v2597_v13 }
 0x1a4   : > { %v3301_v29 = vsel %vm3275_vm13, %v3265_v35, %v2675_v54 }
 0x1a7   : > { %v2677_v28 = vpop.permute.xlu1 %2676 }
 0x1a8   : > { %v2755_v37 = vpop.permute.xlu0 %2754  ;;  %v3303_v7 = vsel %vm3275_vm13, %v3268_v58, %v2677_v28 }
 0x1a9   : > { %v3334_v52 = vsel %vm3308_vm14, %v3301_v29, %v2755_v37 }
 0x1ac   : > { %v2867_v46 = vpop.permute.xlu0 %2866 }
 0x1ad   : > { %v3367_v57 = vsel %vm3341_vm15, %v3334_v52, %v2867_v46 }
 0x1b1   : > { %v2947_v0 = vpop.permute.xlu0 %2946 }
 0x1b2   : > { %v3400_v23 = vsel %vm3374_vm1, %v3367_v57, %v2947_v0 }
 0x1b3   : > { %v2757_v20 = vpop.permute.xlu1 %2756 }
 0x1b4   : > { %v3336_v49 = vsel %vm3308_vm14, %v3303_v7, %v2757_v20 }
 0x1b7   : > { %v3027_v21 = vpop.permute.xlu0 %3026  ;;  %v2869_v50 = vpop.permute.xlu1 %2868 }
 0x1b8   : > { %v3433_v36 = vsel %vm3407_vm2, %v3400_v23, %v3027_v21  ;;  %v3369_v59 = vsel %vm3341_vm15, %v3336_v49, %v2869_v50 }
 0x1b9   : > { %v6841_v24 = vpop.f32.mrb[0].mxu0 }
 0x1ba   : > { %v4530_v31 = vpack.c.bf16 %v6841_v24, %v6841_v24  ;;  %v6845_v44 = vpop.f32.mrb[1].mxu0  ;;  %v3903_v14 = vsel %vm3226_vm12, %v6841_v24, 0.0 }
 0x1bb   : > { %v4528_v51 = vpack.c.bf16 %v6845_v44, %v6845_v44  ;;  %v6849_v26 = vpop.f32.mrb[2].mxu0  ;;  %v3900_v6 = vsel %vm3226_vm12, %v6845_v44, 0.0  ;;  %v3139_v55 = vpop.permute.xlu0 %3138 }
 0x1bc   : > { %3870 = vst.msk [vmem:[%s6839_s26 + $0x8] sm:$0xf] %vm355_vm0, %v4530_v31  ;;  %v4531_v17 = vpack.c.bf16 %v6849_v26, %v6849_v26  ;;  %v6855_v48 = vpop.f32.mrb[3].mxu0  ;;  %v3905_v38 = vsel %vm3226_vm12, %v6849_v26, 0.0  ;;  %v3466_v16 = vsel %vm3440_vm3, %v3433_v36, %v3139_v55 }
 0x1bd   : > { %3868 = vst.msk [vmem:[%s6839_s26] sm:$0xf] %vm355_vm0, %v4528_v51  ;;  %v4529_v15 = vpack.c.bf16 %v6855_v48, %v6855_v48  ;;  %v3901_v27 = vsel %vm3226_vm12, %v6855_v48, 0.0 }
 0x1be   : > { %3871 = vst.msk [vmem:[%s6839_s26 + $0xc] sm:$0xf] %vm355_vm0, %v4531_v17  ;;  %v3902_v56 = vadd.f32 %v3901_v27, %v3900_v6 }
 0x1bf   : > { %3869 = vst.msk [vmem:[%s6839_s26 + $0x4] sm:$0xf] %vm355_vm0, %v4529_v15 }
 0x1c0   : > { %v2949_v53 = vpop.permute.xlu1 %2948  ;;  %v3904_v12 = vadd.f32 %v3903_v14, %v3902_v56 }
 0x1c1   : > { %v3402_v45 = vsel %vm3374_vm1, %v3369_v59, %v2949_v53 }
 0x1c2   : > { %v3906_v39 = vadd.f32 %v3905_v38, %v3904_v12 }
 0x1c4   : > { %v3029_v34 = vpop.permute.xlu1 %3028 }
 0x1c5   : > { %v3219_v40 = vpop.permute.xlu0 %3218  ;;  %v3435_v63 = vsel %vm3407_vm2, %v3402_v45, %v3029_v34 }
 0x1c6   : > { %v3499_v18 = vsel %vm3473_vm7, %v3466_v16, %v3219_v40 }
 0x1c7   : > { %4615 = vmatprep.mubr.msk.bf16.mxu1 %vm3542_vm10, %v3499_v18 }
 0x1ca   : > { %v3141_v60 = vpop.permute.xlu1 %3140 }
 0x1cb   : > { %v3468_v10 = vsel %vm3440_vm3, %v3435_v63, %v3141_v60 }
 0x1ce   : > { %v3221_v9 = vpop.permute.xlu0 %3220  ;;  %v2599_v32 = vpop.permute.xlu1 %2598 }
 0x1cf   : > { %v3501_v41 = vsel %vm3473_vm7, %v3468_v10, %v3221_v9  ;;  %v3271_v31 = vsel %vm3226_vm12, %v6797_v42, %v2599_v32 }
 0x1d0   : > { %4616 = vmatmul.mubr.msk.bf16.gmra.mrb[8].mxu1 %vm3542_vm10, %v3501_v41 }
 0x1d2   : > { %v2679_v43 = vpop.permute.xlu0 %2678  ;;  %v2601_v5 = vpop.permute.xlu1 %2600 }
 0x1d3   : > { %v3305_v17 = vsel %vm3275_vm13, %v3271_v31, %v2679_v43  ;;  %v3274_v53 = vsel %vm3226_vm12, %v6811_v30, %v2601_v5 }
 0x1d6   : > { %v2759_v2 = vpop.permute.xlu0 %2758 }
 0x1d7   : > { %v3338_v6 = vsel %vm3308_vm14, %v3305_v17, %v2759_v2 }
 0x1d8   : > { %v2681_v19 = vpop.permute.xlu1 %2680 }
 0x1d9   : > { %v3307_v57 = vsel %vm3275_vm13, %v3274_v53, %v2681_v19 }
 0x1da   : > { %v2871_v61 = vpop.permute.xlu0 %2870 }
 0x1db   : > { %v3371_v27 = vsel %vm3341_vm15, %v3338_v6, %v2871_v61 }
 0x1dc   : > { %v6893_v11 = vpop.f32.mrb[4].mxu0 }
 0x1dd   : > { %v4534_v3 = vpack.c.bf16 %v6893_v11, %v6893_v11  ;;  %v6897_v47 = vpop.f32.mrb[5].mxu0  ;;  %v3911_v46 = vsel %vm3226_vm12, %v6893_v11, 0.0 }
 0x1de   : > { %v4532_v33 = vpack.c.bf16 %v6897_v47, %v6897_v47  ;;  %v3907_v62 = vsel %vm3226_vm12, %v6897_v47, 0.0  ;;  %v6903_v8 = vpop.f32.mrb[6].mxu0  ;;  %v2951_v25 = vpop.permute.xlu0 %2950 }
 0x1df   : > { %3874 = vst.msk [vmem:[%s6839_s26 + $0x18] sm:$0xf] %vm355_vm0, %v4534_v3  ;;  %v3908_v22 = vadd.f32 %v3907_v62, %v3906_v39  ;;  %v4535_v4 = vpack.c.bf16 %v6903_v8, %v6903_v8  ;;  %v6909_v1 = vpop.f32.mrb[7].mxu0  ;;  %v3913_v0 = vsel %vm3226_vm12, %v6903_v8, 0.0  ;;  %v3404_v35 = vsel %vm3374_vm1, %v3371_v27, %v2951_v25 }
 0x1e0   : > { %3872 = vst.msk [vmem:[%s6839_s26 + $0x10] sm:$0xf] %vm355_vm0, %v4532_v33  ;;  %v4533_v54 = vpack.c.bf16 %v6909_v1, %v6909_v1  ;;  %v3909_v13 = vsel %vm3226_vm12, %v6909_v1, 0.0  ;;  %v2761_v21 = vpop.permute.xlu1 %2760 }
 0x1e1   : > { %3875 = vst.msk [vmem:[%s6839_s26 + $0x1c] sm:$0xf] %vm355_vm0, %v4535_v4  ;;  %v3910_v37 = vadd.f32 %v3909_v13, %v3908_v22  ;;  %v3340_v38 = vsel %vm3308_vm14, %v3307_v57, %v2761_v21 }
 0x1e2   : > { %3873 = vst.msk [vmem:[%s6839_s26 + $0x14] sm:$0xf] %vm355_vm0, %v4533_v54 }
 0x1e3   : > { %v3912_v28 = vadd.f32 %v3911_v46, %v3910_v37 }
 0x1e4   : > { %v2873_v15 = vpop.permute.xlu1 %2872 }
 0x1e5   : > { %v3914_v20 = vadd.f32 %v3913_v0, %v3912_v28  ;;  %v3373_v23 = vsel %vm3341_vm15, %v3340_v38, %v2873_v15 }
 0x1e6   : > { %v3031_v50 = vpop.permute.xlu0 %3030 }
 0x1e7   : > { %v3437_v55 = vsel %vm3407_vm2, %v3404_v35, %v3031_v50 }
 0x1ea   : > { %v3143_v51 = vpop.permute.xlu0 %3142 }
 0x1eb   : > { %v3470_v56 = vsel %vm3440_vm3, %v3437_v55, %v3143_v51 }
 0x1ee   : > { %v2953_v52 = vpop.permute.xlu1 %2952 }
 0x1ef   : > { %v3406_v39 = vsel %vm3374_vm1, %v3373_v23, %v2953_v52 }
 0x1f1   : > { %v3223_v29 = vpop.permute.xlu0 %3222 }
 0x1f2   : > { %v3503_v14 = vsel %vm3473_vm7, %v3470_v56, %v3223_v29  ;;  %v3033_v42 = vpop.permute.xlu1 %3032 }
 0x1f3   : > { %4619 = vmatprep.mubr.msk.bf16.mxu1 %vm3542_vm10, %v3503_v14  ;;  %v3439_v36 = vsel %vm3407_vm2, %v3406_v39, %v3033_v42 }
 0x1f6   : > { %v3145_v12 = vpop.permute.xlu1 %3144 }
 0x1f7   : > { %v3472_v16 = vsel %vm3440_vm3, %v3439_v36, %v3145_v12 }
 0x205   : > { %v3225_v40 = vpop.permute.xlu1 %3224 }
 0x206   : > { %v3505_v34 = vsel %vm3473_vm7, %v3472_v16, %v3225_v40 }
 0x207   : > { %4620 = vmatmul.mubr.msk.bf16.gmra.mrb[12].mxu1 %vm3542_vm10, %v3505_v34 }
 0x20b   : > { %v6945_v30 = vpop.f32.mrb[8].mxu0 }
 0x20c   : > { %v4538_v18 = vpack.c.bf16 %v6945_v30, %v6945_v30  ;;  %v6949_v58 = vpop.f32.mrb[9].mxu0  ;;  %v3919_v43 = vsel %vm3226_vm12, %v6945_v30, 0.0 }
 0x20d   : > { %v4536_v7 = vpack.c.bf16 %v6949_v58, %v6949_v58  ;;  %v3915_v49 = vsel %vm3226_vm12, %v6949_v58, 0.0  ;;  %v6955_v59 = vpop.f32.mrb[10].mxu0 }
 0x20e   : > { %3878 = vst.msk [vmem:[%s6839_s26 + $0x28] sm:$0xf] %vm355_vm0, %v4538_v18  ;;  %v3916_v60 = vadd.f32 %v3915_v49, %v3914_v20  ;;  %v4539_v45 = vpack.c.bf16 %v6955_v59, %v6955_v59  ;;  %v6961_v63 = vpop.f32.mrb[11].mxu0  ;;  %v3921_v2 = vsel %vm3226_vm12, %v6955_v59, 0.0 }
 0x20f   : > { %3876 = vst.msk [vmem:[%s6839_s26 + $0x20] sm:$0xf] %vm355_vm0, %v4536_v7  ;;  %v4537_v10 = vpack.c.bf16 %v6961_v63, %v6961_v63  ;;  %v3917_v9 = vsel %vm3226_vm12, %v6961_v63, 0.0 }
 0x210   : > { %3879 = vst.msk [vmem:[%s6839_s26 + $0x2c] sm:$0xf] %vm355_vm0, %v4539_v45  ;;  %v3918_v41 = vadd.f32 %v3917_v9, %v3916_v60 }
 0x211   : > { %3877 = vst.msk [vmem:[%s6839_s26 + $0x24] sm:$0xf] %vm355_vm0, %v4537_v10 }
 0x212   : > { %v3920_v32 = vadd.f32 %v3919_v43, %v3918_v41 }
 0x214   : > { %v3922_v5 = vadd.f32 %v3921_v2, %v3920_v32 }
 0x238   : > { %v6977_v61 = vpop.f32.mrb[12].mxu0 }
 0x239   : > { %v4542_v3 = vpack.c.bf16 %v6977_v61, %v6977_v61  ;;  %v6981_v33 = vpop.f32.mrb[13].mxu0  ;;  %v3927_v28 = vsel %vm3226_vm12, %v6977_v61, 0.0 }
 0x23a   : > { %v4540_v62 = vpack.c.bf16 %v6981_v33, %v6981_v33  ;;  %v3923_v22 = vsel %vm3226_vm12, %v6981_v33, 0.0  ;;  %v6987_v4 = vpop.f32.mrb[14].mxu0 }
 0x23b   : > { %3882 = vst.msk [vmem:[%s6839_s26 + $0x38] sm:$0xf] %vm355_vm0, %v4542_v3  ;;  %v3924_v19 = vadd.f32 %v3923_v22, %v3922_v5  ;;  %v4543_v25 = vpack.c.bf16 %v6987_v4, %v6987_v4  ;;  %v6993_v54 = vpop.f32.mrb[15].mxu0  ;;  %v3929_v20 = vsel %vm3226_vm12, %v6987_v4, 0.0 }
 0x23c   : > { %3880 = vst.msk [vmem:[%s6839_s26 + $0x30] sm:$0xf] %vm355_vm0, %v4540_v62  ;;  %v4541_v13 = vpack.c.bf16 %v6993_v54, %v6993_v54  ;;  %v3925_v37 = vsel %vm3226_vm12, %v6993_v54, 0.0 }
 0x23d   : > { %3883 = vst.msk [vmem:[%s6839_s26 + $0x3c] sm:$0xf] %vm355_vm0, %v4543_v25  ;;  %v3926_v46 = vadd.f32 %v3925_v37, %v3924_v19 }
 0x23e   : > { %3881 = vst.msk [vmem:[%s6839_s26 + $0x34] sm:$0xf] %vm355_vm0, %v4541_v13 }
 0x23f   : > { %v3928_v0 = vadd.f32 %v3927_v28, %v3926_v46 }
 0x241   : > { %v3930_v21 = vadd.f32 %v3929_v20, %v3928_v0 }
 0x255   : > { %v7009_v50 = vpop.f32.mrb[0].mxu1 }
 0x256   : > { %v4546_v31 = vpack.c.bf16 %v7009_v50, %v7009_v50  ;;  %v7013_v51 = vpop.f32.mrb[1].mxu1  ;;  %v3935_v52 = vsel %vm3226_vm12, %v7009_v50, 0.0 }
 0x257   : > { %v4544_v17 = vpack.c.bf16 %v7013_v51, %v7013_v51  ;;  %v3931_v6 = vsel %vm3226_vm12, %v7013_v51, 0.0  ;;  %v7019_v15 = vpop.f32.mrb[2].mxu1 }
 0x258   : > { %3886 = vst.msk [vmem:[%s6839_s26 + $0x48] sm:$0xf] %vm355_vm0, %v4546_v31  ;;  %v3932_v27 = vadd.f32 %v3931_v6, %v3930_v21  ;;  %v4547_v35 = vpack.c.bf16 %v7019_v15, %v7019_v15  ;;  %v7025_v55 = vpop.f32.mrb[3].mxu1  ;;  %v3937_v53 = vsel %vm3226_vm12, %v7019_v15, 0.0 }
 0x259   : > { %3884 = vst.msk [vmem:[%s6839_s26 + $0x40] sm:$0xf] %vm355_vm0, %v4544_v17  ;;  %v4545_v56 = vpack.c.bf16 %v7025_v55, %v7025_v55  ;;  %v3933_v29 = vsel %vm3226_vm12, %v7025_v55, 0.0 }
 0x25a   : > { %3887 = vst.msk [vmem:[%s6839_s26 + $0x4c] sm:$0xf] %vm355_vm0, %v4547_v35  ;;  %v3934_v14 = vadd.f32 %v3933_v29, %v3932_v27 }
 0x25b   : > { %3885 = vst.msk [vmem:[%s6839_s26 + $0x44] sm:$0xf] %vm355_vm0, %v4545_v56 }
 0x25c   : > { %v3936_v42 = vadd.f32 %v3935_v52, %v3934_v14 }
 0x25e   : > { %v3938_v12 = vadd.f32 %v3937_v53, %v3936_v42 }
 0x274   : > { %v7041_v57 = vpop.f32.mrb[4].mxu1 }
 0x275   : > { %v4550_v38 = vpack.c.bf16 %v7041_v57, %v7041_v57  ;;  %v7045_v23 = vpop.f32.mrb[5].mxu1  ;;  %v3943_v45 = vsel %vm3226_vm12, %v7041_v57, 0.0 }
 0x276   : > { %v4548_v39 = vpack.c.bf16 %v7045_v23, %v7045_v23  ;;  %v3939_v36 = vsel %vm3226_vm12, %v7045_v23, 0.0  ;;  %v7051_v16 = vpop.f32.mrb[6].mxu1 }
 0x277   : > { %3890 = vst.msk [vmem:[%s6839_s26 + $0x58] sm:$0xf] %vm355_vm0, %v4550_v38  ;;  %v3940_v40 = vadd.f32 %v3939_v36, %v3938_v12  ;;  %v4551_v34 = vpack.c.bf16 %v7051_v16, %v7051_v16  ;;  %v7057_v18 = vpop.f32.mrb[7].mxu1  ;;  %v3945_v9 = vsel %vm3226_vm12, %v7051_v16, 0.0 }
 0x278   : > { %3888 = vst.msk [vmem:[%s6839_s26 + $0x50] sm:$0xf] %vm355_vm0, %v4548_v39  ;;  %v4549_v7 = vpack.c.bf16 %v7057_v18, %v7057_v18  ;;  %v3941_v49 = vsel %vm3226_vm12, %v7057_v18, 0.0 }
 0x279   : > { %3891 = vst.msk [vmem:[%s6839_s26 + $0x5c] sm:$0xf] %vm355_vm0, %v4551_v34  ;;  %v3942_v60 = vadd.f32 %v3941_v49, %v3940_v40 }
 0x27a   : > { %3889 = vst.msk [vmem:[%s6839_s26 + $0x54] sm:$0xf] %vm355_vm0, %v4549_v7 }
 0x27b   : > { %v3944_v10 = vadd.f32 %v3943_v45, %v3942_v60 }
 0x27d   : > { %v3946_v41 = vadd.f32 %v3945_v9, %v3944_v10 }
 0x2a3   : > { %v7073_v43 = vpop.f32.mrb[8].mxu1 }
 0x2a4   : > { %v4554_v32 = vpack.c.bf16 %v7073_v43, %v7073_v43  ;;  %v7077_v2 = vpop.f32.mrb[9].mxu1  ;;  %v3951_v28 = vsel %vm3226_vm12, %v7073_v43, 0.0 }
 0x2a5   : > { %v4552_v5 = vpack.c.bf16 %v7077_v2, %v7077_v2  ;;  %v3947_v3 = vsel %vm3226_vm12, %v7077_v2, 0.0  ;;  %v7083_v62 = vpop.f32.mrb[10].mxu1 }
 0x2a6   : > { %3894 = vst.msk [vmem:[%s6839_s26 + $0x68] sm:$0xf] %vm355_vm0, %v4554_v32  ;;  %v3948_v22 = vadd.f32 %v3947_v3, %v3946_v41  ;;  %v4555_v19 = vpack.c.bf16 %v7083_v62, %v7083_v62  ;;  %v7089_v25 = vpop.f32.mrb[11].mxu1  ;;  %v3953_v20 = vsel %vm3226_vm12, %v7083_v62, 0.0 }
 0x2a7   : > { %3892 = vst.msk [vmem:[%s6839_s26 + $0x60] sm:$0xf] %vm355_vm0, %v4552_v5  ;;  %v4553_v13 = vpack.c.bf16 %v7089_v25, %v7089_v25  ;;  %v3949_v37 = vsel %vm3226_vm12, %v7089_v25, 0.0 }
 0x2a8   : > { %3895 = vst.msk [vmem:[%s6839_s26 + $0x6c] sm:$0xf] %vm355_vm0, %v4555_v19  ;;  %v3950_v46 = vadd.f32 %v3949_v37, %v3948_v22 }
 0x2a9   : > { %3893 = vst.msk [vmem:[%s6839_s26 + $0x64] sm:$0xf] %vm355_vm0, %v4553_v13 }
 0x2aa   : > { %v3952_v0 = vadd.f32 %v3951_v28, %v3950_v46 }
 0x2ac   : > { %v3954_v21 = vadd.f32 %v3953_v20, %v3952_v0 }
 0x2da   : > { %v4621_v31 = vpop.f32.mrb[12].mxu1 }
 0x2db   : > { %v4558_v17 = vpack.c.bf16 %v4621_v31, %v4621_v31  ;;  %v3725_v6 = vpop.f32.mrb[13].mxu1  ;;  %v3959_v38 = vsel %vm3226_vm12, %v4621_v31, 0.0 }
 0x2dc   : > { %v4556_v27 = vpack.c.bf16 %v3725_v6, %v3725_v6  ;;  %v3955_v35 = vsel %vm3226_vm12, %v3725_v6, 0.0  ;;  %v4622_v56 = vpop.f32.mrb[14].mxu1 }
 0x2dd   : > { %3898 = vst.msk [vmem:[%s6839_s26 + $0x78] sm:$0xf] %vm355_vm0, %v4558_v17  ;;  %v3956_v29 = vadd.f32 %v3955_v35, %v3954_v21  ;;  %v4559_v14 = vpack.c.bf16 %v4622_v56, %v4622_v56  ;;  %v3728_v52 = vpop.f32.mrb[15].mxu1  ;;  %v3961_v36 = vsel %vm3226_vm12, %v4622_v56, 0.0 }
 0x2de   : > { %3896 = vst.msk [vmem:[%s6839_s26 + $0x70] sm:$0xf] %vm355_vm0, %v4556_v27  ;;  %v4557_v42 = vpack.c.bf16 %v3728_v52, %v3728_v52  ;;  %v3957_v53 = vsel %vm3226_vm12, %v3728_v52, 0.0 }
 0x2df   : > { %3899 = vst.msk [vmem:[%s6839_s26 + $0x7c] sm:$0xf] %vm355_vm0, %v4559_v14  ;;  %v3958_v12 = vadd.f32 %v3957_v53, %v3956_v29 }
 0x2e0   : > { %3897 = vst.msk [vmem:[%s6839_s26 + $0x74] sm:$0xf] %vm355_vm0, %v4557_v42 }
 0x2e1   : > { %v3960_v39 = vadd.f32 %v3959_v38, %v3958_v12 }
 0x2e3   : > { %v3962_v40 = vadd.f32 %v3961_v36, %v3960_v39 }
 0x2e5   : > { %v3963_v34 = vrot.slane %v3962_v40, 4 }
 0x2e7   : > { %v3964_v7 = vadd.f32 %v3963_v34, %v3962_v40 }
 0x2e9   : > { %v3965_v49 = vrot.slane %v3964_v7, 2 }
 0x2eb   : > { %v3966_v60 = vadd.f32 %v3965_v49, %v3964_v7 }
 0x2ed   : > { %v3967_v45 = vrot.slane %v3966_v60, 1 }
 0x2ef   : > { %v3968_v10 = vadd.f32 %v3967_v45, %v3966_v60 }
 0x2f1   : > { %v3969_v9 = vmul.f32 0.00390625, %v3968_v10 }
 0x2f3   : > { %v3970_v41 = vsub.f32 %v6845_v44, %v3969_v9  ;;  %v3971_v32 = vsub.f32 %v6855_v48, %v3969_v9  ;;  %v3972_v5 = vsub.f32 %v6841_v24, %v3969_v9  ;;  %v3973_v3 = vsub.f32 %v6849_v26, %v3969_v9  ;;  %4003 = vst.msk [vmem:[%s315_s28] sm:$0x1] %vm359_vm4, %v3969_v9 }
 0x2f4   : > { %v3974_v22 = vsub.f32 %v6897_v47, %v3969_v9  ;;  %v3975_v19 = vsub.f32 %v6909_v1, %v3969_v9  ;;  %v3976_v13 = vsub.f32 %v6893_v11, %v3969_v9  ;;  %v3977_v37 = vsub.f32 %v6903_v8, %v3969_v9 }
 0x2f5   : > { %v3978_v46 = vsub.f32 %v6949_v58, %v3969_v9  ;;  %v3979_v44 = vsub.f32 %v6961_v63, %v3969_v9  ;;  %v3980_v48 = vsub.f32 %v6945_v30, %v3969_v9  ;;  %v3981_v24 = vsub.f32 %v6955_v59, %v3969_v9 }
 0x2f6   : > { %v3982_v26 = vsub.f32 %v6981_v33, %v3969_v9  ;;  %v3983_v28 = vsub.f32 %v6993_v54, %v3969_v9  ;;  %v3984_v47 = vsub.f32 %v6977_v61, %v3969_v9  ;;  %v3985_v1 = vsub.f32 %v6987_v4, %v3969_v9 }
 0x2f7   : > { %v3986_v11 = vsub.f32 %v7013_v51, %v3969_v9  ;;  %v3987_v8 = vsub.f32 %v7025_v55, %v3969_v9  ;;  %v7141_v58 = vsub.f32 %v7009_v50, %v3969_v9  ;;  %v7144_v63 = vsub.f32 %v7019_v15, %v3969_v9 }
 0x2f8   : > { %v7147_v30 = vsub.f32 %v7045_v23, %v3969_v9  ;;  %v7150_v59 = vsub.f32 %v7057_v18, %v3969_v9  ;;  %v7153_v61 = vsub.f32 %v7041_v57, %v3969_v9  ;;  %v7156_v33 = vsub.f32 %v7051_v16, %v3969_v9 }
 0x2f9   : > { %v7159_v4 = vsub.f32 %v7077_v2, %v3969_v9  ;;  %v7162_v54 = vsub.f32 %v7089_v25, %v3969_v9  ;;  %v7165_v50 = vsub.f32 %v7073_v43, %v3969_v9  ;;  %v7168_v51 = vsub.f32 %v7083_v62, %v3969_v9 }
 0x2fa   : > { %v7170_v15 = vsub.f32 %v3725_v6, %v3969_v9  ;;  %v7172_v55 = vsub.f32 %v3728_v52, %v3969_v9  ;;  %v7174_v57 = vsub.f32 %v4621_v31, %v3969_v9  ;;  %v7176_v23 = vsub.f32 %v4622_v56, %v3969_v9 }
 0x2fb   : > { %v4004_v16 = vmul.f32 %v3970_v41, %v3970_v41  ;;  %v4005_v18 = vmul.f32 %v3971_v32, %v3971_v32  ;;  %v4006_v2 = vmul.f32 %v3972_v5, %v3972_v5  ;;  %v4007_v0 = vmul.f32 %v3973_v3, %v3973_v3 }
 0x2fc   : > { %v4008_v21 = vmul.f32 %v3974_v22, %v3974_v22  ;;  %v4009_v6 = vmul.f32 %v3975_v19, %v3975_v19  ;;  %v4010_v35 = vmul.f32 %v3976_v13, %v3976_v13  ;;  %v4011_v14 = vmul.f32 %v3977_v37, %v3977_v37 }
 0x2fd   : > { %v4036_v25 = vsel %vm3226_vm12, %v4004_v16, 0.0  ;;  %v4037_v43 = vsel %vm3226_vm12, %v4005_v18, 0.0  ;;  %v4039_v62 = vsel %vm3226_vm12, %v4006_v2, 0.0  ;;  %v4041_v27 = vsel %vm3226_vm12, %v4007_v0, 0.0 }
 0x2fe   : > { %v4038_v20 = vadd.f32 %v4037_v43, %v4036_v25  ;;  %v4043_v56 = vsel %vm3226_vm12, %v4008_v21, 0.0  ;;  %v4045_v52 = vsel %vm3226_vm12, %v4009_v6, 0.0  ;;  %v4012_v53 = vmul.f32 %v3978_v46, %v3978_v46 }
 0x2ff   : > { %v4047_v12 = vsel %vm3226_vm12, %v4010_v35, 0.0  ;;  %v4013_v39 = vmul.f32 %v3979_v44, %v3979_v44  ;;  %v4049_v36 = vsel %vm3226_vm12, %v4011_v14, 0.0  ;;  %v4014_v34 = vmul.f32 %v3980_v48, %v3980_v48 }
 0x300   : > { %v4040_v17 = vadd.f32 %v4039_v62, %v4038_v20  ;;  %v4051_v7 = vsel %vm3226_vm12, %v4012_v53, 0.0  ;;  %v4015_v60 = vmul.f32 %v3981_v24, %v3981_v24  ;;  %v4016_v9 = vmul.f32 %v3982_v26, %v3982_v26 }
 0x301   : > { %v4053_v45 = vsel %vm3226_vm12, %v4013_v39, 0.0  ;;  %v4055_v41 = vsel %vm3226_vm12, %v4014_v34, 0.0  ;;  %v4017_v5 = vmul.f32 %v3983_v28, %v3983_v28  ;;  %v4018_v19 = vmul.f32 %v3984_v47, %v3984_v47 }
 0x302   : > { %v4042_v31 = vadd.f32 %v4041_v27, %v4040_v17  ;;  %v4057_v3 = vsel %vm3226_vm12, %v4015_v60, 0.0  ;;  %v4059_v13 = vsel %vm3226_vm12, %v4016_v9, 0.0  ;;  %v4019_v46 = vmul.f32 %v3985_v1, %v3985_v1 }
 0x303   : > { %v4061_v44 = vsel %vm3226_vm12, %v4017_v5, 0.0  ;;  %v4020_v24 = vmul.f32 %v3986_v11, %v3986_v11  ;;  %v4063_v16 = vsel %vm3226_vm12, %v4018_v19, 0.0  ;;  %v4021_v26 = vmul.f32 %v3987_v8, %v3987_v8 }
 0x304   : > { %v4044_v29 = vadd.f32 %v4043_v56, %v4042_v31  ;;  %v4065_v2 = vsel %vm3226_vm12, %v4019_v46, 0.0  ;;  %v4022_v28 = vmul.f32 %v7141_v58, %v7141_v58  ;;  %v4023_v1 = vmul.f32 %v7144_v63, %v7144_v63 }
 0x305   : > { %v4067_v47 = vsel %vm3226_vm12, %v4020_v24, 0.0  ;;  %v4069_v43 = vsel %vm3226_vm12, %v4021_v26, 0.0  ;;  %v4024_v11 = vmul.f32 %v7147_v30, %v7147_v30  ;;  %v4025_v62 = vmul.f32 %v7150_v59, %v7150_v59 }
 0x306   : > { %v4046_v42 = vadd.f32 %v4045_v52, %v4044_v29  ;;  %v4071_v8 = vsel %vm3226_vm12, %v4022_v28, 0.0  ;;  %v4073_v58 = vsel %vm3226_vm12, %v4023_v1, 0.0  ;;  %v4026_v6 = vmul.f32 %v7153_v61, %v7153_v61 }
 0x307   : > { %v4075_v63 = vsel %vm3226_vm12, %v4024_v11, 0.0  ;;  %v4027_v31 = vmul.f32 %v7156_v33, %v7156_v33  ;;  %v4077_v30 = vsel %vm3226_vm12, %v4025_v62, 0.0  ;;  %v4028_v56 = vmul.f32 %v7159_v4, %v7159_v4 }
 0x308   : > { %v4048_v38 = vadd.f32 %v4047_v12, %v4046_v42  ;;  %v4079_v59 = vsel %vm3226_vm12, %v4026_v6, 0.0  ;;  %v4029_v14 = vmul.f32 %v7162_v54, %v7162_v54  ;;  %v4030_v42 = vmul.f32 %v7165_v50, %v7165_v50 }
 0x309   : > { %v4081_v61 = vsel %vm3226_vm12, %v4027_v31, 0.0  ;;  %v4083_v33 = vsel %vm3226_vm12, %v4028_v56, 0.0  ;;  %v4031_v12 = vmul.f32 %v7168_v51, %v7168_v51  ;;  %v4032_v39 = vmul.f32 %v7170_v15, %v7170_v15 }
 0x30a   : > { %v4050_v40 = vadd.f32 %v4049_v36, %v4048_v38  ;;  %v4085_v4 = vsel %vm3226_vm12, %v4029_v14, 0.0  ;;  %v4087_v54 = vsel %vm3226_vm12, %v4030_v42, 0.0  ;;  %v4035_v60 = vmul.f32 %v7176_v23, %v7176_v23 }
 0x30b   : > { %v4089_v50 = vsel %vm3226_vm12, %v4031_v12, 0.0  ;;  %v4091_v51 = vsel %vm3226_vm12, %v4032_v39, 0.0 }
 0x30c   : > { %v4052_v49 = vadd.f32 %v4051_v7, %v4050_v40  ;;  %v4033_v40 = vmul.f32 %v7172_v55, %v7172_v55  ;;  %v4034_v7 = vmul.f32 %v7174_v57, %v7174_v57  ;;  %v4097_v55 = vsel %vm3226_vm12, %v4035_v60, 0.0 }
 0x30e   : > { %v4054_v10 = vadd.f32 %v4053_v45, %v4052_v49  ;;  %v4093_v15 = vsel %vm3226_vm12, %v4033_v40, 0.0 }
 0x310   : > { %v4056_v32 = vadd.f32 %v4055_v41, %v4054_v10  ;;  %v4095_v10 = vsel %vm3226_vm12, %v4034_v7, 0.0 }
 0x312   : > { %v4058_v22 = vadd.f32 %v4057_v3, %v4056_v32 }
 0x314   : > { %v4060_v37 = vadd.f32 %v4059_v13, %v4058_v22 }
 0x316   : > { %v4062_v48 = vadd.f32 %v4061_v44, %v4060_v37 }
 0x318   : > { %v4064_v18 = vadd.f32 %v4063_v16, %v4062_v48 }
 0x31a   : > { %v4066_v0 = vadd.f32 %v4065_v2, %v4064_v18 }
 0x31c   : > { %v4068_v25 = vadd.f32 %v4067_v47, %v4066_v0 }
 0x31e   : > { %v4070_v20 = vadd.f32 %v4069_v43, %v4068_v25 }
 0x320   : > { %v4072_v21 = vadd.f32 %v4071_v8, %v4070_v20 }
 0x322   : > { %v4074_v17 = vadd.f32 %v4073_v58, %v4072_v21 }
 0x324   : > { %v4076_v27 = vadd.f32 %v4075_v63, %v4074_v17 }
 0x326   : > { %v4078_v35 = vadd.f32 %v4077_v30, %v4076_v27 }
 0x328   : > { %v4080_v29 = vadd.f32 %v4079_v59, %v4078_v35 }
 0x32a   : > { %v4082_v52 = vadd.f32 %v4081_v61, %v4080_v29 }
 0x32c   : > { %v4084_v53 = vadd.f32 %v4083_v33, %v4082_v52 }
 0x32e   : > { %v4086_v38 = vadd.f32 %v4085_v4, %v4084_v53 }
 0x330   : > { %v4088_v36 = vadd.f32 %v4087_v54, %v4086_v38 }
 0x332   : > { %v4090_v34 = vadd.f32 %v4089_v50, %v4088_v36 }
 0x334   : > { %v4092_v49 = vadd.f32 %v4091_v51, %v4090_v34 }
 0x336   : > { %v4094_v45 = vadd.f32 %v4093_v15, %v4092_v49 }
 0x338   : > { %v4096_v9 = vadd.f32 %v4095_v10, %v4094_v45 }
 0x33a   : > { %v4098_v41 = vadd.f32 %v4097_v55, %v4096_v9 }
 0x33c   : > { %v4099_v32 = vrot.slane %v4098_v41, 4 }
 0x33e   : > { %v4100_v5 = vadd.f32 %v4099_v32, %v4098_v41 }
 0x340   : > { %v4101_v3 = vrot.slane %v4100_v5, 2 }
 0x342   : > { %v4102_v22 = vadd.f32 %v4101_v3, %v4100_v5 }
 0x344   : > { %v4103_v57 = vrot.slane %v4102_v22, 1 }
 0x346   : > { %v4104_v19 = vadd.f32 %v4103_v57, %v4102_v22 }
 0x348   : > { %4105 = vst.msk [vmem:[%s321_s7] sm:$0x1] %vm359_vm4, %v4104_v19 }
 0x349 PF: > { %s17_s1 = sadd.s32 1, %s4736_s1   ;;  %s7347_s21 = smov %s4732_s22 }
 0x34a   : > { %p14_p5 = scmp.ge.s32.totalorder %s17_s1, 4   ;;  %s7348_s22 = smov %s7350_s2 }
 0x34c   :  { %16 = sbr.rel (!%p14_p5) target bundleno = 2 (0x2), region = 96 }

// kernel: basic_block_forward.4
= control target key start
LH: loop header
LB: loop body
LE: loop exit
PB: predicated region body
PF: predicated region fallthrough
CT: control target
= control target key end

     0   :  { %s5203_s21 = smov 0   ;;  %s5205_s22 = smov 0   ;;  %s7830_s0 = inlined_call_operand.vmem [shape: bf16[2,16,16,8], index: 0, kind: input, shape index: {}]   ;;  %s7831_s1 = inlined_call_operand.vmem [shape: f32[1,1,8], index: 1, kind: input, shape index: {}]   ;;  %s7832_s2 = inlined_call_operand.vmem [shape: f32[1,1,8], index: 2, kind: input, shape index: {}]   ;;  %s7833_s3 = inlined_call_operand.vmem [shape: bf16[72,8], index: 3, kind: input, shape index: {}]   ;;  %s7834_s4 = inlined_call_operand.vmem [shape: bf16[2,16,16,8], index: 4, kind: output, shape index: {0}]   ;;  %s7835_s5 = inlined_call_operand.vmem [shape: f32[2,1,8], index: 5, kind: output, shape index: {1}]   ;;  %s7836_s6 = inlined_call_operand.vmem [shape: f32[2,1,8], index: 6, kind: output, shape index: {2}]  }
   0x1   :  { %s5207_s23 = smov 0  }
   0x2 LB: > { %s26_s24 = sadd.s32 1, %s5153_s22  ;;  %p4544_p0 = scmp.ge.s32.totalorder %s5157_s23, 1  ;;  %s5157_s23 = sphi %s5207_s23, %s17_s23   ;;  %s5153_s22 = sphi %s5205_s22, %s7994_s22   ;;  %s5149_s21 = sphi %s5203_s21, %s7993_s21  }
   0x3   : > { %p27_p1 = scmp.ge.s32.totalorder %s26_s24, 2  ;;  %p244_p2 = scmp.lt.s32.totalorder %s5157_s23, 3 }
   0x5   : > { %s7996_s24 = smov (%p27_p1, %s26_s24), 0  ;;  %p245_p3 = pnand %p4544_p0, %p244_p2 }
   0x7   : > { %248 = sbr.rel (%p245_p3) target bundleno = 885 (0x375), region = 36 }
   0xe   : > { %vm513_vm0 = vcmask 60416   ;;  %vm517_vm1 = vcmask 57344   ;;  %vm518_vm2 = vsmask.f32 256  ;;  %v5159_v0 = vmov 0   ;;  %p293_p4 = scmp.lt.s32.totalorder %s5149_s21, 1 }
   0xf   : > { %515 = vst.msk [vmem:[#allocation2 + $0x4] sm:$0xf] %vm513_vm0, %v5159_v0  ;;  %516 = vst.msk [vmem:[#allocation2 + $0x8] sm:$0xf] %vm513_vm0, %v5159_v0  ;;  %v7872_v1 = vmov 0  ;;  %vm530_vm4 = vcmask 60419  }
  0x10   : > { %514 = vst.msk [vmem:[#allocation2] sm:$0xf] %vm513_vm0, %v5159_v0  ;;  %524 = vst.msk [vmem:[#allocation2 + $0x110] sm:$0xf] %vm513_vm0, %v5159_v0  ;;  %v520_v2 = vld [vmem:[#allocation2 + $0xc] sm:$0x1] }
  0x11   : > { %525 = vst.msk [vmem:[#allocation2 + $0x114] sm:$0xf] %vm513_vm0, %v5159_v0  ;;  %526 = vst.msk [vmem:[#allocation2 + $0x118] sm:$0xf] %vm513_vm0, %v5159_v0  ;;  %s7998_s21 = smov (!%p293_p4, %s5149_s21), 1  ;;  %v7875_v5 = vmov 0 }
  0x12   : > { %vm5229_vm3 = vmand %vm517_vm1, %vm518_vm2  ;;  %vm531_vm5 = vsmask.f32 7950  ;;  %v536_v4 = vld [vmem:[#allocation2 + $0x10] sm:$0x8]  ;;  %v539_v6 = vld [vmem:[#allocation2 + $0x20] sm:$0x8] }
  0x13   : > { %v7873_v1 = vsel %vm5229_vm3, 4294967295, %v7872_v1  ;;  %v521_v3 = vsel %vm5229_vm3, 0, %v520_v2  ;;  %vm5237_vm6 = vmand %vm530_vm4, %vm531_vm5  ;;  %v590_v7 = vld [vmem:[#allocation2 + $0x1c] sm:$0x1]  ;;  %s4830_s25 = sshll.u32 %s7998_s21, 7  ;;  %s5160_s7 = smov 8  }
  0x14   : > { %7874 = vst [vmem:[#allocation3_spill] sm:$0xff] %v7873_v1  ;;  %522 = vst [vmem:[#allocation2 + $0xc] sm:$0x1] %v521_v3  ;;  %v7876_v5 = vsel %vm5237_vm6, 4294967295, %v7875_v5  ;;  %v537_v8 = vsel %vm5237_vm6, 0, %v536_v4  ;;  %v540_v9 = vsel %vm5237_vm6, 0, %v539_v6  ;;  %s5253_s28 = scalar_lea.vmem %s7830_s0, %s4830_s25 }
  0x15   : > { %7877 = vst [vmem:[#allocation4_spill] sm:$0xff] %v7876_v5  ;;  %v591_v10 = vsel %vm5229_vm3, 0, %v590_v7  ;;  %v542_v11 = vld [vmem:[#allocation2 + $0x30] sm:$0x8]  ;;  %vm1204_vm7 = vsmask.f32 3328 }
  0x16   : > { %vm1205_vm8 = vsmask.f32 7440  ;;  %538 = vst [vmem:[#allocation2 + $0x10] sm:$0x8] %v537_v8  ;;  %541 = vst [vmem:[#allocation2 + $0x20] sm:$0x8] %v540_v9 }
  0x17   : > { %592 = vst [vmem:[#allocation2 + $0x1c] sm:$0x1] %v591_v10  ;;  %v543_v12 = vsel %vm5237_vm6, 0, %v542_v11  ;;  %v787_v13 = vld [vmem:[#allocation2 + $0x4] sm:$0xf]  ;;  %v4960_v21 = vld [vmem:[%s5253_s28 + $0x8] sm:$0xff]   ;;  %vm5289_vm9 = vmor %vm1204_vm7, %vm1205_vm8 }
  0x18   : > { %v788_v14 = vld [vmem:[#allocation2 + $0x8] sm:$0xf]  ;;  %v4897_v15 = vld [vmem:[%s5253_s28] sm:$0xff]   ;;  %544 = vst [vmem:[#allocation2 + $0x30] sm:$0x8] %v543_v12  ;;  %v842_v19 = vshrl.u32 %v787_v13, 16  ;;  %v4902_v26 = vunpack.c.l.bf16 %v4960_v21  ;;  %v4903_v44 = vunpack.c.h.bf16 %v4960_v21 }
  0x19   : > { %v851_v16 = vshrl.u32 %v788_v14, 16  ;;  %v854_v17 = vshll.u32 %v788_v14, 16  ;;  %v4647_v18 = vcombine.low %v787_v13, %v788_v14  ;;  %v5261_v20 = vld [vmem:[%s7831_s1] ss:$0 sm:$0xff]  ;;  %v845_v22 = vshll.u32 %v787_v13, 16  ;;  %v4961_v36 = vld [vmem:[%s5253_s28 + $0x10] sm:$0xff]  }
  0x1a   : > { %7878 = vst [vmem:[#allocation5_spill] sm:$0xff] %v5261_v20  ;;  %v4898_v24 = vunpack.c.l.bf16 %v4897_v15  ;;  %v4899_v25 = vunpack.c.h.bf16 %v4897_v15  ;;  %v5265_v29 = vrot.slane %v842_v19, 7  ;;  %v1207_v30 = vrot.slane %v842_v19, 4  ;;  %v5270_v31 = vld [vmem:[%s7832_s2] ss:$0 sm:$0xff]  ;;  %s5161_s10 = smov 16  }
  0x1b   : > { %v587_v23 = vld [vmem:[#allocation2 + $0xc] sm:$0x1]  ;;  %v853_v27 = vrot.slane %v851_v16, 7  ;;  %v1213_v28 = vrot.slane %v851_v16, 4  ;;  %2840 = vrot.lane.b32.xlu0 %v4647_v18, %s5160_s7  ;;  %v1208_v32 = vrot.slane %v845_v22, 5  ;;  %v5274_v34 = vrot.slane %v854_v17, 5 }
  0x1c   : > { %7879 = vst [vmem:[#allocation6_spill] sm:$0xff] %v5265_v29  ;;  %v588_v33 = vsel %vm5229_vm3, 0, %v587_v23  ;;  %v394_v35 = vmul.f32 %v4898_v24, %v5261_v20  ;;  %v5281_v38 = vor.u32 %v845_v22, %v5265_v29  ;;  %v395_v40 = vmul.f32 %v4899_v25, %v5261_v20  ;;  %v593_v9 = vld [vmem:[#allocation2 + $0x2c] sm:$0x1]  ;;  %v596_v10 = vld [vmem:[#allocation2 + $0x3c] sm:$0x1] }
  0x1d   : > { %v5278_v37 = vor.u32 %v854_v17, %v853_v27  ;;  %589 = vst [vmem:[#allocation2 + $0xc] sm:$0x1] %v588_v33  ;;  %v1209_v41 = vor.u32 %v1208_v32, %v1207_v30  ;;  %v1214_v42 = vor.u32 %v1213_v28, %v5274_v34  ;;  %v396_v47 = vmul.f32 %v4902_v26, %v5261_v20  ;;  %v1431_v50 = vld [vmem:[#allocation2 + $0x10] sm:$0x8]  ;;  %v2072_v55 = vld [vmem:[#allocation2 + $0x20] sm:$0x8] }
  0x1e   : > { %7881 = vst [vmem:[#allocation8_spill] sm:$0xff] %v5281_v38  ;;  %v433_v43 = vadd.f32 %v5270_v31, %v394_v35  ;;  %v434_v46 = vadd.f32 %v5270_v31, %v395_v40  ;;  %v4906_v48 = vunpack.c.l.bf16 %v4961_v36  ;;  %v4907_v49 = vunpack.c.h.bf16 %v4961_v36  ;;  %v1434_v60 = vld [vmem:[#allocation2 + $0x20] sm:$0x8]  ;;  %v1831_v61 = vld [vmem:[#allocation2 + $0x1c] sm:$0x1]  ;;  %s5162_s11 = smov 32  }
  0x1f   : > { %7880 = vst [vmem:[#allocation7_spill] sm:$0xff] %v5278_v37  ;;  %v1210_v51 = vrot.slane %v1209_v41, 4  ;;  %v1215_v52 = vrot.slane %v1214_v42, 4  ;;  %v397_v54 = vmul.f32 %v4903_v44, %v5261_v20  ;;  %v435_v57 = vadd.f32 %v5270_v31, %v396_v47  ;;  %v2075_v3 = vld [vmem:[#allocation2 + $0x30] sm:$0x8]  ;;  %v4962_v28 = vld [vmem:[%s5253_s28 + $0x18] sm:$0xff]  }
  0x20   : > { %v465_v53 = vmax.f32 %v433_v43, 0.0  ;;  %v466_v56 = vmax.f32 %v434_v46, 0.0  ;;  %v398_v58 = vmul.f32 %v4906_v48, %v5261_v20  ;;  %v399_v59 = vmul.f32 %v4907_v49, %v5261_v20  ;;  %v1189_v11 = vld [vmem:[#allocation2 + $0x1c] sm:$0x1]  ;;  %v1437_v17 = vld [vmem:[#allocation2 + $0x30] sm:$0x8] }
  0x21   : > { %v1212_v62 = vsel %vm5289_vm9, %v1210_v51, %v5274_v34  ;;  %v436_v0 = vadd.f32 %v5270_v31, %v397_v54  ;;  %v1480_v2 = vshrl.u32 %v1431_v50, 16  ;;  %v467_v6 = vmax.f32 %v435_v57, 0.0  ;;  %v545_v23 = vld [vmem:[#allocation2 + $0x40] sm:$0x8]  ;;  %v599_v30 = vld [vmem:[#allocation2 + $0x4c] sm:$0x1] }
  0x22   : > { %v4832_v63 = vpack.c.bf16 %v465_v53, %v465_v53  ;;  %v4833_v4 = vpack.c.bf16 %v466_v56, %v466_v56  ;;  %v437_v7 = vadd.f32 %v5270_v31, %v398_v58  ;;  %v438_v8 = vadd.f32 %v5270_v31, %v399_v59  ;;  %v5329_v48 = vld [vmem:[%s5253_s28 + $0x20] sm:$0xff]   ;;  %s5163_s12 = smov 56   ;;  %s5164_s13 = smov 24  }
  0x23   : > { %v468_v13 = vmax.f32 %v436_v0, 0.0  ;;  %v5306_v14 = vrot.slane %v1480_v2, 11  ;;  %v2121_v15 = vshrl.u32 %v2072_v55, 16  ;;  %v1502_v16 = vshrl.u32 %v1434_v60, 16  ;;  %s5165_s14 = smov 48   ;;  %s5166_s15 = smov 40  }
  0x24   : > { %v1188_v12 = vld [vmem:[#allocation2 + $0xc] sm:$0x1]  ;;  %754 = vst.msk [vmem:[#allocation2 + $0x14] sm:$0xf] %vm513_vm0, %v4832_v63  ;;  %755 = vst.msk [vmem:[#allocation2 + $0x18] sm:$0xf] %vm513_vm0, %v4833_v4  ;;  %v4834_v19 = vpack.c.bf16 %v467_v6, %v467_v6  ;;  %v4910_v47 = vunpack.c.l.bf16 %v4962_v28  ;;  %v4911_v51 = vunpack.c.h.bf16 %v4962_v28 }
  0x25   : > { %v1217_v18 = vshll.u32 %v1188_v12, 16  ;;  %v469_v21 = vmax.f32 %v437_v7, 0.0  ;;  %v470_v22 = vmax.f32 %v438_v8, 0.0  ;;  %v4835_v24 = vpack.c.bf16 %v468_v13, %v468_v13  ;;  %s5167_s16 = smov 64  }
  0x26   : > { %v5309_v25 = vrot.slane %v2121_v15, 11  ;;  %v5311_v26 = vrot.slane %v1502_v16, 11  ;;  %v1857_v27 = vshll.u32 %v1831_v61, 16  ;;  %756 = vst.msk [vmem:[#allocation2 + $0x24] sm:$0xf] %vm513_vm0, %v4834_v19  ;;  %v2143_v35 = vshrl.u32 %v2075_v3, 16 }
  0x27   : > { %v1219_v32 = vrot.slane %v1217_v18, 5  ;;  %v4836_v33 = vpack.c.bf16 %v469_v21, %v469_v21  ;;  %v4837_v34 = vpack.c.bf16 %v470_v22, %v470_v22  ;;  %757 = vst.msk [vmem:[#allocation2 + $0x28] sm:$0xf] %vm513_vm0, %v4835_v24  ;;  %v594_v40 = vsel %vm5229_vm3, 0, %v593_v9 }
  0x28   : > { %v5316_v36 = vrot.slane %v1857_v27, 5  ;;  %v597_v41 = vsel %vm5229_vm3, 0, %v596_v10  ;;  %v1231_v42 = vshll.u32 %v1189_v11, 16  ;;  %v5326_v44 = vrot.slane %v2143_v35, 11  ;;  %595 = vst [vmem:[#allocation2 + $0x2c] sm:$0x1] %v594_v40 }
  0x29   : > { %v1220_v43 = vsel %vm5289_vm9, %v1215_v52, %v1219_v32  ;;  %758 = vst.msk [vmem:[#allocation2 + $0x34] sm:$0xf] %vm513_vm0, %v4836_v33  ;;  %759 = vst.msk [vmem:[#allocation2 + $0x38] sm:$0xf] %vm513_vm0, %v4837_v34  ;;  %v1524_v46 = vshrl.u32 %v1437_v17, 16  ;;  %v546_v53 = vsel %vm5237_vm6, 0, %v545_v23  ;;  %v5340_v56 = vmul.f32 %v4910_v47, %v5261_v20 }
  0x2a   : > { %598 = vst [vmem:[#allocation2 + $0x3c] sm:$0x1] %v597_v41  ;;  %v4663_v49 = vcombine.low %v1212_v62, %v1220_v43  ;;  %v5331_v50 = vrot.slane %v1231_v42, 5  ;;  %547 = vst [vmem:[#allocation2 + $0x40] sm:$0x8] %v546_v53  ;;  %v600_v57 = vsel %vm5229_vm3, 0, %v599_v30  ;;  %v5348_v61 = vmul.f32 %v4911_v51, %v5261_v20 }
  0x2b   : > { %v790_v52 = vld [vmem:[#allocation2 + $0x14] sm:$0xf]  ;;  %v5337_v55 = vrot.slane %v1524_v46, 11  ;;  %v5345_v58 = vld [vmem:[#allocation2 + $0x18] sm:$0xf]  ;;  %vm3496_vm12 = vcmask 64512  }
  0x2c   : > { %v5335_v54 = vld [vmem:[#allocation2 + $0x14] sm:$0xf]  ;;  %2920 = vrot.lane.b32.xlu1 %v4663_v49, %s5161_s10  ;;  %v864_v59 = vshrl.u32 %v790_v52, 16  ;;  %v867_v60 = vshll.u32 %v790_v52, 16  ;;  %7884 = vst [vmem:[#allocation9_spill] sm:$0xff] %v5348_v61  ;;  %v873_v63 = vshrl.u32 %v5345_v58, 16  ;;  %v4648_v2 = vcombine.low %v790_v52, %v5345_v58 }
  0x2d   : > { %601 = vst [vmem:[#allocation2 + $0x4c] sm:$0x1] %v600_v57  ;;  %v7837_v0 = vshll.u32 %v5345_v58, 16  ;;  %v5354_v3 = vld [vmem:[#allocation2 + $0x18] sm:$0xf]  ;;  %v1485_v4 = vshrl.u32 %v5335_v54, 16 }
  0x2e   : > { %vm834_vm10 = vsmask.f32 4368  ;;  %v5357_v6 = vrot.slane %v864_v59, 7  ;;  %v5359_v7 = vrot.slane %v864_v59, 4  ;;  %v5361_v8 = vrot.slane %v867_v60, 5  ;;  %2842 = vrot.lane.b32.xlu0 %v4648_v2, %s5160_s7 }
  0x2f   : > { %v5363_v9 = vld [vmem:[#allocation2 + $0x24] sm:$0xf]  ;;  %v7840_v10 = vshll.u32 %v5335_v54, 16  ;;  %v875_v11 = vrot.slane %v873_v63, 7  ;;  %v5366_v12 = vrot.slane %v873_v63, 4  ;;  %v1487_v34 = vrot.slane %v1485_v4, 7  ;;  %vm5451_vm11 = vmor %vm518_vm2, %vm834_vm10 }
  0x30   : > { %7885 = vst [vmem:[#allocation10_spill] sm:$0xff] %v5357_v6  ;;  %v5369_v13 = vld [vmem:[#allocation2 + $0x28] sm:$0xf]  ;;  %v1507_v15 = vshrl.u32 %v5363_v9, 16  ;;  %v7839_v16 = vshll.u32 %v5363_v9, 16  ;;  %v5374_v17 = vor.u32 %v867_v60, %v5357_v6  ;;  %v1494_v35 = vshrl.u32 %v5354_v3, 16 }
  0x31   : > { %v1516_v18 = vshrl.u32 %v5369_v13, 16  ;;  %v4696_v21 = vcombine.low %v5363_v9, %v5369_v13  ;;  %v5380_v22 = vld [vmem:[#allocation2 + $0x34] sm:$0xf]  ;;  %v5384_v23 = vor.u32 %v7837_v0, %v875_v11  ;;  %v5394_v30 = vld [vmem:[#allocation2 + $0x38] sm:$0xf]  ;;  %v5405_v42 = vrot.slane %v1485_v4, 4 }
  0x32   : > { %7886 = vst [vmem:[#allocation11_spill] sm:$0xff] %v5374_v17  ;;  %v5386_v24 = vrot.slane %v1507_v15, 7  ;;  %v5388_v27 = vrot.slane %v1507_v15, 4  ;;  %v5392_v28 = vrot.slane %v7839_v16, 5  ;;  %v5402_v40 = vld [vmem:[#allocation2 + $0x24] sm:$0xf]  ;;  %v4695_v46 = vcombine.low %v5335_v54, %v5354_v3 }
  0x33   : > { %7887 = vst [vmem:[#allocation12_spill] sm:$0xff] %v5384_v23  ;;  %v5396_v32 = vrot.slane %v1516_v18, 7  ;;  %v5398_v33 = vrot.slane %v1516_v18, 4  ;;  %3114 = vrot.lane.b32.xlu1 %v4696_v21, %s5162_s11  ;;  %v5409_v43 = vrot.slane %v7840_v10, 5  ;;  %v1496_v47 = vrot.slane %v1494_v35, 7 }
  0x34   : > { %v5413_v49 = vrot.slane %v1494_v35, 4  ;;  %v2148_v51 = vshrl.u32 %v5380_v22, 16  ;;  %v7838_v53 = vshll.u32 %v5380_v22, 16  ;;  %v5417_v52 = vld [vmem:[#allocation2 + $0x28] sm:$0xf]  ;;  %3112 = vrot.lane.b32.xlu0 %v4695_v46, %s5162_s11  ;;  %v2157_v57 = vshrl.u32 %v5394_v30, 16 }
  0x35   : > { %v4744_v60 = vcombine.low %v5380_v22, %v5394_v30  ;;  %v2126_v63 = vshrl.u32 %v5402_v40, 16  ;;  %v2129_v15 = vshll.u32 %v5402_v40, 16  ;;  %v793_v18 = vld [vmem:[#allocation2 + $0x24] sm:$0xf]  ;;  %v2135_v39 = vshrl.u32 %v5417_v52, 16 }
  0x36   : > { %v5425_v2 = vrot.slane %v2148_v51, 7  ;;  %v5427_v4 = vrot.slane %v2148_v51, 4  ;;  %v5431_v11 = vrot.slane %v7838_v53, 5  ;;  %v5434_v21 = vrot.slane %v2157_v57, 7  ;;  %v5440_v62 = vld [vmem:[#allocation2 + $0x28] sm:$0xf] }
  0x37   : > { %v5436_v35 = vrot.slane %v2157_v57, 4  ;;  %3386 = vrot.lane.b32.xlu1 %v4744_v60, %s5163_s12  ;;  %v2128_v46 = vrot.slane %v2126_v63, 7  ;;  %v5443_v0 = vrot.slane %v2126_v63, 4  ;;  %v5445_v59 = vrot.slane %v2129_v15, 5  ;;  %v796_v37 = vld [vmem:[#allocation2 + $0x34] sm:$0xf] }
  0x38   : > { %v4743_v53 = vcombine.low %v5402_v40, %v5417_v52  ;;  %v2137_v60 = vrot.slane %v2135_v39, 7  ;;  %v5455_v19 = vrot.slane %v2135_v39, 4  ;;  %v895_v16 = vshrl.u32 %v5440_v62, 16 }
  0x39   : > { %v4649_v63 = vcombine.low %v793_v18, %v5440_v62  ;;  %v886_v41 = vshrl.u32 %v793_v18, 16  ;;  %v889_v10 = vshll.u32 %v793_v18, 16  ;;  %v7890_v40 = vshll.u32 %v5335_v54, 16  ;;  %v5477_v18 = vld [vmem:[#allocation2 + $0x38] sm:$0xf] }
  0x3a   : > { %3384 = vrot.lane.b32.xlu0 %v4743_v53, %s5163_s12  ;;  %v897_v17 = vrot.slane %v895_v16, 7  ;;  %v5463_v23 = vrot.slane %v895_v16, 4  ;;  %v1492_v6 = vrot.slane %v1487_v34, 4  ;;  %v7891_v39 = vshll.u32 %v5354_v3, 16 }
  0x3b   : > { %v1490_v38 = vor.u32 %v7890_v40, %v1487_v34  ;;  %2844 = vrot.lane.b32.xlu1 %v4649_v63, %s5160_s7  ;;  %v5468_v51 = vrot.slane %v886_v41, 7  ;;  %v5470_v53 = vrot.slane %v886_v41, 4  ;;  %v5472_v1 = vrot.slane %v889_v10, 5 }
  0x3c   : > { %v1499_v29 = vor.u32 %v7891_v39, %v1496_v47  ;;  %v7892_v16 = vshll.u32 %v5440_v62, 16  ;;  %v908_v63 = vshrl.u32 %v796_v37, 16  ;;  %v911_v40 = vshll.u32 %v796_v37, 16 }
  0x3d   : > { %v1491_v54 = vsel %vm5451_vm11, %v5306_v14, %v1490_v38  ;;  %v5486_v41 = vor.u32 %v889_v10, %v5468_v51  ;;  %v917_v5 = vshrl.u32 %v5477_v18, 16  ;;  %v2131_v10 = vor.u32 %v2129_v15, %v2128_v46 }
  0x3e   : > { %v5481_v34 = vor.u32 %v7892_v16, %v897_v17  ;;  %v1500_v47 = vsel %vm5451_vm11, %v1492_v6, %v1499_v29  ;;  %v5490_v38 = vrot.slane %v908_v63, 7  ;;  %v5492_v14 = vrot.slane %v908_v63, 4 }
  0x3f   : > { %v4679_v39 = vcombine.low %v1491_v54, %v1500_v47  ;;  %v5494_v61 = vrot.slane %v911_v40, 5  ;;  %v4650_v17 = vcombine.low %v796_v37, %v5477_v18  ;;  %v919_v29 = vrot.slane %v917_v5, 7 }
  0x40   : > { %7893 = vst [vmem:[#allocation13_spill] sm:$0xff] %v5481_v34  ;;  %v5498_v6 = vrot.slane %v917_v5, 4  ;;  %v2133_v54 = vrot.slane %v2128_v46, 4  ;;  %v5501_v16 = vor.u32 %v911_v40, %v5490_v38  ;;  %v7894_v47 = vshll.u32 %v5417_v52, 16 }
  0x41   : > { %3000 = vrot.lane.b32.xlu0 %v4679_v39, %s5164_s13  ;;  %2846 = vrot.lane.b32.xlu1 %v4650_v17, %s5160_s7  ;;  %v7895_v20 = vshll.u32 %v5363_v9, 16  ;;  %v1514_v34 = vrot.slane %v5386_v24, 4  ;;  %v7896_v39 = vshll.u32 %v5477_v18, 16  ;;  %v2132_v15 = vsel %vm5451_vm11, %v5309_v25, %v2131_v10  ;;  %v2472_v10 = vld [vmem:[#allocation2 + $0x2c] sm:$0x1] }
  0x42   : > { %v2140_v63 = vor.u32 %v7894_v47, %v2137_v60  ;;  %v7897_v46 = vshll.u32 %v5369_v13, 16  ;;  %v1849_v60 = vor.u32 %v5409_v43, %v5405_v42  ;;  %v7899_v25 = vshll.u32 %v5380_v22, 16 }
  0x43   : > { %v1512_v37 = vor.u32 %v7895_v20, %v5386_v24  ;;  %v5512_v5 = vor.u32 %v7896_v39, %v919_v29  ;;  %v7898_v24 = vshll.u32 %v5354_v3, 16  ;;  %v2155_v43 = vrot.slane %v5425_v2, 4 }
  0x44   : > { %v1521_v40 = vor.u32 %v7897_v46, %v5396_v32  ;;  %v2141_v20 = vsel %vm5451_vm11, %v2133_v54, %v2140_v63  ;;  %v2153_v29 = vor.u32 %v7899_v25, %v5425_v2  ;;  %v1850_v42 = vrot.slane %v1849_v60, 4 }
  0x45   : > { %v1513_v9 = vsel %vm5451_vm11, %v5311_v26, %v1512_v37  ;;  %v1851_v17 = vrot.slane %v7898_v24, 5  ;;  %v4727_v47 = vcombine.low %v2132_v15, %v2141_v20  ;;  %v7900_v3 = vshll.u32 %v5394_v30, 16  ;;  %v2473_v15 = vld [vmem:[#allocation2 + $0x3c] sm:$0x1] }
  0x46   : > { %v1522_v32 = vsel %vm5451_vm11, %v1514_v34, %v1521_v40  ;;  %v2154_v26 = vsel %vm5451_vm11, %v5326_v44, %v2153_v29  ;;  %v2490_v2 = vor.u32 %v5445_v59, %v5443_v0  ;;  %v7901_v37 = vshll.u32 %v5417_v52, 16 }
  0x47   : > { %v4680_v54 = vcombine.low %v1513_v9, %v1522_v32  ;;  %v1854_v63 = vor.u32 %v5413_v49, %v1851_v17  ;;  %v2162_v22 = vor.u32 %v7900_v3, %v5434_v21  ;;  %3272 = vrot.lane.b32.xlu0 %v4727_v47, %s5165_s14  ;;  %v1852_v34 = vsel %vm5289_vm9, %v1850_v42, %v1851_v17 }
  0x48   : > { %v2492_v49 = vrot.slane %v7901_v37, 5  ;;  %v2498_v39 = vshll.u32 %v2472_v10, 16  ;;  %v2504_v46 = vor.u32 %v5431_v11, %v5427_v4  ;;  %v7902_v40 = vmov %v7900_v3  ;;  %v1190_v10 = vld [vmem:[#allocation2 + $0x2c] sm:$0x1] }
  0x49   : > { %3002 = vrot.lane.b32.xlu1 %v4680_v54, %s5164_s13  ;;  %v1855_v44 = vrot.slane %v1854_v63, 4  ;;  %v2163_v21 = vsel %vm5451_vm11, %v2155_v43, %v2162_v22  ;;  %v2506_v60 = vrot.slane %v7902_v40, 5  ;;  %v2491_v9 = vrot.slane %v2490_v2, 4  ;;  %v1832_v22 = vld [vmem:[#allocation2 + $0x2c] sm:$0x1] }
  0x4a   : > { %v4728_v20 = vcombine.low %v2154_v26, %v2163_v21  ;;  %v2495_v0 = vor.u32 %v5455_v19, %v2492_v49  ;;  %v2500_v52 = vrot.slane %v2498_v39, 5  ;;  %v2505_v24 = vrot.slane %v2504_v46, 4  ;;  %v5592_v40 = vld [vmem:[#allocation2 + $0x38] sm:$0xf] }
  0x4b   : > { %v1860_v59 = vsel %vm5289_vm9, %v1855_v44, %v5316_v36  ;;  %v2509_v17 = vor.u32 %v5436_v35, %v2506_v60  ;;  %v2512_v25 = vshll.u32 %v2473_v15, 16  ;;  %v2493_v4 = vsel %vm5289_vm9, %v2491_v9, %v2492_v49 }
  0x4c   : > { %v4711_v29 = vcombine.low %v1852_v34, %v1860_v59  ;;  %v2496_v11 = vrot.slane %v2495_v0, 4  ;;  %v1223_v30 = vor.u32 %v5361_v8, %v5359_v7  ;;  %v2507_v19 = vsel %vm5289_vm9, %v2505_v24, %v2506_v60  ;;  %v5580_v34 = vld [vmem:[#allocation2 + $0x34] sm:$0xf]  ;;  %v1191_v59 = vld [vmem:[#allocation2 + $0x3c] sm:$0x1] }
  0x4d   : > { %3274 = vrot.lane.b32.xlu1 %v4728_v20, %s5165_s14  ;;  %v2510_v47 = vrot.slane %v2509_v17, 4  ;;  %v2514_v36 = vrot.slane %v2512_v25, 5  ;;  %v7903_v32 = vshll.u32 %v5345_v58, 16  ;;  %v1237_v7 = vor.u32 %v5472_v1, %v5470_v53 }
  0x4e   : > { %3192 = vrot.lane.b32.xlu0 %v4711_v29, %s5166_s15  ;;  %v2501_v42 = vsel %vm5289_vm9, %v2496_v11, %v2500_v52  ;;  %v1224_v43 = vrot.slane %v1223_v30, 4  ;;  %v7904_v8 = vshll.u32 %v5440_v62, 16  ;;  %v1245_v3 = vshll.u32 %v1190_v10, 16 }
  0x4f   : > { %v1225_v35 = vrot.slane %v7903_v32, 5  ;;  %v4759_v63 = vcombine.low %v2493_v4, %v2501_v42  ;;  %v2515_v26 = vsel %vm5289_vm9, %v2510_v47, %v2514_v36  ;;  %v1238_v49 = vrot.slane %v1237_v7, 4  ;;  %v1440_v32 = vld [vmem:[#allocation2 + $0x40] sm:$0x8] }
  0x50   : > { %v1239_v54 = vrot.slane %v7904_v8, 5  ;;  %v4760_v2 = vcombine.low %v2507_v19, %v2515_v26  ;;  %v1247_v62 = vrot.slane %v1245_v3, 5  ;;  %v1863_v39 = vor.u32 %v5392_v28, %v5388_v27 }
  0x51   : > { %v1228_v58 = vor.u32 %v5366_v12, %v1225_v35  ;;  %v1226_v37 = vsel %vm5289_vm9, %v1224_v43, %v1225_v35  ;;  %v7905_v15 = vshll.u32 %v5369_v13, 16  ;;  %v1871_v46 = vshll.u32 %v1832_v22, 16 }
  0x52   : > { %v1242_v1 = vor.u32 %v5463_v23, %v1239_v54  ;;  %3464 = vrot.lane.b32.xlu0 %v4759_v63, %s5167_s16  ;;  %v1240_v12 = vsel %vm5289_vm9, %v1238_v49, %v1239_v54  ;;  %v1529_v23 = vshrl.u32 %v5580_v34, 16  ;;  %v1864_v27 = vrot.slane %v1863_v39, 4  ;;  %v7907_v63 = vld [vmem:[#allocation9_spill] sm:$0xff] }
  0x53   : > { %v1229_v53 = vrot.slane %v1228_v58, 4  ;;  %v1865_v44 = vrot.slane %v7905_v15, 5  ;;  %v1532_v28 = vshll.u32 %v5580_v34, 16  ;;  %v1873_v0 = vrot.slane %v1871_v46, 5  ;;  %v1833_v58 = vld [vmem:[#allocation2 + $0x3c] sm:$0x1] }
  0x54   : > { %v1243_v21 = vrot.slane %v1242_v1, 4  ;;  %v1531_v52 = vrot.slane %v1529_v23, 7  ;;  %v1538_v29 = vshrl.u32 %v5592_v40, 16  ;;  %v1541_v4 = vshll.u32 %v5592_v40, 16  ;;  %v548_v46 = vld [vmem:[#allocation2 + $0x50] sm:$0x8] }
  0x55   : > { %v1234_v60 = vsel %vm5289_vm9, %v1229_v53, %v5331_v50  ;;  %v1868_v13 = vor.u32 %v5398_v33, %v1865_v44  ;;  %v1866_v17 = vsel %vm5289_vm9, %v1864_v27, %v1865_v44  ;;  %v1251_v11 = vor.u32 %v5494_v61, %v5492_v14 }
  0x56   : > { %v4664_v20 = vcombine.low %v1226_v37, %v1234_v60  ;;  %v1248_v9 = vsel %vm5289_vm9, %v1243_v21, %v1247_v62  ;;  %3466 = vrot.lane.b32.xlu0 %v4760_v2, %s5167_s16  ;;  %v1534_v50 = vor.u32 %v1532_v28, %v1531_v52  ;;  %v1536_v33 = vrot.slane %v1531_v52, 4  ;;  %v1834_v21 = vld [vmem:[#allocation2 + $0x4c] sm:$0x1] }
  0x57   : > { %v4665_v24 = vcombine.low %v1240_v12, %v1248_v9  ;;  %v1869_v25 = vrot.slane %v1868_v13, 4  ;;  %v1540_v10 = vrot.slane %v1538_v29, 7  ;;  %v7906_v19 = vshll.u32 %v5477_v18, 16  ;;  %v7908_v9 = vld [vmem:[#allocation5_spill] sm:$0xff] }
  0x58   : > { %2922 = vrot.lane.b32.xlu1 %v4664_v20, %s5161_s10  ;;  %v1259_v36 = vshll.u32 %v1191_v59, 16  ;;  %v1535_v42 = vsel %vm5451_vm11, %v5337_v55, %v1534_v50  ;;  %v1252_v43 = vrot.slane %v1251_v11, 4  ;;  %v4915_v7 = vunpack.c.h.bf16 %v5329_v48  ;;  %v2474_v59 = vld [vmem:[#allocation2 + $0x4c] sm:$0x1] }
  0x59   : > { %v1874_v30 = vsel %vm5289_vm9, %v1869_v25, %v1873_v0  ;;  %v1253_v47 = vrot.slane %v7906_v19, 5  ;;  %v1543_v8 = vor.u32 %v1541_v4, %v1540_v10  ;;  %v439_v54 = vadd.f32 %v5270_v31, %v5340_v56  ;;  %v2078_v56 = vld [vmem:[#allocation2 + $0x40] sm:$0x8] }
  0x5a   : > { %v4712_v35 = vcombine.low %v1866_v17, %v1874_v30  ;;  %v1261_v14 = vrot.slane %v1259_v36, 5  ;;  %2924 = vrot.lane.b32.xlu0 %v4665_v24, %s5161_s10  ;;  %v440_v55 = vadd.f32 %v5270_v31, %v7907_v63  ;;  %v1546_v26 = vshrl.u32 %v1440_v32, 16  ;;  %v1192_v24 = vld [vmem:[#allocation2 + $0x4c] sm:$0x1] }
  0x5b   : > { %v1256_v61 = vor.u32 %v5498_v6, %v1253_v47  ;;  %v1254_v18 = vsel %vm5289_vm9, %v1252_v43, %v1253_v47  ;;  %v1875_v3 = vrot.slane %v1529_v23, 4  ;;  %v1544_v6 = vsel %vm5451_vm11, %v1536_v33, %v1543_v8 }
  0x5c   : > { %3194 = vrot.lane.b32.xlu1 %v4712_v35, %s5166_s15  ;;  %v471_v2 = vmax.f32 %v439_v54, 0.0  ;;  %v1876_v37 = vrot.slane %v1532_v28, 5  ;;  %v4681_v49 = vcombine.low %v1535_v42, %v1544_v6  ;;  %v4697_v1 = vcombine.low %v5580_v34, %v5592_v40  ;;  %v602_v28 = vld [vmem:[#allocation2 + $0x5c] sm:$0x1]  ;;  %v551_v42 = vld [vmem:[#allocation2 + $0x60] sm:$0x8] }
  0x5d   : > { %v1257_v22 = vrot.slane %v1256_v61, 4  ;;  %v472_v53 = vmax.f32 %v440_v55, 0.0  ;;  %v1879_v62 = vrot.slane %v1541_v4, 5  ;;  %v1881_v12 = vrot.slane %v1538_v29, 4  ;;  %v4964_v4 = vld [vmem:[%s5253_s28 + $0x28] sm:$0xff]  }
  0x5e   : > { %v4838_v15 = vpack.c.bf16 %v471_v2, %v471_v2  ;;  %v1877_v44 = vor.u32 %v1876_v37, %v1875_v3  ;;  %3004 = vrot.lane.b32.xlu0 %v4681_v49, %s5164_s13  ;;  %v1885_v27 = vshll.u32 %v1833_v58, 16  ;;  %v2165_v13 = vshrl.u32 %v2078_v56, 16 }
  0x5f   : > { %v1262_v39 = vsel %vm5289_vm9, %v1257_v22, %v1261_v14  ;;  %v4839_v60 = vpack.c.bf16 %v472_v53, %v472_v53  ;;  %v5635_v34 = vrot.slane %v1546_v26, 11  ;;  %v1882_v20 = vor.u32 %v1881_v12, %v1879_v62  ;;  %v5658_v14 = vld [vmem:[%s5253_s28 + $0x30] sm:$0xff]   ;;  %v5665_v26 = vld [vmem:[%s5253_s28 + $0x38] sm:$0xff]  }
  0x60   : > { %v4666_v23 = vcombine.low %v1254_v18, %v1262_v39  ;;  %760 = vst.msk [vmem:[#allocation2 + $0x44] sm:$0xf] %vm513_vm0, %v4838_v15  ;;  %v1878_v40 = vrot.slane %v1877_v44, 4  ;;  %v7909_v0 = vunpack.c.l.bf16 %v5329_v48  ;;  %v1887_v17 = vrot.slane %v1885_v27, 5 }
  0x61   : > { %761 = vst.msk [vmem:[#allocation2 + $0x48] sm:$0xf] %vm513_vm0, %v4839_v60  ;;  %v1899_v25 = vshll.u32 %v1834_v21, 16  ;;  %v403_v29 = vmul.f32 %v4915_v7, %v7908_v9  ;;  %v549_v33 = vsel %vm5237_vm6, 0, %v548_v46  ;;  %v1883_v48 = vrot.slane %v1882_v20, 4 }
  0x62   : > { %v402_v52 = vmul.f32 %v7909_v0, %v7908_v9  ;;  %2926 = vrot.lane.b32.xlu1 %v4666_v23, %s5161_s10  ;;  %v1880_v11 = vsel %vm5289_vm9, %v1878_v40, %v1879_v62  ;;  %v5648_v30 = vrot.slane %v2165_v13, 11  ;;  %550 = vst [vmem:[#allocation2 + $0x50] sm:$0x8] %v549_v33  ;;  %3116 = vrot.lane.b32.xlu0 %v4697_v1, %s5162_s11  ;;  %v2526_v47 = vshll.u32 %v2474_v59, 16 }
  0x63   : > { %v442_v19 = vadd.f32 %v5270_v31, %v403_v29  ;;  %v603_v32 = vsel %vm5229_vm3, 0, %v602_v28  ;;  %v1273_v35 = vshll.u32 %v1192_v24, 16  ;;  %v1888_v43 = vsel %vm5289_vm9, %v1883_v48, %v1887_v17 }
  0x64   : > { %v441_v10 = vadd.f32 %v5270_v31, %v402_v52  ;;  %604 = vst [vmem:[#allocation2 + $0x5c] sm:$0x1] %v603_v32  ;;  %v4918_v8 = vunpack.c.l.bf16 %v4964_v4  ;;  %v4919_v61 = vunpack.c.h.bf16 %v4964_v4  ;;  %v4713_v54 = vcombine.low %v1880_v11, %v1888_v43 }
  0x65   : > { %v5660_v18 = vrot.slane %v1899_v25, 5  ;;  %v474_v63 = vmax.f32 %v442_v19, 0.0  ;;  %v5662_v55 = vrot.slane %v2526_v47, 5  ;;  %v5667_v3 = vrot.slane %v1273_v35, 5 }
  0x66   : > { %v473_v7 = vmax.f32 %v441_v10, 0.0  ;;  %v404_v6 = vmul.f32 %v4918_v8, %v7908_v9  ;;  %v552_v22 = vsel %vm5237_vm6, 0, %v551_v42  ;;  %3196 = vrot.lane.b32.xlu0 %v4713_v54, %s5166_s15  ;;  %v5678_v49 = vmul.f32 %v4919_v61, %v7908_v9  ;;  %v5106_v42 = vld [vmem:[%s7833_s3] sm:$0xff]  }
  0x67   : > { %v5672_v2 = vld [vmem:[#allocation2 + $0x44] sm:$0xf]  ;;  %v4841_v56 = vpack.c.bf16 %v474_v63, %v474_v63  ;;  %553 = vst [vmem:[#allocation2 + $0x60] sm:$0x8] %v552_v22  ;;  %v4922_v1 = vunpack.c.l.bf16 %v5658_v14  ;;  %v4923_v53 = vunpack.c.h.bf16 %v5658_v14  ;;  %v4926_v21 = vunpack.c.l.bf16 %v5665_v26  ;;  %4996 = vmatprep.subr.bf16.mxu0 %v5106_v42  ;;  %5038 = vmatprep.subr.bf16.mxu1 %v5106_v42  ;;  %v5858_v14 = vld [vmem:[%s7832_s2] ss:$0 sm:$0xff] }
  0x68   : > { %v4840_v58 = vpack.c.bf16 %v473_v7, %v473_v7  ;;  %v5675_v37 = vld [vmem:[#allocation2 + $0x44] sm:$0xf]  ;;  %v5682_v62 = vld [vmem:[#allocation2 + $0x48] sm:$0xf]  ;;  %v1551_v39 = vshrl.u32 %v5672_v2, 16  ;;  %v1554_v15 = vshll.u32 %v5672_v2, 16  ;;  %v5690_v12 = vadd.f32 %v5270_v31, %v404_v6  ;;  %4997 = vmatpush3.bf16.msra.mxu0 %v5106_v42  ;;  %5043 = vmatpush3.bf16.msra.mxu1 %v5106_v42 }
  0x69   : > { %v5686_v44 = vld [vmem:[#allocation2 + $0x48] sm:$0xf]  ;;  %v1560_v46 = vshrl.u32 %v5682_v62, 16  ;;  %v1563_v23 = vshll.u32 %v5682_v62, 16  ;;  %v4698_v60 = vcombine.low %v5672_v2, %v5682_v62  ;;  %v2170_v27 = vshrl.u32 %v5675_v37, 16 }
  0x6a   : > { %762 = vst.msk [vmem:[#allocation2 + $0x54] sm:$0xf] %vm513_vm0, %v4840_v58  ;;  %763 = vst.msk [vmem:[#allocation2 + $0x58] sm:$0xf] %vm513_vm0, %v4841_v56  ;;  %v1553_v13 = vrot.slane %v1551_v39, 7  ;;  %v2173_v28 = vshll.u32 %v5675_v37, 16  ;;  %v4745_v35 = vcombine.low %v5675_v37, %v5686_v44 }
  0x6b   : > { %v2179_v40 = vshrl.u32 %v5686_v44, 16  ;;  %v2182_v20 = vshll.u32 %v5686_v44, 16  ;;  %v1562_v9 = vrot.slane %v1560_v46, 7  ;;  %v2172_v0 = vrot.slane %v2170_v27, 7  ;;  %v2081_v33 = vld [vmem:[#allocation2 + $0x50] sm:$0x8] }
  0x6c   : > { %v1889_v52 = vrot.slane %v1551_v39, 4  ;;  %v1890_v59 = vrot.slane %v1554_v15, 5  ;;  %v1556_v24 = vor.u32 %v1554_v15, %v1553_v13  ;;  %v1558_v17 = vrot.slane %v1553_v13, 4  ;;  %v5750_v62 = vld [vmem:[#allocation2 + $0x48] sm:$0xf] }
  0x6d   : > { %v2181_v25 = vrot.slane %v2179_v40, 7  ;;  %v1893_v29 = vrot.slane %v1563_v23, 5  ;;  %v1565_v4 = vor.u32 %v1563_v23, %v1562_v9  ;;  %v2175_v11 = vor.u32 %v2173_v28, %v2172_v0 }
  0x6e   : > { %v2177_v48 = vrot.slane %v2172_v0, 4  ;;  %v1891_v10 = vor.u32 %v1890_v59, %v1889_v52  ;;  %v1557_v19 = vsel %vm5451_vm11, %v5635_v34, %v1556_v24  ;;  %v1895_v32 = vrot.slane %v1560_v46, 4  ;;  %v5107_v59 = vld [vmem:[%s7833_s3 + $0x8] sm:$0xff]  }
  0x6f   : > { %v2184_v47 = vor.u32 %v2182_v20, %v2181_v25  ;;  %v1566_v43 = vsel %vm5451_vm11, %v1558_v17, %v1565_v4  ;;  %v2176_v7 = vsel %vm5451_vm11, %v5648_v30, %v2175_v11  ;;  %v2187_v34 = vshrl.u32 %v2081_v33, 16  ;;  %4998 = vmatprep.subr.bf16.mxu0 %v5107_v59  ;;  %5039 = vmatprep.subr.bf16.mxu1 %v5107_v59 }
  0x70   : > { %v1892_v8 = vrot.slane %v1891_v10, 4  ;;  %v4682_v54 = vcombine.low %v1557_v19, %v1566_v43  ;;  %v1896_v58 = vor.u32 %v1895_v32, %v1893_v29  ;;  %v2516_v13 = vrot.slane %v2170_v27, 4  ;;  %v5735_v10 = vld [vmem:[#allocation2 + $0x44] sm:$0xf]  ;;  %4999 = vmatpush3.bf16.msra.mxu0 %v5107_v59  ;;  %5044 = vmatpush3.bf16.msra.mxu1 %v5107_v59 }
  0x71   : > { %v5715_v61 = vld [vmem:[#allocation2 + $0x54] sm:$0xf]  ;;  %v2185_v63 = vsel %vm5451_vm11, %v2177_v48, %v2184_v47  ;;  %v5719_v6 = vld [vmem:[#allocation2 + $0x58] sm:$0xf]  ;;  %v4618_v30 = vrot.slane %v2187_v34, 11  ;;  %v2517_v9 = vrot.slane %v2173_v28, 5  ;;  %v5739_v27 = vadd.f32 %v5270_v31, %v5678_v49 }
  0x72   : > { %v2192_v22 = vshrl.u32 %v5715_v61, 16  ;;  %v4729_v37 = vcombine.low %v2176_v7, %v2185_v63  ;;  %v1894_v56 = vsel %vm5289_vm9, %v1892_v8, %v1893_v29  ;;  %v2195_v39 = vshll.u32 %v5715_v61, 16  ;;  %3006 = vrot.lane.b32.xlu1 %v4682_v54, %s5164_s13  ;;  %v2475_v48 = vld [vmem:[#allocation2 + $0x5c] sm:$0x1]  ;;  %v5758_v34 = vld [vmem:[#allocation2 + $0x54] sm:$0xf] }
  0x73   : > { %v1897_v15 = vrot.slane %v1896_v58, 4  ;;  %v2201_v46 = vshrl.u32 %v5719_v6, 16  ;;  %v2204_v23 = vshll.u32 %v5719_v6, 16  ;;  %v2520_v0 = vrot.slane %v2182_v20, 5 }
  0x74   : > { %v2194_v44 = vrot.slane %v2192_v22, 7  ;;  %3276 = vrot.lane.b32.xlu0 %v4729_v37, %s5165_s14  ;;  %v2522_v52 = vrot.slane %v2179_v40, 4  ;;  %v2518_v4 = vor.u32 %v2517_v9, %v2516_v13  ;;  %v2530_v40 = vrot.slane %v2192_v22, 4 }
  0x75   : > { %v1902_v24 = vsel %vm5289_vm9, %v1897_v15, %v5660_v18  ;;  %v2203_v29 = vrot.slane %v2201_v46, 7  ;;  %v2531_v20 = vrot.slane %v2195_v39, 5  ;;  %v2534_v32 = vrot.slane %v2204_v23, 5 }
  0x76   : > { %v2197_v17 = vor.u32 %v2195_v39, %v2194_v44  ;;  %v2199_v25 = vrot.slane %v2194_v44, 4  ;;  %v4714_v33 = vcombine.low %v1894_v56, %v1902_v24  ;;  %v2523_v11 = vor.u32 %v2522_v52, %v2520_v0  ;;  %3118 = vrot.lane.b32.xlu1 %v4698_v60, %s5162_s11 }
  0x77   : > { %v2206_v28 = vor.u32 %v2204_v23, %v2203_v29  ;;  %v2519_v19 = vrot.slane %v2518_v4, 4  ;;  %v2536_v31 = vrot.slane %v2201_v46, 4  ;;  %v2532_v42 = vor.u32 %v2531_v20, %v2530_v40  ;;  %v5771_v46 = vld [vmem:[#allocation2 + $0x58] sm:$0xf]  ;;  %v1443_v4 = vld [vmem:[#allocation2 + $0x50] sm:$0x8] }
  0x78   : > { %v2198_v18 = vsel %vm5451_vm11, %v4618_v30, %v2197_v17  ;;  %3388 = vrot.lane.b32.xlu0 %v4745_v35, %s5163_s12  ;;  %v2524_v47 = vrot.slane %v2523_v11, 4  ;;  %v2540_v2 = vshll.u32 %v2475_v48, 16  ;;  %v930_v60 = vshrl.u32 %v5735_v10, 16  ;;  %v5786_v11 = vld [vmem:[#allocation2 + $0x54] sm:$0xf] }
  0x79   : > { %v2207_v49 = vsel %vm5451_vm11, %v2199_v25, %v2206_v28  ;;  %v2521_v7 = vsel %vm5289_vm9, %v2519_v19, %v2520_v0  ;;  %v2537_v8 = vor.u32 %v2536_v31, %v2534_v32  ;;  %v2533_v63 = vrot.slane %v2532_v42, 4  ;;  %v5792_v20 = vld [vmem:[#allocation2 + $0x58] sm:$0xf] }
  0x7a   : > { %v4730_v43 = vcombine.low %v2198_v18, %v2207_v49  ;;  %v2529_v35 = vsel %vm5289_vm9, %v2524_v47, %v5662_v55  ;;  %3198 = vrot.lane.b32.xlu1 %v4714_v33, %s5166_s15  ;;  %v2542_v58 = vrot.slane %v2540_v2, 5  ;;  %v5761_v22 = vrot.slane %v930_v60, 7 }
  0x7b   : > { %v4761_v54 = vcombine.low %v2521_v7, %v2529_v35  ;;  %v2538_v37 = vrot.slane %v2537_v8, 4  ;;  %v933_v56 = vshll.u32 %v5735_v10, 16  ;;  %v939_v30 = vshrl.u32 %v5750_v62, 16  ;;  %v1193_v35 = vld [vmem:[#allocation2 + $0x5c] sm:$0x1] }
  0x7c   : > { %v942_v39 = vshll.u32 %v5750_v62, 16  ;;  %v4746_v55 = vcombine.low %v5715_v61, %v5719_v6  ;;  %v2535_v15 = vsel %vm5289_vm9, %v2533_v63, %v2534_v32  ;;  %v1263_v44 = vrot.slane %v930_v60, 4 }
  0x7d   : > { %3468 = vrot.lane.b32.xlu0 %v4761_v54, %s5167_s16  ;;  %v952_v23 = vshrl.u32 %v5758_v34, 16  ;;  %v2543_v13 = vsel %vm5289_vm9, %v2538_v37, %v2542_v58  ;;  %v5777_v9 = vor.u32 %v933_v56, %v5761_v22  ;;  %v941_v0 = vrot.slane %v939_v30, 7  ;;  %v5109_v37 = vld [vmem:[%s7833_s3 + $0x10] sm:$0xff]  }
  0x7e   : > { %v1264_v52 = vrot.slane %v933_v56, 5  ;;  %3278 = vrot.lane.b32.xlu1 %v4730_v43, %s5165_s14  ;;  %v4762_v59 = vcombine.low %v2535_v15, %v2543_v13  ;;  %v1269_v61 = vrot.slane %v939_v30, 4  ;;  %v1267_v6 = vrot.slane %v942_v39, 5  ;;  %5000 = vmatprep.subr.bf16.mxu0 %v5109_v37 }
  0x7f   : > { %v5780_v24 = vrot.slane %v952_v23, 7  ;;  %v5782_v17 = vor.u32 %v942_v39, %v941_v0  ;;  %v955_v29 = vshll.u32 %v5758_v34, 16  ;;  %v961_v33 = vshrl.u32 %v5771_v46, 16  ;;  %5001 = vmatpush3.bf16.msra.mxu0 %v5109_v37  ;;  %5040 = vmatprep.subr.bf16.mxu1 %v5109_v37 }
  0x80   : > { %v1265_v25 = vor.u32 %v1264_v52, %v1263_v44  ;;  %v4651_v48 = vcombine.low %v5735_v10, %v5750_v62  ;;  %v1270_v18 = vor.u32 %v1269_v61, %v1267_v6  ;;  %v964_v28 = vshll.u32 %v5771_v46, 16  ;;  %v1446_v61 = vld [vmem:[#allocation2 + $0x60] sm:$0x8]  ;;  %5045 = vmatpush3.bf16.msra.mxu1 %v5109_v37 }
  0x81   : > { %7912 = vst [vmem:[#allocation9_spill] sm:$0xff] %v5780_v24  ;;  %3470 = vrot.lane.b32.xlu0 %v4762_v59, %s5167_s16  ;;  %v1277_v40 = vrot.slane %v952_v23, 4  ;;  %v5795_v47 = vor.u32 %v955_v29, %v5780_v24  ;;  %v963_v32 = vrot.slane %v961_v33, 7  ;;  %v1278_v31 = vrot.slane %v955_v29, 5  ;;  %v605_v29 = vld [vmem:[#allocation2 + $0x6c] sm:$0x1] }
  0x82   : > { %v1266_v19 = vrot.slane %v1265_v25, 4  ;;  %3390 = vrot.lane.b32.xlu1 %v4746_v55, %s5163_s12  ;;  %v1271_v49 = vrot.slane %v1270_v18, 4  ;;  %v1283_v42 = vrot.slane %v961_v33, 4  ;;  %v1568_v2 = vshrl.u32 %v1443_v4, 16  ;;  %v5111_v33 = vld [vmem:[%s7833_s3 + $0x18] sm:$0xff]  }
  0x83   : > { %7913 = vst [vmem:[#allocation5_spill] sm:$0xff] %v5795_v47  ;;  %v1573_v60 = vshrl.u32 %v5786_v11, 16  ;;  %v5801_v62 = vor.u32 %v964_v28, %v963_v32  ;;  %v1576_v43 = vshll.u32 %v5786_v11, 16  ;;  %v1582_v7 = vshrl.u32 %v5792_v20, 16  ;;  %v554_v32 = vld [vmem:[#allocation2 + $0x70] sm:$0x8]  ;;  %5002 = vmatprep.subr.bf16.mxu0 %v5111_v33  ;;  %5041 = vmatprep.subr.bf16.mxu1 %v5111_v33 }
  0x84   : > { %v1268_v10 = vsel %vm5289_vm9, %v1266_v19, %v1267_v6  ;;  %v1276_v8 = vsel %vm5289_vm9, %v1271_v49, %v5667_v3  ;;  %v4603_v54 = vrot.slane %v1568_v2, 11  ;;  %v1585_v58 = vshll.u32 %v5792_v20, 16  ;;  %5003 = vmatpush3.bf16.msra.mxu0 %v5111_v33  ;;  %5046 = vmatpush3.bf16.msra.mxu1 %v5111_v33  ;;  %v7915_v33 = vld [vmem:[#allocation7_spill] sm:$0xff] }
  0x85   : > { %7914 = vst [vmem:[#allocation4_spill] sm:$0xff] %v5801_v62  ;;  %v1575_v63 = vrot.slane %v1573_v60, 7  ;;  %v4667_v56 = vcombine.low %v1268_v10, %v1276_v8  ;;  %v1584_v30 = vrot.slane %v1582_v7, 7  ;;  %v1279_v39 = vor.u32 %v1278_v31, %v1277_v40  ;;  %v2084_v40 = vld [vmem:[#allocation2 + $0x60] sm:$0x8] }
  0x86   : > { %v1281_v55 = vrot.slane %v964_v28, 5  ;;  %2848 = vrot.lane.b32.xlu1 %v4651_v48, %s5160_s7  ;;  %v4652_v15 = vcombine.low %v5758_v34, %v5771_v46  ;;  %v1287_v3 = vshll.u32 %v1193_v35, 16  ;;  %v475_v59 = vmax.f32 %v5690_v12, 0.0  ;;  %v1835_v28 = vld [vmem:[#allocation2 + $0x5c] sm:$0x1] }
  0x87   : > { %v1578_v44 = vor.u32 %v1576_v43, %v1575_v63  ;;  %v1580_v23 = vrot.slane %v1575_v63, 4  ;;  %2928 = vrot.lane.b32.xlu0 %v4667_v56, %s5161_s10  ;;  %v1587_v13 = vor.u32 %v1585_v58, %v1584_v30  ;;  %v1280_v0 = vrot.slane %v1279_v39, 4  ;;  %v608_v10 = vld [vmem:[#allocation2 + $0x7c] sm:$0x1]  ;;  %v557_v56 = vld [vmem:[#allocation2 + $0x80] sm:$0x8] }
  0x88   : > { %v1284_v52 = vor.u32 %v1283_v42, %v1281_v55  ;;  %v1289_v25 = vrot.slane %v1287_v3, 5  ;;  %v4699_v34 = vcombine.low %v5786_v11, %v5792_v20  ;;  %v476_v46 = vmax.f32 %v5739_v27, 0.0 }
  0x89   : > { %v1579_v6 = vsel %vm5451_vm11, %v4603_v54, %v1578_v44  ;;  %v1588_v12 = vsel %vm5451_vm11, %v1580_v23, %v1587_v13  ;;  %v1282_v4 = vsel %vm5289_vm9, %v1280_v0, %v1281_v55  ;;  %v4842_v18 = vpack.c.bf16 %v475_v59, %v475_v59 }
  0x8a   : > { %v1285_v48 = vrot.slane %v1284_v52, 4  ;;  %2850 = vrot.lane.b32.xlu1 %v4652_v15, %s5160_s7  ;;  %v4683_v27 = vcombine.low %v1579_v6, %v1588_v12  ;;  %v4843_v11 = vpack.c.bf16 %v476_v46, %v476_v46  ;;  %v1590_v20 = vshrl.u32 %v1446_v61, 16  ;;  %v7916_v12 = vld [vmem:[#allocation6_spill] sm:$0xff] }
  0x8b   : > { %v1903_v19 = vrot.slane %v1573_v60, 4  ;;  %764 = vst.msk [vmem:[#allocation2 + $0x64] sm:$0xf] %vm513_vm0, %v4842_v18  ;;  %v1904_v49 = vrot.slane %v1576_v43, 5  ;;  %v1907_v42 = vrot.slane %v1585_v58, 5  ;;  %v1909_v2 = vrot.slane %v1582_v7, 4 }
  0x8c   : > { %v1290_v31 = vsel %vm5289_vm9, %v1285_v48, %v1289_v25  ;;  %3008 = vrot.lane.b32.xlu0 %v4683_v27, %s5164_s13  ;;  %765 = vst.msk [vmem:[#allocation2 + $0x68] sm:$0xf] %vm513_vm0, %v4843_v11  ;;  %v1913_v8 = vshll.u32 %v1835_v28, 16  ;;  %v2209_v60 = vshrl.u32 %v2084_v40, 16  ;;  %v606_v54 = vsel %vm5229_vm3, 0, %v605_v29 }
  0x8d   : > { %v4668_v35 = vcombine.low %v1282_v4, %v1290_v31  ;;  %v1905_v63 = vor.u32 %v1904_v49, %v1903_v19  ;;  %v1910_v37 = vor.u32 %v1909_v2, %v1907_v42  ;;  %607 = vst [vmem:[#allocation2 + $0x6c] sm:$0x1] %v606_v54  ;;  %v5840_v43 = vld [vmem:[%s7831_s1] ss:$0 sm:$0xff]  ;;  %v5849_v30 = vrot.slane %v1590_v20, 11 }
  0x8e   : > { %v406_v7 = vmul.f32 %v5840_v43, %v4922_v1  ;;  %v407_v58 = vmul.f32 %v5840_v43, %v4923_v53  ;;  %v1915_v39 = vrot.slane %v1913_v8, 5  ;;  %v555_v55 = vsel %vm5237_vm6, 0, %v554_v32 }
  0x8f   : > { %2930 = vrot.lane.b32.xlu1 %v4668_v35, %s5161_s10  ;;  %v609_v15 = vsel %vm5229_vm3, 0, %v608_v10  ;;  %v1906_v44 = vrot.slane %v1905_v63, 4  ;;  %v1911_v23 = vrot.slane %v1910_v37, 4  ;;  %556 = vst [vmem:[#allocation2 + $0x70] sm:$0x8] %v555_v55  ;;  %v4619_v3 = vrot.slane %v2209_v60, 11 }
  0x90   : > { %v445_v1 = vadd.f32 %v5858_v14, %v406_v7  ;;  %v446_v53 = vadd.f32 %v5858_v14, %v407_v58  ;;  %610 = vst [vmem:[#allocation2 + $0x7c] sm:$0x1] %v609_v15  ;;  %3120 = vrot.lane.b32.xlu0 %v4699_v34, %s5162_s11  ;;  %v4927_v13 = vunpack.c.h.bf16 %v5665_v26  ;;  %v408_v0 = vmul.f32 %v5840_v43, %v4926_v21 }
  0x91   : > { %v558_v52 = vsel %vm5237_vm6, 0, %v557_v56  ;;  %v1908_v59 = vsel %vm5289_vm9, %v1906_v44, %v1907_v42  ;;  %v1916_v61 = vsel %vm5289_vm9, %v1911_v23, %v1915_v39  ;;  %v7917_v4 = vrot.slane %v7916_v12, 4 }
  0x92   : > { %v477_v6 = vmax.f32 %v445_v1, 0.0  ;;  %v478_v25 = vmax.f32 %v446_v53, 0.0  ;;  %559 = vst [vmem:[#allocation2 + $0x80] sm:$0x8] %v558_v52  ;;  %v5873_v34 = vld [vmem:[#allocation2 + $0x64] sm:$0xf]  ;;  %v4715_v46 = vcombine.low %v1908_v59, %v1916_v61  ;;  %v5878_v26 = vmul.f32 %v5840_v43, %v4927_v13 }
  0x93   : > { %v5875_v29 = vld [vmem:[#allocation2 + $0x64] sm:$0xf]  ;;  %v5881_v21 = vadd.f32 %v5858_v14, %v408_v0  ;;  %v5888_v48 = vsel %vm5451_vm11, %v7917_v4, %v7915_v33  ;;  %v5890_v18 = vld [vmem:[#allocation2 + $0x68] sm:$0xf]  ;;  %v1595_v28 = vshrl.u32 %v5873_v34, 16  ;;  %v1598_v40 = vshll.u32 %v5873_v34, 16 }
  0x94   : > { %v5894_v27 = vld [vmem:[#allocation2 + $0x68] sm:$0xf]  ;;  %v4844_v11 = vpack.c.bf16 %v477_v6, %v477_v6  ;;  %v4845_v20 = vpack.c.bf16 %v478_v25, %v478_v25  ;;  %v1604_v19 = vshrl.u32 %v5890_v18, 16  ;;  %v1607_v32 = vshll.u32 %v5890_v18, 16  ;;  %3200 = vrot.lane.b32.xlu0 %v4715_v46, %s5166_s15  ;;  %v1836_v54 = vld [vmem:[#allocation2 + $0x6c] sm:$0x1] }
  0x95   : > { %v4700_v31 = vcombine.low %v5873_v34, %v5890_v18  ;;  %v2214_v49 = vshrl.u32 %v5875_v29, 16  ;;  %v1597_v42 = vrot.slane %v1595_v28, 7  ;;  %v2217_v2 = vshll.u32 %v5875_v29, 16 }
  0x96   : > { %v2223_v10 = vshrl.u32 %v5894_v27, 16  ;;  %v2226_v35 = vshll.u32 %v5894_v27, 16  ;;  %766 = vst.msk [vmem:[#allocation2 + $0x74] sm:$0xf] %vm513_vm0, %v4844_v11  ;;  %767 = vst.msk [vmem:[#allocation2 + $0x78] sm:$0xf] %vm513_vm0, %v4845_v20  ;;  %v4747_v25 = vcombine.low %v5875_v29, %v5894_v27 }
  0x97   : > { %v1606_v8 = vrot.slane %v1604_v19, 7  ;;  %v2216_v60 = vrot.slane %v2214_v49, 7  ;;  %v1917_v63 = vrot.slane %v1595_v28, 4  ;;  %v1918_v37 = vrot.slane %v1598_v40, 5  ;;  %v2087_v52 = vld [vmem:[#allocation2 + $0x70] sm:$0x8] }
  0x98   : > { %v1600_v7 = vor.u32 %v1598_v40, %v1597_v42  ;;  %v1602_v58 = vrot.slane %v1597_v42, 4  ;;  %v2225_v56 = vrot.slane %v2223_v10, 7  ;;  %v1921_v39 = vrot.slane %v1607_v32, 5 }
  0x99   : > { %v1609_v55 = vor.u32 %v1607_v32, %v1606_v8  ;;  %v2219_v15 = vor.u32 %v2217_v2, %v2216_v60  ;;  %v2221_v44 = vrot.slane %v2216_v60, 4  ;;  %v1919_v23 = vor.u32 %v1918_v37, %v1917_v63 }
  0x9a   : > { %v1601_v1 = vsel %vm5451_vm11, %v5849_v30, %v1600_v7  ;;  %v2228_v53 = vor.u32 %v2226_v35, %v2225_v56  ;;  %v1923_v13 = vrot.slane %v1604_v19, 4  ;;  %v1927_v0 = vshll.u32 %v1836_v54, 16  ;;  %v2476_v19 = vld [vmem:[#allocation2 + $0x6c] sm:$0x1]  ;;  %v5930_v54 = vpop.permute.xlu0 %2840 }
  0x9b   : > { %v1610_v59 = vsel %vm5451_vm11, %v1602_v58, %v1609_v55  ;;  %v2220_v61 = vsel %vm5451_vm11, %v4619_v3, %v2219_v15  ;;  %v1920_v6 = vrot.slane %v1919_v23, 4  ;;  %v2231_v40 = vshrl.u32 %v2087_v52, 16  ;;  %v5937_v23 = vld [vmem:[#allocation2 + $0x64] sm:$0xf] }
  0x9c   : > { %v4684_v34 = vcombine.low %v1601_v1, %v1610_v59  ;;  %v2229_v46 = vsel %vm5451_vm11, %v2221_v44, %v2228_v53  ;;  %v1924_v33 = vor.u32 %v1923_v13, %v1921_v39  ;;  %v1929_v30 = vrot.slane %v1927_v0, 5  ;;  %v2477_v13 = vld [vmem:[#allocation2 + $0x7c] sm:$0x1] }
  0x9d   : > { %v4731_v12 = vcombine.low %v2220_v61, %v2229_v46  ;;  %v1922_v4 = vsel %vm5289_vm9, %v1920_v6, %v1921_v39  ;;  %v5920_v18 = vld [vmem:[#allocation2 + $0x74] sm:$0xf]  ;;  %v5922_v28 = vld [vmem:[#allocation2 + $0x78] sm:$0xf]  ;;  %v2544_v3 = vrot.slane %v2214_v49, 4  ;;  %v4620_v32 = vrot.slane %v2231_v40, 11 }
  0x9e   : > { %3010 = vrot.lane.b32.xlu1 %v4684_v34, %s5164_s13  ;;  %v1925_v11 = vrot.slane %v1924_v33, 4  ;;  %v2236_v29 = vshrl.u32 %v5920_v18, 16  ;;  %v2239_v27 = vshll.u32 %v5920_v18, 16  ;;  %v2245_v20 = vshrl.u32 %v5922_v28, 16  ;;  %v5944_v6 = vld [vmem:[#allocation2 + $0x68] sm:$0xf] }
  0x9f   : > { %3280 = vrot.lane.b32.xlu0 %v4731_v12, %s5165_s14  ;;  %v2248_v42 = vshll.u32 %v5922_v28, 16  ;;  %v2545_v8 = vrot.slane %v2217_v2, 5  ;;  %v2548_v60 = vrot.slane %v2226_v35, 5  ;;  %v2550_v7 = vrot.slane %v2223_v10, 4 }
  0xa0   : > { %v1930_v49 = vsel %vm5289_vm9, %v1925_v11, %v1929_v30  ;;  %v2238_v63 = vrot.slane %v2236_v29, 7  ;;  %v2247_v37 = vrot.slane %v2245_v20, 7  ;;  %v2554_v39 = vshll.u32 %v2476_v19, 16  ;;  %v5948_v30 = vpop.permute.xlu0 %2842 }
  0xa1   : > { %v4716_v58 = vcombine.low %v1922_v4, %v1930_v49  ;;  %v2546_v56 = vor.u32 %v2545_v8, %v2544_v3  ;;  %v4748_v55 = vcombine.low %v5920_v18, %v5922_v28  ;;  %v2551_v35 = vor.u32 %v2550_v7, %v2548_v60 }
  0xa2   : > { %3122 = vrot.lane.b32.xlu1 %v4700_v31, %s5162_s11  ;;  %v2241_v15 = vor.u32 %v2239_v27, %v2238_v63  ;;  %v2243_v44 = vrot.slane %v2238_v63, 4  ;;  %v2250_v2 = vor.u32 %v2248_v42, %v2247_v37  ;;  %v2556_v53 = vrot.slane %v2554_v39, 5 }
  0xa3   : > { %3392 = vrot.lane.b32.xlu0 %v4747_v25, %s5163_s12  ;;  %v2547_v1 = vrot.slane %v2546_v56, 4  ;;  %v2558_v10 = vrot.slane %v2236_v29, 4  ;;  %v2559_v0 = vrot.slane %v2239_v27, 5  ;;  %v2552_v31 = vrot.slane %v2551_v35, 4 }
  0xa4   : > { %v2242_v52 = vsel %vm5451_vm11, %v4620_v32, %v2241_v15  ;;  %v2251_v59 = vsel %vm5451_vm11, %v2243_v44, %v2250_v2  ;;  %v2562_v61 = vrot.slane %v2248_v42, 5  ;;  %v2564_v33 = vrot.slane %v2245_v20, 4  ;;  %v809_v2 = vld [vmem:[#allocation2 + $0x78] sm:$0xf] }
  0xa5   : > { %v4732_v34 = vcombine.low %v2242_v52, %v2251_v59  ;;  %v2549_v46 = vsel %vm5289_vm9, %v2547_v1, %v2548_v60  ;;  %v2560_v25 = vor.u32 %v2559_v0, %v2558_v10  ;;  %v2557_v12 = vsel %vm5289_vm9, %v2552_v31, %v2556_v53  ;;  %v1194_v60 = vld [vmem:[#allocation2 + $0x6c] sm:$0x1] }
  0xa6   : > { %3202 = vrot.lane.b32.xlu1 %v4716_v58, %s5166_s15  ;;  %v2568_v4 = vshll.u32 %v2477_v13, 16  ;;  %v974_v40 = vshrl.u32 %v5937_v23, 16  ;;  %v977_v3 = vshll.u32 %v5937_v23, 16  ;;  %v4763_v11 = vcombine.low %v2549_v46, %v2557_v12  ;;  %v808_v58 = vld [vmem:[#allocation2 + $0x74] sm:$0xf]  ;;  %v5972_v10 = vpop.permute.xlu0 %3112 }
  0xa7   : > { %v2561_v29 = vrot.slane %v2560_v25, 4  ;;  %v2565_v27 = vor.u32 %v2564_v33, %v2562_v61  ;;  %v983_v19 = vshrl.u32 %v5944_v6, 16  ;;  %v986_v20 = vshll.u32 %v5944_v6, 16 }
  0xa8   : > { %v2570_v32 = vrot.slane %v2568_v4, 5  ;;  %v5956_v42 = vrot.slane %v974_v40, 7  ;;  %v1291_v8 = vrot.slane %v974_v40, 4  ;;  %3472 = vrot.lane.b32.xlu0 %v4763_v11, %s5167_s16  ;;  %v1292_v7 = vrot.slane %v977_v3, 5 }
  0xa9   : > { %v2563_v49 = vsel %vm5289_vm9, %v2561_v29, %v2562_v61  ;;  %v2566_v63 = vrot.slane %v2565_v27, 4  ;;  %v985_v37 = vrot.slane %v983_v19, 7  ;;  %v1297_v39 = vrot.slane %v983_v19, 4  ;;  %v1449_v61 = vld [vmem:[#allocation2 + $0x70] sm:$0x8] }
  0xaa   : > { %7918 = vst [vmem:[#allocation3_spill] sm:$0xff] %v5956_v42  ;;  %3282 = vrot.lane.b32.xlu1 %v4732_v34, %s5165_s14  ;;  %v5964_v56 = vor.u32 %v977_v3, %v5956_v42  ;;  %v4653_v15 = vcombine.low %v5937_v23, %v5944_v6  ;;  %v1295_v44 = vrot.slane %v986_v20, 5  ;;  %v1293_v53 = vor.u32 %v1292_v7, %v1291_v8  ;;  %v5974_v6 = vld [vmem:[#allocation2 + $0x74] sm:$0xf]  ;;  %v5983_v3 = vld [vmem:[#allocation2 + $0x78] sm:$0xf]  ;;  %v5993_v8 = vpop.permute.xlu1 %2920 }
  0xab   : > { %v2571_v35 = vsel %vm5289_vm9, %v2566_v63, %v2570_v32  ;;  %v5970_v1 = vor.u32 %v986_v20, %v985_v37  ;;  %v1301_v13 = vshll.u32 %v1194_v60, 16  ;;  %v996_v59 = vshrl.u32 %v808_v58, 16  ;;  %v1195_v20 = vld [vmem:[#allocation2 + $0x7c] sm:$0x1]  ;;  %v7927_v42 = vld [vmem:[#allocation8_spill] sm:$0xff] }
  0xac   : > { %7919 = vst [vmem:[#allocation7_spill] sm:$0xff] %v5964_v56  ;;  %v4764_v0 = vcombine.low %v2563_v49, %v2571_v35  ;;  %v1298_v52 = vor.u32 %v1297_v39, %v1295_v44  ;;  %v999_v31 = vshll.u32 %v808_v58, 16  ;;  %v1294_v34 = vrot.slane %v1293_v53, 4  ;;  %v5995_v60 = vpop.permute.xlu0 %3384 }
  0xad   : > { %7920 = vst [vmem:[#allocation6_spill] sm:$0xff] %v5970_v1  ;;  %v1303_v46 = vrot.slane %v1301_v13, 5  ;;  %v1005_v25 = vshrl.u32 %v809_v2, 16  ;;  %v1008_v23 = vshll.u32 %v809_v2, 16  ;;  %v5981_v12 = vrot.slane %v996_v59, 7 }
  0xae   : > { %3394 = vrot.lane.b32.xlu1 %v4748_v55, %s5163_s12  ;;  %3474 = vrot.lane.b32.xlu0 %v4764_v0, %s5167_s16  ;;  %v1299_v33 = vrot.slane %v1298_v52, 4  ;;  %v1305_v4 = vrot.slane %v996_v59, 4  ;;  %v1306_v40 = vrot.slane %v999_v31, 5  ;;  %v1296_v11 = vsel %vm5289_vm9, %v1294_v34, %v1295_v44  ;;  %v1452_v0 = vld [vmem:[#allocation2 + $0x80] sm:$0x8] }
  0xaf   : > { %7921 = vst [vmem:[#allocation14_spill] sm:$0xff] %v5981_v12  ;;  %v1007_v29 = vrot.slane %v1005_v25, 7  ;;  %v1311_v27 = vrot.slane %v1005_v25, 4  ;;  %v4654_v19 = vcombine.low %v808_v58, %v809_v2  ;;  %v5990_v18 = vor.u32 %v999_v31, %v5981_v12 }
  0xb0   : > { %v1304_v32 = vsel %vm5289_vm9, %v1299_v33, %v1303_v46  ;;  %v1612_v28 = vshrl.u32 %v1449_v61, 16  ;;  %v1617_v55 = vshrl.u32 %v5974_v6, 16  ;;  %v1620_v37 = vshll.u32 %v5974_v6, 16 }
  0xb1   : > { %7922 = vst [vmem:[#allocation15_spill] sm:$0xff] %v5990_v18  ;;  %v4669_v49 = vcombine.low %v1296_v11, %v1304_v32  ;;  %v5997_v63 = vor.u32 %v1008_v23, %v1007_v29  ;;  %v1626_v7 = vshrl.u32 %v5983_v3, 16  ;;  %v1629_v44 = vshll.u32 %v5983_v3, 16  ;;  %v1837_v11 = vld [vmem:[#allocation2 + $0x7c] sm:$0x1]  ;;  %v6012_v29 = vpop.permute.xlu1 %3114 }
  0xb2   : > { %2852 = vrot.lane.b32.xlu1 %v4653_v15, %s5160_s7  ;;  %v4605_v58 = vrot.slane %v1612_v28, 11  ;;  %v1619_v39 = vrot.slane %v1617_v55, 7  ;;  %v1307_v2 = vor.u32 %v1306_v40, %v1305_v4  ;;  %v1309_v53 = vrot.slane %v1008_v23, 5 }
  0xb3   : > { %7923 = vst [vmem:[#allocation16_spill] sm:$0xff] %v5997_v63  ;;  %2932 = vrot.lane.b32.xlu0 %v4669_v49, %s5161_s10  ;;  %v1628_v35 = vrot.slane %v1626_v7, 7  ;;  %v1315_v13 = vshll.u32 %v1195_v20, 16  ;;  %v448_v61 = vadd.f32 %v5858_v14, %v5878_v26  ;;  %v479_v25 = vmax.f32 %v5881_v21, 0.0  ;;  %v6014_v32 = vpop.permute.xlu0 %3000  ;;  %v2090_v20 = vld [vmem:[#allocation2 + $0x80] sm:$0x8] }
  0xb4   : > { %v1622_v52 = vor.u32 %v1620_v37, %v1619_v39  ;;  %v1624_v59 = vrot.slane %v1619_v39, 4  ;;  %v1308_v31 = vrot.slane %v1307_v2, 4  ;;  %v1312_v46 = vor.u32 %v1311_v27, %v1309_v53 }
  0xb5   : > { %v1631_v34 = vor.u32 %v1629_v44, %v1628_v35  ;;  %v1317_v15 = vrot.slane %v1315_v13, 5  ;;  %v480_v4 = vmax.f32 %v448_v61, 0.0  ;;  %v1634_v40 = vshrl.u32 %v1452_v0, 16  ;;  %v611_v35 = vld [vmem:[#allocation2 + $0x8c] sm:$0x1] }
  0xb6   : > { %2854 = vrot.lane.b32.xlu1 %v4654_v19, %s5160_s7  ;;  %v1623_v33 = vsel %vm5451_vm11, %v4605_v58, %v1622_v52  ;;  %v1310_v23 = vsel %vm5289_vm9, %v1308_v31, %v1309_v53  ;;  %v1313_v27 = vrot.slane %v1312_v46, 4  ;;  %v4846_v21 = vpack.c.bf16 %v479_v25, %v479_v25  ;;  %v533_v19 = vld [vmem:[#allocation2] sm:$0x8]  ;;  %v560_v61 = vld [vmem:[#allocation2 + $0x90] sm:$0x8] }
  0xb7   : > { %v1632_v26 = vsel %vm5451_vm11, %v1624_v59, %v1631_v34  ;;  %v1931_v28 = vrot.slane %v1617_v55, 4  ;;  %v4701_v58 = vcombine.low %v5974_v6, %v5983_v3  ;;  %v4847_v39 = vpack.c.bf16 %v480_v4, %v480_v4  ;;  %v789_v59 = vld [vmem:[#allocation2 + $0x10] sm:$0x8]  ;;  %v7924_v4 = vld [vmem:[#allocation10_spill] sm:$0xff] }
  0xb8   : > { %v4685_v49 = vcombine.low %v1623_v33, %v1632_v26  ;;  %v1932_v2 = vrot.slane %v1620_v37, 5  ;;  %v1318_v53 = vsel %vm5289_vm9, %v1313_v27, %v1317_v15  ;;  %768 = vst.msk [vmem:[#allocation2 + $0x84] sm:$0xf] %vm513_vm0, %v4846_v21  ;;  %v1935_v13 = vrot.slane %v1629_v44, 5  ;;  %v4967_v37 = vld [vmem:[%s5253_s28 + $0x40] sm:$0xff]   ;;  %v6036_v26 = vpop.permute.xlu1 %3386 }
  0xb9   : > { %v1937_v0 = vrot.slane %v1626_v7, 4  ;;  %v1941_v52 = vshll.u32 %v1837_v11, 16  ;;  %v4670_v55 = vcombine.low %v1310_v23, %v1318_v53  ;;  %769 = vst.msk [vmem:[#allocation2 + $0x88] sm:$0xf] %vm513_vm0, %v4847_v39  ;;  %v534_v6 = vsel %vm5237_vm6, 0, %v533_v19  ;;  %v6040_v27 = vpop.permute.xlu0 %3272 }
  0xba   : > { %3012 = vrot.lane.b32.xlu0 %v4685_v49, %s5164_s13  ;;  %v1933_v31 = vor.u32 %v1932_v2, %v1931_v28  ;;  %v2253_v3 = vshrl.u32 %v2090_v20, 16  ;;  %v6028_v34 = vrot.slane %v1634_v40, 11  ;;  %535 = vst [vmem:[#allocation2] sm:$0x8] %v534_v6  ;;  %v612_v7 = vsel %vm5229_vm3, 0, %v611_v35  ;;  %v6045_v49 = vld [vmem:[%s5253_s28 + $0x48] sm:$0xff]  }
  0xbb   : > { %v1938_v46 = vor.u32 %v1937_v0, %v1935_v13  ;;  %v1943_v15 = vrot.slane %v1941_v52, 5  ;;  %v614_v44 = vld [vmem:[#allocation2 + $0x9c] sm:$0x1]  ;;  %2934 = vrot.lane.b32.xlu1 %v4670_v55, %s5161_s10  ;;  %613 = vst [vmem:[#allocation2 + $0x8c] sm:$0x1] %v612_v7  ;;  %v859_v23 = vshrl.u32 %v789_v59, 16  ;;  %v4930_v28 = vunpack.c.l.bf16 %v4967_v37 }
  0xbc   : > { %v1934_v25 = vrot.slane %v1933_v31, 4  ;;  %v6033_v33 = vrot.slane %v2253_v3, 11  ;;  %v871_v11 = vrot.slane %v7924_v4, 4  ;;  %v6038_v40 = vld [vmem:[#allocation2 + $0x20] sm:$0x8]  ;;  %v4931_v19 = vunpack.c.h.bf16 %v4967_v37  ;;  %v7925_v35 = vld [vmem:[#allocation12_spill] sm:$0xff] }
  0xbd   : > { %v1939_v21 = vrot.slane %v1938_v46, 4  ;;  %v561_v20 = vsel %vm5237_vm6, 0, %v560_v61  ;;  %v4584_v2 = vrot.slane %v859_v23, 11  ;;  %v615_v0 = vsel %vm5229_vm3, 0, %v614_v44  ;;  %v7926_v3 = vld [vmem:[#allocation11_spill] sm:$0xff] }
  0xbe   : > { %3124 = vrot.lane.b32.xlu0 %v4701_v58, %s5162_s11  ;;  %v1936_v39 = vsel %vm5289_vm9, %v1934_v25, %v1935_v13  ;;  %v879_v53 = vsel %vm5451_vm11, %v871_v11, %v7925_v35  ;;  %562 = vst [vmem:[#allocation2 + $0x90] sm:$0x8] %v561_v20  ;;  %v410_v59 = vmul.f32 %v5840_v43, %v4930_v28  ;;  %616 = vst [vmem:[#allocation2 + $0x9c] sm:$0x1] %v615_v0  ;;  %vm3545_vm13 = vcmask 130048  }
  0xbf   : > { %v1944_v52 = vsel %vm5289_vm9, %v1939_v21, %v1943_v15  ;;  %v6059_v58 = vmul.f32 %v5840_v43, %v4931_v19  ;;  %v6062_v55 = vld [vmem:[#allocation2 + $0x84] sm:$0xf]  ;;  %v870_v37 = vsel %vm5451_vm11, %v4584_v2, %v7926_v3  ;;  %vm3578_vm14 = vcmask 195584  }
  0xc0   : > { %v4717_v31 = vcombine.low %v1936_v39, %v1944_v52  ;;  %v6064_v6 = vld [vmem:[#allocation2 + $0x84] sm:$0xf]  ;;  %v6071_v15 = vld [vmem:[#allocation2 + $0x88] sm:$0xf]  ;;  %v1639_v7 = vshrl.u32 %v6062_v55, 16  ;;  %v1642_v44 = vshll.u32 %v6062_v55, 16  ;;  %v4632_v23 = vcombine.low %v870_v37, %v879_v53  ;;  %v6086_v39 = vpop.permute.xlu1 %2844  ;;  %v6088_v2 = vpop.permute.xlu0 %3192 }
  0xc1   : > { %v6075_v25 = vld [vmem:[#allocation2 + $0x88] sm:$0xf]  ;;  %v6078_v4 = vadd.f32 %v5858_v14, %v410_v59  ;;  %v1648_v11 = vshrl.u32 %v6071_v15, 16  ;;  %v1651_v21 = vshll.u32 %v6071_v15, 16  ;;  %v786_v19 = vld [vmem:[#allocation2] sm:$0x8] }
  0xc2   : > { %3204 = vrot.lane.b32.xlu0 %v4717_v31, %s5166_s15  ;;  %v2258_v20 = vshrl.u32 %v6064_v6, 16  ;;  %v1641_v35 = vrot.slane %v1639_v7, 7  ;;  %v837_v53 = vshrl.u32 %v786_v19, 16  ;;  %v2261_v0 = vshll.u32 %v6064_v6, 16  ;;  %v1838_v56 = vld [vmem:[#allocation2 + $0x8c] sm:$0x1] }
  0xc3   : > { %v2267_v52 = vshrl.u32 %v6075_v25, 16  ;;  %v1650_v59 = vrot.slane %v1648_v11, 7  ;;  %v2270_v31 = vshll.u32 %v6075_v25, 16  ;;  %v1945_v37 = vrot.slane %v1639_v7, 4 }
  0xc4   : > { %v2260_v3 = vrot.slane %v2258_v20, 7  ;;  %v1644_v46 = vor.u32 %v1642_v44, %v1641_v35  ;;  %v1646_v61 = vrot.slane %v1641_v35, 4  ;;  %v4583_v13 = vrot.slane %v837_v53, 11 }
  0xc5   : > { %v2269_v28 = vrot.slane %v2267_v52, 7  ;;  %v1653_v63 = vor.u32 %v1651_v21, %v1650_v59  ;;  %v1946_v1 = vrot.slane %v1642_v44, 5  ;;  %v1949_v24 = vrot.slane %v1651_v21, 5  ;;  %v6105_v59 = vpop.permute.xlu1 %2846  ;;  %v2093_v21 = vld [vmem:[#allocation2 + $0x90] sm:$0x8] }
  0xc6   : > { %v2263_v18 = vor.u32 %v2261_v0, %v2260_v3  ;;  %v2265_v12 = vrot.slane %v2260_v3, 4  ;;  %v1645_v19 = vsel %vm5451_vm11, %v6028_v34, %v1644_v46  ;;  %v848_v62 = vsel %vm5451_vm11, %v4583_v13, %v7927_v42  ;;  %v6107_v3 = vpop.permute.xlu0 %3464 }
  0xc7   : > { %v2272_v47 = vor.u32 %v2270_v31, %v2269_v28  ;;  %v1654_v7 = vsel %vm5451_vm11, %v1646_v61, %v1653_v63  ;;  %v4631_v35 = vcombine.low %v848_v62, %v5888_v48  ;;  %v1947_v44 = vor.u32 %v1946_v1, %v1945_v37 }
  0xc8   : > { %v2264_v53 = vsel %vm5451_vm11, %v6033_v33, %v2263_v18  ;;  %v4686_v34 = vcombine.low %v1645_v19, %v1654_v7  ;;  %v1951_v13 = vrot.slane %v1648_v11, 4  ;;  %v1955_v46 = vshll.u32 %v1838_v56, 16  ;;  %v2479_v11 = vld [vmem:[#allocation2 + $0x9c] sm:$0x1]  ;;  %v6128_v7 = vld [vmem:[#allocation2 + $0x84] sm:$0xf] }
  0xc9   : > { %v2273_v42 = vsel %vm5451_vm11, %v2265_v12, %v2272_v47  ;;  %v3499_v63 = vsel %vm3496_vm12, %v4631_v35, %v5930_v54  ;;  %v1948_v48 = vrot.slane %v1947_v44, 4  ;;  %v6115_v18 = vsel %vm3496_vm12, %v4632_v23, %v5948_v30  ;;  %v2478_v23 = vld [vmem:[#allocation2 + $0x8c] sm:$0x1] }
  0xca   : > { %v4733_v62 = vcombine.low %v2264_v53, %v2273_v42  ;;  %3014 = vrot.lane.b32.xlu1 %v4686_v34, %s5164_s13  ;;  %v1952_v1 = vor.u32 %v1951_v13, %v1949_v24  ;;  %v1957_v33 = vrot.slane %v1955_v46, 5  ;;  %v3547_v61 = vsel %vm3545_vm13, %v3499_v63, %v5993_v8  ;;  %v6134_v44 = vpop.permute.xlu0 %3466  ;;  %v6142_v34 = vld [vmem:[#allocation2 + $0x88] sm:$0xf] }
  0xcb   : > { %v4749_v47 = vcombine.low %v6064_v6, %v6075_v25  ;;  %v1950_v54 = vsel %vm5289_vm9, %v1948_v48, %v1949_v24  ;;  %v450_v56 = vadd.f32 %v5858_v14, %v6059_v58  ;;  %v481_v30 = vmax.f32 %v6078_v4, 0.0  ;;  %v6132_v24 = vpop.permute.xlu1 %3002 }
  0xcc   : > { %3284 = vrot.lane.b32.xlu0 %v4733_v62, %s5165_s14  ;;  %v2275_v12 = vshrl.u32 %v2093_v21, 16  ;;  %v1953_v28 = vrot.slane %v1952_v1, 4  ;;  %v2572_v37 = vrot.slane %v2258_v20, 4  ;;  %v2573_v19 = vrot.slane %v2261_v0, 5 }
  0xcd   : > { %v2576_v8 = vrot.slane %v2270_v31, 5  ;;  %v482_v6 = vmax.f32 %v450_v56, 0.0  ;;  %v4848_v25 = vpack.c.bf16 %v481_v30, %v481_v30  ;;  %v2578_v53 = vrot.slane %v2267_v52, 4 }
  0xce   : > { %v6130_v35 = vrot.slane %v2275_v12, 11  ;;  %v7928_v58 = vcombine.low %v6062_v55, %v6071_v15  ;;  %v1958_v4 = vsel %vm5289_vm9, %v1953_v28, %v1957_v33  ;;  %v2574_v20 = vor.u32 %v2573_v19, %v2572_v37  ;;  %v1196_v37 = vld [vmem:[#allocation2 + $0x8c] sm:$0x1]  ;;  %v6165_v19 = vld [vmem:[#allocation2 + $0x30] sm:$0x8] }
  0xcf   : > { %v2582_v0 = vshll.u32 %v2478_v23, 16  ;;  %v2596_v31 = vshll.u32 %v2479_v11, 16  ;;  %v4718_v42 = vcombine.low %v1950_v54, %v1958_v4  ;;  %v4849_v52 = vpack.c.bf16 %v482_v6, %v482_v6  ;;  %770 = vst.msk [vmem:[#allocation2 + $0x94] sm:$0xf] %vm513_vm0, %v4848_v25  ;;  %v6167_v6 = vpop.permute.xlu1 %3274  ;;  %v6169_v25 = vpop.permute.xlu0 %2924 }
  0xd0   : > { %3126 = vrot.lane.b32.xlu1 %v7928_v58, %s5162_s11  ;;  %3396 = vrot.lane.b32.xlu0 %v4749_v47, %s5163_s12  ;;  %v2579_v13 = vor.u32 %v2578_v53, %v2576_v8  ;;  %v1018_v46 = vshrl.u32 %v6128_v7, 16  ;;  %v2575_v21 = vrot.slane %v2574_v20, 4  ;;  %v1021_v63 = vshll.u32 %v6128_v7, 16 }
  0xd1   : > { %v2584_v55 = vrot.slane %v2582_v0, 5  ;;  %v6147_v15 = vrot.slane %v2596_v31, 5  ;;  %771 = vst.msk [vmem:[#allocation2 + $0x98] sm:$0xf] %vm513_vm0, %v4849_v52  ;;  %v1027_v1 = vshrl.u32 %v6142_v34, 16  ;;  %v1030_v33 = vshll.u32 %v6142_v34, 16 }
  0xd2   : > { %v2580_v62 = vrot.slane %v2579_v13, 4  ;;  %v6151_v48 = vrot.slane %v1018_v46, 7  ;;  %v2577_v47 = vsel %vm5289_vm9, %v2575_v21, %v2576_v8  ;;  %v1319_v54 = vrot.slane %v1018_v46, 4  ;;  %v7933_v13 = vld [vmem:[#allocation13_spill] sm:$0xff] }
  0xd3   : > { %v1320_v56 = vrot.slane %v1021_v63, 5  ;;  %v1029_v11 = vrot.slane %v1027_v1, 7  ;;  %v1325_v28 = vrot.slane %v1027_v1, 4  ;;  %v7931_v53 = vshrl.u32 %v6038_v40, 16 }
  0xd4   : > { %7929 = vst [vmem:[#allocation10_spill] sm:$0xff] %v6151_v48  ;;  %3206 = vrot.lane.b32.xlu1 %v4718_v42, %s5166_s15  ;;  %v2585_v12 = vsel %vm5289_vm9, %v2580_v62, %v2584_v55  ;;  %v6163_v23 = vor.u32 %v1021_v63, %v6151_v48  ;;  %v893_v4 = vrot.slane %v5468_v51, 4  ;;  %v6178_v0 = vsel %vm3578_vm14, %v3547_v61, %v6014_v32 }
  0xd5   : > { %v4765_v8 = vcombine.low %v2577_v47, %v2585_v12  ;;  %v4585_v58 = vrot.slane %v7931_v53, 11  ;;  %v6174_v20 = vor.u32 %v1030_v33, %v1029_v11  ;;  %v1321_v31 = vor.u32 %v1320_v56, %v1319_v54  ;;  %v6208_v53 = vpop.permute.xlu0 %3004 }
  0xd6   : > { %7930 = vst [vmem:[#allocation12_spill] sm:$0xff] %v6163_v23  ;;  %v1323_v42 = vrot.slane %v1030_v33, 5  ;;  %v6180_v52 = vld [vmem:[#allocation2 + $0x94] sm:$0xf]  ;;  %v901_v51 = vsel %vm5451_vm11, %v893_v4, %v7933_v13  ;;  %v1329_v46 = vshll.u32 %v1196_v37, 16  ;;  %v903_v32 = vshrl.u32 %v6165_v19, 16 }
  0xd7   : > { %7932 = vst [vmem:[#allocation11_spill] sm:$0xff] %v6174_v20  ;;  %3476 = vrot.lane.b32.xlu0 %v4765_v8, %s5167_s16  ;;  %v892_v40 = vsel %vm5451_vm11, %v4585_v58, %v5486_v41  ;;  %v6189_v21 = vld [vmem:[#allocation2 + $0x94] sm:$0xf]  ;;  %v2280_v61 = vshrl.u32 %v6180_v52, 16  ;;  %v2283_v55 = vshll.u32 %v6180_v52, 16  ;;  %v1322_v62 = vrot.slane %v1321_v31, 4  ;;  %v6206_v8 = vpop.permute.xlu1 %2922 }
  0xd8   : > { %v4633_v63 = vcombine.low %v892_v40, %v901_v51  ;;  %v6194_v1 = vld [vmem:[#allocation2 + $0x98] sm:$0xf]  ;;  %v1326_v33 = vor.u32 %v1325_v28, %v1323_v42  ;;  %v1331_v47 = vrot.slane %v1329_v46, 5  ;;  %v1040_v41 = vshrl.u32 %v6189_v21, 16 }
  0xd9   : > { %v7934_v54 = vunpack.c.l.bf16 %v6045_v49  ;;  %v2282_v12 = vrot.slane %v2280_v61, 7  ;;  %v2289_v11 = vshrl.u32 %v6194_v1, 16  ;;  %v2292_v37 = vshll.u32 %v6194_v1, 16  ;;  %v6216_v40 = vld [vmem:[#allocation2 + $0x98] sm:$0xf] }
  0xda   : > { %v4750_v19 = vcombine.low %v6180_v52, %v6194_v1  ;;  %v2586_v28 = vrot.slane %v2280_v61, 4  ;;  %v2587_v58 = vrot.slane %v2283_v55, 5  ;;  %v6212_v4 = vsel %vm3496_vm12, %v4633_v63, %v6086_v39  ;;  %v6241_v48 = vld [vmem:[#allocation2 + $0x98] sm:$0xf] }
  0xdb   : > { %v6200_v56 = vmul.f32 %v5840_v43, %v7934_v54  ;;  %v1324_v31 = vsel %vm5289_vm9, %v1322_v62, %v1323_v42  ;;  %v2285_v13 = vor.u32 %v2283_v55, %v2282_v12  ;;  %v2287_v51 = vrot.slane %v2282_v12, 4 }
  0xdc   : > { %v2291_v46 = vrot.slane %v2289_v11, 7  ;;  %v2590_v54 = vrot.slane %v2292_v37, 5  ;;  %v2588_v52 = vor.u32 %v2587_v58, %v2586_v28  ;;  %v2592_v1 = vrot.slane %v2289_v11, 4  ;;  %v6233_v58 = vpop.permute.xlu1 %3194 }
  0xdd   : > { %v1327_v30 = vrot.slane %v1326_v33, 4  ;;  %v6218_v23 = vrot.slane %v1040_v41, 7  ;;  %v2286_v61 = vsel %vm5451_vm11, %v6130_v35, %v2285_v13  ;;  %v1043_v63 = vshll.u32 %v6189_v21, 16  ;;  %v6235_v13 = vpop.permute.xlu0 %3116 }
  0xde   : > { %v2294_v39 = vor.u32 %v2292_v37, %v2291_v46  ;;  %v1049_v42 = vshrl.u32 %v6216_v40, 16  ;;  %v2589_v62 = vrot.slane %v2588_v52, 4  ;;  %v2593_v20 = vor.u32 %v2592_v1, %v2590_v54  ;;  %v1455_v37 = vld [vmem:[#allocation2 + $0x90] sm:$0x8]  ;;  %v6239_v1 = vld [vmem:[#allocation2 + $0x94] sm:$0xf] }
  0xdf   : > { %v1332_v55 = vsel %vm5289_vm9, %v1327_v30, %v1331_v47  ;;  %v1052_v12 = vshll.u32 %v6216_v40, 16  ;;  %v6231_v28 = vor.u32 %v1043_v63, %v6218_v23  ;;  %v1333_v47 = vrot.slane %v1040_v41, 4 }
  0xe0   : > { %v2295_v33 = vsel %vm5451_vm11, %v2287_v51, %v2294_v39  ;;  %v4671_v11 = vcombine.low %v1324_v31, %v1332_v55  ;;  %v1051_v35 = vrot.slane %v1049_v42, 7  ;;  %v2591_v52 = vsel %vm5289_vm9, %v2589_v62, %v2590_v54 }
  0xe1   : > { %7935 = vst [vmem:[#allocation8_spill] sm:$0xff] %v6231_v28  ;;  %v4734_v46 = vcombine.low %v2286_v61, %v2295_v33  ;;  %v2594_v30 = vrot.slane %v2593_v20, 4  ;;  %v1334_v51 = vrot.slane %v1043_v63, 5  ;;  %v1339_v39 = vrot.slane %v1049_v42, 4  ;;  %v1197_v42 = vld [vmem:[#allocation2 + $0x9c] sm:$0x1] }
  0xe2   : > { %v6243_v31 = vor.u32 %v1052_v12, %v1051_v35  ;;  %v4656_v55 = vcombine.low %v6189_v21, %v6216_v40  ;;  %v4586_v54 = vrot.slane %v903_v32, 11  ;;  %v915_v20 = vrot.slane %v5490_v38, 4  ;;  %v563_v28 = vld [vmem:[#allocation2 + $0xa0] sm:$0x8] }
  0xe3   : > { %3286 = vrot.lane.b32.xlu1 %v4734_v46, %s5165_s14  ;;  %v2599_v61 = vsel %vm5289_vm9, %v2594_v30, %v6147_v15  ;;  %v1656_v41 = vshrl.u32 %v1455_v37, 16  ;;  %v1661_v33 = vshrl.u32 %v6239_v1, 16  ;;  %v1664_v35 = vshll.u32 %v6239_v1, 16  ;;  %v6263_v30 = vpop.permute.xlu1 %2926 }
  0xe4   : > { %v4766_v62 = vcombine.low %v2591_v52, %v2599_v61  ;;  %v1670_v63 = vshrl.u32 %v6241_v48, 16  ;;  %v914_v21 = vsel %vm5451_vm11, %v4586_v54, %v5501_v16  ;;  %v923_v15 = vsel %vm5451_vm11, %v915_v20, %v5512_v5  ;;  %v6265_v61 = vpop.permute.xlu0 %3196 }
  0xe5   : > { %v4607_v32 = vrot.slane %v1656_v41, 11  ;;  %v1673_v38 = vshll.u32 %v6241_v48, 16  ;;  %v4634_v40 = vcombine.low %v914_v21, %v923_v15  ;;  %v1663_v37 = vrot.slane %v1661_v33, 7 }
  0xe6   : > { %3478 = vrot.lane.b32.xlu0 %v4766_v62, %s5167_s16  ;;  %v1672_v46 = vrot.slane %v1670_v63, 7  ;;  %v1335_v52 = vor.u32 %v1334_v51, %v1333_v47  ;;  %v1337_v16 = vrot.slane %v1052_v12, 5  ;;  %v1343_v54 = vshll.u32 %v1197_v42, 16 }
  0xe7   : > { %3398 = vrot.lane.b32.xlu1 %v4750_v19, %s5163_s12  ;;  %vm3611_vm15 = vcmask 261120   ;;  %vm3644_vm2 = vcmask 326656   ;;  %v6270_v5 = vsel %vm3496_vm12, %v4634_v40, %v6105_v59  ;;  %v1666_v20 = vor.u32 %v1664_v35, %v1663_v37 }
  0xe8   : > { %v1668_v41 = vrot.slane %v1663_v37, 4  ;;  %v1675_v62 = vor.u32 %v1673_v38, %v1672_v46  ;;  %v1336_v21 = vrot.slane %v1335_v52, 4  ;;  %v1340_v15 = vor.u32 %v1339_v39, %v1337_v16  ;;  %v6299_v46 = vpop.permute.xlu1 %3006  ;;  %v6301_v52 = vpop.permute.xlu0 %3276 }
  0xe9   : > { %v1345_v47 = vrot.slane %v1343_v54, 5  ;;  %v3613_v51 = vsel %vm3611_vm15, %v6178_v0, %v5972_v10  ;;  %v1667_v19 = vsel %vm5451_vm11, %v4607_v32, %v1666_v20  ;;  %vm3677_vm4 = vcmask 392192  }
  0xea   : > { %2936 = vrot.lane.b32.xlu0 %v4671_v11, %s5161_s10  ;;  %v1676_v59 = vsel %vm5451_vm11, %v1668_v41, %v1675_v62  ;;  %v3646_v12 = vsel %vm3644_vm2, %v3613_v51, %v6088_v2  ;;  %v7936_v39 = vcombine.low %v6128_v7, %v6142_v34  ;;  %v1338_v10 = vsel %vm5289_vm9, %v1336_v21, %v1337_v16  ;;  %v1839_v34 = vld [vmem:[#allocation2 + $0x9c] sm:$0x1]  ;;  %v617_v41 = vld [vmem:[#allocation2 + $0xac] sm:$0x1] }
  0xeb   : > { %v4687_v42 = vcombine.low %v1667_v19, %v1676_v59  ;;  %v1341_v0 = vrot.slane %v1340_v15, 4  ;;  %v3679_v11 = vsel %vm3677_vm4, %v3646_v12, %v6040_v27  ;;  %v4703_v32 = vcombine.low %v6239_v1, %v6241_v48  ;;  %v4969_v15 = vld [vmem:[%s5253_s28 + $0x50] sm:$0xff]  }
  0xec   : > { %2856 = vrot.lane.b32.xlu1 %v7936_v39, %s5160_s7  ;;  %v7937_v40 = vunpack.c.h.bf16 %v6045_v49  ;;  %v451_v37 = vadd.f32 %v5858_v14, %v6200_v56  ;;  %v564_v7 = vsel %vm5237_vm6, 0, %v563_v28  ;;  %v1959_v48 = vrot.slane %v1661_v33, 4  ;;  %v3119_v59 = vpop.permute.xlu1 %3118  ;;  %v6324_v12 = vpop.permute.xlu0 %3388 }
  0xed   : > { %v1346_v27 = vsel %vm5289_vm9, %v1341_v0, %v1345_v47  ;;  %565 = vst [vmem:[#allocation2 + $0xa0] sm:$0x8] %v564_v7  ;;  %v1960_v1 = vrot.slane %v1664_v35, 5  ;;  %v1963_v49 = vrot.slane %v1673_v38, 5  ;;  %v1965_v54 = vrot.slane %v1670_v63, 4 }
  0xee   : > { %v413_v2 = vmul.f32 %v5840_v43, %v7937_v40  ;;  %3016 = vrot.lane.b32.xlu0 %v4687_v42, %s5164_s13  ;;  %v4672_v43 = vcombine.low %v1338_v10, %v1346_v27  ;;  %v483_v16 = vmax.f32 %v451_v37, 0.0  ;;  %v1969_v20 = vshll.u32 %v1839_v34, 16 }
  0xef   : > { %v1961_v28 = vor.u32 %v1960_v1, %v1959_v48  ;;  %vm3710_vm5 = vcmask 457728   ;;  %vm3743_vm7 = vcmask 523264   ;;  %v1966_v33 = vor.u32 %v1965_v54, %v1963_v49  ;;  %v620_v48 = vld [vmem:[#allocation2 + $0xbc] sm:$0x1] }
  0xf0   : > { %v452_v56 = vadd.f32 %v5858_v14, %v413_v2  ;;  %2858 = vrot.lane.b32.xlu1 %v4656_v55, %s5160_s7  ;;  %v4850_v21 = vpack.c.bf16 %v483_v16, %v483_v16  ;;  %v3712_v35 = vsel %vm3710_vm5, %v3679_v11, %v5995_v60  ;;  %v5112_v14 = vld [vmem:[%s7833_s3 + $0x20] ss:$0 sps:$4 sm:$0xff]   ;;  %v1971_v63 = vrot.slane %v1969_v20, 5  ;;  %v6374_v20 = vpop.permute.xlu0 %3468 }
  0xf1   : > { %v1962_v38 = vrot.slane %v1961_v28, 4  ;;  %v3745_v55 = vsel %vm3743_vm7, %v3712_v35, %v6107_v3  ;;  %vm3812_vm8 = vcmask 588800   ;;  %v1967_v51 = vrot.slane %v1966_v33, 4 }
  0xf2   : > { %v484_v62 = vmax.f32 %v452_v56, 0.0  ;;  %3128 = vrot.lane.b32.xlu0 %v4703_v32, %s5162_s11  ;;  %772 = vst.msk [vmem:[#allocation2 + $0xa4] sm:$0xf] %vm513_vm0, %v4850_v21  ;;  %5006 = vmatprep.mubr.msk.bf16.mxu0 %vm3812_vm8, %v3745_v55  ;;  %v3549_v60 = vsel %vm3545_vm13, %v6115_v18, %v6206_v8  ;;  %v618_v19 = vsel %vm5229_vm3, 0, %v617_v41  ;;  %v3551_v42 = vsel %vm3545_vm13, %v6212_v4, %v6169_v25  ;;  %v566_v18 = vld [vmem:[#allocation2 + $0xb0] sm:$0x8] }
  0xf3   : > { %v1964_v3 = vsel %vm5289_vm9, %v1962_v38, %v1963_v49  ;;  %v3582_v39 = vsel %vm3578_vm14, %v3549_v60, %v6132_v24  ;;  %619 = vst [vmem:[#allocation2 + $0xac] sm:$0x1] %v618_v19  ;;  %vm3845_vm10 = vcmask 1043456   ;;  %v1972_v10 = vsel %vm5289_vm9, %v1967_v51, %v1971_v63  ;;  %v6365_v56 = vld [vmem:[%s7832_s2] ss:$0 sm:$0xff] }
  0xf4   : > { %v4851_v47 = vpack.c.bf16 %v484_v62, %v484_v62  ;;  %2938 = vrot.lane.b32.xlu1 %v4672_v43, %s5161_s10  ;;  %v1458_v8 = vld [vmem:[#allocation2 + $0xa0] sm:$0x8]  ;;  %v3615_v11 = vsel %vm3611_vm15, %v3582_v39, %v6012_v29  ;;  %5048 = vmatprep.subr.msk.bf16.mxu0 %vm3845_vm10, %v5112_v14  ;;  %v3847_v32 = vsel %vm3845_vm10, %v5112_v14, 0  ;;  %v4938_v24 = vunpack.c.l.bf16 %v4969_v15  ;;  %v6346_v29 = vld [vmem:[%s7831_s1] ss:$0 sm:$0xff] }
  0xf5   : > { %v2096_v0 = vld [vmem:[#allocation2 + $0xa0] sm:$0x8]  ;;  %5049 = vmatprep.subr.msk.bf16.mxu1 %vm3845_vm10, %v5112_v14  ;;  %v1678_v40 = vshrl.u32 %v1458_v8, 16  ;;  %v4719_v2 = vcombine.low %v1964_v3, %v1972_v10  ;;  %v3648_v25 = vsel %vm3644_vm2, %v3615_v11, %v6233_v58  ;;  %5005 = vmatpush3.bf16.msra.mxu0 %v3847_v32  ;;  %v4939_v7 = vunpack.c.h.bf16 %v4969_v15 }
  0xf6   : > { %773 = vst.msk [vmem:[#allocation2 + $0xa8] sm:$0xf] %vm513_vm0, %v4851_v47  ;;  %v2297_v37 = vshrl.u32 %v2096_v0, 16  ;;  %5047 = vmatpush3.bf16.msra.mxu1 %v3847_v32  ;;  %v3681_v4 = vsel %vm3677_vm4, %v3648_v25, %v6167_v6  ;;  %v414_v34 = vmul.f32 %v6346_v29, %v4938_v24  ;;  %v567_v27 = vsel %vm5237_vm6, 0, %v566_v18  ;;  %v6411_v32 = vpop.permute.xlu0 %3470 }
  0xf7   : > { %v6351_v1 = vrot.slane %v1678_v40, 11  ;;  %3208 = vrot.lane.b32.xlu0 %v4719_v2, %s5166_s15  ;;  %568 = vst [vmem:[#allocation2 + $0xb0] sm:$0x8] %v567_v27  ;;  %v3584_v6 = vsel %vm3578_vm14, %v3551_v42, %v6208_v53  ;;  %v3553_v49 = vsel %vm3545_vm13, %v6270_v5, %v6263_v30  ;;  %v415_v43 = vmul.f32 %v6346_v29, %v4939_v7  ;;  %v6372_v53 = vpop.permute.xlu1 %3198 }
  0xf8   : > { %v6354_v58 = vrot.slane %v2297_v37, 11  ;;  %v453_v16 = vadd.f32 %v6365_v56, %v414_v34  ;;  %v3714_v54 = vsel %vm3710_vm5, %v3681_v4, %v6036_v26  ;;  %v3617_v28 = vsel %vm3611_vm15, %v3584_v6, %v6235_v13 }
  0xf9   : > { %v6376_v30 = vld [vmem:[#allocation2 + $0xa4] sm:$0xf]  ;;  %v3747_v41 = vsel %vm3743_vm7, %v3714_v54, %v6134_v44  ;;  %v3586_v62 = vsel %vm3578_vm14, %v3553_v49, %v6299_v46  ;;  %v621_v26 = vsel %vm5229_vm3, 0, %v620_v48  ;;  %v6388_v13 = vsel %vm3644_vm2, %v3617_v28, %v6265_v61 }
  0xfa   : > { %v6378_v5 = vld [vmem:[#allocation2 + $0xa4] sm:$0xf]  ;;  %v1683_v21 = vshrl.u32 %v6376_v30, 16  ;;  %v1686_v33 = vshll.u32 %v6376_v30, 16  ;;  %v1840_v38 = vld [vmem:[#allocation2 + $0xac] sm:$0x1]  ;;  %5007 = vmatmul.mubr.msk.bf16.vlgmr.msra.gmra.mrb[0].mxu0 %vm3812_vm8, %v3747_v41  ;;  %v454_v61 = vadd.f32 %v6365_v56, %v415_v43  ;;  %v6401_v15 = vsel %vm3611_vm15, %v3586_v62, %v3119_v59 }
  0xfb   : > { %v2302_v35 = vshrl.u32 %v6378_v5, 16  ;;  %v2305_v14 = vshll.u32 %v6378_v5, 16  ;;  %622 = vst [vmem:[#allocation2 + $0xbc] sm:$0x1] %v621_v26  ;;  %v1983_v63 = vshll.u32 %v1840_v38, 16  ;;  %v485_v55 = vmax.f32 %v453_v16, 0.0  ;;  %v6409_v59 = vpop.permute.xlu1 %3278 }
  0xfc   : > { %v1685_v47 = vrot.slane %v1683_v21, 7  ;;  %v1973_v18 = vrot.slane %v1683_v21, 4  ;;  %v1974_v11 = vrot.slane %v1686_v33, 5  ;;  %v2480_v21 = vld [vmem:[#allocation2 + $0xac] sm:$0x1] }
  0xfd   : > { %v6395_v44 = vld [vmem:[#allocation2 + $0xa8] sm:$0xf]  ;;  %v2304_v3 = vrot.slane %v2302_v35, 7  ;;  %v1985_v49 = vrot.slane %v1983_v63, 5  ;;  %v4852_v62 = vpack.c.bf16 %v485_v55, %v485_v55  ;;  %v2600_v55 = vrot.slane %v2302_v35, 4 }
  0xfe   : > { %v6397_v46 = vld [vmem:[#allocation2 + $0xa8] sm:$0xf]  ;;  %v1692_v51 = vshrl.u32 %v6395_v44, 16  ;;  %v1695_v60 = vshll.u32 %v6395_v44, 16  ;;  %v4704_v19 = vcombine.low %v6376_v30, %v6395_v44  ;;  %v1688_v8 = vor.u32 %v1686_v33, %v1685_v47  ;;  %v2099_v27 = vld [vmem:[#allocation2 + $0xb0] sm:$0x8] }
  0xff   : > { %v2311_v39 = vshrl.u32 %v6397_v46, 16  ;;  %v2314_v42 = vshll.u32 %v6397_v46, 16  ;;  %v1690_v10 = vrot.slane %v1685_v47, 4  ;;  %v2307_v24 = vor.u32 %v2305_v14, %v2304_v3  ;;  %v6429_v63 = vpop.permute.xlu1 %3390  ;;  %v6431_v47 = vpop.permute.xlu0 %2928  ;;  %774 = vst.msk [vmem:[#allocation2 + $0xb4] sm:$0xf] %vm513_vm0, %v4852_v62 }
 0x100   : > { %v1694_v0 = vrot.slane %v1692_v51, 7  ;;  %v2309_v40 = vrot.slane %v2304_v3, 4  ;;  %v1977_v37 = vrot.slane %v1695_v60, 5  ;;  %v1689_v25 = vsel %vm5451_vm11, %v6351_v1, %v1688_v8  ;;  %v6437_v3 = vld [vmem:[#allocation2 + $0xa8] sm:$0xf] }
 0x101   : > { %v2313_v2 = vrot.slane %v2311_v39, 7  ;;  %v1975_v7 = vor.u32 %v1974_v11, %v1973_v18  ;;  %v1979_v34 = vrot.slane %v1692_v51, 4  ;;  %v2308_v48 = vsel %vm5451_vm11, %v6354_v58, %v2307_v24 }
 0x102   : > { %v1697_v4 = vor.u32 %v1695_v60, %v1694_v0  ;;  %v4751_v43 = vcombine.low %v6378_v5, %v6397_v46  ;;  %v486_v30 = vmax.f32 %v454_v61, 0.0  ;;  %v2319_v26 = vshrl.u32 %v2099_v27, 16  ;;  %v2481_v33 = vld [vmem:[#allocation2 + $0xbc] sm:$0x1]  ;;  %v6427_v46 = vld [vmem:[#allocation2 + $0xa4] sm:$0xf] }
 0x103   : > { %v2316_v6 = vor.u32 %v2314_v42, %v2313_v2  ;;  %v1976_v54 = vrot.slane %v1975_v7, 4  ;;  %v1980_v28 = vor.u32 %v1979_v34, %v1977_v37  ;;  %v2601_v51 = vrot.slane %v2305_v14, 5  ;;  %v1198_v34 = vld [vmem:[#allocation2 + $0xac] sm:$0x1] }
 0x104   : > { %v1698_v16 = vsel %vm5451_vm11, %v1690_v10, %v1697_v4  ;;  %v4853_v5 = vpack.c.bf16 %v486_v30, %v486_v30  ;;  %v6435_v61 = vrot.slane %v2319_v26, 11  ;;  %v2604_v60 = vrot.slane %v2314_v42, 5 }
 0x105   : > { %v4688_v1 = vcombine.low %v1689_v25, %v1698_v16  ;;  %v2317_v41 = vsel %vm5451_vm11, %v2309_v40, %v2316_v6  ;;  %v1978_v38 = vsel %vm5289_vm9, %v1976_v54, %v1977_v37  ;;  %v1981_v44 = vrot.slane %v1980_v28, 4  ;;  %v6453_v16 = vpop.permute.xlu1 %2848  ;;  %v6455_v54 = vpop.permute.xlu0 %3008 }
 0x106   : > { %v4735_v58 = vcombine.low %v2308_v48, %v2317_v41  ;;  %775 = vst.msk [vmem:[#allocation2 + $0xb8] sm:$0xf] %vm513_vm0, %v4853_v5  ;;  %v2606_v8 = vrot.slane %v2311_v39, 4  ;;  %v2610_v10 = vshll.u32 %v2480_v21, 16  ;;  %v2624_v0 = vshll.u32 %v2481_v33, 16 }
 0x107   : > { %3018 = vrot.lane.b32.xlu1 %v4688_v1, %s5164_s13  ;;  %v1986_v18 = vsel %vm5289_vm9, %v1981_v44, %v1985_v49  ;;  %v2602_v24 = vor.u32 %v2601_v51, %v2600_v55  ;;  %v1062_v40 = vshrl.u32 %v6427_v46, 16  ;;  %v1065_v35 = vshll.u32 %v6427_v46, 16  ;;  %v6464_v41 = vld [vmem:[#allocation2 + $0xb4] sm:$0xf] }
 0x108   : > { %3288 = vrot.lane.b32.xlu0 %v4735_v58, %s5165_s14  ;;  %v4720_v11 = vcombine.low %v1978_v38, %v1986_v18  ;;  %v2607_v14 = vor.u32 %v2606_v8, %v2604_v60  ;;  %v2612_v42 = vrot.slane %v2610_v10, 5  ;;  %v6445_v2 = vrot.slane %v2624_v0, 5 }
 0x109   : > { %v1071_v37 = vshrl.u32 %v6437_v3, 16  ;;  %v2603_v25 = vrot.slane %v2602_v24, 4  ;;  %v6449_v4 = vrot.slane %v1062_v40, 7  ;;  %v1074_v39 = vshll.u32 %v6437_v3, 16  ;;  %v6480_v24 = vld [vmem:[#allocation2 + $0xb4] sm:$0xf] }
 0x10a   : > { %v1347_v7 = vrot.slane %v1062_v40, 4  ;;  %v2608_v27 = vrot.slane %v2607_v14, 4  ;;  %v1348_v6 = vrot.slane %v1065_v35, 5  ;;  %v4657_v30 = vcombine.low %v6427_v46, %v6437_v3 }
 0x10b   : > { %3130 = vrot.lane.b32.xlu1 %v4704_v19, %s5162_s11  ;;  %v1073_v48 = vrot.slane %v1071_v37, 7  ;;  %v1353_v49 = vrot.slane %v1071_v37, 4  ;;  %v2605_v19 = vsel %vm5289_vm9, %v2603_v25, %v2604_v60  ;;  %v6460_v28 = vor.u32 %v1065_v35, %v6449_v4  ;;  %v6486_v25 = vpop.permute.xlu1 %2850 }
 0x10c   : > { %3400 = vrot.lane.b32.xlu0 %v4751_v43, %s5163_s12  ;;  %v1351_v1 = vrot.slane %v1074_v39, 5  ;;  %v2613_v43 = vsel %vm5289_vm9, %v2608_v27, %v2612_v42  ;;  %v1349_v26 = vor.u32 %v1348_v6, %v1347_v7  ;;  %v1357_v21 = vshll.u32 %v1198_v34, 16 }
 0x10d   : > { %v6468_v62 = vor.u32 %v1074_v39, %v1073_v48  ;;  %v6471_v33 = vld [vmem:[#allocation2 + $0xb8] sm:$0xf]  ;;  %v2324_v58 = vshrl.u32 %v6464_v41, 16  ;;  %v2327_v38 = vshll.u32 %v6464_v41, 16  ;;  %v4767_v44 = vcombine.low %v2605_v19, %v2613_v43  ;;  %v6488_v39 = vpop.permute.xlu0 %3120 }
 0x10e   : > { %v1354_v5 = vor.u32 %v1353_v49, %v1351_v1  ;;  %v2333_v55 = vshrl.u32 %v6471_v33, 16  ;;  %v2336_v51 = vshll.u32 %v6471_v33, 16  ;;  %v4752_v60 = vcombine.low %v6464_v41, %v6471_v33  ;;  %v6484_v37 = vld [vmem:[#allocation2 + $0xb8] sm:$0xf] }
 0x10f   : > { %3210 = vrot.lane.b32.xlu1 %v4720_v11, %s5166_s15  ;;  %v1350_v18 = vrot.slane %v1349_v26, 4  ;;  %v2326_v8 = vrot.slane %v2324_v58, 7  ;;  %v2614_v10 = vrot.slane %v2324_v58, 4  ;;  %v2615_v0 = vrot.slane %v2327_v38, 5 }
 0x110   : > { %3480 = vrot.lane.b32.xlu0 %v4767_v44, %s5167_s16  ;;  %v1355_v11 = vrot.slane %v1354_v5, 4  ;;  %v2335_v40 = vrot.slane %v2333_v55, 7  ;;  %v2618_v35 = vrot.slane %v2336_v51, 5  ;;  %v2620_v14 = vrot.slane %v2333_v55, 4 }
 0x111   : > { %v1352_v42 = vsel %vm5289_vm9, %v1350_v18, %v1351_v1  ;;  %v2329_v7 = vor.u32 %v2327_v38, %v2326_v8  ;;  %v2331_v34 = vrot.slane %v2326_v8, 4  ;;  %v2616_v27 = vor.u32 %v2615_v0, %v2614_v10  ;;  %v1461_v10 = vld [vmem:[#allocation2 + $0xb0] sm:$0x8]  ;;  %v6505_v0 = vld [vmem:[#allocation2 + $0xb4] sm:$0xf] }
 0x112   : > { %v1359_v48 = vrot.slane %v1357_v21, 5  ;;  %v2338_v6 = vor.u32 %v2336_v51, %v2335_v40  ;;  %v2621_v49 = vor.u32 %v2620_v14, %v2618_v35  ;;  %v1084_v19 = vshrl.u32 %v6480_v24, 16 }
 0x113   : > { %v1087_v43 = vshll.u32 %v6480_v24, 16  ;;  %v2330_v1 = vsel %vm5451_vm11, %v6435_v61, %v2329_v7  ;;  %v2617_v26 = vrot.slane %v2616_v27, 4  ;;  %v1093_v44 = vshrl.u32 %v6484_v37, 16  ;;  %v6513_v7 = vld [vmem:[#allocation2 + $0xb8] sm:$0xf] }
 0x114   : > { %v1360_v58 = vsel %vm5289_vm9, %v1355_v11, %v1359_v48  ;;  %v2339_v38 = vsel %vm5451_vm11, %v2331_v34, %v2338_v6  ;;  %v2622_v21 = vrot.slane %v2621_v49, 4  ;;  %v6500_v55 = vrot.slane %v1084_v19, 7  ;;  %v6515_v34 = vpop.permute.xlu1 %2930  ;;  %v1199_v49 = vld [vmem:[#allocation2 + $0xbc] sm:$0x1] }
 0x115   : > { %v4673_v5 = vcombine.low %v1352_v42, %v1360_v58  ;;  %v4736_v51 = vcombine.low %v2330_v1, %v2339_v38  ;;  %v2619_v18 = vsel %vm5289_vm9, %v2617_v26, %v2618_v35  ;;  %v1095_v8 = vrot.slane %v1093_v44, 7  ;;  %v6517_v35 = vpop.permute.xlu0 %3200 }
 0x116   : > { %v1096_v61 = vshll.u32 %v6484_v37, 16  ;;  %v2627_v11 = vsel %vm5289_vm9, %v2622_v21, %v6445_v2  ;;  %v6511_v40 = vor.u32 %v1087_v43, %v6500_v55  ;;  %v1361_v14 = vrot.slane %v1084_v19, 4 }
 0x117   : > { %v1362_v42 = vrot.slane %v1087_v43, 5  ;;  %3290 = vrot.lane.b32.xlu1 %v4736_v51, %s5165_s14  ;;  %v4768_v27 = vcombine.low %v2619_v18, %v2627_v11  ;;  %v1367_v6 = vrot.slane %v1093_v44, 4  ;;  %v4658_v2 = vcombine.low %v6480_v24, %v6484_v37 }
 0x118   : > { %7938 = vst [vmem:[#allocation13_spill] sm:$0xff] %v6511_v40  ;;  %v6520_v48 = vor.u32 %v1096_v61, %v1095_v8  ;;  %v3683_v19 = vsel %vm3677_vm4, %v6388_v13, %v6301_v52  ;;  %v3652_v43 = vsel %vm3644_vm2, %v6401_v15, %v6372_v53  ;;  %v1700_v1 = vshrl.u32 %v1461_v10, 16  ;;  %v4970_v13 = vld [vmem:[%s5253_s28 + $0x58] sm:$0xff]   ;;  %v569_v10 = vld [vmem:[#allocation2 + $0xc0] sm:$0x8] }
 0x119   : > { %v1705_v26 = vshrl.u32 %v6505_v0, 16  ;;  %3482 = vrot.lane.b32.xlu0 %v4768_v27, %s5167_s16  ;;  %v1708_v58 = vshll.u32 %v6505_v0, 16  ;;  %v1714_v44 = vshrl.u32 %v6513_v7, 16  ;;  %v1717_v24 = vshll.u32 %v6513_v7, 16  ;;  %v6544_v27 = vpop.permute.xlu1 %3010 }
 0x11a   : > { %v1363_v37 = vor.u32 %v1362_v42, %v1361_v14  ;;  %v4609_v38 = vrot.slane %v1700_v1, 11  ;;  %v1365_v51 = vrot.slane %v1096_v61, 5  ;;  %v1371_v52 = vshll.u32 %v1199_v49, 16  ;;  %v6546_v49 = vpop.permute.xlu0 %3280 }
 0x11b   : > { %v1707_v21 = vrot.slane %v1705_v26, 7  ;;  %3402 = vrot.lane.b32.xlu1 %v4752_v60, %s5163_s12  ;;  %v1716_v53 = vrot.slane %v1714_v44, 7  ;;  %v3716_v18 = vsel %vm3710_vm5, %v3683_v19, %v6324_v12  ;;  %v3685_v8 = vsel %vm3677_vm4, %v3652_v43, %v6409_v59 }
 0x11c   : > { %v1364_v15 = vrot.slane %v1363_v37, 4  ;;  %v1368_v42 = vor.u32 %v1367_v6, %v1365_v51  ;;  %v1373_v61 = vrot.slane %v1371_v52, 5  ;;  %v4705_v12 = vcombine.low %v6505_v0, %v6513_v7  ;;  %v1841_v37 = vld [vmem:[#allocation2 + $0xbc] sm:$0x1] }
 0x11d   : > { %v1710_v11 = vor.u32 %v1708_v58, %v1707_v21  ;;  %v1712_v14 = vrot.slane %v1707_v21, 4  ;;  %2940 = vrot.lane.b32.xlu0 %v4673_v5, %s5161_s10  ;;  %v1719_v41 = vor.u32 %v1717_v24, %v1716_v53  ;;  %v4942_v60 = vunpack.c.l.bf16 %v4970_v13 }
 0x11e   : > { %v1366_v33 = vsel %vm5289_vm9, %v1364_v15, %v1365_v51  ;;  %v1369_v19 = vrot.slane %v1368_v42, 4  ;;  %v4943_v6 = vunpack.c.h.bf16 %v4970_v13  ;;  %v570_v43 = vsel %vm5237_vm6, 0, %v569_v10  ;;  %v6579_v10 = vpop.permute.xlu0 %3392  ;;  %v801_v42 = vld [vmem:[#allocation2 + $0x50] sm:$0x8] }
 0x11f   : > { %v1711_v59 = vsel %vm5451_vm11, %v4609_v38, %v1710_v11  ;;  %2860 = vrot.lane.b32.xlu1 %v4657_v30, %s5160_s7  ;;  %v1720_v5 = vsel %vm5451_vm11, %v1712_v14, %v1719_v41  ;;  %v416_v1 = vmul.f32 %v6346_v29, %v4942_v60  ;;  %571 = vst [vmem:[#allocation2 + $0xc0] sm:$0x8] %v570_v43  ;;  %v1987_v3 = vrot.slane %v1705_v26, 4  ;;  %v798_v30 = vld [vmem:[#allocation2 + $0x40] sm:$0x8]  ;;  %v6577_v26 = vpop.permute.xlu1 %3122 }
 0x120   : > { %v3749_v0 = vsel %vm3743_vm7, %v3716_v18, %v6374_v20  ;;  %v3718_v7 = vsel %vm3710_vm5, %v3685_v8, %v6429_v63  ;;  %v4689_v38 = vcombine.low %v1711_v59, %v1720_v5  ;;  %v1374_v21 = vsel %vm5289_vm9, %v1369_v19, %v1373_v61  ;;  %v623_v20 = vld [vmem:[#allocation2 + $0xcc] sm:$0x1]  ;;  %v4971_v61 = vld [vmem:[%s5253_s28 + $0x60] sm:$0xff]  }
 0x121   : > { %v417_v46 = vmul.f32 %v6346_v29, %v4943_v6  ;;  %5010 = vmatprep.mubr.msk.bf16.mxu0 %vm3812_vm8, %v3749_v0  ;;  %v4674_v51 = vcombine.low %v1366_v33, %v1374_v21  ;;  %v455_v52 = vadd.f32 %v6365_v56, %v416_v1  ;;  %v1988_v13 = vrot.slane %v1708_v58, 5 }
 0x122   : > { %v1991_v53 = vrot.slane %v1717_v24, 5  ;;  %3020 = vrot.lane.b32.xlu0 %v4689_v38, %s5164_s13  ;;  %v1993_v15 = vrot.slane %v1714_v44, 4  ;;  %v1997_v18 = vshll.u32 %v1841_v37, 16  ;;  %v3751_v8 = vsel %vm3743_vm7, %v3718_v7, %v6411_v32 }
 0x123   : > { %v456_v63 = vadd.f32 %v6365_v56, %v417_v46  ;;  %2862 = vrot.lane.b32.xlu1 %v4658_v2, %s5160_s7  ;;  %v487_v11 = vmax.f32 %v455_v52, 0.0  ;;  %v1989_v58 = vor.u32 %v1988_v13, %v1987_v3  ;;  %v925_v24 = vshrl.u32 %v798_v30, 16  ;;  %5011 = vmatmul.mubr.msk.bf16.gmra.mrb[4].mxu0 %vm3812_vm8, %v3751_v8  ;;  %v7939_v3 = vld [vmem:[#allocation9_spill] sm:$0xff]  ;;  %v6602_v52 = vpop.permute.xlu1 %3202  ;;  %v6604_v13 = vpop.permute.xlu0 %3472 }
 0x124   : > { %v937_v14 = vrot.slane %v5761_v22, 4  ;;  %v1994_v41 = vor.u32 %v1993_v15, %v1991_v53  ;;  %v1999_v33 = vrot.slane %v1997_v18, 5  ;;  %v624_v32 = vsel %vm5229_vm3, 0, %v623_v20  ;;  %v626_v15 = vld [vmem:[#allocation2 + $0xdc] sm:$0x1]  ;;  %v6611_v18 = vld [vmem:[%s5253_s28 + $0x68] sm:$0xff]  }
 0x125   : > { %v488_v44 = vmax.f32 %v456_v63, 0.0  ;;  %v4854_v60 = vpack.c.bf16 %v487_v11, %v487_v11  ;;  %v1990_v59 = vrot.slane %v1989_v58, 4  ;;  %v4587_v19 = vrot.slane %v925_v24, 11  ;;  %625 = vst [vmem:[#allocation2 + $0xcc] sm:$0x1] %v624_v32  ;;  %v7940_v11 = vld [vmem:[#allocation5_spill] sm:$0xff] }
 0x126   : > { %v945_v2 = vsel %vm5451_vm11, %v937_v14, %v5782_v17  ;;  %3132 = vrot.lane.b32.xlu0 %v4705_v12, %s5162_s11  ;;  %v1464_v6 = vld [vmem:[#allocation2 + $0xc0] sm:$0x8]  ;;  %v1995_v43 = vrot.slane %v1994_v41, 4  ;;  %v947_v1 = vshrl.u32 %v801_v42, 16  ;;  %v4946_v0 = vunpack.c.l.bf16 %v4971_v61  ;;  %v7941_v24 = vld [vmem:[#allocation4_spill] sm:$0xff] }
 0x127   : > { %v4855_v22 = vpack.c.bf16 %v488_v44, %v488_v44  ;;  %v2102_v5 = vld [vmem:[#allocation2 + $0xc0] sm:$0x8]  ;;  %2942 = vrot.lane.b32.xlu1 %v4674_v51, %s5161_s10  ;;  %776 = vst.msk [vmem:[#allocation2 + $0xc4] sm:$0xf] %vm513_vm0, %v4854_v60  ;;  %v1722_v7 = vshrl.u32 %v1464_v6, 16  ;;  %v1992_v37 = vsel %vm5289_vm9, %v1990_v59, %v1991_v53  ;;  %v936_v17 = vsel %vm5451_vm11, %v4587_v19, %v5777_v9 }
 0x128   : > { %v2341_v12 = vshrl.u32 %v2102_v5, 16  ;;  %v2000_v38 = vsel %vm5289_vm9, %v1995_v43, %v1999_v33  ;;  %v4635_v21 = vcombine.low %v936_v17, %v945_v2  ;;  %v4588_v46 = vrot.slane %v947_v1, 11  ;;  %v572_v51 = vld [vmem:[#allocation2 + $0xd0] sm:$0x8]  ;;  %v6654_v17 = vpop.permute.xlu1 %3282 }
 0x129   : > { %777 = vst.msk [vmem:[#allocation2 + $0xc8] sm:$0xf] %vm513_vm0, %v4855_v22  ;;  %v959_v30 = vrot.slane %v7939_v3, 4  ;;  %v6606_v53 = vrot.slane %v1722_v7, 11  ;;  %v4721_v20 = vcombine.low %v1992_v37, %v2000_v38  ;;  %v4947_v9 = vunpack.c.h.bf16 %v4971_v61 }
 0x12a   : > { %v6608_v63 = vrot.slane %v2341_v12, 11  ;;  %v3511_v8 = vsel %vm3496_vm12, %v4635_v21, %v6453_v16  ;;  %v958_v58 = vsel %vm5451_vm11, %v4588_v46, %v7940_v11  ;;  %v418_v42 = vmul.f32 %v6346_v29, %v4946_v0  ;;  %v6656_v12 = vpop.permute.xlu0 %3474 }
 0x12b   : > { %v967_v14 = vsel %vm5451_vm11, %v959_v30, %v7941_v24  ;;  %3212 = vrot.lane.b32.xlu0 %v4721_v20, %s5166_s15  ;;  %v3555_v61 = vsel %vm3545_vm13, %v3511_v8, %v6431_v47  ;;  %v419_v41 = vmul.f32 %v6346_v29, %v4947_v9  ;;  %v573_v16 = vsel %vm5237_vm6, 0, %v572_v51 }
 0x12c   : > { %v4636_v44 = vcombine.low %v958_v58, %v967_v14  ;;  %v1842_v33 = vld [vmem:[#allocation2 + $0xcc] sm:$0x1]  ;;  %v6629_v32 = vadd.f32 %v6365_v56, %v418_v42  ;;  %574 = vst [vmem:[#allocation2 + $0xd0] sm:$0x8] %v573_v16  ;;  %v3588_v60 = vsel %vm3578_vm14, %v3555_v61, %v6455_v54  ;;  %v627_v19 = vsel %vm5229_vm3, 0, %v626_v15 }
 0x12d   : > { %v6633_v59 = vld [vmem:[#allocation2 + $0xcc] sm:$0x1]  ;;  %v2011_v2 = vshll.u32 %v1842_v33, 16  ;;  %v458_v6 = vadd.f32 %v6365_v56, %v419_v41  ;;  %628 = vst [vmem:[#allocation2 + $0xdc] sm:$0x1] %v627_v19  ;;  %v3621_v37 = vsel %vm3611_vm15, %v3588_v60, %v6488_v39  ;;  %v6680_v19 = vpop.permute.xlu1 %3394 }
 0x12e   : > { %v3514_v22 = vsel %vm3496_vm12, %v4636_v44, %v6486_v25  ;;  %v2638_v43 = vshll.u32 %v6633_v59, 16  ;;  %v6642_v5 = vld [vmem:[#allocation2 + $0xcc] sm:$0x1]  ;;  %v6644_v1 = vld [vmem:[#allocation2 + $0xc4] sm:$0xf]  ;;  %v489_v0 = vmax.f32 %v6629_v32, 0.0  ;;  %v6670_v39 = vsel %vm3644_vm2, %v3621_v37, %v6517_v35 }
 0x12f   : > { %v6646_v54 = vld [vmem:[#allocation2 + $0xc4] sm:$0xf]  ;;  %v3557_v7 = vsel %vm3545_vm13, %v3514_v22, %v6515_v34  ;;  %v1385_v25 = vshll.u32 %v6642_v5, 16  ;;  %v1727_v21 = vshrl.u32 %v6644_v1, 16  ;;  %v1730_v46 = vshll.u32 %v6644_v1, 16  ;;  %v6682_v22 = vpop.permute.xlu0 %2932 }
 0x130   : > { %v6658_v38 = vld [vmem:[#allocation2 + $0xc8] sm:$0xf]  ;;  %v6666_v34 = vsel %vm3578_vm14, %v3557_v7, %v6544_v27  ;;  %v2346_v9 = vshrl.u32 %v6646_v54, 16  ;;  %v2349_v8 = vshll.u32 %v6646_v54, 16 }
 0x131   : > { %v6662_v3 = vld [vmem:[#allocation2 + $0xc8] sm:$0xf]  ;;  %v1736_v30 = vshrl.u32 %v6658_v38, 16  ;;  %v1739_v51 = vshll.u32 %v6658_v38, 16  ;;  %v4706_v20 = vcombine.low %v6644_v1, %v6658_v38  ;;  %v1729_v15 = vrot.slane %v1727_v21, 7 }
 0x132   : > { %v2355_v11 = vshrl.u32 %v6662_v3, 16  ;;  %v2358_v27 = vshll.u32 %v6662_v3, 16  ;;  %v2348_v24 = vrot.slane %v2346_v9, 7  ;;  %v2001_v35 = vrot.slane %v1727_v21, 4 }
 0x133   : > { %v1738_v58 = vrot.slane %v1736_v30, 7  ;;  %v2002_v14 = vrot.slane %v1730_v46, 5  ;;  %v1732_v42 = vor.u32 %v1730_v46, %v1729_v15  ;;  %v1734_v61 = vrot.slane %v1729_v15, 4  ;;  %v2105_v21 = vld [vmem:[#allocation2 + $0xd0] sm:$0x8] }
 0x134   : > { %v2357_v44 = vrot.slane %v2355_v11, 7  ;;  %v2005_v41 = vrot.slane %v1739_v51, 5  ;;  %v2351_v33 = vor.u32 %v2349_v8, %v2348_v24  ;;  %v2353_v32 = vrot.slane %v2348_v24, 4 }
 0x135   : > { %v1741_v16 = vor.u32 %v1739_v51, %v1738_v58  ;;  %v2003_v60 = vor.u32 %v2002_v14, %v2001_v35  ;;  %v1733_v1 = vsel %vm5451_vm11, %v6606_v53, %v1732_v42  ;;  %v2007_v37 = vrot.slane %v1736_v30, 4 }
 0x136   : > { %v2360_v7 = vor.u32 %v2358_v27, %v2357_v44  ;;  %v2013_v38 = vrot.slane %v2011_v2, 5  ;;  %v2352_v51 = vsel %vm5451_vm11, %v6608_v63, %v2351_v33  ;;  %v4753_v58 = vcombine.low %v6646_v54, %v6662_v3  ;;  %v2483_v44 = vld [vmem:[#allocation2 + $0xdc] sm:$0x1] }
 0x137   : > { %v1742_v46 = vsel %vm5451_vm11, %v1734_v61, %v1741_v16  ;;  %v2004_v15 = vrot.slane %v2003_v60, 4  ;;  %v2008_v53 = vor.u32 %v2007_v37, %v2005_v41  ;;  %v490_v14 = vmax.f32 %v458_v6, 0.0  ;;  %v6698_v16 = vld [vmem:[#allocation2 + $0xc4] sm:$0xf]  ;;  %v6701_v60 = vld [vmem:[#allocation2 + $0xc8] sm:$0xf] }
 0x138   : > { %v4690_v24 = vcombine.low %v1733_v1, %v1742_v46  ;;  %v2361_v35 = vsel %vm5451_vm11, %v2353_v32, %v2360_v7  ;;  %v4856_v42 = vpack.c.bf16 %v489_v0, %v489_v0  ;;  %v2363_v61 = vshrl.u32 %v2105_v21, 16  ;;  %v6709_v1 = vpop.permute.xlu1 %2852  ;;  %v6711_v7 = vpop.permute.xlu0 %3012 }
 0x139   : > { %v4737_v30 = vcombine.low %v2352_v51, %v2361_v35  ;;  %v2006_v2 = vsel %vm5289_vm9, %v2004_v15, %v2005_v41  ;;  %v2009_v63 = vrot.slane %v2008_v53, 4  ;;  %v4857_v33 = vpack.c.bf16 %v490_v14, %v490_v14 }
 0x13a   : > { %3022 = vrot.lane.b32.xlu1 %v4690_v24, %s5164_s13  ;;  %v2628_v54 = vrot.slane %v2346_v9, 4  ;;  %v2629_v3 = vrot.slane %v2349_v8, 5  ;;  %778 = vst.msk [vmem:[#allocation2 + $0xd4] sm:$0xf] %vm513_vm0, %v4856_v42  ;;  %v6705_v6 = vrot.slane %v2363_v61, 11  ;;  %v2632_v41 = vrot.slane %v2358_v27, 5 }
 0x13b   : > { %3292 = vrot.lane.b32.xlu0 %v4737_v30, %s5165_s14  ;;  %v2634_v0 = vrot.slane %v2355_v11, 4  ;;  %v2640_v32 = vrot.slane %v2638_v43, 5  ;;  %v2014_v9 = vsel %vm5289_vm9, %v2009_v63, %v2013_v38  ;;  %779 = vst.msk [vmem:[#allocation2 + $0xd8] sm:$0xf] %vm513_vm0, %v4857_v33  ;;  %v2652_v37 = vshll.u32 %v2483_v44, 16 }
 0x13c   : > { %v2630_v8 = vor.u32 %v2629_v3, %v2628_v54  ;;  %v1106_v21 = vshrl.u32 %v6698_v16, 16  ;;  %v4722_v46 = vcombine.low %v2006_v2, %v2014_v9  ;;  %v1109_v11 = vshll.u32 %v6698_v16, 16  ;;  %v6737_v33 = vpop.permute.xlu1 %2854  ;;  %v6739_v54 = vpop.permute.xlu0 %3124 }
 0x13d   : > { %v2635_v51 = vor.u32 %v2634_v0, %v2632_v41  ;;  %v1115_v59 = vshrl.u32 %v6701_v60, 16  ;;  %v6720_v27 = vrot.slane %v2652_v37, 5  ;;  %v1118_v38 = vshll.u32 %v6701_v60, 16 }
 0x13e   : > { %3134 = vrot.lane.b32.xlu1 %v4706_v20, %s5162_s11  ;;  %v2631_v43 = vrot.slane %v2630_v8, 4  ;;  %v6722_v15 = vrot.slane %v1106_v21, 7  ;;  %v1375_v53 = vrot.slane %v1106_v21, 4  ;;  %v1376_v14 = vrot.slane %v1109_v11, 5 }
 0x13f   : > { %3404 = vrot.lane.b32.xlu0 %v4753_v58, %s5163_s12  ;;  %v2636_v24 = vrot.slane %v2635_v51, 4  ;;  %v1117_v35 = vrot.slane %v1115_v59, 7  ;;  %v1379_v20 = vrot.slane %v1118_v38, 5  ;;  %v1381_v42 = vrot.slane %v1115_v59, 4 }
 0x140   : > { %v2633_v30 = vsel %vm5289_vm9, %v2631_v43, %v2632_v41  ;;  %v6729_v2 = vor.u32 %v1109_v11, %v6722_v15  ;;  %v1377_v63 = vor.u32 %v1376_v14, %v1375_v53  ;;  %v1387_v9 = vrot.slane %v1385_v25, 5 }
 0x141   : > { %v2641_v61 = vsel %vm5289_vm9, %v2636_v24, %v2640_v32  ;;  %v6733_v44 = vor.u32 %v1118_v38, %v1117_v35  ;;  %v6742_v3 = vld [vmem:[#allocation2 + $0xd4] sm:$0xf]  ;;  %v1382_v0 = vor.u32 %v1381_v42, %v1379_v20  ;;  %v3623_v32 = vsel %vm3611_vm15, %v6666_v34, %v6577_v26 }
 0x142   : > { %7942 = vst [vmem:[#allocation9_spill] sm:$0xff] %v6729_v2  ;;  %3214 = vrot.lane.b32.xlu1 %v4722_v46, %s5166_s15  ;;  %v4769_v41 = vcombine.low %v2633_v30, %v2641_v61  ;;  %v6749_v8 = vld [vmem:[#allocation2 + $0xd4] sm:$0xf]  ;;  %v6751_v37 = vld [vmem:[#allocation2 + $0xd8] sm:$0xf]  ;;  %v2368_v21 = vshrl.u32 %v6742_v3, 16 }
 0x143   : > { %7943 = vst [vmem:[#allocation5_spill] sm:$0xff] %v6733_v44  ;;  %v2371_v51 = vshll.u32 %v6742_v3, 16  ;;  %v1378_v46 = vrot.slane %v1377_v63, 4  ;;  %v1128_v11 = vshrl.u32 %v6749_v8, 16  ;;  %v2377_v59 = vshrl.u32 %v6751_v37, 16 }
 0x144   : > { %v2380_v43 = vshll.u32 %v6751_v37, 16  ;;  %3484 = vrot.lane.b32.xlu0 %v4769_v41, %s5167_s16  ;;  %v4754_v26 = vcombine.low %v6742_v3, %v6751_v37  ;;  %v1383_v5 = vrot.slane %v1382_v0, 4  ;;  %v2370_v25 = vrot.slane %v2368_v21, 7  ;;  %v6765_v42 = vld [vmem:[#allocation2 + $0xd8] sm:$0xf]  ;;  %v6767_v3 = vpop.permute.xlu1 %2934  ;;  %v6769_v0 = vpop.permute.xlu0 %3204 }
 0x145   : > { %v2642_v34 = vrot.slane %v2368_v21, 4  ;;  %v2643_v38 = vrot.slane %v2371_v51, 5  ;;  %v1380_v24 = vsel %vm5289_vm9, %v1378_v46, %v1379_v20  ;;  %v2379_v35 = vrot.slane %v2377_v59, 7 }
 0x146   : > { %v2646_v53 = vrot.slane %v2380_v43, 5  ;;  %v2648_v14 = vrot.slane %v2377_v59, 4  ;;  %v1388_v30 = vsel %vm5289_vm9, %v1383_v5, %v1387_v9  ;;  %v2373_v61 = vor.u32 %v2371_v51, %v2370_v25 }
 0x147   : > { %v2375_v63 = vrot.slane %v2370_v25, 4  ;;  %v2644_v41 = vor.u32 %v2643_v38, %v2642_v34  ;;  %v4675_v58 = vcombine.low %v1380_v24, %v1388_v30  ;;  %v2382_v37 = vor.u32 %v2380_v43, %v2379_v35  ;;  %v6786_v30 = vld [vmem:[#allocation2 + $0xd4] sm:$0xf] }
 0x148   : > { %v2649_v21 = vor.u32 %v2648_v14, %v2646_v53  ;;  %v6771_v47 = vrot.slane %v1128_v11, 7  ;;  %v1131_v20 = vshll.u32 %v6749_v8, 16  ;;  %v2374_v9 = vsel %vm5451_vm11, %v6705_v6, %v2373_v61  ;;  %v1467_v6 = vld [vmem:[#allocation2 + $0xd0] sm:$0x8] }
 0x149   : > { %v2645_v46 = vrot.slane %v2644_v41, 4  ;;  %v1137_v51 = vshrl.u32 %v6765_v42, 16  ;;  %v1140_v59 = vshll.u32 %v6765_v42, 16  ;;  %v2383_v5 = vsel %vm5451_vm11, %v2375_v63, %v2382_v37 }
 0x14a   : > { %7944 = vst [vmem:[#allocation4_spill] sm:$0xff] %v6771_v47  ;;  %v2650_v25 = vrot.slane %v2649_v21, 4  ;;  %v6782_v43 = vor.u32 %v1131_v20, %v6771_v47  ;;  %v1389_v34 = vrot.slane %v1128_v11, 4  ;;  %v4738_v38 = vcombine.low %v2374_v9, %v2383_v5  ;;  %v6793_v21 = vld [vmem:[#allocation2 + $0xd8] sm:$0xf]  ;;  %v6801_v5 = vpop.permute.xlu1 %3014  ;;  %v7974_v36 = vld [vmem:[#allocation5_spill] sm:$0xff] }
 0x14b   : > { %v2647_v24 = vsel %vm5289_vm9, %v2645_v46, %v2646_v53  ;;  %v1139_v35 = vrot.slane %v1137_v51, 7  ;;  %v1390_v14 = vrot.slane %v1131_v20, 5  ;;  %v1393_v41 = vrot.slane %v1140_v59, 5  ;;  %v1201_v46 = vld [vmem:[#allocation2 + $0xdc] sm:$0x1] }
 0x14c   : > { %7945 = vst [vmem:[#allocation17_spill] sm:$0xff] %v6782_v43  ;;  %v2655_v61 = vsel %vm5289_vm9, %v2650_v25, %v6720_v27  ;;  %v1395_v63 = vrot.slane %v1137_v51, 4  ;;  %3294 = vrot.lane.b32.xlu1 %v4738_v38, %s5165_s14  ;;  %v3687_v9 = vsel %vm3677_vm4, %v6670_v39, %v6546_v49  ;;  %v6803_v27 = vpop.permute.xlu0 %3284  ;;  %v3656_v25 = vsel %vm3644_vm2, %v3623_v32, %v6602_v52 }
 0x14d   : > { %v4770_v11 = vcombine.low %v2647_v24, %v2655_v61  ;;  %v6796_v53 = vor.u32 %v1140_v59, %v1139_v35  ;;  %v1391_v20 = vor.u32 %v1390_v14, %v1389_v34  ;;  %v1744_v37 = vshrl.u32 %v1467_v6, 16 }
 0x14e   : > { %v1396_v51 = vor.u32 %v1395_v63, %v1393_v41  ;;  %v1749_v38 = vshrl.u32 %v6786_v30, 16  ;;  %v1752_v59 = vshll.u32 %v6786_v30, 16  ;;  %v1758_v34 = vshrl.u32 %v6793_v21, 16  ;;  %v575_v63 = vld [vmem:[#allocation2 + $0xe0] sm:$0x8] }
 0x14f   : > { %7946 = vst [vmem:[#allocation18_spill] sm:$0xff] %v6796_v53  ;;  %3486 = vrot.lane.b32.xlu0 %v4770_v11, %s5167_s16  ;;  %v1761_v49 = vshll.u32 %v6793_v21, 16  ;;  %v1392_v39 = vrot.slane %v1391_v20, 4  ;;  %v4611_v24 = vrot.slane %v1744_v37, 11  ;;  %v1399_v61 = vshll.u32 %v1201_v46, 16 }
 0x150   : > { %v1751_v35 = vrot.slane %v1749_v38, 7  ;;  %v1397_v14 = vrot.slane %v1396_v51, 4  ;;  %3406 = vrot.lane.b32.xlu1 %v4754_v26, %s5163_s12  ;;  %v1760_v52 = vrot.slane %v1758_v34, 7  ;;  %v3720_v6 = vsel %vm3710_vm5, %v3687_v9, %v6579_v10  ;;  %v6828_v9 = vpop.permute.xlu1 %3126 }
 0x151   : > { %v1394_v32 = vsel %vm5289_vm9, %v1392_v39, %v1393_v41  ;;  %v3689_v11 = vsel %vm3677_vm4, %v3656_v25, %v6654_v17  ;;  %v1401_v20 = vrot.slane %v1399_v61, 5  ;;  %v4707_v37 = vcombine.low %v6786_v30, %v6793_v21  ;;  %v6830_v17 = vpop.permute.xlu0 %3396  ;;  %v1843_v21 = vld [vmem:[#allocation2 + $0xdc] sm:$0x1]  ;;  %v804_v61 = vld [vmem:[#allocation2 + $0x60] sm:$0x8] }
 0x152   : > { %v1754_v43 = vor.u32 %v1752_v59, %v1751_v35  ;;  %v1756_v53 = vrot.slane %v1751_v35, 4  ;;  %v1763_v46 = vor.u32 %v1761_v49, %v1760_v52  ;;  %v4951_v26 = vunpack.c.h.bf16 %v6611_v18 }
 0x153   : > { %2944 = vrot.lane.b32.xlu0 %v4675_v58, %s5161_s10  ;;  %v7947_v51 = vunpack.c.l.bf16 %v6611_v18  ;;  %v576_v10 = vsel %vm5237_vm6, 0, %v575_v63  ;;  %v1402_v58 = vsel %vm5289_vm9, %v1397_v14, %v1401_v20  ;;  %v3753_v30 = vsel %vm3743_vm7, %v3720_v6, %v6604_v13  ;;  %v629_v20 = vld [vmem:[#allocation2 + $0xec] sm:$0x1] }
 0x154   : > { %v1755_v25 = vsel %vm5451_vm11, %v4611_v24, %v1754_v43  ;;  %577 = vst [vmem:[#allocation2 + $0xe0] sm:$0x8] %v576_v10  ;;  %v3722_v18 = vsel %vm3710_vm5, %v3689_v11, %v6680_v19  ;;  %v7948_v39 = vcombine.low %v6698_v16, %v6701_v60  ;;  %v1764_v35 = vsel %vm5451_vm11, %v1756_v53, %v1763_v46  ;;  %v7949_v46 = vld [vmem:[#allocation3_spill] sm:$0xff]  ;;  %v6860_v10 = vpop.permute.xlu1 %3206 }
 0x155   : > { %v420_v41 = vmul.f32 %v6346_v29, %v7947_v51  ;;  %v4676_v43 = vcombine.low %v1394_v32, %v1402_v58  ;;  %v421_v24 = vmul.f32 %v6346_v29, %v4951_v26  ;;  %v4691_v63 = vcombine.low %v1755_v25, %v1764_v35  ;;  %5014 = vmatprep.mubr.msk.bf16.mxu0 %vm3812_vm8, %v3753_v30  ;;  %v6862_v25 = vpop.permute.xlu0 %3476  ;;  %v7951_v30 = vld [vmem:[#allocation6_spill] sm:$0xff] }
 0x156   : > { %2864 = vrot.lane.b32.xlu1 %v7948_v39, %s5160_s7  ;;  %v2015_v13 = vrot.slane %v1749_v38, 4  ;;  %v2016_v52 = vrot.slane %v1752_v59, 5  ;;  %v2019_v19 = vrot.slane %v1761_v49, 5  ;;  %v2021_v60 = vrot.slane %v1758_v34, 4  ;;  %v807_v38 = vld [vmem:[#allocation2 + $0x70] sm:$0x8] }
 0x157   : > { %v459_v14 = vadd.f32 %v6365_v56, %v420_v41  ;;  %v460_v6 = vadd.f32 %v6365_v56, %v421_v24  ;;  %v2025_v11 = vshll.u32 %v1843_v21, 16  ;;  %3024 = vrot.lane.b32.xlu0 %v4691_v63, %s5164_s13  ;;  %v3755_v29 = vsel %vm3743_vm7, %v3722_v18, %v6656_v12  ;;  %v4973_v59 = vld [vmem:[%s5253_s28 + $0x70] sm:$0xff]  }
 0x158   : > { %v2017_v53 = vor.u32 %v2016_v52, %v2015_v13  ;;  %v969_v32 = vshrl.u32 %v804_v61, 16  ;;  %v981_v26 = vrot.slane %v7949_v46, 4  ;;  %v7950_v49 = vcombine.low %v6749_v8, %v6765_v42  ;;  %5015 = vmatmul.mubr.msk.bf16.gmra.mrb[8].mxu0 %vm3812_vm8, %v3755_v29  ;;  %v7952_v13 = vld [vmem:[#allocation7_spill] sm:$0xff] }
 0x159   : > { %v491_v16 = vmax.f32 %v459_v14, 0.0  ;;  %v492_v56 = vmax.f32 %v460_v6, 0.0  ;;  %v2022_v51 = vor.u32 %v2021_v60, %v2019_v19  ;;  %v2027_v41 = vrot.slane %v2025_v11, 5 }
 0x15a   : > { %2866 = vrot.lane.b32.xlu1 %v7950_v49, %s5160_s7  ;;  %v2018_v12 = vrot.slane %v2017_v53, 4  ;;  %v4589_v58 = vrot.slane %v969_v32, 11  ;;  %v989_v18 = vsel %vm5451_vm11, %v981_v26, %v7951_v30  ;;  %v630_v8 = vsel %vm5229_vm3, 0, %v629_v20  ;;  %v578_v53 = vld [vmem:[#allocation2 + $0xf0] sm:$0x8]  ;;  %v7954_v49 = vld [vmem:[#allocation15_spill] sm:$0xff] }
 0x15b   : > { %v4858_v34 = vpack.c.bf16 %v491_v16, %v491_v16  ;;  %v4859_v42 = vpack.c.bf16 %v492_v56, %v492_v56  ;;  %v1470_v21 = vld [vmem:[#allocation2 + $0xe0] sm:$0x8]  ;;  %v2023_v39 = vrot.slane %v2022_v51, 4  ;;  %631 = vst [vmem:[#allocation2 + $0xec] sm:$0x1] %v630_v8  ;;  %v991_v24 = vshrl.u32 %v807_v38, 16  ;;  %3136 = vrot.lane.b32.xlu0 %v4707_v37, %s5162_s11 }
 0x15c   : > { %v2108_v35 = vld [vmem:[#allocation2 + $0xe0] sm:$0x8]  ;;  %v4954_v14 = vunpack.c.l.bf16 %v4973_v59  ;;  %v1766_v61 = vshrl.u32 %v1470_v21, 16  ;;  %v2020_v63 = vsel %vm5289_vm9, %v2018_v12, %v2019_v19  ;;  %v980_v52 = vsel %vm5451_vm11, %v4589_v58, %v7952_v13  ;;  %v7953_v37 = vld [vmem:[#allocation14_spill] sm:$0xff]  ;;  %v6902_v12 = vpop.permute.xlu1 %3286  ;;  %v6904_v58 = vpop.permute.xlu0 %3478 }
 0x15d   : > { %780 = vst.msk [vmem:[#allocation2 + $0xe4] sm:$0xf] %vm513_vm0, %v4858_v34  ;;  %v2385_v6 = vshrl.u32 %v2108_v35, 16  ;;  %781 = vst.msk [vmem:[#allocation2 + $0xe8] sm:$0xf] %vm513_vm0, %v4859_v42  ;;  %v2028_v16 = vsel %vm5289_vm9, %v2023_v39, %v2027_v41  ;;  %v4637_v60 = vcombine.low %v980_v52, %v989_v18  ;;  %v4590_v11 = vrot.slane %v991_v24, 11 }
 0x15e   : > { %2946 = vrot.lane.b32.xlu1 %v4676_v43, %s5161_s10  ;;  %v1003_v20 = vrot.slane %v7953_v37, 4  ;;  %v6881_v29 = vrot.slane %v1766_v61, 11  ;;  %v4723_v19 = vcombine.low %v2020_v63, %v2028_v16  ;;  %v4955_v46 = vunpack.c.h.bf16 %v4973_v59  ;;  %v632_v26 = vld [vmem:[#allocation2 + $0xfc] sm:$0x1]  ;;  %v7955_v34 = vld [vmem:[#allocation16_spill] sm:$0xff] }
 0x15f   : > { %v6883_v32 = vrot.slane %v2385_v6, 11  ;;  %v6886_v38 = vld [vmem:[%s5253_s28 + $0x78] sm:$0xff]   ;;  %v3517_v43 = vsel %vm3496_vm12, %v4637_v60, %v6709_v1  ;;  %v1002_v56 = vsel %vm5451_vm11, %v4590_v11, %v7954_v49  ;;  %v6899_v41 = vld [vmem:[%s7831_s1] ss:$0 sm:$0xff]  ;;  %v579_v8 = vsel %vm5237_vm6, 0, %v578_v53 }
 0x160   : > { %v1011_v51 = vsel %vm5451_vm11, %v1003_v20, %v7955_v34  ;;  %v422_v59 = vmul.f32 %v6899_v41, %v4954_v14  ;;  %3216 = vrot.lane.b32.xlu0 %v4723_v19, %s5166_s15  ;;  %v3559_v1 = vsel %vm3545_vm13, %v3517_v43, %v6682_v22  ;;  %v423_v18 = vmul.f32 %v6899_v41, %v4955_v46  ;;  %v6915_v42 = vld [vmem:[%s7832_s2] ss:$0 sm:$0xff]  ;;  %v6953_v34 = vpop.permute.xlu0 %2936 }
 0x161   : > { %v4638_v30 = vcombine.low %v1002_v56, %v1011_v51  ;;  %580 = vst [vmem:[#allocation2 + $0xf0] sm:$0x8] %v579_v8  ;;  %v3592_v39 = vsel %vm3578_vm14, %v3559_v1, %v6711_v7  ;;  %v633_v22 = vsel %vm5229_vm3, 0, %v632_v26  ;;  %v6951_v56 = vpop.permute.xlu1 %3398 }
 0x162   : > { %v461_v21 = vadd.f32 %v6915_v42, %v422_v59  ;;  %v1844_v61 = vld [vmem:[#allocation2 + $0xec] sm:$0x1]  ;;  %v462_v13 = vadd.f32 %v6915_v42, %v423_v18  ;;  %v3625_v52 = vsel %vm3611_vm15, %v3592_v39, %v6739_v54  ;;  %634 = vst [vmem:[#allocation2 + $0xfc] sm:$0x1] %v633_v22 }
 0x163   : > { %v3520_v63 = vsel %vm3496_vm12, %v4638_v30, %v6737_v33  ;;  %v2039_v33 = vshll.u32 %v1844_v61, 16  ;;  %v6945_v19 = vsel %vm3644_vm2, %v3625_v52, %v6769_v0 }
 0x164   : > { %v6923_v24 = vld [vmem:[#allocation2 + $0xe4] sm:$0xf]  ;;  %v6937_v37 = vld [vmem:[#allocation2 + $0xe8] sm:$0xf]  ;;  %v493_v53 = vmax.f32 %v461_v21, 0.0  ;;  %v3561_v54 = vsel %vm3545_vm13, %v3520_v63, %v6767_v3  ;;  %v494_v44 = vmax.f32 %v462_v13, 0.0 }
 0x165   : > { %v6925_v14 = vld [vmem:[#allocation2 + $0xe4] sm:$0xf]  ;;  %v1771_v6 = vshrl.u32 %v6923_v24, 16  ;;  %v1774_v16 = vshll.u32 %v6923_v24, 16  ;;  %v6939_v20 = vld [vmem:[#allocation2 + $0xe8] sm:$0xf] }
 0x166   : > { %v2390_v60 = vshrl.u32 %v6925_v14, 16  ;;  %v2393_v11 = vshll.u32 %v6925_v14, 16  ;;  %v1780_v26 = vshrl.u32 %v6937_v37, 16  ;;  %v1783_v43 = vshll.u32 %v6937_v37, 16 }
 0x167   : > { %v1773_v46 = vrot.slane %v1771_v6, 7  ;;  %v2399_v59 = vshrl.u32 %v6939_v20, 16  ;;  %v2402_v3 = vshll.u32 %v6939_v20, 16  ;;  %v2029_v1 = vrot.slane %v1771_v6, 4 }
 0x168   : > { %v2392_v51 = vrot.slane %v2390_v60, 7  ;;  %v1782_v18 = vrot.slane %v1780_v26, 7  ;;  %v2030_v8 = vrot.slane %v1774_v16, 5  ;;  %v2033_v61 = vrot.slane %v1783_v43, 5  ;;  %v2111_v49 = vld [vmem:[#allocation2 + $0xf0] sm:$0x8] }
 0x169   : > { %v1776_v0 = vor.u32 %v1774_v16, %v1773_v46  ;;  %v1778_v30 = vrot.slane %v1773_v46, 4  ;;  %v2401_v22 = vrot.slane %v2399_v59, 7  ;;  %v2035_v35 = vrot.slane %v1780_v26, 4 }
 0x16a   : > { %v2395_v21 = vor.u32 %v2393_v11, %v2392_v51  ;;  %v2397_v39 = vrot.slane %v2392_v51, 4  ;;  %v1785_v52 = vor.u32 %v1783_v43, %v1782_v18  ;;  %v2031_v7 = vor.u32 %v2030_v8, %v2029_v1  ;;  %v6969_v43 = vpop.permute.xlu0 %3016 }
 0x16b   : > { %v1777_v63 = vsel %vm5451_vm11, %v6881_v29, %v1776_v0  ;;  %v2404_v2 = vor.u32 %v2402_v3, %v2401_v22  ;;  %v2041_v46 = vrot.slane %v2039_v33, 5  ;;  %v4755_v16 = vcombine.low %v6925_v14, %v6939_v20  ;;  %v6967_v29 = vpop.permute.xlu1 %2856  ;;  %v2484_v33 = vld [vmem:[#allocation2 + $0xec] sm:$0x1] }
 0x16c   : > { %v2396_v6 = vsel %vm5451_vm11, %v6883_v32, %v2395_v21  ;;  %v1786_v51 = vsel %vm5451_vm11, %v1778_v30, %v1785_v52  ;;  %v2032_v47 = vrot.slane %v2031_v7, 4  ;;  %v2036_v40 = vor.u32 %v2035_v35, %v2033_v61  ;;  %v2485_v7 = vld [vmem:[#allocation2 + $0xfc] sm:$0x1]  ;;  %v6975_v35 = vld [vmem:[#allocation2 + $0xe4] sm:$0xf] }
 0x16d   : > { %v4692_v26 = vcombine.low %v1777_v63, %v1786_v51  ;;  %v2405_v1 = vsel %vm5451_vm11, %v2397_v39, %v2404_v2  ;;  %v4860_v32 = vpack.c.bf16 %v493_v53, %v493_v53  ;;  %v2407_v0 = vshrl.u32 %v2111_v49, 16  ;;  %7956 = vst [vmem:[#allocation3_spill] sm:$0xff] %v6975_v35  ;;  %v6981_v49 = vld [vmem:[#allocation2 + $0xe8] sm:$0xf] }
 0x16e   : > { %v4739_v18 = vcombine.low %v2396_v6, %v2405_v1  ;;  %v2034_v14 = vsel %vm5289_vm9, %v2032_v47, %v2033_v61  ;;  %v2037_v20 = vrot.slane %v2036_v40, 4  ;;  %v4861_v30 = vpack.c.bf16 %v494_v44, %v494_v44  ;;  %7957 = vst [vmem:[#allocation6_spill] sm:$0xff] %v6981_v49  ;;  %v1202_v6 = vld [vmem:[#allocation2 + $0xec] sm:$0x1]  ;;  %v6994_v51 = vpop.permute.xlu0 %3128 }
 0x16f   : > { %3026 = vrot.lane.b32.xlu1 %v4692_v26, %s5164_s13  ;;  %782 = vst.msk [vmem:[#allocation2 + $0xf4] sm:$0xf] %vm513_vm0, %v4860_v32  ;;  %v6979_v13 = vrot.slane %v2407_v0, 11  ;;  %v2656_v8 = vrot.slane %v2390_v60, 4  ;;  %v2657_v2 = vrot.slane %v2393_v11, 5  ;;  %v2660_v53 = vrot.slane %v2402_v3, 5 }
 0x170   : > { %3296 = vrot.lane.b32.xlu0 %v4739_v18, %s5165_s14  ;;  %v2042_v40 = vsel %vm5289_vm9, %v2037_v20, %v2041_v46  ;;  %783 = vst.msk [vmem:[#allocation2 + $0xf8] sm:$0xf] %vm513_vm0, %v4861_v30  ;;  %v2662_v47 = vrot.slane %v2399_v59, 4  ;;  %v2666_v44 = vshll.u32 %v2484_v33, 16  ;;  %v3594_v21 = vsel %vm3578_vm14, %v3561_v54, %v6801_v5  ;;  %v6992_v46 = vpop.permute.xlu1 %2858 }
 0x171   : > { %v4724_v39 = vcombine.low %v2034_v14, %v2042_v40  ;;  %v2658_v22 = vor.u32 %v2657_v2, %v2656_v8  ;;  %v2680_v61 = vshll.u32 %v2485_v7, 16  ;;  %v7861_v60 = vshrl.u32 %v6975_v35, 16 }
 0x172   : > { %v2663_v11 = vor.u32 %v2662_v47, %v2660_v53  ;;  %v2668_v3 = vrot.slane %v2666_v44, 5  ;;  %v7859_v63 = vshll.u32 %v6975_v35, 16  ;;  %v7855_v52 = vshrl.u32 %v6981_v49, 16 }
 0x173   : > { %v7958_v5 = vcombine.low %v6923_v24, %v6937_v37  ;;  %v2659_v54 = vrot.slane %v2658_v22, 4  ;;  %v7000_v59 = vrot.slane %v2680_v61, 5  ;;  %v7854_v26 = vshll.u32 %v6981_v49, 16  ;;  %v7042_v61 = vpop.permute.xlu0 %3208 }
 0x174   : > { %v1403_v1 = vrot.slane %v7861_v60, 4  ;;  %3408 = vrot.lane.b32.xlu0 %v4755_v16, %s5163_s12  ;;  %v2664_v32 = vrot.slane %v2663_v11, 4  ;;  %v1404_v0 = vrot.slane %v7859_v63, 5  ;;  %v1409_v33 = vrot.slane %v7855_v52, 4 }
 0x175   : > { %3138 = vrot.lane.b32.xlu1 %v7958_v5, %s5162_s11  ;;  %v4661_v24 = vcombine.low %v6975_v35, %v6981_v49  ;;  %v2661_v37 = vsel %vm5289_vm9, %v2659_v54, %v2660_v53  ;;  %v3627_v18 = vsel %vm3611_vm15, %v3594_v21, %v6828_v9  ;;  %v1407_v14 = vrot.slane %v7854_v26, 5 }
 0x176   : > { %v1413_v16 = vshll.u32 %v1202_v6, 16  ;;  %v7018_v20 = vld [vmem:[#allocation2 + $0xf4] sm:$0xf]  ;;  %v2669_v30 = vsel %vm5289_vm9, %v2664_v32, %v2668_v3  ;;  %v1405_v7 = vor.u32 %v1404_v0, %v1403_v1  ;;  %v7025_v8 = vsel %vm3677_vm4, %v6945_v19, %v6803_v27 }
 0x177   : > { %v7029_v2 = vsel %vm3644_vm2, %v3627_v18, %v6860_v10  ;;  %v7032_v9 = vld [vmem:[#allocation2 + $0xf8] sm:$0xf]  ;;  %v2412_v53 = vshrl.u32 %v7018_v20, 16  ;;  %v2415_v40 = vshll.u32 %v7018_v20, 16  ;;  %v4771_v47 = vcombine.low %v2661_v37, %v2669_v30  ;;  %v7040_v10 = vpop.permute.xlu1 %2938  ;;  %v7045_v5 = vld [vmem:[#allocation2 + $0xf4] sm:$0xf] }
 0x178   : > { %v1410_v44 = vor.u32 %v1409_v33, %v1407_v14  ;;  %v2421_v21 = vshrl.u32 %v7032_v9, 16  ;;  %v2424_v22 = vshll.u32 %v7032_v9, 16  ;;  %v4756_v27 = vcombine.low %v7018_v20, %v7032_v9  ;;  %7959 = vst [vmem:[#allocation7_spill] sm:$0xff] %v7045_v5  ;;  %v7049_v33 = vld [vmem:[#allocation2 + $0xf8] sm:$0xf] }
 0x179   : > { %3218 = vrot.lane.b32.xlu1 %v4724_v39, %s5166_s15  ;;  %v1406_v19 = vrot.slane %v1405_v7, 4  ;;  %v2414_v39 = vrot.slane %v2412_v53, 7  ;;  %3488 = vrot.lane.b32.xlu0 %v4771_v47, %s5167_s16  ;;  %v2670_v11 = vrot.slane %v2412_v53, 4  ;;  %v2671_v3 = vrot.slane %v2415_v40, 5  ;;  %7960 = vst [vmem:[#allocation14_spill] sm:$0xff] %v7049_v33 }
 0x17a   : > { %v1411_v6 = vrot.slane %v1410_v44, 4  ;;  %v2423_v54 = vrot.slane %v2421_v21, 7  ;;  %v2674_v1 = vrot.slane %v2424_v22, 5  ;;  %v2676_v32 = vrot.slane %v2421_v21, 4 }
 0x17b   : > { %v1408_v0 = vsel %vm5289_vm9, %v1406_v19, %v1407_v14  ;;  %v2417_v37 = vor.u32 %v2415_v40, %v2414_v39  ;;  %v2419_v18 = vrot.slane %v2414_v39, 4  ;;  %v2672_v30 = vor.u32 %v2671_v3, %v2670_v11  ;;  %v1473_v40 = vld [vmem:[#allocation2 + $0xf0] sm:$0x8]  ;;  %v7062_v3 = vld [vmem:[#allocation2 + $0xf4] sm:$0xf] }
 0x17c   : > { %v1415_v7 = vrot.slane %v1413_v16, 5  ;;  %v2426_v26 = vor.u32 %v2424_v22, %v2423_v54  ;;  %v2677_v52 = vor.u32 %v2676_v32, %v2674_v1  ;;  %v7858_v53 = vshrl.u32 %v7045_v5, 16  ;;  %v7064_v54 = vld [vmem:[#allocation2 + $0xf8] sm:$0xf]  ;;  %v7066_v32 = vpop.permute.xlu1 %3018 }
 0x17d   : > { %v7856_v47 = vshll.u32 %v7045_v5, 16  ;;  %v2418_v44 = vsel %vm5451_vm11, %v6979_v13, %v2417_v37  ;;  %v2673_v21 = vrot.slane %v2672_v30, 4  ;;  %v7857_v19 = vshrl.u32 %v7049_v33, 16  ;;  %v7068_v13 = vpop.permute.xlu0 %3288 }
 0x17e   : > { %v1416_v14 = vsel %vm5289_vm9, %v1411_v6, %v1415_v7  ;;  %v2427_v16 = vsel %vm5451_vm11, %v2419_v18, %v2426_v26  ;;  %v2678_v22 = vrot.slane %v2677_v52, 4  ;;  %v7860_v11 = vshll.u32 %v7049_v33, 16 }
 0x17f   : > { %v4677_v39 = vcombine.low %v1408_v0, %v1416_v14  ;;  %v4740_v37 = vcombine.low %v2418_v44, %v2427_v16  ;;  %v2675_v6 = vsel %vm5289_vm9, %v2673_v21, %v2674_v1  ;;  %v1417_v30 = vrot.slane %v7858_v53, 4  ;;  %v1203_v44 = vld [vmem:[#allocation2 + $0xfc] sm:$0x1] }
 0x180   : > { %v1418_v52 = vrot.slane %v7856_v47, 5  ;;  %v2683_v26 = vsel %vm5289_vm9, %v2678_v22, %v7000_v59  ;;  %v1423_v0 = vrot.slane %v7857_v19, 4  ;;  %v4662_v18 = vcombine.low %v7045_v5, %v7049_v33 }
 0x181   : > { %v1788_v7 = vshrl.u32 %v1473_v40, 16  ;;  %3298 = vrot.lane.b32.xlu1 %v4740_v37, %s5165_s14  ;;  %v4772_v1 = vcombine.low %v2675_v6, %v2683_v26  ;;  %v1793_v21 = vshrl.u32 %v7062_v3, 16  ;;  %v1796_v14 = vshll.u32 %v7062_v3, 16 }
 0x182   : > { %v1802_v16 = vshrl.u32 %v7064_v54, 16  ;;  %v1805_v59 = vshll.u32 %v7064_v54, 16  ;;  %v1419_v22 = vor.u32 %v1418_v52, %v1417_v30  ;;  %v1421_v19 = vrot.slane %v7860_v11, 5  ;;  %v581_v52 = vld [vmem:[#allocation2 + $0x100] sm:$0x8]  ;;  %v7099_v11 = vpop.permute.xlu1 %3130 }
 0x183   : > { %v4613_v47 = vrot.slane %v1788_v7, 11  ;;  %3490 = vrot.lane.b32.xlu0 %v4772_v1, %s5167_s16  ;;  %v1795_v40 = vrot.slane %v1793_v21, 7  ;;  %v1427_v63 = vshll.u32 %v1203_v44, 16  ;;  %v3724_v37 = vsel %vm3710_vm5, %v7025_v8, %v6830_v17  ;;  %v7101_v1 = vpop.permute.xlu0 %3400 }
 0x184   : > { %v1804_v53 = vrot.slane %v1802_v16, 7  ;;  %v1420_v6 = vrot.slane %v1419_v22, 4  ;;  %v1424_v26 = vor.u32 %v1423_v0, %v1421_v19  ;;  %v3693_v7 = vsel %vm3677_vm4, %v7029_v2, %v6902_v12 }
 0x185   : > { %v4709_v30 = vcombine.low %v7062_v3, %v7064_v54  ;;  %3410 = vrot.lane.b32.xlu1 %v4756_v27, %s5163_s12  ;;  %v1798_v17 = vor.u32 %v1796_v14, %v1795_v40  ;;  %v1800_v8 = vrot.slane %v1795_v40, 4  ;;  %v1429_v44 = vrot.slane %v1427_v63, 5 }
 0x186   : > { %v1807_v0 = vor.u32 %v1805_v59, %v1804_v53  ;;  %v1422_v12 = vsel %vm5289_vm9, %v1420_v6, %v1421_v19  ;;  %v1425_v2 = vrot.slane %v1424_v26, 4  ;;  %v7961_v3 = vunpack.c.l.bf16 %v6886_v38 }
 0x187   : > { %v7962_v22 = vunpack.c.h.bf16 %v6886_v38  ;;  %2948 = vrot.lane.b32.xlu0 %v4677_v39, %s5161_s10  ;;  %v1799_v20 = vsel %vm5451_vm11, %v4613_v47, %v1798_v17  ;;  %v582_v9 = vsel %vm5237_vm6, 0, %v581_v52  ;;  %v3757_v27 = vsel %vm3743_vm7, %v3724_v37, %v6862_v25  ;;  %v1845_v39 = vld [vmem:[#allocation2 + $0xfc] sm:$0x1]  ;;  %v810_v47 = vld [vmem:[#allocation2 + $0x80] sm:$0x8] }
 0x188   : > { %v424_v54 = vmul.f32 %v6899_v41, %v7961_v3  ;;  %v1808_v63 = vsel %vm5451_vm11, %v1800_v8, %v1807_v0  ;;  %v1430_v38 = vsel %vm5289_vm9, %v1425_v2, %v1429_v44  ;;  %583 = vst [vmem:[#allocation2 + $0x100] sm:$0x8] %v582_v9  ;;  %5018 = vmatprep.mubr.msk.bf16.mxu0 %vm3812_vm8, %v3757_v27  ;;  %v2043_v37 = vrot.slane %v1793_v21, 4  ;;  %v7135_v8 = vpop.permute.xlu1 %3210  ;;  %v7137_v0 = vpop.permute.xlu0 %3480  ;;  %v7963_v3 = vld [vmem:[#allocation10_spill] sm:$0xff]  ;;  %v7964_v27 = vld [vmem:[#allocation11_spill] sm:$0xff] }
 0x189   : > { %v425_v60 = vmul.f32 %v6899_v41, %v7962_v22  ;;  %v4693_v53 = vcombine.low %v1799_v20, %v1808_v63  ;;  %2868 = vrot.lane.b32.xlu1 %v4661_v24, %s5160_s7  ;;  %v4678_v40 = vcombine.low %v1422_v12, %v1430_v38  ;;  %v3726_v25 = vsel %vm3710_vm5, %v3693_v7, %v6951_v56  ;;  %v813_v56 = vld [vmem:[#allocation2 + $0x90] sm:$0x8] }
 0x18a   : > { %v463_v41 = vadd.f32 %v6915_v42, %v424_v54  ;;  %v2044_v6 = vrot.slane %v1796_v14, 5  ;;  %v2047_v17 = vrot.slane %v1805_v59, 5  ;;  %v2053_v2 = vshll.u32 %v1845_v39, 16  ;;  %v7144_v54 = vld [vmem:[#allocation2 + $0x114] sm:$0xf]  ;;  %v7965_v39 = vld [vmem:[#allocation12_spill] sm:$0xff] }
 0x18b   : > { %v464_v19 = vadd.f32 %v6915_v42, %v425_v60  ;;  %v2049_v42 = vrot.slane %v1802_v16, 4  ;;  %v635_v60 = vld [vmem:[#allocation2 + $0x10c] sm:$0x1]  ;;  %3028 = vrot.lane.b32.xlu0 %v4693_v53, %s5164_s13  ;;  %v3759_v24 = vsel %vm3743_vm7, %v3726_v25, %v6904_v58  ;;  %v1013_v12 = vshrl.u32 %v810_v47, 16  ;;  %v584_v16 = vld [vmem:[#allocation2 + $0x110] sm:$0x8] }
 0x18c   : > { %v495_v26 = vmax.f32 %v463_v41, 0.0  ;;  %v2045_v44 = vor.u32 %v2044_v6, %v2043_v37  ;;  %v1025_v59 = vrot.slane %v7963_v3, 4  ;;  %5019 = vmatmul.mubr.msk.bf16.gmra.mrb[12].mxu0 %vm3812_vm8, %v3759_v24  ;;  %v2055_v20 = vrot.slane %v2053_v2, 5  ;;  %v7177_v2 = vld [vmem:[#allocation2 + $0x118] sm:$0xf] }
 0x18d   : > { %v496_v52 = vmax.f32 %v464_v19, 0.0  ;;  %v2050_v7 = vor.u32 %v2049_v42, %v2047_v17  ;;  %2870 = vrot.lane.b32.xlu1 %v4662_v18, %s5160_s7  ;;  %v4591_v58 = vrot.slane %v1013_v12, 11  ;;  %v636_v63 = vsel %vm5229_vm3, 0, %v635_v60  ;;  %v7169_v42 = vpop.permute.xlu1 %3290 }
 0x18e   : > { %v4862_v21 = vpack.c.bf16 %v495_v26, %v495_v26  ;;  %v2046_v22 = vrot.slane %v2045_v44, 4  ;;  %v1033_v53 = vsel %vm5451_vm11, %v1025_v59, %v7964_v27  ;;  %637 = vst [vmem:[#allocation2 + $0x10c] sm:$0x1] %v636_v63  ;;  %v1035_v38 = vshrl.u32 %v813_v56, 16 }
 0x18f   : > { %v4863_v14 = vpack.c.bf16 %v496_v52, %v496_v52  ;;  %v2051_v9 = vrot.slane %v2050_v7, 4  ;;  %v1047_v41 = vrot.slane %v6218_v23, 4  ;;  %3140 = vrot.lane.b32.xlu0 %v4709_v30, %s5162_s11  ;;  %v1476_v18 = vld [vmem:[#allocation2 + $0x100] sm:$0x8]  ;;  %v1024_v47 = vsel %vm5451_vm11, %v4591_v58, %v7965_v39 }
 0x190   : > { %784 = vst.msk [vmem:[#allocation2 + $0x104] sm:$0xf] %vm513_vm0, %v4862_v21  ;;  %v2048_v19 = vsel %vm5289_vm9, %v2046_v22, %v2047_v17  ;;  %v2114_v25 = vld [vmem:[#allocation2 + $0x100] sm:$0x8]  ;;  %v585_v37 = vsel %vm5237_vm6, 0, %v584_v16  ;;  %v7863_v6 = vshrl.u32 %v7144_v54, 16  ;;  %v4639_v52 = vcombine.low %v1024_v47, %v1033_v53  ;;  %v7171_v17 = vpop.permute.xlu0 %3482 }
 0x191   : > { %785 = vst.msk [vmem:[#allocation2 + $0x108] sm:$0xf] %vm513_vm0, %v4863_v14  ;;  %v1810_v26 = vshrl.u32 %v1476_v18, 16  ;;  %v2056_v23 = vsel %vm5289_vm9, %v2051_v9, %v2055_v20  ;;  %v2429_v30 = vshrl.u32 %v2114_v25, 16  ;;  %586 = vst [vmem:[#allocation2 + $0x110] sm:$0x8] %v585_v37  ;;  %2950 = vrot.lane.b32.xlu1 %v4678_v40, %s5161_s10  ;;  %v1055_v50 = vsel %vm5451_vm11, %v1047_v41, %v6243_v31  ;;  %v7214_v18 = vpop.permute.xlu1 %3402 }
 0x192   : > { %v4725_v60 = vcombine.low %v2048_v19, %v2056_v23  ;;  %v4592_v44 = vrot.slane %v1035_v38, 11  ;;  %v7181_v24 = vrot.slane %v7863_v6, 7  ;;  %v7862_v12 = vshll.u32 %v7144_v54, 16  ;;  %v7966_v14 = vld [vmem:[#allocation8_spill] sm:$0xff] }
 0x193   : > { %v4614_v56 = vrot.slane %v1810_v26, 11  ;;  %v3523_v40 = vsel %vm3496_vm12, %v4639_v52, %v6967_v29  ;;  %v4629_v21 = vrot.slane %v2429_v30, 11 }
 0x194   : > { %3220 = vrot.lane.b32.xlu0 %v4725_v60, %s5166_s15  ;;  %v1046_v7 = vsel %vm5451_vm11, %v4592_v44, %v7966_v14  ;;  %v3563_v29 = vsel %vm3545_vm13, %v3523_v40, %v6953_v34  ;;  %v7206_v63 = vor.u32 %v7862_v12, %v7181_v24  ;;  %v7216_v19 = vpop.permute.xlu0 %2940 }
 0x195   : > { %v7190_v31 = vcombine.low %v1046_v7, %v1055_v50  ;;  %7967 = vst [vmem:[#allocation15_spill] sm:$0xff] %v7216_v19  ;;  %v3596_v25 = vsel %vm3578_vm14, %v3563_v29, %v6969_v43  ;;  %v1846_v44 = vld [vmem:[#allocation2 + $0x10c] sm:$0x1]  ;;  %v7228_v19 = vpop.permute.xlu1 %2860 }
 0x196   : > { %v2067_v5 = vshll.u32 %v1846_v44, 16 }
 0x197   : > { %v7195_v22 = vld [vmem:[#allocation2 + $0x104] sm:$0xf] }
 0x198   : > { %v7197_v20 = vld [vmem:[#allocation2 + $0x108] sm:$0xf]  ;;  %v7199_v58 = vld [vmem:[#allocation2 + $0x104] sm:$0xf]  ;;  %v1815_v9 = vshrl.u32 %v7195_v22, 16  ;;  %v1818_v27 = vshll.u32 %v7195_v22, 16  ;;  %v7230_v35 = vpop.permute.xlu0 %3020 }
 0x199   : > { %v1824_v53 = vshrl.u32 %v7197_v20, 16  ;;  %v1827_v38 = vshll.u32 %v7197_v20, 16  ;;  %v7212_v41 = vld [vmem:[#allocation2 + $0x108] sm:$0xf]  ;;  %v2434_v34 = vshrl.u32 %v7199_v58, 16  ;;  %v2437_v39 = vshll.u32 %v7199_v58, 16 }
 0x19a   : > { %v2443_v47 = vshrl.u32 %v7212_v41, 16  ;;  %v1817_v37 = vrot.slane %v1815_v9, 7  ;;  %v2446_v23 = vshll.u32 %v7212_v41, 16  ;;  %v2057_v52 = vrot.slane %v1815_v9, 4  ;;  %v2117_v49 = vld [vmem:[#allocation2 + $0x110] sm:$0x8] }
 0x19b   : > { %v1826_v26 = vrot.slane %v1824_v53, 7  ;;  %v2436_v30 = vrot.slane %v2434_v34, 7  ;;  %v2058_v50 = vrot.slane %v1818_v27, 5  ;;  %v2061_v40 = vrot.slane %v1827_v38, 5 }
 0x19c   : > { %v2445_v60 = vrot.slane %v2443_v47, 7  ;;  %v1820_v14 = vor.u32 %v1818_v27, %v1817_v37  ;;  %v1822_v7 = vrot.slane %v1817_v37, 4  ;;  %v2063_v6 = vrot.slane %v1824_v53, 4 }
 0x19d   : > { %v1829_v12 = vor.u32 %v1827_v38, %v1826_v26  ;;  %v2439_v3 = vor.u32 %v2437_v39, %v2436_v30  ;;  %v2441_v16 = vrot.slane %v2436_v30, 4  ;;  %v2059_v33 = vor.u32 %v2058_v50, %v2057_v52 }
 0x19e   : > { %v2448_v59 = vor.u32 %v2446_v23, %v2445_v60  ;;  %v1821_v43 = vsel %vm5451_vm11, %v4614_v56, %v1820_v14  ;;  %v2064_v9 = vor.u32 %v2063_v6, %v2061_v40  ;;  %v2069_v52 = vrot.slane %v2067_v5, 5 }
 0x19f   : > { %v1830_v29 = vsel %vm5451_vm11, %v1822_v7, %v1829_v12  ;;  %v2440_v53 = vsel %vm5451_vm11, %v4629_v21, %v2439_v3  ;;  %v2060_v37 = vrot.slane %v2059_v33, 4  ;;  %v3629_v6 = vsel %vm3611_vm15, %v3596_v25, %v6994_v51  ;;  %v527_v25 = vld [vmem:[#allocation2 + $0x11c] sm:$0x1] }
 0x1a0   : > { %v4694_v27 = vcombine.low %v1821_v43, %v1830_v29  ;;  %v2449_v38 = vsel %vm5451_vm11, %v2441_v16, %v2448_v59  ;;  %v2065_v56 = vrot.slane %v2064_v9, 4  ;;  %v4710_v12 = vcombine.low %v7195_v22, %v7197_v20  ;;  %v2486_v59 = vld [vmem:[#allocation2 + $0x10c] sm:$0x1]  ;;  %v7257_v29 = vpop.permute.xlu1 %2862 }
 0x1a1   : > { %v4741_v26 = vcombine.low %v2440_v53, %v2449_v38  ;;  %v2062_v30 = vsel %vm5289_vm9, %v2060_v37, %v2061_v40  ;;  %v2451_v60 = vshrl.u32 %v2117_v49, 16  ;;  %v7968_v21 = vshrl.u32 %v7177_v2, 16 }
 0x1a2   : > { %3030 = vrot.lane.b32.xlu1 %v4694_v27, %s5164_s13  ;;  %v2070_v5 = vsel %vm5289_vm9, %v2065_v56, %v2069_v52  ;;  %v4757_v51 = vcombine.low %v7199_v58, %v7212_v41  ;;  %v2684_v33 = vrot.slane %v2434_v34, 4  ;;  %v2685_v16 = vrot.slane %v2437_v39, 5  ;;  %v7259_v58 = vpop.permute.xlu0 %3132  ;;  %s315_s13 = scalar_lea.vmem %s7835_s5, %s7998_s21 }
 0x1a3   : > { %v2467_v3 = vrot.slane %v7968_v21, 7  ;;  %3300 = vrot.lane.b32.xlu0 %v4741_v26, %s5165_s14  ;;  %v3526_v22 = vsel %vm3496_vm12, %v7190_v31, %v6992_v46  ;;  %v4630_v49 = vrot.slane %v2451_v60, 11  ;;  %v7969_v20 = vshll.u32 %v7177_v2, 16  ;;  %v816_v26 = vld [vmem:[#allocation2 + $0xa0] sm:$0x8] }
 0x1a4   : > { %v2688_v50 = vrot.slane %v2446_v23, 5  ;;  %v3565_v40 = vsel %vm3545_vm13, %v3526_v22, %v7040_v10  ;;  %v2686_v14 = vor.u32 %v2685_v16, %v2684_v33  ;;  %v2690_v7 = vrot.slane %v2443_v47, 4  ;;  %v7305_v33 = vpop.permute.xlu1 %2942 }
 0x1a5   : > { %v2470_v44 = vor.u32 %v7969_v20, %v2467_v3  ;;  %v2694_v43 = vshll.u32 %v2486_v59, 16  ;;  %v4726_v41 = vcombine.low %v2062_v30, %v2070_v5  ;;  %v2462_v46 = vsel %vm5451_vm11, %v4630_v49, %v7206_v63 }
 0x1a6   : > { %3142 = vrot.lane.b32.xlu1 %v4710_v12, %s5162_s11  ;;  %v7970_v31 = vrot.slane %v7181_v24, 4  ;;  %v528_v10 = vsel %vm5229_vm3, 0, %v527_v25  ;;  %v2687_v39 = vrot.slane %v2686_v14, 4  ;;  %v2691_v47 = vor.u32 %v2690_v7, %v2688_v50  ;;  %v3213_v16 = vpop.permute.xlu0 %3212  ;;  %v822_v25 = vld [vmem:[#allocation2 + $0xc0] sm:$0x8]  ;;  %s7417_s11 = scalar_lea.vmem %s7834_s4, %s4830_s25 }
 0x1a7   : > { %3412 = vrot.lane.b32.xlu0 %v4757_v51, %s5163_s12  ;;  %v2696_v23 = vrot.slane %v2694_v43, 5  ;;  %v3598_v9 = vsel %vm3578_vm14, %v3565_v40, %v7066_v32  ;;  %529 = vst [vmem:[#allocation2 + $0x11c] sm:$0x1] %v528_v10  ;;  %v7971_v63 = vshrl.u32 %v7144_v54, 16  ;;  %v7972_v24 = vshll.u32 %v7144_v54, 16 }
 0x1a8   : > { %v2471_v34 = vsel %vm5451_vm11, %v7970_v31, %v2470_v44  ;;  %v3662_v37 = vsel %vm3644_vm2, %v3629_v6, %v7042_v61  ;;  %v2689_v56 = vsel %vm5289_vm9, %v2687_v39, %v2688_v50  ;;  %v2692_v52 = vrot.slane %v2691_v47, 4  ;;  %v828_v40 = vld [vmem:[#allocation2 + $0xe0] sm:$0x8]  ;;  %v7976_v47 = vld [vmem:[#allocation4_spill] sm:$0xff] }
 0x1a9   : > { %v4742_v27 = vcombine.low %v2462_v46, %v2471_v34  ;;  %v2698_v53 = vrot.slane %v7971_v63, 4  ;;  %v2699_v38 = vrot.slane %v7972_v24, 5  ;;  %v3631_v12 = vsel %vm3611_vm15, %v3598_v9, %v7099_v11  ;;  %v819_v11 = vld [vmem:[#allocation2 + $0xb0] sm:$0x8]  ;;  %v7978_v24 = vld [vmem:[#allocation3_spill] sm:$0xff] }
 0x1aa   : > { %v3695_v32 = vsel %vm3677_vm4, %v3662_v37, %v7068_v13  ;;  %3222 = vrot.lane.b32.xlu1 %v4726_v41, %s5166_s15  ;;  %v7973_v30 = vmov %v7969_v20  ;;  %v7293_v61 = vrot.slane %v7968_v21, 4  ;;  %v3664_v6 = vsel %vm3644_vm2, %v3631_v12, %v7135_v8  ;;  %v825_v20 = vld [vmem:[#allocation2 + $0xd0] sm:$0x8]  ;;  %v7980_v12 = vld [vmem:[#allocation18_spill] sm:$0xff] }
 0x1ab   : > { %v7289_v60 = vrot.slane %v7973_v30, 5  ;;  %v3728_v3 = vsel %vm3710_vm5, %v3695_v32, %v7101_v1  ;;  %v2697_v13 = vsel %vm5289_vm9, %v2692_v52, %v2696_v23  ;;  %v3697_v59 = vsel %vm3677_vm4, %v3664_v6, %v7169_v42  ;;  %v7975_v34 = vld [vmem:[#allocation13_spill] sm:$0xff]  ;;  %v7981_v30 = vld [vmem:[#allocation15_spill] sm:$0xff] }
 0x1ac   : > { %v3761_v5 = vsel %vm3743_vm7, %v3728_v3, %v7137_v0  ;;  %v1057_v51 = vshrl.u32 %v816_v26, 16  ;;  %v4773_v22 = vcombine.low %v2689_v56, %v2697_v13  ;;  %v4758_v8 = vcombine.low %v7144_v54, %v7177_v2  ;;  %v3023_v10 = vpop.permute.xlu1 %3022  ;;  %v831_v3 = vld [vmem:[#allocation2 + $0xf0] sm:$0x8] }
 0x1ad   : > { %v2700_v1 = vor.u32 %v2699_v38, %v2698_v53  ;;  %v3730_v49 = vsel %vm3710_vm5, %v3697_v59, %v7214_v18  ;;  %5022 = vmatprep.mubr.msk.bf16.mxu1 %vm3812_vm8, %v3761_v5  ;;  %v1069_v44 = vrot.slane %v6449_v4, 4  ;;  %v1079_v50 = vshrl.u32 %v819_v11, 16  ;;  %v7983_v59 = vld [vmem:[#allocation17_spill] sm:$0xff] }
 0x1ae   : > { %v3763_v42 = vsel %vm3743_vm7, %v3730_v49, %v7171_v17  ;;  %v4593_v0 = vrot.slane %v1057_v51, 11  ;;  %3302 = vrot.lane.b32.xlu1 %v4742_v27, %s5165_s14  ;;  %3492 = vrot.lane.b32.xlu0 %v4773_v22, %s5167_s16  ;;  %v638_v54 = vld [vmem:[#allocation2 + $0x11c] sm:$0x1]  ;;  %v2705_v2 = vor.u32 %v7293_v61, %v7289_v60  ;;  %v1091_v18 = vrot.slane %v6500_v55, 4 }
 0x1af   : > { %v1101_v14 = vshrl.u32 %v822_v25, 16  ;;  %v1113_v7 = vrot.slane %v6722_v15, 4  ;;  %v639_v17 = vsel %vm5229_vm3, 0, %v638_v54  ;;  %v1077_v43 = vsel %vm5451_vm11, %v1069_v44, %v6468_v62  ;;  %5023 = vmatmul.mubr.msk.bf16.vlgmr.msra.gmra.mrb[0].mxu1 %vm3812_vm8, %v3763_v42  ;;  %v3293_v62 = vpop.permute.xlu0 %3292  ;;  %v7984_v42 = vld [vmem:[#allocation6_spill] sm:$0xff] }
 0x1b0   : > { %v1068_v4 = vsel %vm5451_vm11, %v4593_v0, %v6460_v28  ;;  %v4594_v41 = vrot.slane %v1079_v50, 11  ;;  %640 = vst [vmem:[#allocation2 + $0x11c] sm:$0x1] %v639_v17  ;;  %v1099_v55 = vsel %vm5451_vm11, %v1091_v18, %v6520_v48  ;;  %v1123_v39 = vshrl.u32 %v825_v20, 16  ;;  %v7977_v48 = vld [vmem:[#allocation9_spill] sm:$0xff]  ;;  %v7986_v18 = vld [vmem:[#allocation7_spill] sm:$0xff] }
 0x1b1   : > { %v4641_v46 = vcombine.low %v1068_v4, %v1077_v43  ;;  %v4595_v15 = vrot.slane %v1101_v14, 11  ;;  %v1121_v31 = vsel %vm5451_vm11, %v1113_v7, %v7974_v36  ;;  %v1135_v23 = vrot.slane %v7976_v47, 4  ;;  %v7988_v14 = vld [vmem:[#allocation14_spill] sm:$0xff] }
 0x1b2   : > { %v1090_v28 = vsel %vm5451_vm11, %v4594_v41, %v7975_v34  ;;  %v1145_v9 = vshrl.u32 %v828_v40, 16  ;;  %3414 = vrot.lane.b32.xlu1 %v4758_v8, %s5163_s12  ;;  %v2701_v27 = vrot.slane %v2700_v1, 4  ;;  %v7979_v38 = vshrl.u32 %v7978_v24, 16 }
 0x1b3   : > { %v4642_v63 = vcombine.low %v1090_v28, %v1099_v55  ;;  %v1112_v53 = vsel %vm5451_vm11, %v4595_v15, %v7977_v48  ;;  %v3529_v26 = vsel %vm3496_vm12, %v4641_v46, %v7228_v19  ;;  %v4596_v52 = vrot.slane %v1123_v39, 11  ;;  %v3405_v13 = vpop.permute.xlu0 %3404 }
 0x1b4   : > { %v1152_v37 = vrot.slane %v7979_v38, 7  ;;  %v7348_v56 = vcombine.low %v1112_v53, %v1121_v31  ;;  %v1143_v32 = vsel %vm5451_vm11, %v1135_v23, %v7980_v12  ;;  %v3567_v21 = vsel %vm3545_vm13, %v3529_v26, %v7981_v30 }
 0x1b5   : > { %v7982_v61 = vshll.u32 %v7978_v24, 16  ;;  %v3600_v11 = vsel %vm3578_vm14, %v3567_v21, %v7230_v35  ;;  %v1134_v19 = vsel %vm5451_vm11, %v4596_v52, %v7983_v59  ;;  %v4597_v5 = vrot.slane %v1145_v9, 11  ;;  %v3135_v35 = vpop.permute.xlu1 %3134 }
 0x1b6   : > { %v2703_v51 = vsel %vm5289_vm9, %v2701_v27, %v7289_v60  ;;  %v2706_v25 = vrot.slane %v2705_v2, 4  ;;  %v3633_v22 = vsel %vm3611_vm15, %v3600_v11, %v7259_v58  ;;  %v7367_v8 = vcombine.low %v1134_v19, %v1143_v32 }
 0x1b7   : > { %v1155_v6 = vor.u32 %v7982_v61, %v1152_v37  ;;  %v2487_v1 = vld [vmem:[#allocation2 + $0x11c] sm:$0x1]  ;;  %v3666_v49 = vsel %vm3644_vm2, %v3633_v22, %v3213_v16  ;;  %v1157_v20 = vrot.slane %v1152_v37, 4  ;;  %v7985_v0 = vshrl.u32 %v7984_v42, 16  ;;  %v3485_v55 = vpop.permute.xlu0 %3484 }
 0x1b8   : > { %v1167_v50 = vshrl.u32 %v831_v3, 16  ;;  %v2708_v40 = vshll.u32 %v2487_v1, 16  ;;  %v3699_v54 = vsel %vm3677_vm4, %v3666_v49, %v3293_v62  ;;  %v7987_v60 = vshrl.u32 %v7986_v18, 16 }
 0x1b9   : > { %v1161_v44 = vrot.slane %v7985_v0, 7  ;;  %v7989_v7 = vshrl.u32 %v7988_v14, 16  ;;  %v3732_v17 = vsel %vm3710_vm5, %v3699_v54, %v3405_v13  ;;  %v1156_v16 = vsel %vm5451_vm11, %v4597_v5, %v1155_v6  ;;  %v3215_v53 = vpop.permute.xlu1 %3214 }
 0x1ba   : > { %v1174_v2 = vrot.slane %v7987_v60, 7  ;;  %v7990_v4 = vshll.u32 %v7984_v42, 16  ;;  %v4598_v41 = vrot.slane %v1167_v50, 11  ;;  %v2710_v46 = vrot.slane %v2708_v40, 5 }
 0x1bb   : > { %v1183_v58 = vrot.slane %v7989_v7, 7  ;;  %v7991_v15 = vshll.u32 %v7986_v18, 16  ;;  %v7992_v34 = vshll.u32 %v7988_v14, 16  ;;  %v3765_v62 = vsel %vm3743_vm7, %v3732_v17, %v3485_v55 }
 0x1bc   : > { %v1164_v43 = vor.u32 %v7990_v4, %v1161_v44  ;;  %v1179_v31 = vrot.slane %v1174_v2, 4  ;;  %v2711_v47 = vsel %vm5289_vm9, %v2706_v25, %v2710_v46  ;;  %5026 = vmatprep.mubr.msk.bf16.mxu1 %vm3812_vm8, %v3765_v62  ;;  %v3532_v45 = vsel %vm3496_vm12, %v4642_v63, %v7257_v29 }
 0x1bd   : > { %v1177_v36 = vor.u32 %v7991_v15, %v1174_v2  ;;  %v1186_v28 = vor.u32 %v7992_v34, %v1183_v58  ;;  %v4774_v48 = vcombine.low %v2703_v51, %v2711_v47  ;;  %v3569_v38 = vsel %vm3545_vm13, %v3532_v45, %v7305_v33 }
 0x1be   : > { %v1165_v39 = vsel %vm5451_vm11, %v1157_v20, %v1164_v43  ;;  %v3295_v37 = vpop.permute.xlu1 %3294  ;;  %v3602_v26 = vsel %vm3578_vm14, %v3569_v38, %v3023_v10 }
 0x1bf   : > { %v7392_v23 = vcombine.low %v1156_v16, %v1165_v39  ;;  %v1178_v9 = vsel %vm5451_vm11, %v4598_v41, %v1177_v36  ;;  %v1187_v27 = vsel %vm5451_vm11, %v1179_v31, %v1186_v28  ;;  %3494 = vrot.lane.b32.xlu1 %v4774_v48, %s5167_s16  ;;  %v3635_v52 = vsel %vm3611_vm15, %v3602_v26, %v3135_v35  ;;  %s321_s16 = scalar_lea.vmem %s7836_s6, %s7998_s21 }
 0x1c0   : > { %v7398_v24 = vcombine.low %v1178_v9, %v1187_v27  ;;  %v3668_v57 = vsel %vm3644_vm2, %v3635_v52, %v3215_v53 }
 0x1c1   : > { %v3487_v12 = vpop.permute.xlu0 %3486  ;;  %v3701_v32 = vsel %vm3677_vm4, %v3668_v57, %v3295_v37 }
 0x1c2   : > { %v3407_v30 = vpop.permute.xlu1 %3406 }
 0x1c3   : > { %v3734_v21 = vsel %vm3710_vm5, %v3701_v32, %v3407_v30 }
 0x1c4   : > { %v3767_v61 = vsel %vm3743_vm7, %v3734_v21, %v3487_v12 }
 0x1c5   : > { %5027 = vmatmul.mubr.msk.bf16.gmra.mrb[4].mxu1 %vm3812_vm8, %v3767_v61  ;;  %v2945_v29 = vpop.permute.xlu0 %2944 }
 0x1c8   : > { %v2865_v33 = vpop.permute.xlu1 %2864 }
 0x1c9   : > { %v3025_v63 = vpop.permute.xlu0 %3024  ;;  %v3535_v18 = vsel %vm3496_vm12, %v7348_v56, %v2865_v33 }
 0x1ca   : > { %v3571_v60 = vsel %vm3545_vm13, %v3535_v18, %v2945_v29 }
 0x1cb   : > { %v3604_v14 = vsel %vm3578_vm14, %v3571_v60, %v3025_v63 }
 0x1cc   : > { %v2867_v1 = vpop.permute.xlu1 %2866 }
 0x1cd   : > { %v7419_v10 = vpop.f32.mrb[0].mxu0  ;;  %v3137_v35 = vpop.permute.xlu0 %3136  ;;  %v3538_v56 = vsel %vm3496_vm12, %v7367_v8, %v2867_v1 }
 0x1ce   : > { %v4866_v6 = vpack.c.bf16 %v7419_v10, %v7419_v10  ;;  %v7423_v3 = vpop.f32.mrb[1].mxu0  ;;  %v4173_v49 = vsel %vm3496_vm12, %v7419_v10, 0.0  ;;  %v3637_v58 = vsel %vm3611_vm15, %v3604_v14, %v3137_v35 }
 0x1cf   : > { %v4864_v11 = vpack.c.bf16 %v7423_v3, %v7423_v3  ;;  %v7427_v13 = vpop.f32.mrb[2].mxu0  ;;  %v4170_v5 = vsel %vm3496_vm12, %v7423_v3, 0.0 }
 0x1d0   : > { %4140 = vst.msk [vmem:[%s7417_s11 + $0x8] sm:$0xf] %vm513_vm0, %v4866_v6  ;;  %v4867_v59 = vpack.c.bf16 %v7427_v13, %v7427_v13  ;;  %v7433_v19 = vpop.f32.mrb[3].mxu0  ;;  %v4175_v42 = vsel %vm3496_vm12, %v7427_v13, 0.0  ;;  %v2947_v44 = vpop.permute.xlu1 %2946 }
 0x1d1   : > { %4138 = vst.msk [vmem:[%s7417_s11] sm:$0xf] %vm513_vm0, %v4864_v11  ;;  %v4865_v51 = vpack.c.bf16 %v7433_v19, %v7433_v19  ;;  %v4171_v25 = vsel %vm3496_vm12, %v7433_v19, 0.0  ;;  %v3573_v55 = vsel %vm3545_vm13, %v3538_v56, %v2947_v44 }
 0x1d2   : > { %4141 = vst.msk [vmem:[%s7417_s11 + $0xc] sm:$0xf] %vm513_vm0, %v4867_v59  ;;  %v4172_v22 = vadd.f32 %v4171_v25, %v4170_v5  ;;  %v3217_v50 = vpop.permute.xlu0 %3216 }
 0x1d3   : > { %4139 = vst.msk [vmem:[%s7417_s11 + $0x4] sm:$0xf] %vm513_vm0, %v4865_v51  ;;  %v3670_v17 = vsel %vm3644_vm2, %v3637_v58, %v3217_v50 }
 0x1d4   : > { %v4174_v20 = vadd.f32 %v4173_v49, %v4172_v22 }
 0x1d6   : > { %v4176_v0 = vadd.f32 %v4175_v42, %v4174_v20 }
 0x1e1   : > { %v3027_v40 = vpop.permute.xlu1 %3026 }
 0x1e2   : > { %v3297_v54 = vpop.permute.xlu0 %3296  ;;  %v3606_v36 = vsel %vm3578_vm14, %v3573_v55, %v3027_v40 }
 0x1e3   : > { %v3703_v16 = vsel %vm3677_vm4, %v3670_v17, %v3297_v54 }
 0x1e6   : > { %v3409_v2 = vpop.permute.xlu0 %3408 }
 0x1e7   : > { %v3139_v7 = vpop.permute.xlu1 %3138  ;;  %v3736_v4 = vsel %vm3710_vm5, %v3703_v16, %v3409_v2 }
 0x1e8   : > { %v3639_v31 = vsel %vm3611_vm15, %v3606_v36, %v3139_v7 }
 0x1eb   : > { %v3489_v43 = vpop.permute.xlu0 %3488  ;;  %v3219_v46 = vpop.permute.xlu1 %3218 }
 0x1ec   : > { %v3769_v41 = vsel %vm3743_vm7, %v3736_v4, %v3489_v43  ;;  %v3672_v28 = vsel %vm3644_vm2, %v3639_v31, %v3219_v46 }
 0x1ed   : > { %5030 = vmatprep.mubr.msk.bf16.mxu1 %vm3812_vm8, %v3769_v41 }
 0x1f3   : > { %v3299_v15 = vpop.permute.xlu1 %3298 }
 0x1f4   : > { %v3705_v62 = vsel %vm3677_vm4, %v3672_v28, %v3299_v15 }
 0x1f5   : > { %v3491_v34 = vpop.permute.xlu0 %3490 }
 0x1f6   : > { %v7469_v9 = vpop.f32.mrb[4].mxu0 }
 0x1f7   : > { %v3411_v39 = vpop.permute.xlu1 %3410  ;;  %v4870_v27 = vpack.c.bf16 %v7469_v9, %v7469_v9  ;;  %v7474_v48 = vpop.f32.mrb[5].mxu0  ;;  %v4181_v21 = vsel %vm3496_vm12, %v7469_v9, 0.0 }
 0x1f8   : > { %v3738_v47 = vsel %vm3710_vm5, %v3705_v62, %v3411_v39  ;;  %v4868_v45 = vpack.c.bf16 %v7474_v48, %v7474_v48  ;;  %v4177_v38 = vsel %vm3496_vm12, %v7474_v48, 0.0  ;;  %v7481_v37 = vpop.f32.mrb[6].mxu0 }
 0x1f9   : > { %v3771_v8 = vsel %vm3743_vm7, %v3738_v47, %v3491_v34  ;;  %v2949_v53 = vpop.permute.xlu0 %2948  ;;  %4144 = vst.msk [vmem:[%s7417_s11 + $0x18] sm:$0xf] %vm513_vm0, %v4870_v27  ;;  %v4178_v26 = vadd.f32 %v4177_v38, %v4176_v0  ;;  %v4871_v52 = vpack.c.bf16 %v7481_v37, %v7481_v37  ;;  %v7487_v57 = vpop.f32.mrb[7].mxu0  ;;  %v4183_v63 = vsel %vm3496_vm12, %v7481_v37, 0.0 }
 0x1fa   : > { %5031 = vmatmul.mubr.msk.bf16.gmra.mrb[8].mxu1 %vm3812_vm8, %v3771_v8  ;;  %4142 = vst.msk [vmem:[%s7417_s11 + $0x10] sm:$0xf] %vm513_vm0, %v4868_v45  ;;  %v4869_v12 = vpack.c.bf16 %v7487_v57, %v7487_v57  ;;  %v4179_v32 = vsel %vm3496_vm12, %v7487_v57, 0.0 }
 0x1fb   : > { %4145 = vst.msk [vmem:[%s7417_s11 + $0x1c] sm:$0xf] %vm513_vm0, %v4871_v52  ;;  %v4180_v30 = vadd.f32 %v4179_v32, %v4178_v26  ;;  %v2869_v61 = vpop.permute.xlu1 %2868 }
 0x1fc   : > { %4143 = vst.msk [vmem:[%s7417_s11 + $0x14] sm:$0xf] %vm513_vm0, %v4869_v12  ;;  %v3541_v49 = vsel %vm3496_vm12, %v7392_v23, %v2869_v61 }
 0x1fd   : > { %v4182_v29 = vadd.f32 %v4181_v21, %v4180_v30  ;;  %v3029_v33 = vpop.permute.xlu0 %3028  ;;  %v3575_v20 = vsel %vm3545_vm13, %v3541_v49, %v2949_v53 }
 0x1fe   : > { %v3608_v42 = vsel %vm3578_vm14, %v3575_v20, %v3029_v33 }
 0x1ff   : > { %v4184_v6 = vadd.f32 %v4183_v63, %v4182_v29  ;;  %v2871_v11 = vpop.permute.xlu1 %2870 }
 0x200   : > { %v3544_v2 = vsel %vm3496_vm12, %v7398_v24, %v2871_v11 }
 0x201   : > { %v3141_v59 = vpop.permute.xlu0 %3140 }
 0x202   : > { %v3641_v0 = vsel %vm3611_vm15, %v3608_v42, %v3141_v59 }
 0x203   : > { %v2951_v5 = vpop.permute.xlu1 %2950 }
 0x204   : > { %v3577_v7 = vsel %vm3545_vm13, %v3544_v2, %v2951_v5 }
 0x206   : > { %v3221_v51 = vpop.permute.xlu0 %3220 }
 0x207   : > { %v3674_v44 = vsel %vm3644_vm2, %v3641_v0, %v3221_v51 }
 0x214   : > { %v3031_v25 = vpop.permute.xlu1 %3030 }
 0x215   : > { %v3301_v22 = vpop.permute.xlu0 %3300  ;;  %v3610_v58 = vsel %vm3578_vm14, %v3577_v7, %v3031_v25 }
 0x216   : > { %v3707_v50 = vsel %vm3677_vm4, %v3674_v44, %v3301_v22 }
 0x218   : > { %v3143_v1 = vpop.permute.xlu1 %3142 }
 0x219   : > { %v3413_v35 = vpop.permute.xlu0 %3412  ;;  %v3643_v17 = vsel %vm3611_vm15, %v3610_v58, %v3143_v1 }
 0x21a   : > { %v3740_v54 = vsel %vm3710_vm5, %v3707_v50, %v3413_v35 }
 0x21c   : > { %v3223_v40 = vpop.permute.xlu1 %3222 }
 0x21d   : > { %v3676_v16 = vsel %vm3644_vm2, %v3643_v17, %v3223_v40 }
 0x220   : > { %v3493_v18 = vpop.permute.xlu0 %3492  ;;  %v3303_v23 = vpop.permute.xlu1 %3302 }
 0x221   : > { %v3773_v60 = vsel %vm3743_vm7, %v3740_v54, %v3493_v18  ;;  %v3709_v4 = vsel %vm3677_vm4, %v3676_v16, %v3303_v23 }
 0x222   : > { %5034 = vmatprep.mubr.msk.bf16.mxu1 %vm3812_vm8, %v3773_v60 }
 0x224   : > { %v3415_v14 = vpop.permute.xlu1 %3414 }
 0x225   : > { %v3742_v41 = vsel %vm3710_vm5, %v3709_v4, %v3415_v14 }
 0x22b   : > { %v7520_v43 = vpop.f32.mrb[8].mxu0 }
 0x22c   : > { %v4874_v24 = vpack.c.bf16 %v7520_v43, %v7520_v43  ;;  %v7525_v56 = vpop.f32.mrb[9].mxu0  ;;  %v4189_v27 = vsel %vm3496_vm12, %v7520_v43, 0.0 }
 0x22d   : > { %v4872_v15 = vpack.c.bf16 %v7525_v56, %v7525_v56  ;;  %v4185_v36 = vsel %vm3496_vm12, %v7525_v56, 0.0  ;;  %v7532_v31 = vpop.f32.mrb[10].mxu0 }
 0x22e   : > { %4148 = vst.msk [vmem:[%s7417_s11 + $0x28] sm:$0xf] %vm513_vm0, %v4874_v24  ;;  %v4186_v34 = vadd.f32 %v4185_v36, %v4184_v6  ;;  %v4875_v28 = vpack.c.bf16 %v7532_v31, %v7532_v31  ;;  %v7539_v62 = vpop.f32.mrb[11].mxu0  ;;  %v4191_v45 = vsel %vm3496_vm12, %v7532_v31, 0.0 }
 0x22f   : > { %4146 = vst.msk [vmem:[%s7417_s11 + $0x20] sm:$0xf] %vm513_vm0, %v4872_v15  ;;  %v4873_v39 = vpack.c.bf16 %v7539_v62, %v7539_v62  ;;  %v4187_v47 = vsel %vm3496_vm12, %v7539_v62, 0.0 }
 0x230   : > { %4149 = vst.msk [vmem:[%s7417_s11 + $0x2c] sm:$0xf] %vm513_vm0, %v4875_v28  ;;  %v4188_v8 = vadd.f32 %v4187_v47, %v4186_v34 }
 0x231   : > { %v3495_v46 = vpop.permute.xlu1 %3494  ;;  %4147 = vst.msk [vmem:[%s7417_s11 + $0x24] sm:$0xf] %vm513_vm0, %v4873_v39 }
 0x232   : > { %v3775_v55 = vsel %vm3743_vm7, %v3742_v41, %v3495_v46  ;;  %v4190_v53 = vadd.f32 %v4189_v27, %v4188_v8 }
 0x233   : > { %5035 = vmatmul.mubr.msk.bf16.gmra.mrb[12].mxu1 %vm3812_vm8, %v3775_v55 }
 0x234   : > { %v4192_v38 = vadd.f32 %v4191_v45, %v4190_v53 }
 0x25f   : > { %v7555_v26 = vpop.f32.mrb[12].mxu0 }
 0x260   : > { %v4878_v52 = vpack.c.bf16 %v7555_v26, %v7555_v26  ;;  %v7559_v12 = vpop.f32.mrb[13].mxu0  ;;  %v4197_v59 = vsel %vm3496_vm12, %v7555_v26, 0.0 }
 0x261   : > { %v4876_v32 = vpack.c.bf16 %v7559_v12, %v7559_v12  ;;  %v4193_v30 = vsel %vm3496_vm12, %v7559_v12, 0.0  ;;  %v7565_v21 = vpop.f32.mrb[14].mxu0 }
 0x262   : > { %4152 = vst.msk [vmem:[%s7417_s11 + $0x38] sm:$0xf] %vm513_vm0, %v4878_v52  ;;  %v4194_v61 = vadd.f32 %v4193_v30, %v4192_v38  ;;  %v4879_v29 = vpack.c.bf16 %v7565_v21, %v7565_v21  ;;  %v7571_v33 = vpop.f32.mrb[15].mxu0  ;;  %v4199_v51 = vsel %vm3496_vm12, %v7565_v21, 0.0 }
 0x263   : > { %4150 = vst.msk [vmem:[%s7417_s11 + $0x30] sm:$0xf] %vm513_vm0, %v4876_v32  ;;  %v4877_v63 = vpack.c.bf16 %v7571_v33, %v7571_v33  ;;  %v4195_v6 = vsel %vm3496_vm12, %v7571_v33, 0.0 }
 0x264   : > { %4153 = vst.msk [vmem:[%s7417_s11 + $0x3c] sm:$0xf] %vm513_vm0, %v4879_v29  ;;  %v4196_v11 = vadd.f32 %v4195_v6, %v4194_v61 }
 0x265   : > { %4151 = vst.msk [vmem:[%s7417_s11 + $0x34] sm:$0xf] %vm513_vm0, %v4877_v63 }
 0x266   : > { %v4198_v5 = vadd.f32 %v4197_v59, %v4196_v11 }
 0x268   : > { %v4200_v25 = vadd.f32 %v4199_v51, %v4198_v5 }
 0x282   : > { %v7587_v22 = vpop.f32.mrb[0].mxu1 }
 0x283   : > { %v4882_v1 = vpack.c.bf16 %v7587_v22, %v7587_v22  ;;  %v7591_v49 = vpop.f32.mrb[1].mxu1  ;;  %v4205_v60 = vsel %vm3496_vm12, %v7587_v22, 0.0 }
 0x284   : > { %v4880_v35 = vpack.c.bf16 %v7591_v49, %v7591_v49  ;;  %v4201_v20 = vsel %vm3496_vm12, %v7591_v49, 0.0  ;;  %v7597_v42 = vpop.f32.mrb[2].mxu1 }
 0x285   : > { %4156 = vst.msk [vmem:[%s7417_s11 + $0x48] sm:$0xf] %vm513_vm0, %v4882_v1  ;;  %v4202_v0 = vadd.f32 %v4201_v20, %v4200_v25  ;;  %v4883_v44 = vpack.c.bf16 %v7597_v42, %v7597_v42  ;;  %v7603_v50 = vpop.f32.mrb[3].mxu1  ;;  %v4207_v2 = vsel %vm3496_vm12, %v7597_v42, 0.0 }
 0x286   : > { %4154 = vst.msk [vmem:[%s7417_s11 + $0x40] sm:$0xf] %vm513_vm0, %v4880_v35  ;;  %v4881_v40 = vpack.c.bf16 %v7603_v50, %v7603_v50  ;;  %v4203_v54 = vsel %vm3496_vm12, %v7603_v50, 0.0 }
 0x287   : > { %4157 = vst.msk [vmem:[%s7417_s11 + $0x4c] sm:$0xf] %vm513_vm0, %v4883_v44  ;;  %v4204_v18 = vadd.f32 %v4203_v54, %v4202_v0 }
 0x288   : > { %4155 = vst.msk [vmem:[%s7417_s11 + $0x44] sm:$0xf] %vm513_vm0, %v4881_v40 }
 0x289   : > { %v4206_v23 = vadd.f32 %v4205_v60, %v4204_v18 }
 0x28b   : > { %v4208_v14 = vadd.f32 %v4207_v2, %v4206_v23 }
 0x298   : > { %v7619_v7 = vpop.f32.mrb[4].mxu1 }
 0x299   : > { %v4886_v58 = vpack.c.bf16 %v7619_v7, %v7619_v7  ;;  %v7623_v17 = vpop.f32.mrb[5].mxu1  ;;  %v4213_v28 = vsel %vm3496_vm12, %v7619_v7, 0.0 }
 0x29a   : > { %v4884_v16 = vpack.c.bf16 %v7623_v17, %v7623_v17  ;;  %v4209_v4 = vsel %vm3496_vm12, %v7623_v17, 0.0  ;;  %v7629_v41 = vpop.f32.mrb[6].mxu1 }
 0x29b   : > { %4160 = vst.msk [vmem:[%s7417_s11 + $0x58] sm:$0xf] %vm513_vm0, %v4886_v58  ;;  %v4210_v46 = vadd.f32 %v4209_v4, %v4208_v14  ;;  %v4887_v24 = vpack.c.bf16 %v7629_v41, %v7629_v41  ;;  %v7635_v55 = vpop.f32.mrb[7].mxu1  ;;  %v4215_v47 = vsel %vm3496_vm12, %v7629_v41, 0.0 }
 0x29c   : > { %4158 = vst.msk [vmem:[%s7417_s11 + $0x50] sm:$0xf] %vm513_vm0, %v4884_v16  ;;  %v4885_v15 = vpack.c.bf16 %v7635_v55, %v7635_v55  ;;  %v4211_v36 = vsel %vm3496_vm12, %v7635_v55, 0.0 }
 0x29d   : > { %4161 = vst.msk [vmem:[%s7417_s11 + $0x5c] sm:$0xf] %vm513_vm0, %v4887_v24  ;;  %v4212_v34 = vadd.f32 %v4211_v36, %v4210_v46 }
 0x29e   : > { %4159 = vst.msk [vmem:[%s7417_s11 + $0x54] sm:$0xf] %vm513_vm0, %v4885_v15 }
 0x29f   : > { %v4214_v39 = vadd.f32 %v4213_v28, %v4212_v34 }
 0x2a1   : > { %v4216_v8 = vadd.f32 %v4215_v47, %v4214_v39 }
 0x2cd   : > { %v7651_v27 = vpop.f32.mrb[8].mxu1 }
 0x2ce   : > { %v4890_v53 = vpack.c.bf16 %v7651_v27, %v7651_v27  ;;  %v7655_v45 = vpop.f32.mrb[9].mxu1  ;;  %v4221_v59 = vsel %vm3496_vm12, %v7651_v27, 0.0 }
 0x2cf   : > { %v4888_v38 = vpack.c.bf16 %v7655_v45, %v7655_v45  ;;  %v4217_v52 = vsel %vm3496_vm12, %v7655_v45, 0.0  ;;  %v7661_v32 = vpop.f32.mrb[10].mxu1 }
 0x2d0   : > { %4164 = vst.msk [vmem:[%s7417_s11 + $0x68] sm:$0xf] %vm513_vm0, %v4890_v53  ;;  %v4218_v30 = vadd.f32 %v4217_v52, %v4216_v8  ;;  %v4891_v61 = vpack.c.bf16 %v7661_v32, %v7661_v32  ;;  %v7667_v29 = vpop.f32.mrb[11].mxu1  ;;  %v4223_v51 = vsel %vm3496_vm12, %v7661_v32, 0.0 }
 0x2d1   : > { %4162 = vst.msk [vmem:[%s7417_s11 + $0x60] sm:$0xf] %vm513_vm0, %v4888_v38  ;;  %v4889_v63 = vpack.c.bf16 %v7667_v29, %v7667_v29  ;;  %v4219_v6 = vsel %vm3496_vm12, %v7667_v29, 0.0 }
 0x2d2   : > { %4165 = vst.msk [vmem:[%s7417_s11 + $0x6c] sm:$0xf] %vm513_vm0, %v4891_v61  ;;  %v4220_v11 = vadd.f32 %v4219_v6, %v4218_v30 }
 0x2d3   : > { %4163 = vst.msk [vmem:[%s7417_s11 + $0x64] sm:$0xf] %vm513_vm0, %v4889_v63 }
 0x2d4   : > { %v4222_v5 = vadd.f32 %v4221_v59, %v4220_v11 }
 0x2d6   : > { %v4224_v25 = vadd.f32 %v4223_v51, %v4222_v5 }
 0x306   : > { %v5036_v1 = vpop.f32.mrb[12].mxu1 }
 0x307   : > { %v4894_v35 = vpack.c.bf16 %v5036_v1, %v5036_v1  ;;  %v3995_v20 = vpop.f32.mrb[13].mxu1  ;;  %v4229_v58 = vsel %vm3496_vm12, %v5036_v1, 0.0 }
 0x308   : > { %v4892_v0 = vpack.c.bf16 %v3995_v20, %v3995_v20  ;;  %v4225_v44 = vsel %vm3496_vm12, %v3995_v20, 0.0  ;;  %v5037_v40 = vpop.f32.mrb[14].mxu1 }
 0x309   : > { %4168 = vst.msk [vmem:[%s7417_s11 + $0x78] sm:$0xf] %vm513_vm0, %v4894_v35  ;;  %v4226_v54 = vadd.f32 %v4225_v44, %v4224_v25  ;;  %v4895_v18 = vpack.c.bf16 %v5037_v40, %v5037_v40  ;;  %v3998_v60 = vpop.f32.mrb[15].mxu1  ;;  %v4231_v4 = vsel %vm3496_vm12, %v5037_v40, 0.0 }
 0x30a   : > { %4166 = vst.msk [vmem:[%s7417_s11 + $0x70] sm:$0xf] %vm513_vm0, %v4892_v0  ;;  %v4893_v23 = vpack.c.bf16 %v3998_v60, %v3998_v60  ;;  %v4227_v2 = vsel %vm3496_vm12, %v3998_v60, 0.0 }
 0x30b   : > { %4169 = vst.msk [vmem:[%s7417_s11 + $0x7c] sm:$0xf] %vm513_vm0, %v4895_v18  ;;  %v4228_v14 = vadd.f32 %v4227_v2, %v4226_v54 }
 0x30c   : > { %4167 = vst.msk [vmem:[%s7417_s11 + $0x74] sm:$0xf] %vm513_vm0, %v4893_v23 }
 0x30d   : > { %v4230_v16 = vadd.f32 %v4229_v58, %v4228_v14 }
 0x30f   : > { %v4232_v46 = vadd.f32 %v4231_v4, %v4230_v16 }
 0x311   : > { %v4233_v24 = vrot.slane %v4232_v46, 4 }
 0x313   : > { %v4234_v15 = vadd.f32 %v4233_v24, %v4232_v46 }
 0x315   : > { %v4235_v36 = vrot.slane %v4234_v15, 2 }
 0x317   : > { %v4236_v34 = vadd.f32 %v4235_v36, %v4234_v15 }
 0x319   : > { %v4237_v28 = vrot.slane %v4236_v34, 1 }
 0x31b   : > { %v4238_v39 = vadd.f32 %v4237_v28, %v4236_v34 }
 0x31d   : > { %v4239_v47 = vmul.f32 0.00390625, %v4238_v39 }
 0x31f   : > { %v4240_v8 = vsub.f32 %v7423_v3, %v4239_v47  ;;  %v4241_v53 = vsub.f32 %v7433_v19, %v4239_v47  ;;  %v4242_v38 = vsub.f32 %v7419_v10, %v4239_v47  ;;  %v4243_v52 = vsub.f32 %v7427_v13, %v4239_v47  ;;  %4273 = vst.msk [vmem:[%s315_s13] sm:$0x1] %vm517_vm1, %v4239_v47 }
 0x320   : > { %v4244_v30 = vsub.f32 %v7474_v48, %v4239_v47  ;;  %v4245_v61 = vsub.f32 %v7487_v57, %v4239_v47  ;;  %v4246_v63 = vsub.f32 %v7469_v9, %v4239_v47  ;;  %v4247_v6 = vsub.f32 %v7481_v37, %v4239_v47 }
 0x321   : > { %v4248_v11 = vsub.f32 %v7525_v56, %v4239_v47  ;;  %v4249_v3 = vsub.f32 %v7539_v62, %v4239_v47  ;;  %v4250_v19 = vsub.f32 %v7520_v43, %v4239_v47  ;;  %v4251_v10 = vsub.f32 %v7532_v31, %v4239_v47 }
 0x322   : > { %v4252_v13 = vsub.f32 %v7559_v12, %v4239_v47  ;;  %v4253_v59 = vsub.f32 %v7571_v33, %v4239_v47  ;;  %v4254_v48 = vsub.f32 %v7555_v26, %v4239_v47  ;;  %v4255_v57 = vsub.f32 %v7565_v21, %v4239_v47 }
 0x323   : > { %v4256_v9 = vsub.f32 %v7591_v49, %v4239_v47  ;;  %v4257_v37 = vsub.f32 %v7603_v50, %v4239_v47  ;;  %v7719_v56 = vsub.f32 %v7587_v22, %v4239_v47  ;;  %v7722_v62 = vsub.f32 %v7597_v42, %v4239_v47 }
 0x324   : > { %v7725_v43 = vsub.f32 %v7623_v17, %v4239_v47  ;;  %v7728_v31 = vsub.f32 %v7635_v55, %v4239_v47  ;;  %v7731_v26 = vsub.f32 %v7619_v7, %v4239_v47  ;;  %v7734_v12 = vsub.f32 %v7629_v41, %v4239_v47 }
 0x325   : > { %v7737_v21 = vsub.f32 %v7655_v45, %v4239_v47  ;;  %v7740_v33 = vsub.f32 %v7667_v29, %v4239_v47  ;;  %v7743_v22 = vsub.f32 %v7651_v27, %v4239_v47  ;;  %v7746_v49 = vsub.f32 %v7661_v32, %v4239_v47 }
 0x326   : > { %v7748_v42 = vsub.f32 %v3995_v20, %v4239_v47  ;;  %v7750_v50 = vsub.f32 %v3998_v60, %v4239_v47  ;;  %v7752_v7 = vsub.f32 %v5036_v1, %v4239_v47  ;;  %v7754_v17 = vsub.f32 %v5037_v40, %v4239_v47 }
 0x327   : > { %v4274_v41 = vmul.f32 %v4240_v8, %v4240_v8  ;;  %v4275_v55 = vmul.f32 %v4241_v53, %v4241_v53  ;;  %v4276_v45 = vmul.f32 %v4242_v38, %v4242_v38  ;;  %v4277_v5 = vmul.f32 %v4243_v52, %v4243_v52 }
 0x328   : > { %v4278_v25 = vmul.f32 %v4244_v30, %v4244_v30  ;;  %v4279_v20 = vmul.f32 %v4245_v61, %v4245_v61  ;;  %v4280_v44 = vmul.f32 %v4246_v63, %v4246_v63  ;;  %v4281_v18 = vmul.f32 %v4247_v6, %v4247_v6 }
 0x329   : > { %v4306_v29 = vsel %vm3496_vm12, %v4274_v41, 0.0  ;;  %v4307_v27 = vsel %vm3496_vm12, %v4275_v55, 0.0  ;;  %v4309_v32 = vsel %vm3496_vm12, %v4276_v45, 0.0  ;;  %v4311_v0 = vsel %vm3496_vm12, %v4277_v5, 0.0 }
 0x32a   : > { %v4308_v51 = vadd.f32 %v4307_v27, %v4306_v29  ;;  %v4313_v40 = vsel %vm3496_vm12, %v4278_v25, 0.0  ;;  %v4315_v60 = vsel %vm3496_vm12, %v4279_v20, 0.0  ;;  %v4282_v2 = vmul.f32 %v4248_v11, %v4248_v11 }
 0x32b   : > { %v4317_v14 = vsel %vm3496_vm12, %v4280_v44, 0.0  ;;  %v4283_v16 = vmul.f32 %v4249_v3, %v4249_v3  ;;  %v4319_v4 = vsel %vm3496_vm12, %v4281_v18, 0.0  ;;  %v4284_v24 = vmul.f32 %v4250_v19, %v4250_v19 }
 0x32c   : > { %v4310_v35 = vadd.f32 %v4309_v32, %v4308_v51  ;;  %v4321_v15 = vsel %vm3496_vm12, %v4282_v2, 0.0  ;;  %v4285_v34 = vmul.f32 %v4251_v10, %v4251_v10  ;;  %v4286_v47 = vmul.f32 %v4252_v13, %v4252_v13 }
 0x32d   : > { %v4323_v28 = vsel %vm3496_vm12, %v4283_v16, 0.0  ;;  %v4325_v8 = vsel %vm3496_vm12, %v4284_v24, 0.0  ;;  %v4287_v38 = vmul.f32 %v4253_v59, %v4253_v59  ;;  %v4288_v61 = vmul.f32 %v4254_v48, %v4254_v48 }
 0x32e   : > { %v4312_v1 = vadd.f32 %v4311_v0, %v4310_v35  ;;  %v4327_v52 = vsel %vm3496_vm12, %v4285_v34, 0.0  ;;  %v4329_v63 = vsel %vm3496_vm12, %v4286_v47, 0.0  ;;  %v4289_v11 = vmul.f32 %v4255_v57, %v4255_v57 }
 0x32f   : > { %v4331_v3 = vsel %vm3496_vm12, %v4287_v38, 0.0  ;;  %v4290_v10 = vmul.f32 %v4256_v9, %v4256_v9  ;;  %v4333_v41 = vsel %vm3496_vm12, %v4288_v61, 0.0  ;;  %v4291_v13 = vmul.f32 %v4257_v37, %v4257_v37 }
 0x330   : > { %v4314_v54 = vadd.f32 %v4313_v40, %v4312_v1  ;;  %v4335_v45 = vsel %vm3496_vm12, %v4289_v11, 0.0  ;;  %v4292_v59 = vmul.f32 %v7719_v56, %v7719_v56  ;;  %v4293_v57 = vmul.f32 %v7722_v62, %v7722_v62 }
 0x331   : > { %v4337_v48 = vsel %vm3496_vm12, %v4290_v10, 0.0  ;;  %v4339_v27 = vsel %vm3496_vm12, %v4291_v13, 0.0  ;;  %v4294_v9 = vmul.f32 %v7725_v43, %v7725_v43  ;;  %v4295_v32 = vmul.f32 %v7728_v31, %v7728_v31 }
 0x332   : > { %v4316_v23 = vadd.f32 %v4315_v60, %v4314_v54  ;;  %v4341_v37 = vsel %vm3496_vm12, %v4292_v59, 0.0  ;;  %v4343_v56 = vsel %vm3496_vm12, %v4293_v57, 0.0  ;;  %v4296_v20 = vmul.f32 %v7731_v26, %v7731_v26 }
 0x333   : > { %v4345_v62 = vsel %vm3496_vm12, %v4294_v9, 0.0  ;;  %v4297_v1 = vmul.f32 %v7734_v12, %v7734_v12  ;;  %v4347_v43 = vsel %vm3496_vm12, %v4295_v32, 0.0  ;;  %v4298_v40 = vmul.f32 %v7737_v21, %v7737_v21 }
 0x334   : > { %v4318_v58 = vadd.f32 %v4317_v14, %v4316_v23  ;;  %v4349_v31 = vsel %vm3496_vm12, %v4296_v20, 0.0  ;;  %v4299_v18 = vmul.f32 %v7740_v33, %v7740_v33  ;;  %v4300_v23 = vmul.f32 %v7743_v22, %v7743_v22 }
 0x335   : > { %v4351_v26 = vsel %vm3496_vm12, %v4297_v1, 0.0  ;;  %v4353_v12 = vsel %vm3496_vm12, %v4298_v40, 0.0  ;;  %v4301_v14 = vmul.f32 %v7746_v49, %v7746_v49  ;;  %v4302_v16 = vmul.f32 %v7748_v42, %v7748_v42 }
 0x336   : > { %v4320_v46 = vadd.f32 %v4319_v4, %v4318_v58  ;;  %v4355_v21 = vsel %vm3496_vm12, %v4299_v18, 0.0  ;;  %v4357_v33 = vsel %vm3496_vm12, %v4300_v23, 0.0  ;;  %v4305_v34 = vmul.f32 %v7754_v17, %v7754_v17 }
 0x337   : > { %v4359_v22 = vsel %vm3496_vm12, %v4301_v14, 0.0  ;;  %v4361_v49 = vsel %vm3496_vm12, %v4302_v16, 0.0 }
 0x338   : > { %v4322_v36 = vadd.f32 %v4321_v15, %v4320_v46  ;;  %v4303_v46 = vmul.f32 %v7750_v50, %v7750_v50  ;;  %v4304_v15 = vmul.f32 %v7752_v7, %v7752_v7  ;;  %v4367_v50 = vsel %vm3496_vm12, %v4305_v34, 0.0 }
 0x33a   : > { %v4324_v39 = vadd.f32 %v4323_v28, %v4322_v36  ;;  %v4363_v42 = vsel %vm3496_vm12, %v4303_v46, 0.0 }
 0x33c   : > { %v4326_v53 = vadd.f32 %v4325_v8, %v4324_v39  ;;  %v4365_v39 = vsel %vm3496_vm12, %v4304_v15, 0.0 }
 0x33e   : > { %v4328_v30 = vadd.f32 %v4327_v52, %v4326_v53 }
 0x340   : > { %v4330_v6 = vadd.f32 %v4329_v63, %v4328_v30 }
 0x342   : > { %v4332_v19 = vadd.f32 %v4331_v3, %v4330_v6 }
 0x344   : > { %v4334_v55 = vadd.f32 %v4333_v41, %v4332_v19 }
 0x346   : > { %v4336_v5 = vadd.f32 %v4335_v45, %v4334_v55 }
 0x348   : > { %v4338_v29 = vadd.f32 %v4337_v48, %v4336_v5 }
 0x34a   : > { %v4340_v51 = vadd.f32 %v4339_v27, %v4338_v29 }
 0x34c   : > { %v4342_v25 = vadd.f32 %v4341_v37, %v4340_v51 }
 0x34e   : > { %v4344_v35 = vadd.f32 %v4343_v56, %v4342_v25 }
 0x350   : > { %v4346_v0 = vadd.f32 %v4345_v62, %v4344_v35 }
 0x352   : > { %v4348_v44 = vadd.f32 %v4347_v43, %v4346_v0 }
 0x354   : > { %v4350_v54 = vadd.f32 %v4349_v31, %v4348_v44 }
 0x356   : > { %v4352_v60 = vadd.f32 %v4351_v26, %v4350_v54 }
 0x358   : > { %v4354_v2 = vadd.f32 %v4353_v12, %v4352_v60 }
 0x35a   : > { %v4356_v58 = vadd.f32 %v4355_v21, %v4354_v2 }
 0x35c   : > { %v4358_v4 = vadd.f32 %v4357_v33, %v4356_v58 }
 0x35e   : > { %v4360_v24 = vadd.f32 %v4359_v22, %v4358_v4 }
 0x360   : > { %v4362_v36 = vadd.f32 %v4361_v49, %v4360_v24 }
 0x362   : > { %v4364_v28 = vadd.f32 %v4363_v42, %v4362_v36 }
 0x364   : > { %v4366_v47 = vadd.f32 %v4365_v39, %v4364_v28 }
 0x366   : > { %v4368_v8 = vadd.f32 %v4367_v50, %v4366_v47 }
 0x368   : > { %v4369_v53 = vrot.slane %v4368_v8, 4 }
 0x36a   : > { %v4370_v38 = vadd.f32 %v4369_v53, %v4368_v8 }
 0x36c   : > { %v4371_v52 = vrot.slane %v4370_v38, 2 }
 0x36e   : > { %v4372_v30 = vadd.f32 %v4371_v52, %v4370_v38 }
 0x370   : > { %v4373_v7 = vrot.slane %v4372_v30, 1 }
 0x372   : > { %v4374_v61 = vadd.f32 %v4373_v7, %v4372_v30 }
 0x374   : > { %4375 = vst.msk [vmem:[%s321_s16] sm:$0x1] %vm517_vm1, %v4374_v61 }
 0x375 PF: > { %s17_s23 = sadd.s32 1, %s5157_s23   ;;  %s7993_s21 = smov %s5153_s22 }
 0x376   : > { %p14_p5 = scmp.ge.s32.totalorder %s17_s23, 4   ;;  %s7994_s22 = smov %s7996_s24 }
 0x378   :  { %16 = sbr.rel (!%p14_p5) target bundleno = 2 (0x2), region = 96 }

</bundles_post_ra>
